<compile_context>
chip_gen: v7x
topology: tpu7x:2x2x1
jax: 0.10.0
libtpu: 0.0.40
codegen_flags: <defaults>
</compile_context>

<pallas_src>
import jax
import jax.numpy as jnp
from jax.experimental import pallas as pl
from jax.experimental.pallas import tpu as pltpu


# ----------------------------- layout geometry ------------------------------

def _geom(H, W):
    """Flattened padded-image geometry for a 3x3 / pad=1 conv."""
    Wp = W + 2                       # padded width
    Mp = (H + 2) * Wp                # flattened padded image length
    Mo = H * Wp - 2                  # output-grid length (cols >= W are garbage)
    L = (-(W + 3)) % 16              # leading zero rows so the interior store
    #                                  of the next-layer buffer starts 16-aligned
    Mtot = L + Mp                    # conv1-output / conv2-input buffer length
    return Wp, Mp, Mo, L, Mtot


# ------------------------------ Pallas kernels -------------------------------

def _make_conv1_kernel(H, W):
    """Fused (concat([x2, x1_up], C) -> 3x3 conv) + per-step BN stats.

    Inputs are the zero-padded, flattened skip (x2) and upsampled (x1) tensors.
    The output is written directly in conv2's padded-flat layout (zero borders,
    interior at a 16-aligned offset)."""
    Wp, Mp, Mo, L, Mtot = _geom(H, W)
    START = L + W + 3                          # interior offset in the out buffer
    inv_cnt = 1.0 / float(H * W)

    def kernel(x2_ref, x1_ref, w_skip_ref, w_up_ref, cmask_ref,
               y_ref, sum_ref, ssd_ref):
        mid = w_skip_ref.shape[-1]
        acc = jnp.zeros((Mo, mid), jnp.float32)
        # 3x3 conv = 9 row-shifted slices of the flat padded image, each fed to
        # the MXU with f32 accumulation.  No reshapes -> no relayout copies.
        for dy in range(3):
            for dx in range(3):
                k = dy * 3 + dx
                off = dy * Wp + dx
                p2 = x2_ref[0, pl.ds(off, Mo), :]          # (Mo, C2) bf16
                p1 = x1_ref[0, pl.ds(off, Mo), :]          # (Mo, C1) bf16
                acc = acc + jnp.dot(p2, w_skip_ref[k],
                                    preferred_element_type=jnp.float32)
                acc = acc + jnp.dot(p1, w_up_ref[k],
                                    preferred_element_type=jnp.float32)

        cmask = cmask_ref[...]                             # (Mo, 1) f32
        acc = acc * cmask                                  # zero garbage columns

        # Per-grid-step BatchNorm partials (numerically stable: per-block mean
        # + centered sum of squares; combined outside with Chan's formula).
        s = jnp.sum(acc, axis=0, keepdims=True)            # (1, mid)
        m = s * inv_cnt
        d = (acc - m) * cmask
        sum_ref[0] = s
        ssd_ref[0] = jnp.sum(d * d, axis=0, keepdims=True)

        # Store in conv2's padded-flat input layout: zero the whole block once
        # (covers all border rows), then overwrite the interior (aligned start).
        y_ref[0] = jnp.zeros((Mtot, mid), y_ref.dtype)
        y_ref[0, pl.ds(START, Mo), :] = acc.astype(y_ref.dtype)

    return kernel


def _make_conv2_kernel(H, W):
    """Fused (BN1 -> ReLU -> 3x3 conv) + per-step BN stats.

    BN1 scale/shift are applied on the fly to conv1's padded-flat output; the
    border mask re-zeroes the conv padding (relu(0*s + t) would otherwise be
    non-zero)."""
    Wp, Mp, Mo, L, Mtot = _geom(H, W)
    inv_cnt = 1.0 / float(H * W)

    def kernel(x_ref, sc_ref, sh_ref, w_ref, cmask_ref, bmask_ref,
               y_ref, sum_ref, ssd_ref, a_scr):
        cout = w_ref.shape[-1]
        # BN1 + ReLU + border re-zeroing, computed once into a VMEM scratch.
        x = x_ref[0].astype(jnp.float32)                   # (Mtot, mid)
        a = jnp.maximum(x * sc_ref[...] + sh_ref[...], 0.0) * bmask_ref[...]
        a_scr[...] = a.astype(a_scr.dtype)

        acc = jnp.zeros((Mo, cout), jnp.float32)
        for dy in range(3):
            for dx in range(3):
                k = dy * 3 + dx
                off = L + dy * Wp + dx
                acc = acc + jnp.dot(a_scr[pl.ds(off, Mo), :], w_ref[k],
                                    preferred_element_type=jnp.float32)

        cmask = cmask_ref[...]
        acc = acc * cmask
        s = jnp.sum(acc, axis=0, keepdims=True)
        m = s * inv_cnt
        d = (acc - m) * cmask
        sum_ref[0] = s
        ssd_ref[0] = jnp.sum(d * d, axis=0, keepdims=True)
        y_ref[0] = acc                                     # (Mo, cout) f32

    return kernel


# ------------------------------ pallas wrappers ------------------------------

def conv1_call(x2f, x1f, w_skip, w_up, cmask, H, W, compute_dtype):
    N, Mp_in, C2 = x2f.shape
    C1 = x1f.shape[-1]
    mid = w_skip.shape[-1]
    Wp, Mp, Mo, L, Mtot = _geom(H, W)
    assert Mp_in == Mp

    y, s, ssd = pl.pallas_call(
        _make_conv1_kernel(H, W),
        out_shape=(
            jax.ShapeDtypeStruct((N, Mtot, mid), compute_dtype),
            jax.ShapeDtypeStruct((N, 1, mid), jnp.float32),
            jax.ShapeDtypeStruct((N, 1, mid), jnp.float32),
        ),
        grid=(N,),
        in_specs=[
            pl.BlockSpec((1, Mp, C2), lambda n: (n, 0, 0)),
            pl.BlockSpec((1, Mp, C1), lambda n: (n, 0, 0)),
            pl.BlockSpec((9, C2, mid), lambda n: (0, 0, 0)),
            pl.BlockSpec((9, C1, mid), lambda n: (0, 0, 0)),
            pl.BlockSpec((Mo, 1), lambda n: (0, 0)),
        ],
        out_specs=(
            pl.BlockSpec((1, Mtot, mid), lambda n: (n, 0, 0)),
            pl.BlockSpec((1, 1, mid), lambda n: (n, 0, 0)),
            pl.BlockSpec((1, 1, mid), lambda n: (n, 0, 0)),
        ),
        compiler_params=pltpu.CompilerParams(
            dimension_semantics=("parallel",),       # per-step partial stats
            vmem_limit_bytes=32 * 1024 * 1024),
    )(x2f, x1f, w_skip, w_up, cmask)
    return y, s[:, 0, :], ssd[:, 0, :]


def conv2_call(y1, scale1, shift1, w2, cmask, bmask, H, W, compute_dtype):
    N, Mtot_in, mid = y1.shape
    cout = w2.shape[-1]
    Wp, Mp, Mo, L, Mtot = _geom(H, W)
    assert Mtot_in == Mtot

    y, s, ssd = pl.pallas_call(
        _make_conv2_kernel(H, W),
        out_shape=(
            jax.ShapeDtypeStruct((N, Mo, cout), jnp.float32),
            jax.ShapeDtypeStruct((N, 1, cout), jnp.float32),
            jax.ShapeDtypeStruct((N, 1, cout), jnp.float32),
        ),
        grid=(N,),
        in_specs=[
            pl.BlockSpec((1, Mtot, mid), lambda n: (n, 0, 0)),
            pl.BlockSpec((1, mid), lambda n: (0, 0)),
            pl.BlockSpec((1, mid), lambda n: (0, 0)),
            pl.BlockSpec((9, mid, cout), lambda n: (0, 0, 0)),
            pl.BlockSpec((Mo, 1), lambda n: (0, 0)),
            pl.BlockSpec((Mtot, 1), lambda n: (0, 0)),
        ],
        out_specs=(
            pl.BlockSpec((1, Mo, cout), lambda n: (n, 0, 0)),
            pl.BlockSpec((1, 1, cout), lambda n: (n, 0, 0)),
            pl.BlockSpec((1, 1, cout), lambda n: (n, 0, 0)),
        ),
        scratch_shapes=[pltpu.VMEM((Mtot, mid), compute_dtype)],
        compiler_params=pltpu.CompilerParams(
            dimension_semantics=("parallel",),
            vmem_limit_bytes=32 * 1024 * 1024),
    )(y1, scale1, shift1, w2, cmask, bmask)
    return y, s[:, 0, :], ssd[:, 0, :]


# --------------------------------- JAX glue ----------------------------------

def _bn_scale_shift(sums, ssds, count_per_step, gamma, beta, eps=1e-5):
    """Combine per-grid-step (sum, centered sum-of-squares) partials into
    train-mode (biased-variance) BatchNorm scale/shift via Chan's formula."""
    n = sums.shape[0] * count_per_step
    mean = jnp.sum(sums, axis=0) / n
    mu_k = sums / count_per_step
    m2 = jnp.sum(ssds, axis=0) + count_per_step * jnp.sum((mu_k - mean) ** 2, axis=0)
    var = m2 / n                                   # biased, as PyTorch BN uses
    scale = gamma / jnp.sqrt(var + eps)
    shift = beta - mean * scale
    return scale, shift


def bilinear_upsample_2x_align_corners(x):
    """nn.Upsample(scale_factor=2, mode='bilinear', align_corners=True), NHWC."""
    # TODO(synk): could be fused into conv1's input path to avoid this HBM
    # intermediate; kept as JAX glue for now.
    N, H, W, C = x.shape
    Ho, Wo = 2 * H, 2 * W
    ys = (jnp.arange(Ho, dtype=jnp.float32) * (H - 1) / (Ho - 1)) if H > 1 else jnp.zeros((Ho,), jnp.float32)
    xs = (jnp.arange(Wo, dtype=jnp.float32) * (W - 1) / (Wo - 1)) if W > 1 else jnp.zeros((Wo,), jnp.float32)
    y0 = jnp.floor(ys).astype(jnp.int32)
    y1 = jnp.minimum(y0 + 1, H - 1)
    wy = (ys - y0.astype(jnp.float32))[None, :, None, None]
    x0 = jnp.floor(xs).astype(jnp.int32)
    x1 = jnp.minimum(x0 + 1, W - 1)
    wx = (xs - x0.astype(jnp.float32))[None, None, :, None]
    row = x[:, y0, :, :] * (1.0 - wy) + x[:, y1, :, :] * wy
    return row[:, :, x0, :] * (1.0 - wx) + row[:, :, x1, :] * wx


def up_forward(x1_nchw, x2_nchw, params, eps=1e-5, compute_dtype=jnp.bfloat16):
    """Forward of Up(bilinear=True). Inputs / output are NCHW like PyTorch."""
    f32 = jnp.float32
    x1 = jnp.transpose(x1_nchw, (0, 2, 3, 1)).astype(f32)   # -> NHWC
    x2 = jnp.transpose(x2_nchw, (0, 2, 3, 1)).astype(f32)

    x1u = bilinear_upsample_2x_align_corners(x1)
    # Pad x1 to x2's spatial size (torch F.pad) and add the 1-px conv halo in
    # the same jnp.pad so XLA fuses it with the upsample (no extra HBM pass).
    dX = x2.shape[1] - x1u.shape[1]      # height diff (torch dim 2)
    dY = x2.shape[2] - x1u.shape[2]      # width  diff (torch dim 3)
    x1p = jnp.pad(x1u, ((0, 0),
                        (1 + dX // 2, 1 + dX - dX // 2),
                        (1 + dY // 2, 1 + dY - dY // 2),
                        (0, 0)))
    x2p = jnp.pad(x2, ((0, 0), (1, 1), (1, 1), (0, 0)))

    N, Hpad, Wpad, C2 = x2p.shape
    H, W = Hpad - 2, Wpad - 2
    C1 = x1p.shape[-1]
    Wp, Mp, Mo, L, Mtot = _geom(H, W)

    # Flat, channels-last, halo included; bf16 at the pallas boundary.
    x2f = x2p.reshape(N, Mp, C2).astype(compute_dtype)
    x1f = x1p.reshape(N, Mp, C1).astype(compute_dtype)

    # Weight split for the fused concat([x2, x1], C) -> conv1 (torch.cat puts
    # x2's channels first).  Conv biases are omitted: they cancel exactly in
    # the train-mode BatchNorm that follows each conv.
    w1 = params["w1"]                                   # (3, 3, C2 + C1, mid)
    mid = w1.shape[-1]
    w1 = w1.reshape(9, C2 + C1, mid)
    w_skip = w1[:, :C2, :].astype(compute_dtype)
    w_up = w1[:, C2:, :].astype(compute_dtype)
    w2 = params["w2"].reshape(9, mid, -1).astype(compute_dtype)
    cout = w2.shape[-1]

    # Tiny constant masks.
    o = jnp.arange(Mo)
    cmask = (o % Wp < W).astype(f32).reshape(Mo, 1)     # valid-column mask
    p = jnp.arange(Mtot) - L
    yp, xp = p // Wp, p % Wp
    bmask = ((p >= 0) & (yp >= 1) & (yp <= H) & (xp >= 1) & (xp <= W))
    bmask = bmask.astype(f32).reshape(Mtot, 1)          # interior (non-border) mask

    cnt = float(H * W)

    # conv1: fused concat + 3x3 conv; output already in conv2's padded layout.
    y1, s1, d1 = conv1_call(x2f, x1f, w_skip, w_up, cmask, H, W, compute_dtype)
    scale1, shift1 = _bn_scale_shift(s1, d1, cnt, params["g1"], params["be1"], eps)

    # conv2: fused BN1 + ReLU + 3x3 conv.
    y2, s2, d2 = conv2_call(y1,
                            scale1.reshape(1, mid).astype(f32),
                            shift1.reshape(1, mid).astype(f32),
                            w2, cmask, bmask, H, W, compute_dtype)
    scale2, shift2 = _bn_scale_shift(s2, d2, cnt, params["g2"], params["be2"], eps)

    # BN2 + ReLU + strip garbage columns + NHWC->NCHW, fused by XLA into the
    # mandatory output layout change (one read of y2, one write of the result).
    y2 = jnp.pad(y2, ((0, 0), (0, 2), (0, 0))).reshape(N, H, Wp, cout)[:, :, :W, :]
    out = jnp.maximum(y2 * scale2.reshape(1, 1, 1, cout)
                      + shift2.reshape(1, 1, 1, cout), 0.0)
    return jnp.transpose(out, (0, 3, 1, 2))


# ------------------------------ parameter init -------------------------------

def init_params(in_channels, out_channels, key):
    mid = in_channels // 2        # bilinear=True branch of Up
    def conv_w(k, cin, cout_):
        bound = 1.0 / jnp.sqrt(jnp.float32(cin * 9))
        return jax.random.uniform(k, (3, 3, cin, cout_), jnp.float32, -bound, bound)
    k1, k2 = jax.random.split(key)
    return dict(
        # Conv biases intentionally not created: with train-mode BN right after
        # each conv a per-channel bias cancels exactly in (x - mean).
        w1=conv_w(k1, in_channels, mid),
        g1=jnp.ones((mid,), jnp.float32), be1=jnp.zeros((mid,), jnp.float32),
        w2=conv_w(k2, mid, out_channels),
        g2=jnp.ones((out_channels,), jnp.float32),
        be2=jnp.zeros((out_channels,), jnp.float32),
    )


if __name__ == "__main__":
    key = jax.random.PRNGKey(0)
    k1, k2, kp = jax.random.split(key, 3)

    in_channels, out_channels = 16, 16
    # UNet decoder convention: x1 (deeper, half spatial) and the skip x2 each
    # carry in_channels // 2 channels; their concat has in_channels channels.
    x1 = jax.random.normal(k1, (2, in_channels // 2, 8, 8), jnp.float32)
    x2 = jax.random.normal(k2, (2, in_channels // 2, 16, 16), jnp.float32)

    params = init_params(in_channels, out_channels, kp)
    out = jax.jit(up_forward)(x1, x2, params)
    jax.block_until_ready(out)
    assert out.shape == (2, out_channels, 16, 16), out.shape
    assert bool(jnp.all(jnp.isfinite(out)))
    print("KERNEL_OK")
</pallas_src>

<mosaic_0001>
module attributes {stable_mosaic.version = 11 : i64} {
  func.func @kernel(%arg0: i32, %arg1: memref<1x324x8xbf16, #tpu.memory_space<vmem>>, %arg2: memref<1x324x8xbf16, #tpu.memory_space<vmem>>, %arg3: memref<9x8x8xbf16, #tpu.memory_space<vmem>>, %arg4: memref<9x8x8xbf16, #tpu.memory_space<vmem>>, %arg5: memref<286x1xf32, #tpu.memory_space<vmem>>, %arg6: memref<1x337x8xbf16, #tpu.memory_space<vmem>>, %arg7: memref<1x1x8xf32, #tpu.memory_space<vmem>>, %arg8: memref<1x1x8xf32, #tpu.memory_space<vmem>>) attributes {dimension_semantics = [#tpu.dimension_semantics<parallel>], iteration_bounds = array<i64: 2>, scalar_prefetch = 0 : i64, scratch_operands = 0 : i64, tpu.core_type = #tpu.core_type<tc>, window_params = [{transform_indices = @transform_0, window_bounds = array<i64: 1, 324, 8>}, {transform_indices = @transform_1, window_bounds = array<i64: 1, 324, 8>}, {pipeline_mode = #tpu.pipeline_mode<synchronous>, transform_indices = @transform_2, window_bounds = array<i64: 9, 8, 8>}, {pipeline_mode = #tpu.pipeline_mode<synchronous>, transform_indices = @transform_3, window_bounds = array<i64: 9, 8, 8>}, {pipeline_mode = #tpu.pipeline_mode<synchronous>, transform_indices = @transform_4, window_bounds = array<i64: 286, 1>}, {transform_indices = @transform_5, window_bounds = array<i64: 1, 337, 8>}, {transform_indices = @transform_6, window_bounds = array<i64: 1, 1, 8>}, {transform_indices = @transform_7, window_bounds = array<i64: 1, 1, 8>}]} {
    %cst = arith.constant 0.000000e+00 : f32
    %0 = vector.broadcast %cst : f32 to vector<286x8xf32>
    %c0 = arith.constant 0 : index
    %c0_0 = arith.constant 0 : index
    %c0_1 = arith.constant 0 : index
    %1 = vector.load %arg1[%c0, %c0_0, %c0_1] : memref<1x324x8xbf16, #tpu.memory_space<vmem>>, vector<1x286x8xbf16>
    %2 = vector.shape_cast %1 : vector<1x286x8xbf16> to vector<286x8xbf16>
    %c0_2 = arith.constant 0 : index
    %c0_3 = arith.constant 0 : index
    %c0_4 = arith.constant 0 : index
    %3 = vector.load %arg2[%c0_2, %c0_3, %c0_4] : memref<1x324x8xbf16, #tpu.memory_space<vmem>>, vector<1x286x8xbf16>
    %4 = vector.shape_cast %3 : vector<1x286x8xbf16> to vector<286x8xbf16>
    %c0_5 = arith.constant 0 : index
    %c0_6 = arith.constant 0 : index
    %c0_7 = arith.constant 0 : index
    %5 = vector.load %arg3[%c0_5, %c0_6, %c0_7] : memref<9x8x8xbf16, #tpu.memory_space<vmem>>, vector<1x8x8xbf16>
    %6 = vector.shape_cast %5 : vector<1x8x8xbf16> to vector<8x8xbf16>
    %cst_8 = arith.constant dense<0.000000e+00> : vector<286x8xf32>
    %7 = tpu.matmul %2, %6, %cst_8 {dimension_numbers = #tpu.dot_dimension_numbers<[1], [0], [0], [1], [0, 0, 1, 1], [], []>} : vector<286x8xbf16>, vector<8x8xbf16>, vector<286x8xf32> -> vector<286x8xf32>
    %8 = arith.addf %0, %7 : vector<286x8xf32>
    %c0_9 = arith.constant 0 : index
    %c0_10 = arith.constant 0 : index
    %c0_11 = arith.constant 0 : index
    %9 = vector.load %arg4[%c0_9, %c0_10, %c0_11] : memref<9x8x8xbf16, #tpu.memory_space<vmem>>, vector<1x8x8xbf16>
    %10 = vector.shape_cast %9 : vector<1x8x8xbf16> to vector<8x8xbf16>
    %cst_12 = arith.constant dense<0.000000e+00> : vector<286x8xf32>
    %11 = tpu.matmul %4, %10, %cst_12 {dimension_numbers = #tpu.dot_dimension_numbers<[1], [0], [0], [1], [0, 0, 1, 1], [], []>} : vector<286x8xbf16>, vector<8x8xbf16>, vector<286x8xf32> -> vector<286x8xf32>
    %12 = arith.addf %8, %11 : vector<286x8xf32>
    %c0_13 = arith.constant 0 : index
    %c1 = arith.constant 1 : index
    %c0_14 = arith.constant 0 : index
    %13 = vector.load %arg1[%c0_13, %c1, %c0_14] : memref<1x324x8xbf16, #tpu.memory_space<vmem>>, vector<1x286x8xbf16>
    %14 = vector.shape_cast %13 : vector<1x286x8xbf16> to vector<286x8xbf16>
    %c0_15 = arith.constant 0 : index
    %c1_16 = arith.constant 1 : index
    %c0_17 = arith.constant 0 : index
    %15 = vector.load %arg2[%c0_15, %c1_16, %c0_17] : memref<1x324x8xbf16, #tpu.memory_space<vmem>>, vector<1x286x8xbf16>
    %16 = vector.shape_cast %15 : vector<1x286x8xbf16> to vector<286x8xbf16>
    %c1_18 = arith.constant 1 : index
    %c0_19 = arith.constant 0 : index
    %c0_20 = arith.constant 0 : index
    %17 = vector.load %arg3[%c1_18, %c0_19, %c0_20] : memref<9x8x8xbf16, #tpu.memory_space<vmem>>, vector<1x8x8xbf16>
    %18 = vector.shape_cast %17 : vector<1x8x8xbf16> to vector<8x8xbf16>
    %cst_21 = arith.constant dense<0.000000e+00> : vector<286x8xf32>
    %19 = tpu.matmul %14, %18, %cst_21 {dimension_numbers = #tpu.dot_dimension_numbers<[1], [0], [0], [1], [0, 0, 1, 1], [], []>} : vector<286x8xbf16>, vector<8x8xbf16>, vector<286x8xf32> -> vector<286x8xf32>
    %20 = arith.addf %12, %19 : vector<286x8xf32>
    %c1_22 = arith.constant 1 : index
    %c0_23 = arith.constant 0 : index
    %c0_24 = arith.constant 0 : index
    %21 = vector.load %arg4[%c1_22, %c0_23, %c0_24] : memref<9x8x8xbf16, #tpu.memory_space<vmem>>, vector<1x8x8xbf16>
    %22 = vector.shape_cast %21 : vector<1x8x8xbf16> to vector<8x8xbf16>
    %cst_25 = arith.constant dense<0.000000e+00> : vector<286x8xf32>
    %23 = tpu.matmul %16, %22, %cst_25 {dimension_numbers = #tpu.dot_dimension_numbers<[1], [0], [0], [1], [0, 0, 1, 1], [], []>} : vector<286x8xbf16>, vector<8x8xbf16>, vector<286x8xf32> -> vector<286x8xf32>
    %24 = arith.addf %20, %23 : vector<286x8xf32>
    %c0_26 = arith.constant 0 : index
    %c2 = arith.constant 2 : index
    %c0_27 = arith.constant 0 : index
    %25 = vector.load %arg1[%c0_26, %c2, %c0_27] : memref<1x324x8xbf16, #tpu.memory_space<vmem>>, vector<1x286x8xbf16>
    %26 = vector.shape_cast %25 : vector<1x286x8xbf16> to vector<286x8xbf16>
    %c0_28 = arith.constant 0 : index
    %c2_29 = arith.constant 2 : index
    %c0_30 = arith.constant 0 : index
    %27 = vector.load %arg2[%c0_28, %c2_29, %c0_30] : memref<1x324x8xbf16, #tpu.memory_space<vmem>>, vector<1x286x8xbf16>
    %28 = vector.shape_cast %27 : vector<1x286x8xbf16> to vector<286x8xbf16>
    %c2_31 = arith.constant 2 : index
    %c0_32 = arith.constant 0 : index
    %c0_33 = arith.constant 0 : index
    %29 = vector.load %arg3[%c2_31, %c0_32, %c0_33] : memref<9x8x8xbf16, #tpu.memory_space<vmem>>, vector<1x8x8xbf16>
    %30 = vector.shape_cast %29 : vector<1x8x8xbf16> to vector<8x8xbf16>
    %cst_34 = arith.constant dense<0.000000e+00> : vector<286x8xf32>
    %31 = tpu.matmul %26, %30, %cst_34 {dimension_numbers = #tpu.dot_dimension_numbers<[1], [0], [0], [1], [0, 0, 1, 1], [], []>} : vector<286x8xbf16>, vector<8x8xbf16>, vector<286x8xf32> -> vector<286x8xf32>
    %32 = arith.addf %24, %31 : vector<286x8xf32>
    %c2_35 = arith.constant 2 : index
    %c0_36 = arith.constant 0 : index
    %c0_37 = arith.constant 0 : index
    %33 = vector.load %arg4[%c2_35, %c0_36, %c0_37] : memref<9x8x8xbf16, #tpu.memory_space<vmem>>, vector<1x8x8xbf16>
    %34 = vector.shape_cast %33 : vector<1x8x8xbf16> to vector<8x8xbf16>
    %cst_38 = arith.constant dense<0.000000e+00> : vector<286x8xf32>
    %35 = tpu.matmul %28, %34, %cst_38 {dimension_numbers = #tpu.dot_dimension_numbers<[1], [0], [0], [1], [0, 0, 1, 1], [], []>} : vector<286x8xbf16>, vector<8x8xbf16>, vector<286x8xf32> -> vector<286x8xf32>
    %36 = arith.addf %32, %35 : vector<286x8xf32>
    %c0_39 = arith.constant 0 : index
    %c18 = arith.constant 18 : index
    %c0_40 = arith.constant 0 : index
    %37 = vector.load %arg1[%c0_39, %c18, %c0_40] : memref<1x324x8xbf16, #tpu.memory_space<vmem>>, vector<1x286x8xbf16>
    %38 = vector.shape_cast %37 : vector<1x286x8xbf16> to vector<286x8xbf16>
    %c0_41 = arith.constant 0 : index
    %c18_42 = arith.constant 18 : index
    %c0_43 = arith.constant 0 : index
    %39 = vector.load %arg2[%c0_41, %c18_42, %c0_43] : memref<1x324x8xbf16, #tpu.memory_space<vmem>>, vector<1x286x8xbf16>
    %40 = vector.shape_cast %39 : vector<1x286x8xbf16> to vector<286x8xbf16>
    %c3 = arith.constant 3 : index
    %c0_44 = arith.constant 0 : index
    %c0_45 = arith.constant 0 : index
    %41 = vector.load %arg3[%c3, %c0_44, %c0_45] : memref<9x8x8xbf16, #tpu.memory_space<vmem>>, vector<1x8x8xbf16>
    %42 = vector.shape_cast %41 : vector<1x8x8xbf16> to vector<8x8xbf16>
    %cst_46 = arith.constant dense<0.000000e+00> : vector<286x8xf32>
    %43 = tpu.matmul %38, %42, %cst_46 {dimension_numbers = #tpu.dot_dimension_numbers<[1], [0], [0], [1], [0, 0, 1, 1], [], []>} : vector<286x8xbf16>, vector<8x8xbf16>, vector<286x8xf32> -> vector<286x8xf32>
    %44 = arith.addf %36, %43 : vector<286x8xf32>
    %c3_47 = arith.constant 3 : index
    %c0_48 = arith.constant 0 : index
    %c0_49 = arith.constant 0 : index
    %45 = vector.load %arg4[%c3_47, %c0_48, %c0_49] : memref<9x8x8xbf16, #tpu.memory_space<vmem>>, vector<1x8x8xbf16>
    %46 = vector.shape_cast %45 : vector<1x8x8xbf16> to vector<8x8xbf16>
    %cst_50 = arith.constant dense<0.000000e+00> : vector<286x8xf32>
    %47 = tpu.matmul %40, %46, %cst_50 {dimension_numbers = #tpu.dot_dimension_numbers<[1], [0], [0], [1], [0, 0, 1, 1], [], []>} : vector<286x8xbf16>, vector<8x8xbf16>, vector<286x8xf32> -> vector<286x8xf32>
    %48 = arith.addf %44, %47 : vector<286x8xf32>
    %c0_51 = arith.constant 0 : index
    %c19 = arith.constant 19 : index
    %c0_52 = arith.constant 0 : index
    %49 = vector.load %arg1[%c0_51, %c19, %c0_52] : memref<1x324x8xbf16, #tpu.memory_space<vmem>>, vector<1x286x8xbf16>
    %50 = vector.shape_cast %49 : vector<1x286x8xbf16> to vector<286x8xbf16>
    %c0_53 = arith.constant 0 : index
    %c19_54 = arith.constant 19 : index
    %c0_55 = arith.constant 0 : index
    %51 = vector.load %arg2[%c0_53, %c19_54, %c0_55] : memref<1x324x8xbf16, #tpu.memory_space<vmem>>, vector<1x286x8xbf16>
    %52 = vector.shape_cast %51 : vector<1x286x8xbf16> to vector<286x8xbf16>
    %c4 = arith.constant 4 : index
    %c0_56 = arith.constant 0 : index
    %c0_57 = arith.constant 0 : index
    %53 = vector.load %arg3[%c4, %c0_56, %c0_57] : memref<9x8x8xbf16, #tpu.memory_space<vmem>>, vector<1x8x8xbf16>
    %54 = vector.shape_cast %53 : vector<1x8x8xbf16> to vector<8x8xbf16>
    %cst_58 = arith.constant dense<0.000000e+00> : vector<286x8xf32>
    %55 = tpu.matmul %50, %54, %cst_58 {dimension_numbers = #tpu.dot_dimension_numbers<[1], [0], [0], [1], [0, 0, 1, 1], [], []>} : vector<286x8xbf16>, vector<8x8xbf16>, vector<286x8xf32> -> vector<286x8xf32>
    %56 = arith.addf %48, %55 : vector<286x8xf32>
    %c4_59 = arith.constant 4 : index
    %c0_60 = arith.constant 0 : index
    %c0_61 = arith.constant 0 : index
    %57 = vector.load %arg4[%c4_59, %c0_60, %c0_61] : memref<9x8x8xbf16, #tpu.memory_space<vmem>>, vector<1x8x8xbf16>
    %58 = vector.shape_cast %57 : vector<1x8x8xbf16> to vector<8x8xbf16>
    %cst_62 = arith.constant dense<0.000000e+00> : vector<286x8xf32>
    %59 = tpu.matmul %52, %58, %cst_62 {dimension_numbers = #tpu.dot_dimension_numbers<[1], [0], [0], [1], [0, 0, 1, 1], [], []>} : vector<286x8xbf16>, vector<8x8xbf16>, vector<286x8xf32> -> vector<286x8xf32>
    %60 = arith.addf %56, %59 : vector<286x8xf32>
    %c0_63 = arith.constant 0 : index
    %c20 = arith.constant 20 : index
    %c0_64 = arith.constant 0 : index
    %61 = vector.load %arg1[%c0_63, %c20, %c0_64] : memref<1x324x8xbf16, #tpu.memory_space<vmem>>, vector<1x286x8xbf16>
    %62 = vector.shape_cast %61 : vector<1x286x8xbf16> to vector<286x8xbf16>
    %c0_65 = arith.constant 0 : index
    %c20_66 = arith.constant 20 : index
    %c0_67 = arith.constant 0 : index
    %63 = vector.load %arg2[%c0_65, %c20_66, %c0_67] : memref<1x324x8xbf16, #tpu.memory_space<vmem>>, vector<1x286x8xbf16>
    %64 = vector.shape_cast %63 : vector<1x286x8xbf16> to vector<286x8xbf16>
    %c5 = arith.constant 5 : index
    %c0_68 = arith.constant 0 : index
    %c0_69 = arith.constant 0 : index
    %65 = vector.load %arg3[%c5, %c0_68, %c0_69] : memref<9x8x8xbf16, #tpu.memory_space<vmem>>, vector<1x8x8xbf16>
    %66 = vector.shape_cast %65 : vector<1x8x8xbf16> to vector<8x8xbf16>
    %cst_70 = arith.constant dense<0.000000e+00> : vector<286x8xf32>
    %67 = tpu.matmul %62, %66, %cst_70 {dimension_numbers = #tpu.dot_dimension_numbers<[1], [0], [0], [1], [0, 0, 1, 1], [], []>} : vector<286x8xbf16>, vector<8x8xbf16>, vector<286x8xf32> -> vector<286x8xf32>
    %68 = arith.addf %60, %67 : vector<286x8xf32>
    %c5_71 = arith.constant 5 : index
    %c0_72 = arith.constant 0 : index
    %c0_73 = arith.constant 0 : index
    %69 = vector.load %arg4[%c5_71, %c0_72, %c0_73] : memref<9x8x8xbf16, #tpu.memory_space<vmem>>, vector<1x8x8xbf16>
    %70 = vector.shape_cast %69 : vector<1x8x8xbf16> to vector<8x8xbf16>
    %cst_74 = arith.constant dense<0.000000e+00> : vector<286x8xf32>
    %71 = tpu.matmul %64, %70, %cst_74 {dimension_numbers = #tpu.dot_dimension_numbers<[1], [0], [0], [1], [0, 0, 1, 1], [], []>} : vector<286x8xbf16>, vector<8x8xbf16>, vector<286x8xf32> -> vector<286x8xf32>
    %72 = arith.addf %68, %71 : vector<286x8xf32>
    %c0_75 = arith.constant 0 : index
    %c36 = arith.constant 36 : index
    %c0_76 = arith.constant 0 : index
    %73 = vector.load %arg1[%c0_75, %c36, %c0_76] : memref<1x324x8xbf16, #tpu.memory_space<vmem>>, vector<1x286x8xbf16>
    %74 = vector.shape_cast %73 : vector<1x286x8xbf16> to vector<286x8xbf16>
    %c0_77 = arith.constant 0 : index
    %c36_78 = arith.constant 36 : index
    %c0_79 = arith.constant 0 : index
    %75 = vector.load %arg2[%c0_77, %c36_78, %c0_79] : memref<1x324x8xbf16, #tpu.memory_space<vmem>>, vector<1x286x8xbf16>
    %76 = vector.shape_cast %75 : vector<1x286x8xbf16> to vector<286x8xbf16>
    %c6 = arith.constant 6 : index
    %c0_80 = arith.constant 0 : index
    %c0_81 = arith.constant 0 : index
    %77 = vector.load %arg3[%c6, %c0_80, %c0_81] : memref<9x8x8xbf16, #tpu.memory_space<vmem>>, vector<1x8x8xbf16>
    %78 = vector.shape_cast %77 : vector<1x8x8xbf16> to vector<8x8xbf16>
    %cst_82 = arith.constant dense<0.000000e+00> : vector<286x8xf32>
    %79 = tpu.matmul %74, %78, %cst_82 {dimension_numbers = #tpu.dot_dimension_numbers<[1], [0], [0], [1], [0, 0, 1, 1], [], []>} : vector<286x8xbf16>, vector<8x8xbf16>, vector<286x8xf32> -> vector<286x8xf32>
    %80 = arith.addf %72, %79 : vector<286x8xf32>
    %c6_83 = arith.constant 6 : index
    %c0_84 = arith.constant 0 : index
    %c0_85 = arith.constant 0 : index
    %81 = vector.load %arg4[%c6_83, %c0_84, %c0_85] : memref<9x8x8xbf16, #tpu.memory_space<vmem>>, vector<1x8x8xbf16>
    %82 = vector.shape_cast %81 : vector<1x8x8xbf16> to vector<8x8xbf16>
    %cst_86 = arith.constant dense<0.000000e+00> : vector<286x8xf32>
    %83 = tpu.matmul %76, %82, %cst_86 {dimension_numbers = #tpu.dot_dimension_numbers<[1], [0], [0], [1], [0, 0, 1, 1], [], []>} : vector<286x8xbf16>, vector<8x8xbf16>, vector<286x8xf32> -> vector<286x8xf32>
    %84 = arith.addf %80, %83 : vector<286x8xf32>
    %c0_87 = arith.constant 0 : index
    %c37 = arith.constant 37 : index
    %c0_88 = arith.constant 0 : index
    %85 = vector.load %arg1[%c0_87, %c37, %c0_88] : memref<1x324x8xbf16, #tpu.memory_space<vmem>>, vector<1x286x8xbf16>
    %86 = vector.shape_cast %85 : vector<1x286x8xbf16> to vector<286x8xbf16>
    %c0_89 = arith.constant 0 : index
    %c37_90 = arith.constant 37 : index
    %c0_91 = arith.constant 0 : index
    %87 = vector.load %arg2[%c0_89, %c37_90, %c0_91] : memref<1x324x8xbf16, #tpu.memory_space<vmem>>, vector<1x286x8xbf16>
    %88 = vector.shape_cast %87 : vector<1x286x8xbf16> to vector<286x8xbf16>
    %c7 = arith.constant 7 : index
    %c0_92 = arith.constant 0 : index
    %c0_93 = arith.constant 0 : index
    %89 = vector.load %arg3[%c7, %c0_92, %c0_93] : memref<9x8x8xbf16, #tpu.memory_space<vmem>>, vector<1x8x8xbf16>
    %90 = vector.shape_cast %89 : vector<1x8x8xbf16> to vector<8x8xbf16>
    %cst_94 = arith.constant dense<0.000000e+00> : vector<286x8xf32>
    %91 = tpu.matmul %86, %90, %cst_94 {dimension_numbers = #tpu.dot_dimension_numbers<[1], [0], [0], [1], [0, 0, 1, 1], [], []>} : vector<286x8xbf16>, vector<8x8xbf16>, vector<286x8xf32> -> vector<286x8xf32>
    %92 = arith.addf %84, %91 : vector<286x8xf32>
    %c7_95 = arith.constant 7 : index
    %c0_96 = arith.constant 0 : index
    %c0_97 = arith.constant 0 : index
    %93 = vector.load %arg4[%c7_95, %c0_96, %c0_97] : memref<9x8x8xbf16, #tpu.memory_space<vmem>>, vector<1x8x8xbf16>
    %94 = vector.shape_cast %93 : vector<1x8x8xbf16> to vector<8x8xbf16>
    %cst_98 = arith.constant dense<0.000000e+00> : vector<286x8xf32>
    %95 = tpu.matmul %88, %94, %cst_98 {dimension_numbers = #tpu.dot_dimension_numbers<[1], [0], [0], [1], [0, 0, 1, 1], [], []>} : vector<286x8xbf16>, vector<8x8xbf16>, vector<286x8xf32> -> vector<286x8xf32>
    %96 = arith.addf %92, %95 : vector<286x8xf32>
    %c0_99 = arith.constant 0 : index
    %c38 = arith.constant 38 : index
    %c0_100 = arith.constant 0 : index
    %97 = vector.load %arg1[%c0_99, %c38, %c0_100] : memref<1x324x8xbf16, #tpu.memory_space<vmem>>, vector<1x286x8xbf16>
    %98 = vector.shape_cast %97 : vector<1x286x8xbf16> to vector<286x8xbf16>
    %c0_101 = arith.constant 0 : index
    %c38_102 = arith.constant 38 : index
    %c0_103 = arith.constant 0 : index
    %99 = vector.load %arg2[%c0_101, %c38_102, %c0_103] : memref<1x324x8xbf16, #tpu.memory_space<vmem>>, vector<1x286x8xbf16>
    %100 = vector.shape_cast %99 : vector<1x286x8xbf16> to vector<286x8xbf16>
    %c8 = arith.constant 8 : index
    %c0_104 = arith.constant 0 : index
    %c0_105 = arith.constant 0 : index
    %101 = vector.load %arg3[%c8, %c0_104, %c0_105] : memref<9x8x8xbf16, #tpu.memory_space<vmem>>, vector<1x8x8xbf16>
    %102 = vector.shape_cast %101 : vector<1x8x8xbf16> to vector<8x8xbf16>
    %cst_106 = arith.constant dense<0.000000e+00> : vector<286x8xf32>
    %103 = tpu.matmul %98, %102, %cst_106 {dimension_numbers = #tpu.dot_dimension_numbers<[1], [0], [0], [1], [0, 0, 1, 1], [], []>} : vector<286x8xbf16>, vector<8x8xbf16>, vector<286x8xf32> -> vector<286x8xf32>
    %104 = arith.addf %96, %103 : vector<286x8xf32>
    %c8_107 = arith.constant 8 : index
    %c0_108 = arith.constant 0 : index
    %c0_109 = arith.constant 0 : index
    %105 = vector.load %arg4[%c8_107, %c0_108, %c0_109] : memref<9x8x8xbf16, #tpu.memory_space<vmem>>, vector<1x8x8xbf16>
    %106 = vector.shape_cast %105 : vector<1x8x8xbf16> to vector<8x8xbf16>
    %cst_110 = arith.constant dense<0.000000e+00> : vector<286x8xf32>
    %107 = tpu.matmul %100, %106, %cst_110 {dimension_numbers = #tpu.dot_dimension_numbers<[1], [0], [0], [1], [0, 0, 1, 1], [], []>} : vector<286x8xbf16>, vector<8x8xbf16>, vector<286x8xf32> -> vector<286x8xf32>
    %108 = arith.addf %104, %107 : vector<286x8xf32>
    %c0_111 = arith.constant 0 : index
    %c0_112 = arith.constant 0 : index
    %109 = vector.load %arg5[%c0_111, %c0_112] : memref<286x1xf32, #tpu.memory_space<vmem>>, vector<286x1xf32>
    %110 = vector.broadcast %109 : vector<286x1xf32> to vector<286x8xf32>
    %111 = arith.mulf %108, %110 : vector<286x8xf32>
    %cst_113 = arith.constant dense<0.000000e+00> : vector<8xf32>
    %112 = vector.multi_reduction <add>, %111, %cst_113 [0] : vector<286x8xf32> to vector<8xf32>
    %113 = vector.shape_cast %112 : vector<8xf32> to vector<1x8xf32>
    %cst_114 = arith.constant 3.906250e-03 : f32
    %114 = vector.broadcast %cst_114 : f32 to vector<1x8xf32>
    %115 = arith.mulf %113, %114 : vector<1x8xf32>
    %116 = vector.broadcast %115 : vector<1x8xf32> to vector<286x8xf32>
    %117 = arith.subf %111, %116 : vector<286x8xf32>
    %118 = vector.broadcast %109 : vector<286x1xf32> to vector<286x8xf32>
    %119 = arith.mulf %117, %118 : vector<286x8xf32>
    %c0_115 = arith.constant 0 : index
    %c0_116 = arith.constant 0 : index
    %c0_117 = arith.constant 0 : index
    %120 = vector.load %arg7[%c0_115, %c0_116, %c0_117] : memref<1x1x8xf32, #tpu.memory_space<vmem>>, vector<1x1x8xf32>
    %121 = vector.shape_cast %120 : vector<1x1x8xf32> to vector<1x8xf32>
    %122 = vector.shape_cast %113 : vector<1x8xf32> to vector<1x1x8xf32>
    tpu.vector_store %arg7[%c0_115, %c0_116, %c0_117], %122 {strides = array<i32>} : memref<1x1x8xf32, #tpu.memory_space<vmem>>, vector<1x1x8xf32>,
    %123 = arith.mulf %119, %119 : vector<286x8xf32>
    %cst_118 = arith.constant dense<0.000000e+00> : vector<8xf32>
    %124 = vector.multi_reduction <add>, %123, %cst_118 [0] : vector<286x8xf32> to vector<8xf32>
    %125 = vector.shape_cast %124 : vector<8xf32> to vector<1x8xf32>
    %c0_119 = arith.constant 0 : index
    %c0_120 = arith.constant 0 : index
    %c0_121 = arith.constant 0 : index
    %126 = vector.load %arg8[%c0_119, %c0_120, %c0_121] : memref<1x1x8xf32, #tpu.memory_space<vmem>>, vector<1x1x8xf32>
    %127 = vector.shape_cast %126 : vector<1x1x8xf32> to vector<1x8xf32>
    %128 = vector.shape_cast %125 : vector<1x8xf32> to vector<1x1x8xf32>
    tpu.vector_store %arg8[%c0_119, %c0_120, %c0_121], %128 {strides = array<i32>} : memref<1x1x8xf32, #tpu.memory_space<vmem>>, vector<1x1x8xf32>,
    %cst_122 = arith.constant 0.000000e+00 : bf16
    %129 = vector.broadcast %cst_122 : bf16 to vector<337x8xbf16>
    %c0_123 = arith.constant 0 : index
    %c0_124 = arith.constant 0 : index
    %c0_125 = arith.constant 0 : index
    %130 = vector.load %arg6[%c0_123, %c0_124, %c0_125] : memref<1x337x8xbf16, #tpu.memory_space<vmem>>, vector<1x337x8xbf16>
    %131 = vector.shape_cast %130 : vector<1x337x8xbf16> to vector<337x8xbf16>
    %132 = vector.shape_cast %129 : vector<337x8xbf16> to vector<1x337x8xbf16>
    tpu.vector_store %arg6[%c0_123, %c0_124, %c0_125], %132 {strides = array<i32>} : memref<1x337x8xbf16, #tpu.memory_space<vmem>>, vector<1x337x8xbf16>,
    %133 = arith.truncf %111 : vector<286x8xf32> to vector<286x8xbf16>
    %c0_126 = arith.constant 0 : index
    %c32 = arith.constant 32 : index
    %c0_127 = arith.constant 0 : index
    %134 = vector.load %arg6[%c0_126, %c32, %c0_127] : memref<1x337x8xbf16, #tpu.memory_space<vmem>>, vector<1x286x8xbf16>
    %135 = vector.shape_cast %134 : vector<1x286x8xbf16> to vector<286x8xbf16>
    %136 = vector.shape_cast %133 : vector<286x8xbf16> to vector<1x286x8xbf16>
    tpu.vector_store %arg6[%c0_126, %c32, %c0_127], %136 {strides = array<i32>} : memref<1x337x8xbf16, #tpu.memory_space<vmem>>, vector<1x286x8xbf16>,
    return
  }
  func.func @transform_0(%arg0: i32) -> (i32, i32, i32) {
    %c0_i32 = arith.constant 0 : i32
    %c0_i32_0 = arith.constant 0 : i32
    %c0_i32_1 = arith.constant 0 : i32
    return %arg0, %c0_i32, %c0_i32_0 : i32, i32, i32
  }
  func.func @transform_1(%arg0: i32) -> (i32, i32, i32) {
    %c0_i32 = arith.constant 0 : i32
    %c0_i32_0 = arith.constant 0 : i32
    %c0_i32_1 = arith.constant 0 : i32
    return %arg0, %c0_i32, %c0_i32_0 : i32, i32, i32
  }
  func.func @transform_2(%arg0: i32) -> (i32, i32, i32) {
    %c0_i32 = arith.constant 0 : i32
    %c0_i32_0 = arith.constant 0 : i32
    %c0_i32_1 = arith.constant 0 : i32
    %c0_i32_2 = arith.constant 0 : i32
    return %c0_i32, %c0_i32_0, %c0_i32_1 : i32, i32, i32
  }
  func.func @transform_3(%arg0: i32) -> (i32, i32, i32) {
    %c0_i32 = arith.constant 0 : i32
    %c0_i32_0 = arith.constant 0 : i32
    %c0_i32_1 = arith.constant 0 : i32
    %c0_i32_2 = arith.constant 0 : i32
    return %c0_i32, %c0_i32_0, %c0_i32_1 : i32, i32, i32
  }
  func.func @transform_4(%arg0: i32) -> (i32, i32) {
    %c0_i32 = arith.constant 0 : i32
    %c0_i32_0 = arith.constant 0 : i32
    %c0_i32_1 = arith.constant 0 : i32
    return %c0_i32, %c0_i32_0 : i32, i32
  }
  func.func @transform_5(%arg0: i32) -> (i32, i32, i32) {
    %c0_i32 = arith.constant 0 : i32
    %c0_i32_0 = arith.constant 0 : i32
    %c0_i32_1 = arith.constant 0 : i32
    return %arg0, %c0_i32, %c0_i32_0 : i32, i32, i32
  }
  func.func @transform_6(%arg0: i32) -> (i32, i32, i32) {
    %c0_i32 = arith.constant 0 : i32
    %c0_i32_0 = arith.constant 0 : i32
    %c0_i32_1 = arith.constant 0 : i32
    return %arg0, %c0_i32, %c0_i32_0 : i32, i32, i32
  }
  func.func @transform_7(%arg0: i32) -> (i32, i32, i32) {
    %c0_i32 = arith.constant 0 : i32
    %c0_i32_0 = arith.constant 0 : i32
    %c0_i32_1 = arith.constant 0 : i32
    return %arg0, %c0_i32, %c0_i32_0 : i32, i32, i32
  }
}

module attributes {stable_mosaic.version = 11 : i64} {
  func.func @kernel(%arg0: i32, %arg1: memref<1x337x8xbf16, #tpu.memory_space<vmem>>, %arg2: memref<1x8xf32, #tpu.memory_space<vmem>>, %arg3: memref<1x8xf32, #tpu.memory_space<vmem>>, %arg4: memref<9x8x16xbf16, #tpu.memory_space<vmem>>, %arg5: memref<286x1xf32, #tpu.memory_space<vmem>>, %arg6: memref<337x1xf32, #tpu.memory_space<vmem>>, %arg7: memref<1x286x16xf32, #tpu.memory_space<vmem>>, %arg8: memref<1x1x16xf32, #tpu.memory_space<vmem>>, %arg9: memref<1x1x16xf32, #tpu.memory_space<vmem>>, %arg10: memref<337x8xbf16, #tpu.memory_space<vmem>>) attributes {dimension_semantics = [#tpu.dimension_semantics<parallel>], iteration_bounds = array<i64: 2>, scalar_prefetch = 0 : i64, scratch_operands = 1 : i64, tpu.core_type = #tpu.core_type<tc>, window_params = [{transform_indices = @transform_0, window_bounds = array<i64: 1, 337, 8>}, {pipeline_mode = #tpu.pipeline_mode<synchronous>, transform_indices = @transform_1, window_bounds = array<i64: 1, 8>}, {pipeline_mode = #tpu.pipeline_mode<synchronous>, transform_indices = @transform_2, window_bounds = array<i64: 1, 8>}, {pipeline_mode = #tpu.pipeline_mode<synchronous>, transform_indices = @transform_3, window_bounds = array<i64: 9, 8, 16>}, {pipeline_mode = #tpu.pipeline_mode<synchronous>, transform_indices = @transform_4, window_bounds = array<i64: 286, 1>}, {pipeline_mode = #tpu.pipeline_mode<synchronous>, transform_indices = @transform_5, window_bounds = array<i64: 337, 1>}, {transform_indices = @transform_6, window_bounds = array<i64: 1, 286, 16>}, {transform_indices = @transform_7, window_bounds = array<i64: 1, 1, 16>}, {transform_indices = @transform_8, window_bounds = array<i64: 1, 1, 16>}]} {
    %c0 = arith.constant 0 : index
    %c0_0 = arith.constant 0 : index
    %c0_1 = arith.constant 0 : index
    %0 = vector.load %arg1[%c0, %c0_0, %c0_1] : memref<1x337x8xbf16, #tpu.memory_space<vmem>>, vector<1x337x8xbf16>
    %1 = vector.shape_cast %0 : vector<1x337x8xbf16> to vector<337x8xbf16>
    %2 = arith.extf %1 : vector<337x8xbf16> to vector<337x8xf32>
    %c0_2 = arith.constant 0 : index
    %c0_3 = arith.constant 0 : index
    %3 = vector.load %arg2[%c0_2, %c0_3] : memref<1x8xf32, #tpu.memory_space<vmem>>, vector<1x8xf32>
    %4 = vector.broadcast %3 : vector<1x8xf32> to vector<337x8xf32>
    %5 = arith.mulf %2, %4 : vector<337x8xf32>
    %c0_4 = arith.constant 0 : index
    %c0_5 = arith.constant 0 : index
    %6 = vector.load %arg3[%c0_4, %c0_5] : memref<1x8xf32, #tpu.memory_space<vmem>>, vector<1x8xf32>
    %7 = vector.broadcast %6 : vector<1x8xf32> to vector<337x8xf32>
    %8 = arith.addf %5, %7 : vector<337x8xf32>
    %cst = arith.constant 0.000000e+00 : f32
    %9 = vector.broadcast %cst : f32 to vector<337x8xf32>
    %10 = arith.maximumf %8, %9 : vector<337x8xf32>
    %c0_6 = arith.constant 0 : index
    %c0_7 = arith.constant 0 : index
    %11 = vector.load %arg6[%c0_6, %c0_7] : memref<337x1xf32, #tpu.memory_space<vmem>>, vector<337x1xf32>
    %12 = vector.broadcast %11 : vector<337x1xf32> to vector<337x8xf32>
    %13 = arith.mulf %10, %12 : vector<337x8xf32>
    %14 = arith.truncf %13 : vector<337x8xf32> to vector<337x8xbf16>
    %c0_8 = arith.constant 0 : index
    %c0_9 = arith.constant 0 : index
    %15 = vector.load %arg10[%c0_8, %c0_9] : memref<337x8xbf16, #tpu.memory_space<vmem>>, vector<337x8xbf16>
    tpu.vector_store %arg10[%c0_8, %c0_9], %14 {strides = array<i32>} : memref<337x8xbf16, #tpu.memory_space<vmem>>, vector<337x8xbf16>,
    %cst_10 = arith.constant 0.000000e+00 : f32
    %16 = vector.broadcast %cst_10 : f32 to vector<286x16xf32>
    %c13 = arith.constant 13 : index
    %c0_11 = arith.constant 0 : index
    %17 = vector.load %arg10[%c13, %c0_11] : memref<337x8xbf16, #tpu.memory_space<vmem>>, vector<286x8xbf16>
    %c0_12 = arith.constant 0 : index
    %c0_13 = arith.constant 0 : index
    %c0_14 = arith.constant 0 : index
    %18 = vector.load %arg4[%c0_12, %c0_13, %c0_14] : memref<9x8x16xbf16, #tpu.memory_space<vmem>>, vector<1x8x16xbf16>
    %19 = vector.shape_cast %18 : vector<1x8x16xbf16> to vector<8x16xbf16>
    %cst_15 = arith.constant dense<0.000000e+00> : vector<286x16xf32>
    %20 = tpu.matmul %17, %19, %cst_15 {dimension_numbers = #tpu.dot_dimension_numbers<[1], [0], [0], [1], [0, 0, 1, 1], [], []>} : vector<286x8xbf16>, vector<8x16xbf16>, vector<286x16xf32> -> vector<286x16xf32>
    %21 = arith.addf %16, %20 : vector<286x16xf32>
    %c14 = arith.constant 14 : index
    %c0_16 = arith.constant 0 : index
    %22 = vector.load %arg10[%c14, %c0_16] : memref<337x8xbf16, #tpu.memory_space<vmem>>, vector<286x8xbf16>
    %c1 = arith.constant 1 : index
    %c0_17 = arith.constant 0 : index
    %c0_18 = arith.constant 0 : index
    %23 = vector.load %arg4[%c1, %c0_17, %c0_18] : memref<9x8x16xbf16, #tpu.memory_space<vmem>>, vector<1x8x16xbf16>
    %24 = vector.shape_cast %23 : vector<1x8x16xbf16> to vector<8x16xbf16>
    %cst_19 = arith.constant dense<0.000000e+00> : vector<286x16xf32>
    %25 = tpu.matmul %22, %24, %cst_19 {dimension_numbers = #tpu.dot_dimension_numbers<[1], [0], [0], [1], [0, 0, 1, 1], [], []>} : vector<286x8xbf16>, vector<8x16xbf16>, vector<286x16xf32> -> vector<286x16xf32>
    %26 = arith.addf %21, %25 : vector<286x16xf32>
    %c15 = arith.constant 15 : index
    %c0_20 = arith.constant 0 : index
    %27 = vector.load %arg10[%c15, %c0_20] : memref<337x8xbf16, #tpu.memory_space<vmem>>, vector<286x8xbf16>
    %c2 = arith.constant 2 : index
    %c0_21 = arith.constant 0 : index
    %c0_22 = arith.constant 0 : index
    %28 = vector.load %arg4[%c2, %c0_21, %c0_22] : memref<9x8x16xbf16, #tpu.memory_space<vmem>>, vector<1x8x16xbf16>
    %29 = vector.shape_cast %28 : vector<1x8x16xbf16> to vector<8x16xbf16>
    %cst_23 = arith.constant dense<0.000000e+00> : vector<286x16xf32>
    %30 = tpu.matmul %27, %29, %cst_23 {dimension_numbers = #tpu.dot_dimension_numbers<[1], [0], [0], [1], [0, 0, 1, 1], [], []>} : vector<286x8xbf16>, vector<8x16xbf16>, vector<286x16xf32> -> vector<286x16xf32>
    %31 = arith.addf %26, %30 : vector<286x16xf32>
    %c31 = arith.constant 31 : index
    %c0_24 = arith.constant 0 : index
    %32 = vector.load %arg10[%c31, %c0_24] : memref<337x8xbf16, #tpu.memory_space<vmem>>, vector<286x8xbf16>
    %c3 = arith.constant 3 : index
    %c0_25 = arith.constant 0 : index
    %c0_26 = arith.constant 0 : index
    %33 = vector.load %arg4[%c3, %c0_25, %c0_26] : memref<9x8x16xbf16, #tpu.memory_space<vmem>>, vector<1x8x16xbf16>
    %34 = vector.shape_cast %33 : vector<1x8x16xbf16> to vector<8x16xbf16>
    %cst_27 = arith.constant dense<0.000000e+00> : vector<286x16xf32>
    %35 = tpu.matmul %32, %34, %cst_27 {dimension_numbers = #tpu.dot_dimension_numbers<[1], [0], [0], [1], [0, 0, 1, 1], [], []>} : vector<286x8xbf16>, vector<8x16xbf16>, vector<286x16xf32> -> vector<286x16xf32>
    %36 = arith.addf %31, %35 : vector<286x16xf32>
    %c32 = arith.constant 32 : index
    %c0_28 = arith.constant 0 : index
    %37 = vector.load %arg10[%c32, %c0_28] : memref<337x8xbf16, #tpu.memory_space<vmem>>, vector<286x8xbf16>
    %c4 = arith.constant 4 : index
    %c0_29 = arith.constant 0 : index
    %c0_30 = arith.constant 0 : index
    %38 = vector.load %arg4[%c4, %c0_29, %c0_30] : memref<9x8x16xbf16, #tpu.memory_space<vmem>>, vector<1x8x16xbf16>
    %39 = vector.shape_cast %38 : vector<1x8x16xbf16> to vector<8x16xbf16>
    %cst_31 = arith.constant dense<0.000000e+00> : vector<286x16xf32>
    %40 = tpu.matmul %37, %39, %cst_31 {dimension_numbers = #tpu.dot_dimension_numbers<[1], [0], [0], [1], [0, 0, 1, 1], [], []>} : vector<286x8xbf16>, vector<8x16xbf16>, vector<286x16xf32> -> vector<286x16xf32>
    %41 = arith.addf %36, %40 : vector<286x16xf32>
    %c33 = arith.constant 33 : index
    %c0_32 = arith.constant 0 : index
    %42 = vector.load %arg10[%c33, %c0_32] : memref<337x8xbf16, #tpu.memory_space<vmem>>, vector<286x8xbf16>
    %c5 = arith.constant 5 : index
    %c0_33 = arith.constant 0 : index
    %c0_34 = arith.constant 0 : index
    %43 = vector.load %arg4[%c5, %c0_33, %c0_34] : memref<9x8x16xbf16, #tpu.memory_space<vmem>>, vector<1x8x16xbf16>
    %44 = vector.shape_cast %43 : vector<1x8x16xbf16> to vector<8x16xbf16>
    %cst_35 = arith.constant dense<0.000000e+00> : vector<286x16xf32>
    %45 = tpu.matmul %42, %44, %cst_35 {dimension_numbers = #tpu.dot_dimension_numbers<[1], [0], [0], [1], [0, 0, 1, 1], [], []>} : vector<286x8xbf16>, vector<8x16xbf16>, vector<286x16xf32> -> vector<286x16xf32>
    %46 = arith.addf %41, %45 : vector<286x16xf32>
    %c49 = arith.constant 49 : index
    %c0_36 = arith.constant 0 : index
    %47 = vector.load %arg10[%c49, %c0_36] : memref<337x8xbf16, #tpu.memory_space<vmem>>, vector<286x8xbf16>
    %c6 = arith.constant 6 : index
    %c0_37 = arith.constant 0 : index
    %c0_38 = arith.constant 0 : index
    %48 = vector.load %arg4[%c6, %c0_37, %c0_38] : memref<9x8x16xbf16, #tpu.memory_space<vmem>>, vector<1x8x16xbf16>
    %49 = vector.shape_cast %48 : vector<1x8x16xbf16> to vector<8x16xbf16>
    %cst_39 = arith.constant dense<0.000000e+00> : vector<286x16xf32>
    %50 = tpu.matmul %47, %49, %cst_39 {dimension_numbers = #tpu.dot_dimension_numbers<[1], [0], [0], [1], [0, 0, 1, 1], [], []>} : vector<286x8xbf16>, vector<8x16xbf16>, vector<286x16xf32> -> vector<286x16xf32>
    %51 = arith.addf %46, %50 : vector<286x16xf32>
    %c50 = arith.constant 50 : index
    %c0_40 = arith.constant 0 : index
    %52 = vector.load %arg10[%c50, %c0_40] : memref<337x8xbf16, #tpu.memory_space<vmem>>, vector<286x8xbf16>
    %c7 = arith.constant 7 : index
    %c0_41 = arith.constant 0 : index
    %c0_42 = arith.constant 0 : index
    %53 = vector.load %arg4[%c7, %c0_41, %c0_42] : memref<9x8x16xbf16, #tpu.memory_space<vmem>>, vector<1x8x16xbf16>
    %54 = vector.shape_cast %53 : vector<1x8x16xbf16> to vector<8x16xbf16>
    %cst_43 = arith.constant dense<0.000000e+00> : vector<286x16xf32>
    %55 = tpu.matmul %52, %54, %cst_43 {dimension_numbers = #tpu.dot_dimension_numbers<[1], [0], [0], [1], [0, 0, 1, 1], [], []>} : vector<286x8xbf16>, vector<8x16xbf16>, vector<286x16xf32> -> vector<286x16xf32>
    %56 = arith.addf %51, %55 : vector<286x16xf32>
    %c51 = arith.constant 51 : index
    %c0_44 = arith.constant 0 : index
    %57 = vector.load %arg10[%c51, %c0_44] : memref<337x8xbf16, #tpu.memory_space<vmem>>, vector<286x8xbf16>
    %c8 = arith.constant 8 : index
    %c0_45 = arith.constant 0 : index
    %c0_46 = arith.constant 0 : index
    %58 = vector.load %arg4[%c8, %c0_45, %c0_46] : memref<9x8x16xbf16, #tpu.memory_space<vmem>>, vector<1x8x16xbf16>
    %59 = vector.shape_cast %58 : vector<1x8x16xbf16> to vector<8x16xbf16>
    %cst_47 = arith.constant dense<0.000000e+00> : vector<286x16xf32>
    %60 = tpu.matmul %57, %59, %cst_47 {dimension_numbers = #tpu.dot_dimension_numbers<[1], [0], [0], [1], [0, 0, 1, 1], [], []>} : vector<286x8xbf16>, vector<8x16xbf16>, vector<286x16xf32> -> vector<286x16xf32>
    %61 = arith.addf %56, %60 : vector<286x16xf32>
    %c0_48 = arith.constant 0 : index
    %c0_49 = arith.constant 0 : index
    %62 = vector.load %arg5[%c0_48, %c0_49] : memref<286x1xf32, #tpu.memory_space<vmem>>, vector<286x1xf32>
    %63 = vector.broadcast %62 : vector<286x1xf32> to vector<286x16xf32>
    %64 = arith.mulf %61, %63 : vector<286x16xf32>
    %cst_50 = arith.constant dense<0.000000e+00> : vector<16xf32>
    %65 = vector.multi_reduction <add>, %64, %cst_50 [0] : vector<286x16xf32> to vector<16xf32>
    %66 = vector.shape_cast %65 : vector<16xf32> to vector<1x16xf32>
    %cst_51 = arith.constant 3.906250e-03 : f32
    %67 = vector.broadcast %cst_51 : f32 to vector<1x16xf32>
    %68 = arith.mulf %66, %67 : vector<1x16xf32>
    %69 = vector.broadcast %68 : vector<1x16xf32> to vector<286x16xf32>
    %70 = arith.subf %64, %69 : vector<286x16xf32>
    %71 = vector.broadcast %62 : vector<286x1xf32> to vector<286x16xf32>
    %72 = arith.mulf %70, %71 : vector<286x16xf32>
    %c0_52 = arith.constant 0 : index
    %c0_53 = arith.constant 0 : index
    %c0_54 = arith.constant 0 : index
    %73 = vector.load %arg8[%c0_52, %c0_53, %c0_54] : memref<1x1x16xf32, #tpu.memory_space<vmem>>, vector<1x1x16xf32>
    %74 = vector.shape_cast %73 : vector<1x1x16xf32> to vector<1x16xf32>
    %75 = vector.shape_cast %66 : vector<1x16xf32> to vector<1x1x16xf32>
    tpu.vector_store %arg8[%c0_52, %c0_53, %c0_54], %75 {strides = array<i32>} : memref<1x1x16xf32, #tpu.memory_space<vmem>>, vector<1x1x16xf32>,
    %76 = arith.mulf %72, %72 : vector<286x16xf32>
    %cst_55 = arith.constant dense<0.000000e+00> : vector<16xf32>
    %77 = vector.multi_reduction <add>, %76, %cst_55 [0] : vector<286x16xf32> to vector<16xf32>
    %78 = vector.shape_cast %77 : vector<16xf32> to vector<1x16xf32>
    %c0_56 = arith.constant 0 : index
    %c0_57 = arith.constant 0 : index
    %c0_58 = arith.constant 0 : index
    %79 = vector.load %arg9[%c0_56, %c0_57, %c0_58] : memref<1x1x16xf32, #tpu.memory_space<vmem>>, vector<1x1x16xf32>
    %80 = vector.shape_cast %79 : vector<1x1x16xf32> to vector<1x16xf32>
    %81 = vector.shape_cast %78 : vector<1x16xf32> to vector<1x1x16xf32>
    tpu.vector_store %arg9[%c0_56, %c0_57, %c0_58], %81 {strides = array<i32>} : memref<1x1x16xf32, #tpu.memory_space<vmem>>, vector<1x1x16xf32>,
    %c0_59 = arith.constant 0 : index
    %c0_60 = arith.constant 0 : index
    %c0_61 = arith.constant 0 : index
    %82 = vector.load %arg7[%c0_59, %c0_60, %c0_61] : memref<1x286x16xf32, #tpu.memory_space<vmem>>, vector<1x286x16xf32>
    %83 = vector.shape_cast %82 : vector<1x286x16xf32> to vector<286x16xf32>
    %84 = vector.shape_cast %64 : vector<286x16xf32> to vector<1x286x16xf32>
    tpu.vector_store %arg7[%c0_59, %c0_60, %c0_61], %84 {strides = array<i32>} : memref<1x286x16xf32, #tpu.memory_space<vmem>>, vector<1x286x16xf32>,
    return
  }
  func.func @transform_0(%arg0: i32) -> (i32, i32, i32) {
    %c0_i32 = arith.constant 0 : i32
    %c0_i32_0 = arith.constant 0 : i32
    %c0_i32_1 = arith.constant 0 : i32
    return %arg0, %c0_i32, %c0_i32_0 : i32, i32, i32
  }
  func.func @transform_1(%arg0: i32) -> (i32, i32) {
    %c0_i32 = arith.constant 0 : i32
    %c0_i32_0 = arith.constant 0 : i32
    %c0_i32_1 = arith.constant 0 : i32
    return %c0_i32, %c0_i32_0 : i32, i32
  }
  func.func @transform_2(%arg0: i32) -> (i32, i32) {
    %c0_i32 = arith.constant 0 : i32
    %c0_i32_0 = arith.constant 0 : i32
    %c0_i32_1 = arith.constant 0 : i32
    return %c0_i32, %c0_i32_0 : i32, i32
  }
  func.func @transform_3(%arg0: i32) -> (i32, i32, i32) {
    %c0_i32 = arith.constant 0 : i32
    %c0_i32_0 = arith.constant 0 : i32
    %c0_i32_1 = arith.constant 0 : i32
    %c0_i32_2 = arith.constant 0 : i32
    return %c0_i32, %c0_i32_0, %c0_i32_1 : i32, i32, i32
  }
  func.func @transform_4(%arg0: i32) -> (i32, i32) {
    %c0_i32 = arith.constant 0 : i32
    %c0_i32_0 = arith.constant 0 : i32
    %c0_i32_1 = arith.constant 0 : i32
    return %c0_i32, %c0_i32_0 : i32, i32
  }
  func.func @transform_5(%arg0: i32) -> (i32, i32) {
    %c0_i32 = arith.constant 0 : i32
    %c0_i32_0 = arith.constant 0 : i32
    %c0_i32_1 = arith.constant 0 : i32
    return %c0_i32, %c0_i32_0 : i32, i32
  }
  func.func @transform_6(%arg0: i32) -> (i32, i32, i32) {
    %c0_i32 = arith.constant 0 : i32
    %c0_i32_0 = arith.constant 0 : i32
    %c0_i32_1 = arith.constant 0 : i32
    return %arg0, %c0_i32, %c0_i32_0 : i32, i32, i32
  }
  func.func @transform_7(%arg0: i32) -> (i32, i32, i32) {
    %c0_i32 = arith.constant 0 : i32
    %c0_i32_0 = arith.constant 0 : i32
    %c0_i32_1 = arith.constant 0 : i32
    return %arg0, %c0_i32, %c0_i32_0 : i32, i32, i32
  }
  func.func @transform_8(%arg0: i32) -> (i32, i32, i32) {
    %c0_i32 = arith.constant 0 : i32
    %c0_i32_0 = arith.constant 0 : i32
    %c0_i32_1 = arith.constant 0 : i32
    return %arg0, %c0_i32, %c0_i32_0 : i32, i32, i32
  }
}

</mosaic_0001>

<bundles_post_ra>
// kernel: up_forward.3
= control target key start
LH: loop header
LB: loop body
LE: loop exit
PB: predicated region body
PF: predicated region fallthrough
CT: control target
= control target key end

     0   :  { %s7047_s27 = smov 0   ;;  %s9466_s0 = inlined_call_operand.vmem [shape: bf16[2,337,8], index: 0, kind: input, shape index: {}]   ;;  %s9467_s1 = inlined_call_operand.vmem [shape: f32[1,8], index: 1, kind: input, shape index: {}]   ;;  %s9468_s2 = inlined_call_operand.vmem [shape: f32[1,8], index: 2, kind: input, shape index: {}]   ;;  %s9469_s3 = inlined_call_operand.vmem [shape: bf16[9,8,16], index: 3, kind: input, shape index: {}]   ;;  %s9470_s4 = inlined_call_operand.vmem [shape: f32[286,1], index: 4, kind: input, shape index: {}]   ;;  %s9471_s5 = inlined_call_operand.vmem [shape: f32[337,1], index: 5, kind: input, shape index: {}]   ;;  %s9472_s6 = inlined_call_operand.vmem [shape: f32[2,286,16], index: 6, kind: output, shape index: {0}]   ;;  %s9473_s7 = inlined_call_operand.vmem [shape: f32[2,1,16], index: 7, kind: output, shape index: {1}]   ;;  %s9474_s8 = inlined_call_operand.vmem [shape: f32[2,1,16], index: 8, kind: output, shape index: {2}]  }
   0x1 LB: > { %s5602_s28 = sadd.s32 4294967295, %s6999_s27   ;;  %p5606_p0 = scmp.ge.s32.totalorder %s6999_s27, 1  ;;  %s6999_s27 = sphi %s7047_s27, %s19_s27  }
   0x2   : > { %p267_p1 = scmp.lt.s32.totalorder %s6999_s27, 3 }
   0x4   : > { %p268_p2 = pnand %p5606_p0, %p267_p1 }
   0x6   : > { %271 = sbr.rel (%p268_p2) target bundleno = 827 (0x33b), region = 44 }
   0xd   : > { %v559_v0 = vld [vmem:[%s9471_s5 + $0x30] sm:$0xff]  ;;  %v557_v1 = vld [vmem:[%s9471_s5 + $0x20] sm:$0xff]  ;;  %v7001_v2 = vmov 0   ;;  %v560_v3 = vld [vmem:[%s9471_s5 + $0x38] sm:$0xff]  ;;  %vm1303_vm0 = vcmask 1043456   ;;  %p307_p3 = scmp.lt.s32.totalorder %s5602_s28, 1 }
   0xe   : > { %6895 = vset.pattern.permute.xlu1 %v7001_v2  ;;  %6894 = vset.pattern.permute.xlu0 %v7001_v2  ;;  %v558_v4 = vld [vmem:[%s9471_s5 + $0x28] sm:$0xff]  ;;  %v555_v5 = vld [vmem:[%s9471_s5 + $0x10] sm:$0xff]  ;;  %v561_v7 = vld [vmem:[%s9471_s5 + $0x40] sm:$0xff]  ;;  %vm1027_vm1 = vcmask 60416   ;;  %vm1248_vm2 = vcmask 64512   ;;  %vm1210_vm3 = vcmask 1044480  }
   0xf   : > { %628 = vperm.xlu1 %6895, %v559_v0   ;;  %618 = vperm.xlu0 %6894, %v557_v1   ;;  %v554_v6 = vld [vmem:[%s9471_s5 + $0x8] sm:$0xff]  ;;  %v556_v8 = vld [vmem:[%s9471_s5 + $0x18] sm:$0xff]  ;;  %v563_v9 = vld [vmem:[%s9471_s5 + $0x50] sm:$0xff]  ;;  %s9767_s28 = smov (!%p307_p3, %s5602_s28), 1  ;;  %vm1898_vm4 = vsmask.f32 4352 }
  0x10   : > { %v562_v10 = vld [vmem:[%s9471_s5 + $0x48] sm:$0xff]  ;;  %v565_v11 = vld [vmem:[%s9471_s5 + $0x60] sm:$0xff]  ;;  %v564_v12 = vld [vmem:[%s9471_s5 + $0x58] sm:$0xff]  ;;  %s6883_s29 = smul.u32 172, %s9767_s28  ;;  %vm3122_vm5 = vsmask.f32 7424  ;;  %s319_s21 = scalar_lea.vmem %s9473_s7, %s9767_s28 }
  0x11   : > { %v567_v13 = vld [vmem:[%s9471_s5 + $0x70] sm:$0xff]  ;;  %v566_v14 = vld [vmem:[%s9471_s5 + $0x68] sm:$0xff]  ;;  %v569_v16 = vld [vmem:[%s9471_s5 + $0x80] sm:$0xff]  ;;  %vm1487_vm6 = vsmask.f32 5376  ;;  %vm1070_vm7 = vcmask 57344   ;;  %s322_s24 = scalar_lea.vmem %s9474_s8, %s9767_s28 }
  0x12   : > { %v5769_v15 = vld [vmem:[%s9469_s3 + $0x10] sm:$0xf]  ;;  %v568_v17 = vld [vmem:[%s9471_s5 + $0x78] sm:$0xff]  ;;  %v7110_v18 = vld [vmem:[%s9469_s3 + $0x14] sm:$0xf]  ;;  %s7236_s14 = scalar_lea.vmem %s9466_s0, %s6883_s29  ;;  %vm4066_vm10 = vcmask 1046528  }
  0x13   : > { %633 = vperm.xlu1 %6895, %v560_v3   ;;  %623 = vperm.xlu0 %6894, %v558_v4   ;;  %v5654_v19 = vld [vmem:[%s9469_s3 + $0x4] sm:$0xf]  ;;  %v571_v20 = vld [vmem:[%s9471_s5 + $0x90] sm:$0xff]  ;;  %v570_v21 = vld [vmem:[%s9471_s5 + $0x88] sm:$0xff]  ;;  %v7122_v22 = vsel %vm1303_vm0, %v5769_v15, 0  ;;  %s6884_s16 = smul.u32 288, %s9767_s28 }
  0x14   : > { %6877 = vmatprep.subr.msk.bf16.mxu0 %vm1303_vm0, %v5769_v15  ;;  %9555 = vst [vmem:[#allocation3_spill] sm:$0xff] %v7122_v22  ;;  %6873 = vmatprep.subr.msk.bf16.mxu1 %vm1303_vm0, %v5654_v19  ;;  %v1305_v23 = vsel %vm1303_vm0, %v5654_v19, 0  ;;  %v573_v24 = vld [vmem:[%s9471_s5 + $0xa0] sm:$0xff]  ;;  %v572_v25 = vld [vmem:[%s9471_s5 + $0x98] sm:$0xff]  ;;  %v575_v27 = vld [vmem:[%s9471_s5 + $0xb0] sm:$0xff]  ;;  %vm5193_vm12 = vcmask 130048  }
  0x15   : > { %6394 = vmatpush3.bf16.msra.mxu0 %v7122_v22  ;;  %6242 = vmatpush3.bf16.msra.mxu1 %v1305_v23  ;;  %v7138_v26 = vld [vmem:[%s9469_s3] sm:$0xf]  ;;  %v574_v28 = vld [vmem:[%s9471_s5 + $0xa8] sm:$0xff]  ;;  %v576_v30 = vld [vmem:[%s9471_s5 + $0xb8] sm:$0xff]  ;;  %vm1071_vm8 = vsmask.f32 256  ;;  %s8927_s19 = scalar_lea.vmem %s9472_s6, %s6884_s16 }
  0x16   : > { %6879 = vmatprep.subr.msk.bf16.mxu0 %vm1303_vm0, %v7110_v18  ;;  %6874 = vmatprep.subr.msk.bf16.mxu1 %vm1303_vm0, %v7138_v26  ;;  %v577_v29 = vld [vmem:[%s9471_s5 + $0xc0] sm:$0xff]  ;;  %v579_v31 = vld [vmem:[%s9471_s5 + $0xd0] sm:$0xff]  ;;  %v578_v32 = vld [vmem:[%s9471_s5 + $0xc8] sm:$0xff]  ;;  %vm4504_vm11 = vsmask.f32 6400  ;;  %vm5263_vm13 = vcmask 128000  }
  0x17   : > { %608 = vperm.xlu1 %6895, %v555_v5   ;;  %603 = vperm.xlu0 %6894, %v554_v6   ;;  %v581_v33 = vld [vmem:[%s9471_s5 + $0xe0] sm:$0xff]  ;;  %v580_v34 = vld [vmem:[%s9471_s5 + $0xd8] sm:$0xff]  ;;  %v583_v35 = vld [vmem:[%s9471_s5 + $0xf0] sm:$0xff]  ;;  %vm5345_vm14 = vcmask 122880  }
  0x18   : > { %v582_v36 = vld [vmem:[%s9471_s5 + $0xe8] sm:$0xff]  ;;  %v585_v37 = vld [vmem:[%s9471_s5 + $0x100] sm:$0xff]  ;;  %v584_v38 = vld [vmem:[%s9471_s5 + $0xf8] sm:$0xff] }
  0x19   : > { %v587_v39 = vld [vmem:[%s9471_s5 + $0x110] sm:$0xff]  ;;  %v586_v40 = vld [vmem:[%s9471_s5 + $0x108] sm:$0xff]  ;;  %v589_v41 = vld [vmem:[%s9471_s5 + $0x120] sm:$0xff] }
  0x1a   : > { %v588_v42 = vld [vmem:[%s9471_s5 + $0x118] sm:$0xff]  ;;  %v591_v43 = vld [vmem:[%s9471_s5 + $0x130] sm:$0xff]  ;;  %v590_v44 = vld [vmem:[%s9471_s5 + $0x128] sm:$0xff] }
  0x1b   : > { %638 = vperm.xlu1 %6895, %v561_v7   ;;  %613 = vperm.xlu0 %6894, %v556_v8   ;;  %v593_v45 = vld [vmem:[%s9471_s5 + $0x140] sm:$0xff]  ;;  %v592_v46 = vld [vmem:[%s9471_s5 + $0x138] sm:$0xff]  ;;  %v595_v47 = vld [vmem:[%s9471_s5 + $0x150] sm:$0x1] }
  0x1c   : > { %v594_v48 = vld [vmem:[%s9471_s5 + $0x148] sm:$0xff]  ;;  %v4941_v50 = vld [vmem:[%s9470_s4] sm:$0xff]  ;;  %v4944_v51 = vld [vmem:[%s9470_s4 + $0x18] sm:$0xff] }
  0x1d   : > { %v4942_v49 = vld [vmem:[%s9470_s4 + $0x8] sm:$0xff]  ;;  %v4943_v52 = vld [vmem:[%s9470_s4 + $0x10] sm:$0xff]  ;;  %v4945_v54 = vld [vmem:[%s9470_s4 + $0x20] sm:$0xff] }
  0x1e   : > { %v4946_v53 = vld [vmem:[%s9470_s4 + $0x28] sm:$0xff]  ;;  %v4948_v55 = vld [vmem:[%s9470_s4 + $0x38] sm:$0xff]  ;;  %v4947_v56 = vld [vmem:[%s9470_s4 + $0x30] sm:$0xff] }
  0x1f   : > { %648 = vperm.xlu1 %6895, %v563_v9   ;;  %643 = vperm.xlu0 %6894, %v562_v10   ;;  %v6052_v57 = vld [vmem:[%s7236_s14 + $0x18] sm:$0xff]   ;;  %v6051_v58 = vld [vmem:[%s7236_s14 + $0x10] sm:$0xff]   ;;  %v4950_v60 = vld [vmem:[%s9470_s4 + $0x48] sm:$0xff] }
  0x20   : > { %v5980_v59 = vunpack.c.l.bf16 %v6052_v57  ;;  %v4949_v61 = vld [vmem:[%s9470_s4 + $0x40] sm:$0xff]  ;;  %v5981_v62 = vunpack.c.h.bf16 %v6052_v57  ;;  %v5976_v63 = vunpack.c.l.bf16 %v6051_v58  ;;  %v6050_v0 = vld [vmem:[%s7236_s14 + $0x8] sm:$0xff]   ;;  %v5977_v5 = vunpack.c.h.bf16 %v6051_v58  ;;  %v4952_v6 = vld [vmem:[%s9470_s4 + $0x58] sm:$0xff] }
  0x21   : > { %v5967_v1 = vld [vmem:[%s7236_s14] sm:$0xff]   ;;  %v4951_v7 = vld [vmem:[%s9470_s4 + $0x50] sm:$0xff]  ;;  %v5972_v9 = vunpack.c.l.bf16 %v6050_v0  ;;  %vm8014_vm9 = vmand %vm1070_vm7, %vm1071_vm8 }
  0x22   : > { %v7257_v2 = vld [vmem:[%s9467_s1] ss:$0 sm:$0xff]  ;;  %v5969_v10 = vunpack.c.h.bf16 %v5967_v1 }
  0x23   : > { %658 = vperm.xlu1 %6895, %v565_v11   ;;  %653 = vperm.xlu0 %6894, %v564_v12   ;;  %v6053_v3 = vld [vmem:[%s7236_s14 + $0x20] sm:$0xff]   ;;  %v423_v4 = vmul.f32 %v5980_v59, %v7257_v2  ;;  %v424_v8 = vmul.f32 %v5981_v62, %v7257_v2  ;;  %v421_v11 = vmul.f32 %v5976_v63, %v7257_v2 }
  0x24   : > { %v5984_v12 = vunpack.c.l.bf16 %v6053_v3  ;;  %v422_v15 = vmul.f32 %v5977_v5, %v7257_v2  ;;  %v4953_v19 = vld [vmem:[%s9470_s4 + $0x60] sm:$0xff]  ;;  %v418_v23 = vmul.f32 %v5969_v10, %v7257_v2 }
  0x25   : > { %v4957_v57 = vld [vmem:[%s9470_s4 + $0x80] sm:$0xff] }
  0x27   : > { %668 = vperm.xlu1 %6895, %v567_v13   ;;  %663 = vperm.xlu0 %6894, %v566_v14   ;;  %v7272_v13 = vld [vmem:[%s9468_s2] ss:$0 sm:$0xff] }
  0x28   : > { %v7275_v14 = vadd.f32 %v7272_v13, %v423_v4 }
  0x2b   : > { %678 = vperm.xlu1 %6895, %v569_v16   ;;  %673 = vperm.xlu0 %6894, %v568_v17   ;;  %v6054_v16 = vld [vmem:[%s7236_s14 + $0x28] sm:$0xff]  }
  0x2c   : > { %v4954_v17 = vld [vmem:[%s9470_s4 + $0x68] sm:$0xff] }
  0x2f   : > { %688 = vperm.xlu1 %6895, %v571_v20   ;;  %683 = vperm.xlu0 %6894, %v570_v21   ;;  %v7286_v20 = vadd.f32 %v7272_v13, %v424_v8  ;;  %v419_v21 = vmul.f32 %v5972_v9, %v7257_v2 }
  0x33   : > { %698 = vperm.xlu1 %6895, %v573_v24   ;;  %693 = vperm.xlu0 %6894, %v572_v25   ;;  %v5973_v24 = vunpack.c.h.bf16 %v6050_v0  ;;  %v6055_v25 = vld [vmem:[%s7236_s14 + $0x30] sm:$0xff]  }
  0x37   : > { %708 = vperm.xlu1 %6895, %v575_v27   ;;  %703 = vperm.xlu0 %6894, %v574_v28   ;;  %v7292_v27 = vadd.f32 %v7272_v13, %v421_v11  ;;  %v425_v28 = vmul.f32 %v5984_v12, %v7257_v2  ;;  %v4960_v12 = vld [vmem:[%s9470_s4 + $0x98] sm:$0xff] }
  0x3b   : > { %718 = vperm.xlu1 %6895, %v577_v29   ;;  %713 = vperm.xlu0 %6894, %v576_v30   ;;  %v5988_v29 = vunpack.c.l.bf16 %v6054_v16  ;;  %v5985_v30 = vunpack.c.h.bf16 %v6053_v3  ;;  %v6060_v3 = vld [vmem:[%s7236_s14 + $0x58] sm:$0xff]  }
  0x3f   : > { %728 = vperm.xlu1 %6895, %v579_v31   ;;  %723 = vperm.xlu0 %6894, %v578_v32   ;;  %v6056_v31 = vld [vmem:[%s7236_s14 + $0x38] sm:$0xff]   ;;  %v516_v32 = vmax.f32 %v7275_v14, 0.0 }
  0x43   : > { %738 = vperm.xlu1 %6895, %v581_v33   ;;  %733 = vperm.xlu0 %6894, %v580_v34   ;;  %v7298_v33 = vadd.f32 %v7272_v13, %v422_v15  ;;  %v5992_v34 = vunpack.c.l.bf16 %v6055_v25  ;;  %v4959_v15 = vld [vmem:[%s9470_s4 + $0x90] sm:$0xff] }
  0x47   : > { %748 = vperm.xlu1 %6895, %v583_v35   ;;  %743 = vperm.xlu0 %6894, %v582_v36   ;;  %v6057_v35 = vld [vmem:[%s7236_s14 + $0x40] sm:$0xff]   ;;  %v4956_v36 = vld [vmem:[%s9470_s4 + $0x78] sm:$0xff] }
  0x4b   : > { %758 = vperm.xlu1 %6895, %v585_v37   ;;  %753 = vperm.xlu0 %6894, %v584_v38   ;;  %v4955_v37 = vld [vmem:[%s9470_s4 + $0x70] sm:$0xff]  ;;  %v517_v38 = vmax.f32 %v7286_v20, 0.0  ;;  %v6069_v20 = vld [vmem:[%s7236_s14 + $0xa0] sm:$0xff]  }
  0x4f   : > { %768 = vperm.xlu1 %6895, %v587_v39   ;;  %763 = vperm.xlu0 %6894, %v586_v40   ;;  %v7309_v39 = vadd.f32 %v7272_v13, %v419_v21  ;;  %v7312_v40 = vadd.f32 %v7272_v13, %v418_v23  ;;  %v6012_v21 = vunpack.c.l.bf16 %v6060_v3 }
  0x51   : > { %v512_v58 = vmax.f32 %v7309_v39, 0.0  ;;  %v511_v59 = vmax.f32 %v7312_v40, 0.0  ;;  %v4969_v39 = vld [vmem:[%s9470_s4 + $0xe0] sm:$0xff] }
  0x53   : > { %778 = vperm.xlu1 %6895, %v589_v41   ;;  %773 = vperm.xlu0 %6894, %v588_v42   ;;  %v420_v41 = vmul.f32 %v5973_v24, %v7257_v2  ;;  %v6058_v42 = vld [vmem:[%s7236_s14 + $0x48] sm:$0xff]  }
  0x54   : > { %v6005_v11 = vunpack.c.h.bf16 %v6058_v42 }
  0x57   : > { %788 = vperm.xlu1 %6895, %v591_v43   ;;  %783 = vperm.xlu0 %6894, %v590_v44   ;;  %v514_v43 = vmax.f32 %v7292_v27, 0.0  ;;  %v7318_v44 = vadd.f32 %v7272_v13, %v425_v28 }
  0x59   : > { %v518_v62 = vmax.f32 %v7318_v44, 0.0 }
  0x5b   : > { %798 = vperm.xlu1 %6895, %v593_v45   ;;  %793 = vperm.xlu0 %6894, %v592_v46   ;;  %v5989_v45 = vunpack.c.h.bf16 %v6054_v16  ;;  %v5996_v46 = vunpack.c.l.bf16 %v6056_v31 }
  0x5d   : > { %v428_v63 = vmul.f32 %v5989_v45, %v7257_v2  ;;  %v431_v0 = vmul.f32 %v5996_v46, %v7257_v2  ;;  %v4962_v45 = vld [vmem:[%s9470_s4 + $0xa8] sm:$0xff]  ;;  %v4961_v46 = vld [vmem:[%s9470_s4 + $0xa0] sm:$0xff] }
  0x5f   : > { %808 = vperm.xlu1 %6895, %v595_v47   ;;  %803 = vperm.xlu0 %6894, %v594_v48   ;;  %v427_v47 = vmul.f32 %v5988_v29, %v7257_v2  ;;  %v426_v48 = vmul.f32 %v5985_v30, %v7257_v2  ;;  %v7366_v23 = vadd.f32 %v7272_v13, %v428_v63  ;;  %v6061_v29 = vld [vmem:[%s7236_s14 + $0x60] sm:$0xff]  }
  0x60   : > { %v7369_v24 = vadd.f32 %v7272_v13, %v431_v0  ;;  %v6017_v63 = vunpack.c.h.bf16 %v6061_v29  ;;  %v6063_v0 = vld [vmem:[%s7236_s14 + $0x70] sm:$0xff]  }
  0x61   : > { %v7341_v4 = vadd.f32 %v7272_v13, %v427_v47  ;;  %v7344_v5 = vadd.f32 %v7272_v13, %v426_v48  ;;  %v439_v48 = vmul.f32 %v6012_v21, %v7257_v2  ;;  %v7432_v21 = vld [vmem:[%s7236_s14 + $0x80] sm:$0xff]  }
  0x63   : > { %4984 = vperm.xlu1 %6895, %v4942_v49   ;;  %4979 = vperm.xlu0 %6894, %v4941_v50   ;;  %v5993_v49 = vunpack.c.h.bf16 %v6055_v25  ;;  %v6000_v50 = vunpack.c.l.bf16 %v6057_v35  ;;  %v520_v30 = vmax.f32 %v7341_v4, 0.0  ;;  %v4974_v4 = vld [vmem:[%s9470_s4 + $0x108] sm:$0xff] }
  0x67   : > { %4994 = vperm.xlu1 %6895, %v4944_v51   ;;  %4989 = vperm.xlu0 %6894, %v4943_v52   ;;  %v6059_v51 = vld [vmem:[%s7236_s14 + $0x50] sm:$0xff]   ;;  %v515_v52 = vmax.f32 %v7298_v33, 0.0 }
  0x68   : > { %v6008_v1 = vunpack.c.l.bf16 %v6059_v51  ;;  %v6009_v28 = vunpack.c.h.bf16 %v6059_v51  ;;  %v521_v51 = vmax.f32 %v7366_v23, 0.0 }
  0x6a   : > { %v437_v25 = vmul.f32 %v6008_v1, %v7257_v2 }
  0x6b   : > { %5004 = vperm.xlu1 %6895, %v4946_v53   ;;  %4999 = vperm.xlu0 %6894, %v4945_v54   ;;  %v429_v53 = vmul.f32 %v5992_v34, %v7257_v2  ;;  %v5997_v54 = vunpack.c.h.bf16 %v6056_v31  ;;  %v519_v31 = vmax.f32 %v7344_v5, 0.0 }
  0x6d   : > { %v7349_v8 = vadd.f32 %v7272_v13, %v429_v53  ;;  %v432_v9 = vmul.f32 %v5997_v54, %v7257_v2  ;;  %v524_v53 = vmax.f32 %v7369_v24, 0.0  ;;  %v7403_v54 = vadd.f32 %v7272_v13, %v437_v25 }
  0x6f   : > { %5014 = vperm.xlu1 %6895, %v4948_v55   ;;  %5009 = vperm.xlu0 %6894, %v4947_v56   ;;  %v6004_v55 = vunpack.c.l.bf16 %v6058_v42  ;;  %v4958_v56 = vld [vmem:[%s9470_s4 + $0x88] sm:$0xff] }
  0x70   : > { %v6062_v42 = vld [vmem:[%s7236_s14 + $0x68] sm:$0xff]  }
  0x71   : > { %v435_v10 = vmul.f32 %v6004_v55, %v7257_v2  ;;  %v438_v55 = vmul.f32 %v6009_v28, %v7257_v2 }
  0x73   : > { %5024 = vperm.xlu1 %6895, %v4950_v60   ;;  %5019 = vperm.xlu0 %6894, %v4949_v61   ;;  %v7334_v60 = vadd.f32 %v7272_v13, %v420_v41  ;;  %v6001_v61 = vunpack.c.h.bf16 %v6057_v35  ;;  %v522_v35 = vmax.f32 %v7349_v8, 0.0  ;;  %v436_v41 = vmul.f32 %v6005_v11, %v7257_v2  ;;  %v4976_v8 = vld [vmem:[%s9470_s4 + $0x118] sm:$0x3f] }
  0x74   : > { %v7436_v28 = vadd.f32 %v7272_v13, %v438_v55 }
  0x75   : > { %v513_v16 = vmax.f32 %v7334_v60, 0.0 }
  0x77   : > { %5034 = vperm.xlu1 %6895, %v4952_v6   ;;  %5029 = vperm.xlu0 %6894, %v4951_v7   ;;  %v430_v6 = vmul.f32 %v5993_v49, %v7257_v2  ;;  %v433_v7 = vmul.f32 %v6000_v50, %v7257_v2  ;;  %v6016_v49 = vunpack.c.l.bf16 %v6061_v29  ;;  %v6013_v50 = vunpack.c.h.bf16 %v6060_v3 }
  0x78   : > { %v6024_v29 = vunpack.c.l.bf16 %v6063_v0  ;;  %v6025_v3 = vunpack.c.h.bf16 %v6063_v0 }
  0x79   : > { %v7379_v34 = vadd.f32 %v7272_v13, %v433_v7  ;;  %v7416_v7 = vadd.f32 %v7272_v13, %v436_v41  ;;  %v6021_v41 = vunpack.c.h.bf16 %v6062_v42 }
  0x7b   : > { %5044 = vperm.xlu1 %6895, %v4954_v17   ;;  %5039 = vperm.xlu0 %6894, %v4953_v19   ;;  %v7362_v17 = vsel %vm1303_vm0, %v7110_v18, 0  ;;  %v434_v19 = vmul.f32 %v6001_v61, %v7257_v2  ;;  %v7376_v18 = vadd.f32 %v7272_v13, %v430_v6  ;;  %v6020_v61 = vunpack.c.l.bf16 %v6062_v42 }
  0x7c   : > { %v6032_v42 = vunpack.c.l.bf16 %v7432_v21 }
  0x7d   : > { %v7397_v47 = vadd.f32 %v7272_v13, %v434_v19  ;;  %v440_v19 = vmul.f32 %v6013_v50, %v7257_v2  ;;  %v443_v11 = vmul.f32 %v6020_v61, %v7257_v2  ;;  %v4966_v61 = vld [vmem:[%s9470_s4 + $0xc8] sm:$0xff] }
  0x7f   : > { %5054 = vperm.xlu1 %6895, %v4956_v36   ;;  %5049 = vperm.xlu0 %6894, %v4955_v37   ;;  %v7383_v36 = vadd.f32 %v7272_v13, %v432_v9  ;;  %v7386_v37 = vadd.f32 %v7272_v13, %v435_v10  ;;  %v6064_v9 = vld [vmem:[%s7236_s14 + $0x78] sm:$0xff]   ;;  %v4963_v10 = vld [vmem:[%s9470_s4 + $0xb0] sm:$0xff]  ;;  %v7465_v1 = vadd.f32 %v7272_v13, %v443_v11 }
  0x80   : > { %v6028_v6 = vunpack.c.l.bf16 %v6064_v9 }
  0x83   : > { %5064 = vperm.xlu1 %6895, %v4958_v56   ;;  %5059 = vperm.xlu0 %6894, %v4957_v57   ;;  %v523_v56 = vmax.f32 %v7376_v18, 0.0  ;;  %v7409_v57 = vsel %vm1303_vm0, %v7138_v26, 0  ;;  %v4964_v26 = vld [vmem:[%s9470_s4 + $0xb8] sm:$0xff] }
  0x87   : > { %5074 = vperm.xlu1 %6895, %v4960_v12   ;;  %5069 = vperm.xlu0 %6894, %v4959_v15   ;;  %v7427_v12 = vadd.f32 %v7272_v13, %v439_v48  ;;  %v441_v15 = vmul.f32 %v6016_v49, %v7257_v2  ;;  %v442_v48 = vmul.f32 %v6017_v63, %v7257_v2  ;;  %v4965_v63 = vld [vmem:[%s9470_s4 + $0xc0] sm:$0xff] }
  0x89   : > { %v7454_v27 = vadd.f32 %v7272_v13, %v441_v15  ;;  %v7468_v15 = vadd.f32 %v7272_v13, %v442_v48  ;;  %v449_v48 = vmul.f32 %v6032_v42, %v7257_v2  ;;  %v6067_v42 = vld [vmem:[%s7236_s14 + $0x90] sm:$0xff]  }
  0x8a   : > { %v6041_v33 = vunpack.c.h.bf16 %v6067_v42 }
  0x8b   : > { %5084 = vperm.xlu1 %6895, %v4962_v45   ;;  %5079 = vperm.xlu0 %6894, %v4961_v46  }
  0x8e   : > { %v629_v45 = vpop.permute.xlu1 %628  ;;  %v619_v46 = vpop.permute.xlu0 %618 }
  0x8f   : > { %v817_v49 = vmul.f32 %v629_v45, %v516_v32  ;;  %v815_v50 = vmul.f32 %v619_v46, %v514_v43  ;;  %5094 = vperm.xlu1 %6895, %v4964_v26   ;;  %5089 = vperm.xlu0 %6894, %v4963_v10   ;;  %v7457_v32 = vadd.f32 %v7272_v13, %v440_v19  ;;  %v6029_v43 = vunpack.c.h.bf16 %v6064_v9  ;;  %v7462_v46 = vld [vmem:[%s7236_s14 + $0x88] sm:$0xff]  }
  0x90   : > { %v445_v10 = vmul.f32 %v6024_v29, %v7257_v2  ;;  %v444_v45 = vmul.f32 %v6021_v41, %v7257_v2  ;;  %v447_v19 = vmul.f32 %v6028_v6, %v7257_v2  ;;  %v446_v9 = vmul.f32 %v6025_v3, %v7257_v2  ;;  %v4968_v3 = vld [vmem:[%s9470_s4 + $0xd8] sm:$0xff]  ;;  %v4967_v6 = vld [vmem:[%s9470_s4 + $0xd0] sm:$0xff] }
  0x91   : > { %v5929_v0 = vpack.c.bf16 %v817_v49, %v817_v49  ;;  %v5927_v26 = vpack.c.bf16 %v815_v50, %v815_v50 }
  0x92   : > { %v634_v55 = vpop.permute.xlu1 %633  ;;  %v624_v25 = vpop.permute.xlu0 %623  ;;  %v7491_v50 = vadd.f32 %v7272_v13, %v445_v10 }
  0x93   : > { %1034 = vst.msk [vmem:[#allocation2 + $0x18] sm:$0xf] %vm1027_vm1, %v5929_v0  ;;  %1032 = vst.msk [vmem:[#allocation2 + $0x10] sm:$0xf] %vm1027_vm1, %v5927_v26  ;;  %v818_v29 = vmul.f32 %v634_v55, %v517_v38  ;;  %v816_v41 = vmul.f32 %v624_v25, %v515_v52  ;;  %5104 = vperm.xlu1 %6895, %v4966_v61   ;;  %5099 = vperm.xlu0 %6894, %v4965_v63   ;;  %v6036_v52 = vunpack.c.l.bf16 %v7462_v46 }
  0x94   : > { %v448_v38 = vmul.f32 %v6029_v43, %v7257_v2  ;;  %v7494_v55 = vadd.f32 %v7272_v13, %v444_v45  ;;  %v7499_v26 = vadd.f32 %v7272_v13, %v447_v19  ;;  %v7502_v43 = vadd.f32 %v7272_v13, %v446_v9 }
  0x95   : > { %v5930_v25 = vpack.c.bf16 %v818_v29, %v818_v29  ;;  %v5928_v49 = vpack.c.bf16 %v816_v41, %v816_v41  ;;  %v6033_v29 = vunpack.c.h.bf16 %v7432_v21  ;;  %v7513_v9 = vadd.f32 %v7272_v13, %v449_v48  ;;  %v7516_v41 = vld [vmem:[%s7236_s14 + $0x98] sm:$0xff]   ;;  %v4970_v21 = vld [vmem:[%s9470_s4 + $0xe8] sm:$0xff] }
  0x96   : > { %v609_v61 = vpop.permute.xlu1 %608  ;;  %v604_v63 = vpop.permute.xlu0 %603  ;;  %v7525_v40 = vadd.f32 %v7272_v13, %v448_v38  ;;  %v6037_v48 = vunpack.c.h.bf16 %v7462_v46  ;;  %v6044_v38 = vunpack.c.l.bf16 %v7516_v41 }
  0x97   : > { %1035 = vst.msk [vmem:[#allocation2 + $0x1c] sm:$0xf] %vm1027_vm1, %v5930_v25  ;;  %1033 = vst.msk [vmem:[#allocation2 + $0x14] sm:$0xf] %vm1027_vm1, %v5928_v49  ;;  %v813_v10 = vmul.f32 %v609_v61, %v512_v58  ;;  %v812_v45 = vmul.f32 %v604_v63, %v511_v59  ;;  %5114 = vperm.xlu1 %6895, %v4968_v3   ;;  %5109 = vperm.xlu0 %6894, %v4967_v6   ;;  %v6040_v59 = vunpack.c.l.bf16 %v6067_v42 }
  0x98   : > { %v451_v58 = vmul.f32 %v6036_v52, %v7257_v2  ;;  %v450_v0 = vmul.f32 %v6033_v29, %v7257_v2  ;;  %v4972_v29 = vld [vmem:[%s9470_s4 + $0xf8] sm:$0xff] }
  0x99   : > { %v5925_v3 = vpack.c.bf16 %v813_v10, %v813_v10  ;;  %v5924_v6 = vpack.c.bf16 %v812_v45, %v812_v45  ;;  %v4971_v45 = vld [vmem:[%s9470_s4 + $0xf0] sm:$0xff] }
  0x9a   : > { %v639_v61 = vpop.permute.xlu1 %638  ;;  %v614_v63 = vpop.permute.xlu0 %613  ;;  %v7551_v60 = vadd.f32 %v7272_v13, %v451_v58  ;;  %v7562_v58 = vadd.f32 %v7272_v13, %v450_v0  ;;  %v2255_v49 = vld [vmem:[#allocation2 + $0x10] sm:$0xf] }
  0x9b   : > { %1030 = vst.msk [vmem:[#allocation2 + $0x8] sm:$0xf] %vm1027_vm1, %v5925_v3  ;;  %1029 = vst.msk [vmem:[#allocation2 + $0x4] sm:$0xf] %vm1027_vm1, %v5924_v6  ;;  %v819_v46 = vmul.f32 %v639_v61, %v518_v62  ;;  %v814_v52 = vmul.f32 %v614_v63, %v513_v16  ;;  %5124 = vperm.xlu1 %6895, %v4970_v21   ;;  %5119 = vperm.xlu0 %6894, %v4969_v39   ;;  %v2257_v3 = vld [vmem:[#allocation2 + $0x18] sm:$0xf]  ;;  %v6048_v61 = vunpack.c.l.bf16 %v6069_v20 }
  0x9c   : > { %v453_v62 = vmul.f32 %v6040_v59, %v7257_v2  ;;  %v452_v16 = vmul.f32 %v6037_v48, %v7257_v2  ;;  %v5826_v6 = vld [vmem:[%s9469_s3 + $0x18] sm:$0xf]  ;;  %v6045_v63 = vunpack.c.h.bf16 %v7516_v41  ;;  %v455_v59 = vmul.f32 %v6044_v38, %v7257_v2  ;;  %v366_v38 = vld [vmem:[%s7236_s14 + $0xa8] sm:$0x1] }
  0x9d   : > { %v5931_v21 = vpack.c.bf16 %v819_v46, %v819_v46  ;;  %v5926_v39 = vpack.c.bf16 %v814_v52, %v814_v52  ;;  %v454_v48 = vmul.f32 %v6041_v33, %v7257_v2  ;;  %v6049_v46 = vunpack.c.h.bf16 %v6069_v20 }
  0x9e   : > { %v649_v42 = vpop.permute.xlu1 %648  ;;  %v644_v10 = vpop.permute.xlu0 %643  ;;  %v2256_v44 = vld [vmem:[#allocation2 + $0x14] sm:$0xf]  ;;  %v7559_v19 = vld [vmem:[#allocation2 + $0x1c] sm:$0xf]  ;;  %v7587_v5 = vadd.f32 %v7272_v13, %v452_v16  ;;  %v7602_v16 = vadd.f32 %v7272_v13, %v455_v59 }
  0x9f   : > { %1036 = vst.msk [vmem:[#allocation2 + $0x20] sm:$0xf] %vm1027_vm1, %v5931_v21  ;;  %1031 = vst.msk [vmem:[#allocation2 + $0xc] sm:$0xf] %vm1027_vm1, %v5926_v39  ;;  %v821_v41 = vmul.f32 %v649_v42, %v520_v30  ;;  %v820_v52 = vmul.f32 %v644_v10, %v519_v31  ;;  %5134 = vperm.xlu1 %6895, %v4972_v29   ;;  %5129 = vperm.xlu0 %6894, %v4971_v45   ;;  %v4973_v29 = vld [vmem:[%s9470_s4 + $0x100] sm:$0xff]  ;;  %v409_v21 = vunpack.c.l.bf16 %v366_v38  ;;  %v7613_v59 = vld [vmem:[#allocation2 + $0x14] sm:$0xff]  }
  0xa0   : > { %v7572_v0 = vcombine.low %v2256_v44, %v2257_v3  ;;  %v7575_v25 = vcombine.low %v2255_v49, %v2256_v44  ;;  %v7578_v20 = vcombine.low %v2257_v3, %v7559_v19  ;;  %v7584_v30 = vadd.f32 %v7272_v13, %v453_v62 }
  0xa1   : > { %v5933_v31 = vpack.c.bf16 %v821_v41, %v821_v41  ;;  %v5932_v33 = vpack.c.bf16 %v820_v52, %v820_v52  ;;  %v457_v10 = vmul.f32 %v6048_v61, %v7257_v2  ;;  %v456_v42 = vmul.f32 %v6045_v63, %v7257_v2 }
  0xa2   : > { %6395 = vmatprep.mubr.msk.bf16.mxu0 %vm1248_vm2, %v7575_v25  ;;  %v659_v45 = vpop.permute.xlu1 %658  ;;  %v654_v3 = vpop.permute.xlu0 %653  ;;  %v7596_v44 = vld [vmem:[#allocation2 + $0x8] sm:$0xf]  ;;  %v7599_v62 = vsel %vm1303_vm0, %v5826_v6, 0  ;;  %v458_v39 = vmul.f32 %v6049_v46, %v7257_v2  ;;  %v1114_v41 = vld [vmem:[#allocation2 + $0x4] sm:$0x8]  ;;  %v7617_v46 = vadd.f32 %v7272_v13, %v454_v48  ;;  %v4975_v48 = vld [vmem:[%s9470_s4 + $0x110] sm:$0xff] }
  0xa3   : > { %1038 = vst.msk [vmem:[#allocation2 + $0x28] sm:$0xf] %vm1027_vm1, %v5933_v31  ;;  %1037 = vst.msk [vmem:[#allocation2 + $0x24] sm:$0xf] %vm1027_vm1, %v5932_v33  ;;  %v823_v61 = vmul.f32 %v659_v45, %v522_v35  ;;  %v822_v63 = vmul.f32 %v654_v3, %v521_v51  ;;  %6396 = vmatmul.mubr.msk.bf16.vlgmr.msra.gmra.mrb[0].mxu0 %vm1248_vm2, %v7578_v20  ;;  %5144 = vperm.xlu1 %6895, %v4974_v4  }
  0xa4   : > { %5139 = vperm.xlu0 %6894, %v4973_v29   ;;  %6432 = vmatpush3.bf16.msra.mxu0 %v7362_v17  ;;  %v7624_v23 = vcombine.low %v1114_v41, %v7596_v44  ;;  %v7634_v33 = vadd.f32 %v7272_v13, %v457_v10  ;;  %v7637_v17 = vadd.f32 %v7272_v13, %v456_v42  ;;  %v1214_v42 = vrot.slane %v7613_v59, 3 }
  0xa5   : > { %v5935_v4 = vpack.c.bf16 %v823_v61, %v823_v61  ;;  %v5934_v31 = vpack.c.bf16 %v822_v63, %v822_v63  ;;  %6880 = vmatprep.subr.msk.bf16.mxu0 %vm1303_vm0, %v5826_v6  ;;  %v459_v63 = vmul.f32 %v7257_v2, %v409_v21  ;;  %v7644_v38 = vadd.f32 %v7272_v13, %v458_v39 }
  0xa6   : > { %v2254_v29 = vld [vmem:[#allocation2 + $0xc] sm:$0x8]  ;;  %v669_v45 = vpop.permute.xlu1 %668  ;;  %v664_v3 = vpop.permute.xlu0 %663  ;;  %v2259_v51 = vld [vmem:[#allocation2 + $0x20] sm:$0xf]  ;;  %v1211_v21 = vrot.slane %v7624_v23, 3 }
  0xa7   : > { %v7639_v41 = vld [vmem:[#allocation2 + $0xc] sm:$0xff]   ;;  %1040 = vst.msk [vmem:[#allocation2 + $0x30] sm:$0xf] %vm1027_vm1, %v5935_v4  ;;  %1039 = vst.msk [vmem:[#allocation2 + $0x2c] sm:$0xf] %vm1027_vm1, %v5934_v31  ;;  %v825_v6 = vmul.f32 %v669_v45, %v524_v53  ;;  %v824_v10 = vmul.f32 %v664_v3, %v523_v56  ;;  %5154 = vperm.xlu1 %6895, %v4976_v8   ;;  %v5732_v2 = vcombine.low %v2254_v29, %v2255_v49  ;;  %v7659_v24 = vld [vmem:[#allocation2 + $0x1c] sm:$0xff]  }
  0xa8   : > { %5149 = vperm.xlu0 %6894, %v4975_v48   ;;  %v1212_v39 = vrot.slane %v7639_v41, 3  ;;  %v7657_v4 = vcombine.low %v7559_v19, %v2259_v51  ;;  %v553_v56 = vld [vmem:[%s9471_s5] sm:$0xff]  ;;  %v7669_v61 = vadd.f32 %v7272_v13, %v459_v63  ;;  %v9557_v8 = vmax.f32 %v7383_v36, 0.0 }
  0xa9   : > { %v5937_v53 = vpack.c.bf16 %v825_v6, %v825_v6  ;;  %v5936_v18 = vpack.c.bf16 %v824_v10, %v824_v10  ;;  %v9556_v10 = vmax.f32 %v7379_v34, 0.0  ;;  %v2387_v13 = vshrl.u32 %v5732_v2, 16 }
  0xaa   : > { %v679_v31 = vpop.permute.xlu1 %678  ;;  %v674_v48 = vpop.permute.xlu0 %673  ;;  %v1213_v29 = vsel %vm1210_vm3, %v1211_v21, %v1212_v39  ;;  %v1215_v45 = vsel %vm1210_vm3, %v1212_v39, %v1214_v42  ;;  %v2260_v19 = vld [vmem:[#allocation2 + $0x24] sm:$0xf]  ;;  %v2261_v3 = vld [vmem:[#allocation2 + $0x28] sm:$0xf]  ;;  %v2395_v63 = vshrl.u32 %v7572_v0, 16  ;;  %v1216_v34 = vrot.slane %v7659_v24, 3 }
  0xab   : > { %1042 = vst.msk [vmem:[#allocation2 + $0x38] sm:$0xf] %vm1027_vm1, %v5937_v53  ;;  %1041 = vst.msk [vmem:[#allocation2 + $0x34] sm:$0xf] %vm1027_vm1, %v5936_v18  ;;  %v827_v49 = vmul.f32 %v679_v31, %v9556_v10  ;;  %v826_v35 = vmul.f32 %v674_v48, %v9557_v8  ;;  %6243 = vmatprep.mubr.msk.bf16.mxu1 %vm1248_vm2, %v1213_v29  ;;  %v5711_v21 = vld [vmem:[%s9469_s3 + $0x8] sm:$0xf]  ;;  %v7684_v39 = vcombine.low %v2259_v51, %v2260_v19 }
  0xac   : > { %598 = vperm.xlu0 %6894, %v553_v56   ;;  %6244 = vmatmul.mubr.msk.bf16.vlgmr.msra.gmra.mrb[0].mxu1 %vm1248_vm2, %v1215_v45  ;;  %v7687_v53 = vld [vmem:[#allocation2 + $0x24] sm:$0xff]   ;;  %v2390_v36 = vshll.u32 %v5732_v2, 16  ;;  %v7690_v31 = vcombine.low %v2260_v19, %v2261_v3  ;;  %v1217_v29 = vsel %vm1210_vm3, %v1214_v42, %v1216_v34  ;;  %v9560_v2 = vmax.f32 %v7397_v47, 0.0 }
  0xad   : > { %v5939_v18 = vpack.c.bf16 %v827_v49, %v827_v49  ;;  %v5938_v8 = vpack.c.bf16 %v826_v35, %v826_v35  ;;  %6280 = vmatpush3.bf16.msra.mxu1 %v7409_v57  ;;  %6399 = vmatprep.mubr.msk.bf16.mxu0 %vm1248_vm2, %v7684_v39  ;;  %v1218_v45 = vrot.slane %v7687_v53, 3  ;;  %v9559_v57 = vmax.f32 %v7386_v37, 0.0 }
  0xae   : > { %9558 = vst [vmem:[#allocation4_spill] sm:$0xff] %v7690_v31  ;;  %v689_v48 = vpop.permute.xlu1 %688  ;;  %v684_v56 = vpop.permute.xlu0 %683  ;;  %v2262_v51 = vld [vmem:[#allocation2 + $0x2c] sm:$0xf]  ;;  %v2263_v10 = vld [vmem:[#allocation2 + $0x30] sm:$0xf]  ;;  %6875 = vmatprep.subr.msk.bf16.mxu1 %vm1303_vm0, %v5711_v21  ;;  %6247 = vmatprep.mubr.msk.bf16.mxu1 %vm1248_vm2, %v1217_v29  ;;  %v2389_v6 = vrot.slane %v2387_v13, 3 }
  0xaf   : > { %1044 = vst.msk [vmem:[#allocation2 + $0x40] sm:$0xf] %vm1027_vm1, %v5939_v18  ;;  %1043 = vst.msk [vmem:[#allocation2 + $0x3c] sm:$0xf] %vm1027_vm1, %v5938_v8  ;;  %v829_v35 = vmul.f32 %v689_v48, %v9559_v57  ;;  %v828_v49 = vmul.f32 %v684_v56, %v9560_v2  ;;  %v7705_v42 = vcombine.low %v2261_v3, %v2262_v51  ;;  %v7709_v52 = vld [vmem:[#allocation2 + $0x2c] sm:$0xff]   ;;  %v2397_v11 = vrot.slane %v2395_v63, 3 }
  0xb0   : > { %v7707_v19 = vcombine.low %v2262_v51, %v2263_v10  ;;  %v2398_v18 = vshll.u32 %v7572_v0, 16  ;;  %v7713_v8 = vsel %vm1303_vm0, %v5711_v21, 0  ;;  %v2392_v37 = vrot.slane %v2390_v36, 4  ;;  %v7721_v56 = vld [vmem:[%s9469_s3 + $0x1c] sm:$0xf] }
  0xb1   : > { %v5941_v48 = vpack.c.bf16 %v829_v35, %v829_v35  ;;  %v5940_v47 = vpack.c.bf16 %v828_v49, %v828_v49  ;;  %6400 = vmatmul.mubr.msk.bf16.gmra.mrb[4].mxu0 %vm1248_vm2, %v7705_v42  ;;  %v1220_v3 = vrot.slane %v7709_v52, 3  ;;  %v9562_v21 = vmax.f32 %v7403_v54, 0.0 }
  0xb2   : > { %9561 = vst [vmem:[#allocation5_spill] sm:$0xff] %v7707_v19  ;;  %v699_v13 = vpop.permute.xlu1 %698  ;;  %v694_v63 = vpop.permute.xlu0 %693  ;;  %v2264_v29 = vld [vmem:[#allocation2 + $0x34] sm:$0xf]  ;;  %v2265_v0 = vld [vmem:[#allocation2 + $0x38] sm:$0xf]  ;;  %v9563_v51 = vmax.f32 %v7416_v7, 0.0  ;;  %v1219_v35 = vsel %vm1210_vm3, %v1216_v34, %v1218_v45 }
  0xb3   : > { %1046 = vst.msk [vmem:[#allocation2 + $0x48] sm:$0xf] %vm1027_vm1, %v5941_v48  ;;  %1045 = vst.msk [vmem:[#allocation2 + $0x44] sm:$0xf] %vm1027_vm1, %v5940_v47  ;;  %v831_v36 = vmul.f32 %v699_v13, %v9562_v21  ;;  %v7730_v2 = vcombine.low %v2263_v10, %v2264_v29  ;;  %v7732_v49 = vld [vmem:[#allocation2 + $0x34] sm:$0xff]   ;;  %v2400_v14 = vrot.slane %v2398_v18, 4  ;;  %v1221_v48 = vsel %vm1210_vm3, %v1218_v45, %v1220_v3 }
  0xb4   : > { %v830_v57 = vmul.f32 %v694_v63, %v9563_v51  ;;  %v2404_v22 = vshrl.u32 %v7657_v4, 16  ;;  %6248 = vmatmul.mubr.msk.bf16.gmra.mrb[4].mxu1 %vm1248_vm2, %v1219_v35  ;;  %v7737_v47 = vcombine.low %v2264_v29, %v2265_v0  ;;  %v2407_v54 = vshll.u32 %v7657_v4, 16  ;;  %v1076_v19 = vld [vmem:[#allocation2 + $0x4] sm:$0xc] }
  0xb5   : > { %v5943_v13 = vpack.c.bf16 %v831_v36, %v831_v36  ;;  %6403 = vmatprep.mubr.msk.bf16.mxu0 %vm1248_vm2, %v7730_v2  ;;  %6251 = vmatprep.mubr.msk.bf16.mxu1 %vm1248_vm2, %v1221_v48  ;;  %v7745_v34 = vsel %vm1303_vm0, %v7721_v56, 0  ;;  %v2393_v45 = vor.u32 %v2392_v37, %v2389_v6  ;;  %v9565_v4 = vmax.f32 %v7427_v12, 0.0 }
  0xb6   : > { %9564 = vst [vmem:[#allocation6_spill] sm:$0xff] %v7737_v47  ;;  %v5942_v7 = vpack.c.bf16 %v830_v57, %v830_v57  ;;  %v709_v10 = vpop.permute.xlu1 %708  ;;  %v704_v18 = vpop.permute.xlu0 %703  ;;  %v2266_v63 = vld [vmem:[#allocation2 + $0x3c] sm:$0xf]  ;;  %v2267_v21 = vld [vmem:[#allocation2 + $0x40] sm:$0xf]  ;;  %v9566_v36 = vmax.f32 %v7436_v28, 0.0 }
  0xb7   : > { %1048 = vst.msk [vmem:[#allocation2 + $0x50] sm:$0xf] %vm1027_vm1, %v5943_v13  ;;  %v833_v29 = vmul.f32 %v709_v10, %v9565_v4  ;;  %v7753_v57 = vcombine.low %v2265_v0, %v2266_v63  ;;  %v1222_v35 = vrot.slane %v7732_v49, 3  ;;  %v7756_v48 = vld [vmem:[#allocation2 + $0x3c] sm:$0xff]   ;;  %v3125_v47 = vshll.u32 %v7575_v25, 16 }
  0xb8   : > { %1047 = vst.msk [vmem:[#allocation2 + $0x4c] sm:$0xf] %vm1027_vm1, %v5942_v7  ;;  %v832_v51 = vmul.f32 %v704_v18, %v9566_v36  ;;  %v2406_v6 = vrot.slane %v2404_v22, 3  ;;  %v7759_v37 = vcombine.low %v2266_v63, %v2267_v21  ;;  %v2401_v13 = vor.u32 %v2400_v14, %v2397_v11 }
  0xb9   : > { %v2409_v7 = vrot.slane %v2407_v54, 4  ;;  %v5945_v31 = vpack.c.bf16 %v833_v29, %v833_v29  ;;  %6404 = vmatmul.mubr.msk.bf16.gmra.mrb[8].mxu0 %vm1248_vm2, %v7753_v57  ;;  %v1224_v28 = vrot.slane %v7756_v48, 3  ;;  %v9569_v22 = vmax.f32 %v7454_v27, 0.0 }
  0xba   : > { %9567 = vst [vmem:[#allocation7_spill] sm:$0xff] %v7759_v37  ;;  %v5944_v12 = vpack.c.bf16 %v832_v51, %v832_v51  ;;  %v719_v0 = vpop.permute.xlu1 %718  ;;  %v714_v10 = vpop.permute.xlu0 %713  ;;  %v2268_v18 = vld [vmem:[#allocation2 + $0x44] sm:$0xf]  ;;  %v2269_v4 = vld [vmem:[#allocation2 + $0x48] sm:$0xf]  ;;  %v7765_v36 = vsel %vm1898_vm4, %v2393_v45, %v2401_v13  ;;  %v9570_v11 = vmax.f32 %v7457_v32, 0.0  ;;  %v1223_v63 = vsel %vm1210_vm3, %v1220_v3, %v1222_v35 }
  0xbb   : > { %9568 = vst [vmem:[#allocation8_spill] sm:$0xff] %v7765_v36  ;;  %1050 = vst.msk [vmem:[#allocation2 + $0x58] sm:$0xf] %vm1027_vm1, %v5945_v31  ;;  %v835_v14 = vmul.f32 %v719_v0, %v9569_v22  ;;  %v7774_v29 = vcombine.low %v2267_v21, %v2268_v18  ;;  %v7776_v51 = vld [vmem:[#allocation2 + $0x44] sm:$0xff]   ;;  %v7779_v45 = vcombine.low %v1076_v19, %v7596_v44  ;;  %v3129_v27 = vshll.u32 %v7578_v20, 16 }
  0xbc   : > { %1049 = vst.msk [vmem:[#allocation2 + $0x54] sm:$0xf] %vm1027_vm1, %v5944_v12  ;;  %v834_v54 = vmul.f32 %v714_v10, %v9570_v11  ;;  %6252 = vmatmul.mubr.msk.bf16.gmra.mrb[8].mxu1 %vm1248_vm2, %v1223_v63  ;;  %v1225_v31 = vsel %vm1210_vm3, %v1222_v35, %v1224_v28  ;;  %v7783_v12 = vcombine.low %v2268_v18, %v2269_v4  ;;  %v3123_v32 = vshrl.u32 %v7575_v25, 16 }
  0xbd   : > { %v3127_v0 = vrot.slane %v3125_v47, 1  ;;  %v5947_v3 = vpack.c.bf16 %v835_v14, %v835_v14  ;;  %6407 = vmatprep.mubr.msk.bf16.mxu0 %vm1248_vm2, %v7774_v29  ;;  %6255 = vmatprep.mubr.msk.bf16.mxu1 %vm1248_vm2, %v1225_v31  ;;  %v7790_v11 = vor.u32 %v2409_v7, %v2406_v6  ;;  %v9573_v25 = vmax.f32 %v7465_v1, 0.0 }
  0xbe   : > { %9571 = vst [vmem:[#allocation9_spill] sm:$0xff] %v7783_v12  ;;  %v5946_v21 = vpack.c.bf16 %v834_v54, %v834_v54  ;;  %v729_v44 = vpop.permute.xlu1 %728  ;;  %v724_v19 = vpop.permute.xlu0 %723  ;;  %v2271_v22 = vld [vmem:[#allocation2 + $0x50] sm:$0xf]  ;;  %v9574_v35 = vmax.f32 %v7468_v15, 0.0  ;;  %v1226_v54 = vrot.slane %v7776_v51, 3  ;;  %v3131_v6 = vrot.slane %v3129_v27, 1 }
  0xbf   : > { %v2270_v10 = vld [vmem:[#allocation2 + $0x4c] sm:$0xf]  ;;  %9572 = vst [vmem:[#allocation10_spill] sm:$0xff] %v7790_v11  ;;  %1052 = vst.msk [vmem:[#allocation2 + $0x60] sm:$0xf] %vm1027_vm1, %v5947_v3  ;;  %v837_v47 = vmul.f32 %v729_v44, %v9573_v25  ;;  %v3133_v7 = vshrl.u32 %v7578_v20, 16  ;;  %v7813_v27 = vsel %vm1898_vm4, %v2401_v13, %v7790_v11 }
  0xc0   : > { %1051 = vst.msk [vmem:[#allocation2 + $0x5c] sm:$0xf] %vm1027_vm1, %v5946_v21  ;;  %v836_v18 = vmul.f32 %v724_v19, %v9574_v35  ;;  %v7798_v14 = vcombine.low %v2269_v4, %v2270_v10  ;;  %v7801_v63 = vld [vmem:[#allocation2 + $0x4c] sm:$0xff]   ;;  %v7803_v31 = vcombine.low %v2270_v10, %v2271_v22  ;;  %v1489_v3 = vshrl.u32 %v7779_v45, 16  ;;  %9576 = vst [vmem:[#allocation12_spill] sm:$0xff] %v7813_v27 }
  0xc1   : > { %v5949_v21 = vpack.c.bf16 %v837_v47, %v837_v47  ;;  %v1228_v1 = vrot.slane %v7801_v63, 3  ;;  %v1492_v15 = vshll.u32 %v7779_v45, 16  ;;  %v3128_v10 = vor.u32 %v3127_v0, %v3123_v32 }
  0xc2   : > { %9575 = vst [vmem:[#allocation11_spill] sm:$0xff] %v7803_v31  ;;  %v5948_v36 = vpack.c.bf16 %v836_v18, %v836_v18  ;;  %6408 = vmatmul.mubr.msk.bf16.gmra.mrb[12].mxu0 %vm1248_vm2, %v7798_v14  ;;  %v739_v4 = vpop.permute.xlu1 %738  ;;  %v734_v44 = vpop.permute.xlu0 %733  ;;  %v2273_v25 = vld [vmem:[#allocation2 + $0x58] sm:$0xf]  ;;  %v9577_v20 = vmax.f32 %v7491_v50, 0.0  ;;  %v9578_v35 = vmax.f32 %v7494_v55, 0.0  ;;  %v1227_v45 = vsel %vm1210_vm3, %v1224_v28, %v1226_v54 }
  0xc3   : > { %v2272_v19 = vld [vmem:[#allocation2 + $0x54] sm:$0xf]  ;;  %1054 = vst.msk [vmem:[#allocation2 + $0x68] sm:$0xf] %vm1027_vm1, %v5949_v21  ;;  %v3136_v32 = vshll.u32 %v7684_v39, 16  ;;  %v1229_v13 = vsel %vm1210_vm3, %v1226_v54, %v1228_v1  ;;  %v3143_v50 = vshll.u32 %v7705_v42, 16  ;;  %v3132_v54 = vsel %vm3122_vm5, %v3128_v10, %v3131_v6 }
  0xc4   : > { %1053 = vst.msk [vmem:[#allocation2 + $0x64] sm:$0xf] %vm1027_vm1, %v5948_v36  ;;  %v839_v47 = vmul.f32 %v739_v4, %v9577_v20  ;;  %v838_v18 = vmul.f32 %v734_v44, %v9578_v35  ;;  %v7822_v31 = vcombine.low %v2271_v22, %v2272_v19  ;;  %v7824_v12 = vld [vmem:[#allocation2 + $0x54] sm:$0xff]   ;;  %6256 = vmatmul.mubr.msk.bf16.gmra.mrb[12].mxu1 %vm1248_vm2, %v1227_v45  ;;  %v3150_v28 = vshll.u32 %v7730_v2, 16 }
  0xc5   : > { %v7829_v0 = vcombine.low %v2272_v19, %v2273_v25  ;;  %6259 = vmatprep.mubr.msk.bf16.mxu1 %vm1248_vm2, %v1229_v13  ;;  %v1230_v55 = vrot.slane %v7824_v12, 3  ;;  %v9580_v19 = vmax.f32 %v7499_v26, 0.0  ;;  %v9581_v35 = vmax.f32 %v7502_v43, 0.0 }
  0xc6   : > { %v5951_v36 = vpack.c.bf16 %v839_v47, %v839_v47  ;;  %v5950_v21 = vpack.c.bf16 %v838_v18, %v838_v18  ;;  %6411 = vmatprep.mubr.msk.bf16.mxu0 %vm1248_vm2, %v7822_v31  ;;  %v749_v22 = vpop.permute.xlu1 %748  ;;  %v744_v4 = vpop.permute.xlu0 %743  ;;  %v7837_v20 = vld [vmem:[#allocation2 + $0x60] sm:$0xf]  ;;  %v3140_v10 = vshrl.u32 %v7684_v39, 16  ;;  %v3145_v11 = vrot.slane %v3143_v50, 1 }
  0xc7   : > { %9579 = vst [vmem:[#allocation13_spill] sm:$0xff] %v7829_v0  ;;  %v2274_v44 = vld [vmem:[#allocation2 + $0x5c] sm:$0xf]  ;;  %v841_v47 = vmul.f32 %v749_v22, %v9580_v19  ;;  %v840_v18 = vmul.f32 %v744_v4, %v9581_v35  ;;  %v3138_v0 = vrot.slane %v3136_v32, 1  ;;  %v3147_v43 = vshrl.u32 %v7705_v42, 16 }
  0xc8   : > { %1056 = vst.msk [vmem:[#allocation2 + $0x70] sm:$0xf] %vm1027_vm1, %v5951_v36  ;;  %1055 = vst.msk [vmem:[#allocation2 + $0x6c] sm:$0xf] %vm1027_vm1, %v5950_v21  ;;  %v7847_v45 = vcombine.low %v2274_v44, %v7837_v20  ;;  %v7849_v13 = vcombine.low %v2273_v25, %v2274_v44  ;;  %v7851_v27 = vld [vmem:[#allocation2 + $0x5c] sm:$0xff]   ;;  %v7854_v36 = vrot.slane %v1489_v3, 2  ;;  %v3135_v4 = vor.u32 %v3133_v7, %v3131_v6 }
  0xc9   : > { %v5953_v21 = vpack.c.bf16 %v841_v47, %v841_v47  ;;  %v5952_v37 = vpack.c.bf16 %v840_v18, %v840_v18  ;;  %v1232_v26 = vrot.slane %v7851_v27, 3  ;;  %v7861_v32 = vrot.slane %v3150_v28, 1 }
  0xca   : > { %9582 = vst [vmem:[#allocation14_spill] sm:$0xff] %v7847_v45  ;;  %6412 = vmatmul.mubr.msk.bf16.gmra.mrb[16].mxu0 %vm1248_vm2, %v7849_v13  ;;  %v759_v22 = vpop.permute.xlu1 %758  ;;  %v754_v25 = vpop.permute.xlu0 %753  ;;  %v7863_v39 = vrot.slane %v1492_v15, 3  ;;  %v9583_v3 = vmax.f32 %v7513_v9, 0.0  ;;  %v9584_v44 = vmax.f32 %v7525_v40, 0.0  ;;  %v1231_v42 = vsel %vm1210_vm3, %v1228_v1, %v1230_v55 }
  0xcb   : > { %6433 = vmatprep.mubr.msk.bf16.mxu0 %vm1248_vm2, %v3132_v54  ;;  %1058 = vst.msk [vmem:[#allocation2 + $0x78] sm:$0xf] %vm1027_vm1, %v5953_v21  ;;  %1057 = vst.msk [vmem:[#allocation2 + $0x74] sm:$0xf] %vm1027_vm1, %v5952_v37  ;;  %v7872_v47 = vld [vmem:[#allocation2 + $0x64] sm:$0xff]   ;;  %v3157_v6 = vshll.u32 %v7753_v57, 16  ;;  %v1233_v7 = vsel %vm1210_vm3, %v1230_v55, %v1232_v26  ;;  %v3139_v21 = vsel %vm3122_vm5, %v3135_v4, %v3138_v0 }
  0xcc   : > { %v843_v50 = vmul.f32 %v759_v22, %v9583_v3  ;;  %v842_v19 = vmul.f32 %v754_v25, %v9584_v44  ;;  %6260 = vmatmul.mubr.msk.bf16.gmra.mrb[16].mxu1 %vm1248_vm2, %v1231_v42  ;;  %v3154_v15 = vshrl.u32 %v7730_v2, 16  ;;  %v3164_v37 = vshll.u32 %v7774_v29, 16 }
  0xcd   : > { %v9484_v9 = vshrl.u32 %v7639_v41, 16  ;;  %6263 = vmatprep.mubr.msk.bf16.mxu1 %vm1248_vm2, %v1233_v7  ;;  %v9501_v40 = vshrl.u32 %v7613_v59, 16  ;;  %v9500_v1 = vshll.u32 %v7613_v59, 16  ;;  %v3142_v22 = vor.u32 %v3140_v10, %v3138_v0 }
  0xce   : > { %v5955_v28 = vpack.c.bf16 %v843_v50, %v843_v50  ;;  %v5954_v54 = vpack.c.bf16 %v842_v19, %v842_v19  ;;  %v769_v35 = vpop.permute.xlu1 %768  ;;  %v764_v18 = vpop.permute.xlu0 %763  ;;  %v1234_v55 = vrot.slane %v7872_v47, 3  ;;  %v9585_v25 = vmax.f32 %v7551_v60, 0.0 }
  0xcf   : > { %v7885_v2 = vld [vmem:[#allocation2 + $0x6c] sm:$0xff]   ;;  %v9586_v50 = vmax.f32 %v7562_v58, 0.0  ;;  %v3159_v19 = vrot.slane %v3157_v6, 1  ;;  %v3161_v42 = vshrl.u32 %v7753_v57, 16  ;;  %v3166_v10 = vrot.slane %v3164_v37, 1 }
  0xd0   : > { %1060 = vst.msk [vmem:[#allocation2 + $0x80] sm:$0xf] %vm1027_vm1, %v5955_v28  ;;  %1059 = vst.msk [vmem:[#allocation2 + $0x7c] sm:$0xf] %vm1027_vm1, %v5954_v54  ;;  %v845_v3 = vmul.f32 %v769_v35, %v9585_v25  ;;  %v1236_v0 = vrot.slane %v7885_v2, 3  ;;  %v3171_v4 = vshll.u32 %v7798_v14, 16  ;;  %v3146_v60 = vsel %vm3122_vm5, %v3142_v22, %v3145_v11 }
  0xd1   : > { %v844_v44 = vmul.f32 %v764_v18, %v9586_v50  ;;  %v7898_v7 = vrot.slane %v9484_v9, 2  ;;  %v1235_v57 = vsel %vm1210_vm3, %v1232_v26, %v1234_v55  ;;  %v3149_v37 = vor.u32 %v3147_v43, %v3145_v11 }
  0xd2   : > { %v5957_v28 = vpack.c.bf16 %v845_v3, %v845_v3  ;;  %6434 = vmatmul.mubr.msk.bf16.vlgmr.msra.gmra.mrb[0].mxu0 %vm1248_vm2, %v3139_v21  ;;  %v779_v58 = vpop.permute.xlu1 %778  ;;  %v774_v6 = vpop.permute.xlu0 %773  ;;  %v1508_v35 = vrot.slane %v9501_v40, 2  ;;  %v1511_v18 = vrot.slane %v9500_v1, 3  ;;  %v9587_v21 = vmax.f32 %v7584_v30, 0.0  ;;  %v7915_v3 = vld [vmem:[#allocation2 + $0x74] sm:$0xff]  }
  0xd3   : > { %v5956_v54 = vpack.c.bf16 %v844_v44, %v844_v44  ;;  %6470 = vmatpush3.bf16.msra.mxu0 %v7599_v62  ;;  %6437 = vmatprep.mubr.msk.bf16.mxu0 %vm1248_vm2, %v3146_v60  ;;  %v9588_v22 = vmax.f32 %v7587_v5, 0.0  ;;  %v9499_v11 = vshrl.u32 %v7659_v24, 16  ;;  %v9498_v26 = vshll.u32 %v7659_v24, 16 }
  0xd4   : > { %1062 = vst.msk [vmem:[#allocation2 + $0x88] sm:$0xf] %vm1027_vm1, %v5957_v28  ;;  %v847_v62 = vmul.f32 %v779_v58, %v9587_v21  ;;  %6881 = vmatprep.subr.msk.bf16.mxu0 %vm1303_vm0, %v7721_v56  ;;  %6264 = vmatmul.mubr.msk.bf16.gmra.mrb[20].mxu1 %vm1248_vm2, %v1235_v57  ;;  %v1237_v43 = vsel %vm1210_vm3, %v1234_v55, %v1236_v0  ;;  %v3168_v30 = vshrl.u32 %v7774_v29, 16  ;;  %v7926_v50 = vrot.slane %v3171_v4, 1 }
  0xd5   : > { %1061 = vst.msk [vmem:[#allocation2 + $0x84] sm:$0xf] %vm1027_vm1, %v5956_v54  ;;  %v846_v25 = vmul.f32 %v774_v6, %v9588_v22  ;;  %v9485_v5 = vshll.u32 %v7639_v41, 16  ;;  %6267 = vmatprep.mubr.msk.bf16.mxu1 %vm1248_vm2, %v1237_v43  ;;  %v1517_v56 = vrot.slane %v9499_v11, 2  ;;  %v1520_v54 = vrot.slane %v9498_v26, 3 }
  0xd6   : > { %v5959_v44 = vpack.c.bf16 %v847_v62, %v847_v62  ;;  %v789_v60 = vpop.permute.xlu1 %788  ;;  %v784_v55 = vpop.permute.xlu0 %783  ;;  %v3153_v29 = vsel %vm3122_vm5, %v3149_v37, %v7861_v32  ;;  %v3156_v4 = vor.u32 %v3154_v15, %v7861_v32  ;;  %v3178_v6 = vshll.u32 %v7822_v31, 16 }
  0xd7   : > { %v5958_v28 = vpack.c.bf16 %v846_v25, %v846_v25  ;;  %v7937_v58 = vld [vmem:[#allocation2 + $0x7c] sm:$0xff]   ;;  %v7940_v57 = vor.u32 %v1511_v18, %v1508_v35  ;;  %v9589_v21 = vmax.f32 %v7602_v16, 0.0  ;;  %v9590_v22 = vmax.f32 %v7617_v46, 0.0 }
  0xd8   : > { %1064 = vst.msk [vmem:[#allocation2 + $0x90] sm:$0xf] %vm1027_vm1, %v5959_v44  ;;  %v1238_v37 = vrot.slane %v7915_v3, 3  ;;  %v7949_v43 = vor.u32 %v1520_v54, %v1517_v56  ;;  %v3160_v32 = vsel %vm3122_vm5, %v3156_v4, %v3159_v19  ;;  %v1240_v15 = vrot.slane %v7937_v58, 3 }
  0xd9   : > { %1063 = vst.msk [vmem:[#allocation2 + $0x8c] sm:$0xf] %vm1027_vm1, %v5958_v28  ;;  %v849_v62 = vmul.f32 %v789_v60, %v9589_v21  ;;  %v848_v25 = vmul.f32 %v784_v55, %v9590_v22  ;;  %v3163_v35 = vor.u32 %v3161_v42, %v3159_v19  ;;  %v3175_v18 = vshrl.u32 %v7798_v14, 16  ;;  %v2276_v55 = vld [vmem:[#allocation2 + $0x64] sm:$0xf] }
  0xda   : > { %6438 = vmatmul.mubr.msk.bf16.gmra.mrb[4].mxu0 %vm1248_vm2, %v3153_v29  ;;  %v1502_v16 = vrot.slane %v9485_v5, 3  ;;  %v7960_v46 = vsel %vm1487_vm6, %v7940_v57, %v7949_v43  ;;  %v799_v28 = vpop.permute.xlu1 %798  ;;  %v794_v56 = vpop.permute.xlu0 %793  ;;  %v3170_v42 = vor.u32 %v3168_v30, %v3166_v10  ;;  %v7966_v54 = vrot.slane %v3178_v6, 1  ;;  %v2278_v22 = vld [vmem:[#allocation2 + $0x6c] sm:$0xf] }
  0xdb   : > { %v5961_v44 = vpack.c.bf16 %v849_v62, %v849_v62  ;;  %v5960_v9 = vpack.c.bf16 %v848_v25, %v848_v25  ;;  %6441 = vmatprep.mubr.msk.bf16.mxu0 %vm1248_vm2, %v3160_v32  ;;  %v3167_v19 = vsel %vm3122_vm5, %v3163_v35, %v3166_v10  ;;  %v1495_v60 = vor.u32 %v7863_v39, %v7854_v36  ;;  %v2285_v1 = vld [vmem:[#allocation2 + $0x88] sm:$0xf] }
  0xdc   : > { %v7964_v14 = vld [vmem:[#allocation2 + $0x84] sm:$0xff]   ;;  %v9591_v29 = vmax.f32 %v7634_v33, 0.0  ;;  %v9592_v21 = vmax.f32 %v7637_v17, 0.0  ;;  %v1239_v10 = vsel %vm1210_vm3, %v1236_v0, %v1238_v37  ;;  %v3185_v30 = vshll.u32 %v7849_v13, 16 }
  0xdd   : > { %1066 = vst.msk [vmem:[#allocation2 + $0x98] sm:$0xf] %vm1027_vm1, %v5961_v44  ;;  %1065 = vst.msk [vmem:[#allocation2 + $0x94] sm:$0xf] %vm1027_vm1, %v5960_v9  ;;  %6268 = vmatmul.mubr.msk.bf16.gmra.mrb[24].mxu1 %vm1248_vm2, %v1239_v10  ;;  %v1241_v36 = vsel %vm1210_vm3, %v1238_v37, %v1240_v15  ;;  %v1242_v39 = vrot.slane %v7964_v14, 3  ;;  %v9495_v33 = vshrl.u32 %v7687_v53, 16  ;;  %v7991_v32 = vcombine.low %v7837_v20, %v2276_v55 }
  0xde   : > { %v851_v4 = vmul.f32 %v799_v28, %v9591_v29  ;;  %v850_v62 = vmul.f32 %v794_v56, %v9592_v21  ;;  %v9494_v9 = vshll.u32 %v7687_v53, 16  ;;  %6271 = vmatprep.mubr.msk.bf16.mxu1 %vm1248_vm2, %v1241_v36  ;;  %v9486_v0 = vshrl.u32 %v7709_v52, 16  ;;  %v809_v35 = vpop.permute.xlu1 %808  ;;  %v804_v37 = vpop.permute.xlu0 %803 }
  0xdf   : > { %v9493_v25 = vshll.u32 %v7709_v52, 16  ;;  %9593 = vst [vmem:[#allocation15_spill] sm:$0xff] %v7991_v32  ;;  %v3174_v44 = vsel %vm3122_vm5, %v3170_v42, %v7926_v50  ;;  %v7998_v56 = vor.u32 %v1502_v16, %v7898_v7  ;;  %v1526_v29 = vrot.slane %v9495_v33, 2  ;;  %v2277_v42 = vld [vmem:[#allocation2 + $0x68] sm:$0xf] }
  0xe0   : > { %v5963_v17 = vpack.c.bf16 %v851_v4, %v851_v4  ;;  %v5962_v6 = vpack.c.bf16 %v850_v62, %v850_v62  ;;  %v7995_v28 = vld [vmem:[#allocation2 + $0x8c] sm:$0xff]   ;;  %v1073_v4 = vld [vmem:[#allocation2 + $0xa8] sm:$0x1]  ;;  %v9594_v20 = vmax.f32 %v7669_v61, 0.0  ;;  %v9595_v21 = vmax.f32 %v7644_v38, 0.0 }
  0xe1   : > { %v1529_v10 = vrot.slane %v9494_v9, 3  ;;  %v1535_v7 = vrot.slane %v9486_v0, 2  ;;  %v1244_v36 = vrot.slane %v7995_v28, 3  ;;  %v3182_v61 = vshrl.u32 %v7822_v31, 16  ;;  %v2286_v33 = vld [vmem:[#allocation2 + $0x8c] sm:$0xf] }
  0xe2   : > { %1068 = vst.msk [vmem:[#allocation2 + $0xa0] sm:$0xf] %vm1027_vm1, %v5963_v17  ;;  %1067 = vst.msk [vmem:[#allocation2 + $0x9c] sm:$0xf] %vm1027_vm1, %v5962_v6  ;;  %v853_v55 = vmul.f32 %v809_v35, %v9594_v20  ;;  %v852_v62 = vmul.f32 %v804_v37, %v9595_v21  ;;  %v8020_v17 = vcombine.low %v2277_v42, %v2278_v22  ;;  %v1538_v38 = vrot.slane %v9493_v25, 3  ;;  %v8025_v21 = vpop.permute.xlu0 %4979 }
  0xe3   : > { %6442 = vmatmul.mubr.msk.bf16.gmra.mrb[8].mxu0 %vm1248_vm2, %v3167_v19  ;;  %v3187_v37 = vrot.slane %v3185_v30, 1  ;;  %v1530_v20 = vor.u32 %v1529_v10, %v1526_v29  ;;  %9599 = vst [vmem:[#allocation17_spill] sm:$0xff] %v8025_v21  ;;  %v3177_v5 = vor.u32 %v3175_v18, %v7926_v50  ;;  %v1504_v31 = vsel %vm1487_vm6, %v1495_v60, %v7998_v56  ;;  %v2280_v50 = vld [vmem:[#allocation2 + $0x74] sm:$0xf] }
  0xe4   : > { %9598 = vst [vmem:[#allocation16_spill] sm:$0xff] %v8020_v17  ;;  %v5965_v6 = vpack.c.bf16 %v853_v55, %v853_v55  ;;  %v5964_v35 = vpack.c.bf16 %v852_v62, %v852_v62  ;;  %6445 = vmatprep.mubr.msk.bf16.mxu0 %vm1248_vm2, %v3174_v44  ;;  %v8029_v0 = vld [vmem:[#allocation2 + $0x94] ss:$0 sps:$4 sm:$0x33]   ;;  %v3189_v22 = vshrl.u32 %v7849_v13, 16  ;;  %v1539_v42 = vor.u32 %v1538_v38, %v1535_v7 }
  0xe5   : > { %v1243_v19 = vsel %vm1210_vm3, %v1240_v15, %v1242_v39  ;;  %v3192_v30 = vshll.u32 %v7991_v32, 16  ;;  %v8043_v18 = vsel %vm1487_vm6, %v7949_v43, %v1530_v20  ;;  %v1245_v13 = vsel %vm1210_vm3, %v1242_v39, %v1244_v36  ;;  %v2279_v44 = vld [vmem:[#allocation2 + $0x70] sm:$0xf]  ;;  %v2282_v62 = vld [vmem:[#allocation2 + $0x7c] sm:$0xf] }
  0xe6   : > { %v1074_v55 = vsel %vm8014_vm9, %v5965_v6, %v1073_v4  ;;  %1069 = vst.msk [vmem:[#allocation2 + $0xa4] sm:$0xf] %vm1027_vm1, %v5964_v35  ;;  %6272 = vmatmul.mubr.msk.bf16.gmra.mrb[28].mxu1 %vm1248_vm2, %v1243_v19  ;;  %v3199_v60 = vshll.u32 %v8020_v17, 16  ;;  %v8049_v29 = vsel %vm1487_vm6, %v1530_v20, %v1539_v42  ;;  %v9487_v15 = vshrl.u32 %v7732_v49, 16  ;;  %v8058_v7 = vpop.permute.xlu0 %4989 }
  0xe7   : > { %1075 = vst [vmem:[#allocation2 + $0xa8] sm:$0x1] %v1074_v55  ;;  %6275 = vmatprep.mubr.msk.bf16.mxu1 %vm1248_vm2, %v1245_v13  ;;  %v3181_v4 = vsel %vm3122_vm5, %v3177_v5, %v7966_v54  ;;  %v3184_v43 = vor.u32 %v3182_v61, %v7966_v54  ;;  %v9488_v10 = vshll.u32 %v7732_v49, 16  ;;  %v9489_v39 = vshrl.u32 %v7756_v48, 16  ;;  %9600 = vst [vmem:[#allocation18_spill] sm:$0xff] %v8058_v7  ;;  %v8231_v7 = vld [vmem:[#allocation2 + $0x28] sm:$0xff]  }
  0xe8   : > { %v1246_v16 = vrot.slane %v8029_v0, 3  ;;  %v8061_v38 = vcombine.low %v2279_v44, %v2280_v50  ;;  %v1544_v6 = vrot.slane %v9487_v15, 2  ;;  %v9490_v35 = vshll.u32 %v7756_v48, 16  ;;  %v2281_v54 = vld [vmem:[#allocation2 + $0x78] sm:$0xf] }
  0xe9   : > { %v3188_v5 = vsel %vm3122_vm5, %v3184_v43, %v3187_v37  ;;  %v3191_v20 = vor.u32 %v3189_v22, %v3187_v37  ;;  %v1547_v61 = vrot.slane %v9488_v10, 3  ;;  %v1553_v55 = vrot.slane %v9489_v39, 2 }
  0xea   : > { %9601 = vst [vmem:[#allocation19_spill] sm:$0xff] %v8061_v38  ;;  %v3194_v19 = vrot.slane %v3192_v30, 1  ;;  %v3196_v13 = vshrl.u32 %v7991_v32, 16  ;;  %v8072_v50 = vcombine.low %v2281_v54, %v2282_v62  ;;  %v1556_v44 = vrot.slane %v9490_v35, 3  ;;  %v8079_v10 = vpop.permute.xlu0 %4999 }
  0xeb   : > { %6446 = vmatmul.mubr.msk.bf16.gmra.mrb[12].mxu0 %vm1248_vm2, %v3181_v4  ;;  %v3201_v15 = vrot.slane %v3199_v60, 1  ;;  %v1548_v43 = vor.u32 %v1547_v61, %v1544_v6  ;;  %v9492_v37 = vshrl.u32 %v7776_v51, 16  ;;  %v9491_v22 = vshll.u32 %v7776_v51, 16  ;;  %9603 = vst [vmem:[#allocation21_spill] sm:$0xff] %v8079_v10 }
  0xec   : > { %9602 = vst [vmem:[#allocation20_spill] sm:$0xff] %v8072_v50  ;;  %6449 = vmatprep.mubr.msk.bf16.mxu0 %vm1248_vm2, %v3188_v5  ;;  %v1247_v30 = vsel %vm1210_vm3, %v1244_v36, %v1246_v16  ;;  %v3206_v62 = vshll.u32 %v8061_v38, 16  ;;  %v1557_v54 = vor.u32 %v1556_v44, %v1553_v55  ;;  %v9496_v39 = vshrl.u32 %v7801_v63, 16 }
  0xed   : > { %v8086_v35 = vsel %vm1487_vm6, %v1539_v42, %v1548_v43  ;;  %v1562_v60 = vrot.slane %v9492_v37, 2  ;;  %v1565_v4 = vrot.slane %v9491_v22, 3  ;;  %v9497_v6 = vshll.u32 %v7801_v63, 16  ;;  %v2284_v42 = vld [vmem:[#allocation2 + $0x84] sm:$0xf] }
  0xee   : > { %6276 = vmatmul.mubr.msk.bf16.gmra.mrb[32].mxu1 %vm1248_vm2, %v1247_v30  ;;  %v3198_v5 = vor.u32 %v3196_v13, %v3194_v19  ;;  %v3203_v36 = vshrl.u32 %v8020_v17, 16  ;;  %v3213_v16 = vshll.u32 %v8072_v50, 16  ;;  %v8097_v61 = vsel %vm1487_vm6, %v1548_v43, %v1557_v54  ;;  %v3519_v37 = vld [vmem:[#allocation2 + $0x18] sm:$0xf]  ;;  %v8104_v30 = vld [vmem:[#allocation2 + $0x1c] sm:$0xf]  ;;  %v8108_v25 = vpop.permute.xlu0 %5009 }
  0xef   : > { %6281 = vmatprep.mubr.msk.bf16.mxu1 %vm1248_vm2, %v1504_v31  ;;  %v1566_v55 = vor.u32 %v1565_v4, %v1562_v60  ;;  %v1571_v44 = vrot.slane %v9496_v39, 2  ;;  %v1574_v22 = vrot.slane %v9497_v6, 3  ;;  %v8106_v13 = vld [vmem:[#allocation2 + $0x18] sm:$0xe]  ;;  %9604 = vst [vmem:[#allocation22_spill] sm:$0xff] %v8108_v25  ;;  %v3195_v43 = vsel %vm3122_vm5, %v3191_v20, %v3194_v19 }
  0xf0   : > { %v3202_v9 = vsel %vm3122_vm5, %v3198_v5, %v3201_v15  ;;  %v2283_v31 = vld [vmem:[#allocation2 + $0x80] sm:$0xf]  ;;  %v3208_v60 = vrot.slane %v3206_v62, 1  ;;  %v3210_v4 = vshrl.u32 %v8061_v38, 16  ;;  %v8116_v26 = vrot.slane %v3213_v16, 1 }
  0xf1   : > { %v8114_v39 = vsel %vm1487_vm6, %v1557_v54, %v1566_v55  ;;  %v1575_v6 = vor.u32 %v1574_v22, %v1571_v44  ;;  %v8118_v11 = vcombine.low %v2283_v31, %v2284_v42  ;;  %v9502_v40 = vshrl.u32 %v7824_v12, 16  ;;  %v8133_v5 = vld [vmem:[%s9469_s3 + $0xc] sm:$0xf] }
  0xf2   : > { %v9503_v20 = vshll.u32 %v7824_v12, 16  ;;  %v8123_v19 = vcombine.low %v2285_v1, %v2286_v33  ;;  %v9505_v54 = vshrl.u32 %v7851_v27, 16  ;;  %v9506_v22 = vshll.u32 %v7851_v27, 16  ;;  %9607 = vst [vmem:[#allocation25_spill] sm:$0xff] %v8133_v5  ;;  %v8135_v16 = vpop.permute.xlu0 %5019 }
  0xf3   : > { %9605 = vst [vmem:[#allocation23_spill] sm:$0xff] %v8118_v11  ;;  %6450 = vmatmul.mubr.msk.bf16.gmra.mrb[16].mxu0 %vm1248_vm2, %v3195_v43  ;;  %v8126_v62 = vsel %vm1487_vm6, %v1566_v55, %v1575_v6  ;;  %9608 = vst [vmem:[#allocation26_spill] sm:$0xff] %v8135_v16  ;;  %v8139_v42 = vcombine.low %v3519_v37, %v8104_v30  ;;  %v1580_v1 = vrot.slane %v9502_v40, 2  ;;  %v2288_v43 = vld [vmem:[#allocation2 + $0x94] sm:$0xf]  ;;  %v3220_v40 = vshll.u32 %v8118_v11, 16 }
  0xf4   : > { %9606 = vst [vmem:[#allocation24_spill] sm:$0xff] %v8123_v19  ;;  %6453 = vmatprep.mubr.msk.bf16.mxu0 %vm1248_vm2, %v3202_v9  ;;  %v1583_v33 = vrot.slane %v9503_v20, 3  ;;  %v1513_v44 = vsel %vm1487_vm6, %v7998_v56, %v7940_v57  ;;  %v1589_v9 = vrot.slane %v9505_v54, 2  ;;  %v1592_v37 = vrot.slane %v9506_v22, 3  ;;  %v2287_v20 = vld [vmem:[#allocation2 + $0x90] sm:$0xf] }
  0xf5   : > { %v3205_v31 = vor.u32 %v3203_v36, %v3201_v15  ;;  %v9509_v55 = vshrl.u32 %v7872_v47, 16  ;;  %v3212_v57 = vor.u32 %v3210_v4, %v3208_v60  ;;  %v3227_v56 = vshll.u32 %v8123_v19, 16 }
  0xf6   : > { %6282 = vmatmul.mubr.msk.bf16.vlgmr.msra.gmra.mrb[0].mxu1 %vm1248_vm2, %v1513_v44  ;;  %v1584_v16 = vor.u32 %v1583_v33, %v1580_v1  ;;  %v1593_v54 = vor.u32 %v1592_v37, %v1589_v9  ;;  %v9508_v22 = vshll.u32 %v7872_v47, 16  ;;  %v8162_v10 = vpop.permute.xlu0 %5029  ;;  %v8164_v15 = vcombine.low %v2287_v20, %v2288_v43  ;;  %v3116_v9 = vld [vmem:[#allocation2 + $0x9c] sm:$0xf] }
  0xf7   : > { %6285 = vmatprep.mubr.msk.bf16.mxu1 %vm1248_vm2, %v7960_v46  ;;  %6318 = vmatpush3.bf16.msra.mxu1 %v7713_v8  ;;  %9609 = vst [vmem:[#allocation27_spill] sm:$0xff] %v8162_v10  ;;  %v1598_v1 = vrot.slane %v9509_v55, 2  ;;  %v9511_v46 = vshrl.u32 %v7885_v2, 16  ;;  %v3209_v8 = vsel %vm3122_vm5, %v3205_v31, %v3208_v60  ;;  %v9512_v33 = vshll.u32 %v7885_v2, 16 }
  0xf8   : > { %9610 = vst [vmem:[#allocation28_spill] sm:$0xff] %v8164_v15  ;;  %v8167_v36 = vsel %vm1487_vm6, %v1575_v6, %v1584_v16  ;;  %6876 = vmatprep.subr.msk.bf16.mxu1 %vm1303_vm0, %v8133_v5  ;;  %v8176_v4 = vsel %vm1487_vm6, %v1584_v16, %v1593_v54  ;;  %v1601_v20 = vrot.slane %v9508_v22, 3  ;;  %v3216_v6 = vsel %vm3122_vm5, %v3212_v57, %v8116_v26 }
  0xf9   : > { %v3217_v44 = vshrl.u32 %v8072_v50, 16  ;;  %v3222_v43 = vrot.slane %v3220_v40, 1  ;;  %v1607_v37 = vrot.slane %v9511_v46, 2  ;;  %v3224_v60 = vshrl.u32 %v8118_v11, 16  ;;  %v8194_v40 = vld [vmem:[#allocation2 + $0x98] sm:$0xf] }
  0xfa   : > { %v3229_v16 = vrot.slane %v3227_v56, 1  ;;  %v1602_v31 = vor.u32 %v1601_v20, %v1598_v1  ;;  %v1610_v22 = vrot.slane %v9512_v33, 3  ;;  %v8190_v55 = vpop.permute.xlu0 %5039  ;;  %v3234_v57 = vshll.u32 %v8164_v15, 16  ;;  %9612 = vst [vmem:[#allocation30_spill] sm:$0xff] %v8194_v40 }
  0xfb   : > { %6454 = vmatmul.mubr.msk.bf16.gmra.mrb[20].mxu0 %vm1248_vm2, %v3209_v8  ;;  %9611 = vst [vmem:[#allocation29_spill] sm:$0xff] %v8190_v55  ;;  %v9515_v10 = vshrl.u32 %v7915_v3, 16  ;;  %v8200_v56 = vcombine.low %v8194_v40, %v3116_v9  ;;  %v9519_v33 = vshll.u32 %v7937_v58, 16  ;;  %v3226_v55 = vor.u32 %v3224_v60, %v3222_v43 }
  0xfc   : > { %6457 = vmatprep.mubr.msk.bf16.mxu0 %vm1248_vm2, %v3216_v6  ;;  %v8203_v1 = vsel %vm1487_vm6, %v1593_v54, %v1602_v31  ;;  %v1611_v20 = vor.u32 %v1610_v22, %v1607_v37  ;;  %v3219_v6 = vor.u32 %v3217_v44, %v8116_v26  ;;  %v9613_v8 = vshll.u32 %v7915_v3, 16  ;;  %v8215_v54 = vld [vmem:[#allocation2 + $0x20] sm:$0xff]  }
  0xfd   : > { %v1616_v46 = vrot.slane %v9515_v10, 2  ;;  %v9614_v9 = vshrl.u32 %v7937_v58, 16  ;;  %v1628_v26 = vrot.slane %v9519_v33, 3  ;;  %v3230_v60 = vsel %vm3122_vm5, %v3226_v55, %v3229_v16 }
  0xfe   : > { %6286 = vmatmul.mubr.msk.bf16.gmra.mrb[4].mxu1 %vm1248_vm2, %v8043_v18  ;;  %v1619_v25 = vrot.slane %v9613_v8, 3  ;;  %v8218_v22 = vsel %vm1487_vm6, %v1602_v31, %v1611_v20  ;;  %v8224_v44 = vpop.permute.xlu0 %5049  ;;  %v3223_v37 = vsel %vm3122_vm5, %v3219_v6, %v3222_v43  ;;  %v3231_v8 = vshrl.u32 %v8123_v19, 16  ;;  %v8251_v43 = vld [vmem:[#allocation2 + $0x38] sm:$0xff]  }
  0xff   : > { %6289 = vmatprep.mubr.msk.bf16.mxu1 %vm1248_vm2, %v8049_v29  ;;  %v1625_v18 = vrot.slane %v9614_v9, 2  ;;  %9615 = vst [vmem:[#allocation31_spill] sm:$0xff] %v8224_v44  ;;  %v3236_v10 = vrot.slane %v3234_v57, 1  ;;  %v3238_v21 = vshrl.u32 %v8164_v15, 16  ;;  %v3242_v31 = vshll.u32 %v8200_v56, 16 }
 0x100   : > { %v1620_v29 = vor.u32 %v1619_v25, %v1616_v46  ;;  %v3650_v11 = vshll.u32 %v8139_v42, 16  ;;  %v3655_v25 = vshll.u32 %v8215_v54, 16  ;;  %v8241_v46 = vld [vmem:[#allocation2 + $0x30] sm:$0xff]   ;;  %v9526_v6 = vshrl.u32 %v7995_v28, 16 }
 0x101   : > { %v1629_v9 = vor.u32 %v1628_v26, %v1625_v18  ;;  %v9528_v18 = vshll.u32 %v7995_v28, 16  ;;  %v9618_v44 = vshll.u32 %v7964_v14, 16  ;;  %v3240_v19 = vor.u32 %v3238_v21, %v3236_v10 }
 0x102   : > { %v8235_v33 = vsel %vm1487_vm6, %v1611_v20, %v1620_v29  ;;  %v8248_v26 = vpop.permute.xlu0 %5059  ;;  %v3233_v20 = vor.u32 %v3231_v8, %v3229_v16  ;;  %v1643_v50 = vrot.slane %v9526_v6, 2  ;;  %v3244_v16 = vrot.slane %v3242_v31, 1 }
 0x103   : > { %6458 = vmatmul.mubr.msk.bf16.gmra.mrb[24].mxu0 %vm1248_vm2, %v3223_v37  ;;  %v8244_v57 = vsel %vm1487_vm6, %v1620_v29, %v1629_v9  ;;  %9616 = vst [vmem:[#allocation32_spill] sm:$0xff] %v8248_v26  ;;  %v9617_v37 = vshrl.u32 %v7964_v14, 16  ;;  %v1637_v15 = vrot.slane %v9618_v44, 3  ;;  %v3663_v29 = vshll.u32 %v8231_v7, 16 }
 0x104   : > { %6461 = vmatprep.mubr.msk.bf16.mxu0 %vm1248_vm2, %v3230_v60  ;;  %v1646_v26 = vrot.slane %v9528_v18, 3  ;;  %v3246_v60 = vshrl.u32 %v8200_v56, 16  ;;  %v3652_v8 = vrot.slane %v3650_v11, 1  ;;  %v3657_v21 = vrot.slane %v3655_v25, 1 }
 0x105   : > { %v1634_v55 = vrot.slane %v9617_v37, 2  ;;  %v8265_v37 = vld [vmem:[#allocation2 + $0x40] sm:$0xff]   ;;  %v3671_v44 = vshll.u32 %v8241_v46, 16  ;;  %v1650_v17 = vshrl.u32 %v8029_v0, 16  ;;  %v3679_v31 = vshll.u32 %v8251_v43, 16 }
 0x106   : > { %6290 = vmatmul.mubr.msk.bf16.gmra.mrb[8].mxu1 %vm1248_vm2, %v8086_v35  ;;  %v1647_v6 = vor.u32 %v1646_v26, %v1643_v50  ;;  %v8271_v18 = vpop.permute.xlu0 %5069  ;;  %v3648_v35 = vshrl.u32 %v8139_v42, 16  ;;  %v3659_v56 = vshrl.u32 %v8215_v54, 16  ;;  %v3237_v26 = vsel %vm3122_vm5, %v3233_v20, %v3236_v10  ;;  %v8294_v20 = vld [vmem:[#allocation2 + $0x50] sm:$0xff]  }
 0x107   : > { %v1638_v38 = vor.u32 %v1637_v15, %v1634_v55  ;;  %6293 = vmatprep.mubr.msk.bf16.mxu1 %vm1248_vm2, %v8097_v61  ;;  %9619 = vst [vmem:[#allocation33_spill] sm:$0xff] %v8271_v18  ;;  %v1653_v15 = vshll.u32 %v8029_v0, 16  ;;  %v3665_v61 = vrot.slane %v3663_v29, 1  ;;  %v8280_v55 = vld [vmem:[#allocation2 + $0x48] sm:$0xff]   ;;  %v1652_v25 = vrot.slane %v1650_v17, 2 }
 0x108   : > { %v3653_v18 = vor.u32 %v3652_v8, %v3648_v35  ;;  %v3687_v42 = vshll.u32 %v8265_v37, 16  ;;  %v3248_v0 = vor.u32 %v3246_v60, %v3244_v16  ;;  %v3661_v40 = vor.u32 %v3659_v56, %v3657_v21  ;;  %v8296_v8 = vld [vmem:[#allocation2 + $0x58] sm:$0xff]  }
 0x109   : > { %v8276_v11 = vsel %vm1487_vm6, %v1629_v9, %v1638_v38  ;;  %v8283_v50 = vsel %vm1487_vm6, %v1638_v38, %v1647_v6  ;;  %v1655_v32 = vrot.slane %v1653_v15, 3  ;;  %v3245_v9 = vsel %vm3122_vm5, %v3240_v19, %v3244_v16 }
 0x10a   : > { %v3673_v45 = vrot.slane %v3671_v44, 1  ;;  %v8289_v29 = vpop.permute.xlu0 %5079  ;;  %v3658_v38 = vsel %vm3122_vm5, %v3653_v18, %v3657_v21  ;;  %v3667_v17 = vshrl.u32 %v8231_v7, 16  ;;  %v3681_v10 = vrot.slane %v3679_v31, 1  ;;  %v8308_v31 = vld [vmem:[#allocation2 + $0x60] sm:$0xff]  }
 0x10b   : > { %6462 = vmatmul.mubr.msk.bf16.gmra.mrb[28].mxu0 %vm1248_vm2, %v3237_v26  ;;  %9620 = vst [vmem:[#allocation34_spill] sm:$0xff] %v8289_v29  ;;  %v1656_v35 = vor.u32 %v1655_v32, %v1652_v25  ;;  %v8299_v15 = vsel %vm3122_vm5, %v3661_v40, %v3665_v61  ;;  %v3675_v19 = vshrl.u32 %v8241_v46, 16  ;;  %v3695_v16 = vshll.u32 %v8280_v55, 16 }
 0x10c   : > { %6465 = vmatprep.mubr.msk.bf16.mxu0 %vm1248_vm2, %v3245_v9  ;;  %v9621_v60 = vshrl.u32 %v7613_v59, 16  ;;  %v3683_v18 = vshrl.u32 %v8251_v43, 16  ;;  %v3689_v21 = vrot.slane %v3687_v42, 1  ;;  %v9622_v40 = vshll.u32 %v7613_v59, 16 }
 0x10d   : > { %v8311_v32 = vsel %vm1487_vm6, %v1647_v6, %v1656_v35  ;;  %v3669_v25 = vor.u32 %v3667_v17, %v3665_v61  ;;  %v3677_v26 = vor.u32 %v3675_v19, %v3673_v45  ;;  %v9623_v9 = vshrl.u32 %v7659_v24, 16 }
 0x10e   : > { %v1911_v44 = vrot.slane %v9621_v60, 3  ;;  %6294 = vmatmul.mubr.msk.bf16.gmra.mrb[12].mxu1 %vm1248_vm2, %v8114_v39  ;;  %v1912_v56 = vrot.slane %v9622_v40, 4  ;;  %v9624_v39 = vshll.u32 %v7659_v24, 16  ;;  %v8321_v42 = vpop.permute.xlu0 %5089  ;;  %v3685_v5 = vor.u32 %v3683_v18, %v3681_v10 }
 0x10f   : > { %6297 = vmatprep.mubr.msk.bf16.mxu1 %vm1248_vm2, %v8126_v62  ;;  %v1915_v60 = vrot.slane %v9623_v9, 3  ;;  %9625 = vst [vmem:[#allocation35_spill] sm:$0xff] %v8321_v42  ;;  %v3703_v6 = vshll.u32 %v8294_v20, 16  ;;  %v3711_v35 = vshll.u32 %v8296_v8, 16  ;;  %v3674_v40 = vsel %vm3122_vm5, %v3669_v25, %v3673_v45 }
 0x110   : > { %v1916_v29 = vrot.slane %v9624_v39, 4  ;;  %v8325_v59 = vor.u32 %v1912_v56, %v1911_v44  ;;  %v8329_v62 = vsel %vm3122_vm5, %v3677_v26, %v3681_v10  ;;  %v3697_v61 = vrot.slane %v3695_v16, 1 }
 0x111   : > { %v8332_v19 = vsel %vm3122_vm5, %v3685_v5, %v3689_v21  ;;  %v3691_v24 = vshrl.u32 %v8265_v37, 16  ;;  %v3719_v18 = vshll.u32 %v8308_v31, 16  ;;  %v9627_v9 = vshrl.u32 %v7687_v53, 16 }
 0x112   : > { %9626 = vst [vmem:[#allocation36_spill] sm:$0xff] %v8325_v59  ;;  %v1917_v17 = vor.u32 %v1916_v29, %v1915_v60  ;;  %v3699_v44 = vshrl.u32 %v8280_v55, 16  ;;  %v9629_v29 = vshll.u32 %v7687_v53, 16  ;;  %v9630_v5 = vshrl.u32 %v7709_v52, 16  ;;  %v8348_v56 = vpop.permute.xlu0 %5099 }
 0x113   : > { %v1919_v39 = vrot.slane %v9627_v9, 3  ;;  %6466 = vmatmul.mubr.msk.bf16.gmra.mrb[32].mxu0 %vm1248_vm2, %v3248_v0  ;;  %9631 = vst [vmem:[#allocation38_spill] sm:$0xff] %v8348_v56  ;;  %v3705_v25 = vrot.slane %v3703_v6, 1  ;;  %v3713_v26 = vrot.slane %v3711_v35, 1  ;;  %v9632_v0 = vshll.u32 %v7709_v52, 16 }
 0x114   : > { %v8342_v45 = vsel %vm1898_vm4, %v8325_v59, %v1917_v17  ;;  %v1920_v10 = vrot.slane %v9629_v29, 4  ;;  %v1923_v16 = vrot.slane %v9630_v5, 3  ;;  %6471 = vmatprep.mubr.msk.bf16.mxu0 %vm1248_vm2, %v3658_v38  ;;  %v3693_v9 = vor.u32 %v3691_v24, %v3689_v21 }
 0x115   : > { %9628 = vst [vmem:[#allocation37_spill] sm:$0xff] %v8342_v45  ;;  %v1924_v60 = vrot.slane %v9632_v0, 4  ;;  %v3701_v42 = vor.u32 %v3699_v44, %v3697_v61  ;;  %v3707_v59 = vshrl.u32 %v8294_v20, 16  ;;  %v3715_v53 = vshrl.u32 %v8296_v8, 16 }
 0x116   : > { %v1921_v45 = vor.u32 %v1920_v10, %v1919_v39  ;;  %6298 = vmatmul.mubr.msk.bf16.gmra.mrb[16].mxu1 %vm1248_vm2, %v8167_v36  ;;  %v3721_v29 = vrot.slane %v3719_v18, 1  ;;  %v1900_v5 = vshrl.u32 %v7624_v23, 16  ;;  %v8361_v52 = vsel %vm3122_vm5, %v3693_v9, %v3697_v61  ;;  %v8370_v39 = vpop.permute.xlu0 %5109 }
 0x117   : > { %v1925_v38 = vor.u32 %v1924_v60, %v1923_v16  ;;  %6301 = vmatprep.mubr.msk.bf16.mxu1 %vm1248_vm2, %v8176_v4  ;;  %v9633_v6 = vshrl.u32 %v7732_v49, 16  ;;  %v9634_v36 = vshll.u32 %v7732_v49, 16  ;;  %9635 = vst [vmem:[#allocation39_spill] sm:$0xff] %v8370_v39  ;;  %v8373_v18 = vsel %vm3122_vm5, %v3701_v42, %v3705_v25  ;;  %v8375_v4 = vld [vmem:[#allocation2 + $0x68] sm:$0xff]  }
 0x118   : > { %v8364_v21 = vsel %vm1898_vm4, %v1917_v17, %v1921_v45  ;;  %v3709_v44 = vor.u32 %v3707_v59, %v3705_v25  ;;  %v3717_v10 = vor.u32 %v3715_v53, %v3713_v26  ;;  %v1903_v17 = vshll.u32 %v7624_v23, 16  ;;  %v8395_v53 = vld [vmem:[#allocation2 + $0x70] sm:$0xff]   ;;  %v8400_v23 = vld [vmem:[%s9469_s3 + $0x20] sm:$0xf] }
 0x119   : > { %v1927_v35 = vrot.slane %v9633_v6, 3  ;;  %v1928_v24 = vrot.slane %v9634_v36, 4  ;;  %v8378_v61 = vsel %vm1898_vm4, %v1921_v45, %v1925_v38  ;;  %v9636_v0 = vshrl.u32 %v7756_v48, 16 }
 0x11a   : > { %v9637_v49 = vshll.u32 %v7756_v48, 16  ;;  %v8386_v6 = vsel %vm3122_vm5, %v3709_v44, %v3713_v26  ;;  %v8389_v42 = vsel %vm3122_vm5, %v3717_v10, %v3721_v29  ;;  %v8391_v59 = vrot.slane %v1900_v5, 3  ;;  %v8412_v44 = vpop.permute.xlu0 %5119 }
 0x11b   : > { %v1929_v16 = vor.u32 %v1928_v24, %v1927_v35  ;;  %v1931_v60 = vrot.slane %v9636_v0, 3  ;;  %v9638_v45 = vshrl.u32 %v7639_v41, 16  ;;  %6472 = vmatmul.mubr.msk.bf16.vlgmr.msra.gmra.mrb[0].mxu0 %vm1248_vm2, %v8299_v15  ;;  %v9639_v48 = vshll.u32 %v7639_v41, 16  ;;  %9641 = vst [vmem:[#allocation40_spill] sm:$0xff] %v8412_v44 }
 0x11c   : > { %v1932_v9 = vrot.slane %v9637_v49, 4  ;;  %v9640_v36 = vshrl.u32 %v7776_v51, 16  ;;  %6508 = vmatpush3.bf16.msra.mxu0 %v7745_v34  ;;  %6475 = vmatprep.mubr.msk.bf16.mxu0 %vm1248_vm2, %v3674_v40  ;;  %v3723_v10 = vshrl.u32 %v8308_v31, 16  ;;  %v3727_v15 = vshll.u32 %v8375_v4, 16 }
 0x11d   : > { %v1907_v25 = vrot.slane %v9638_v45, 3  ;;  %v1908_v26 = vrot.slane %v9639_v48, 4  ;;  %v8407_v35 = vsel %vm1898_vm4, %v1925_v38, %v1929_v16  ;;  %v9642_v41 = vshll.u32 %v7776_v51, 16  ;;  %6882 = vmatprep.subr.msk.bf16.mxu0 %vm1303_vm0, %v8400_v23 }
 0x11e   : > { %v1933_v5 = vor.u32 %v1932_v9, %v1931_v60  ;;  %v1935_v24 = vrot.slane %v9640_v36, 3  ;;  %v9643_v38 = vshrl.u32 %v7801_v63, 16  ;;  %v8421_v60 = vrot.slane %v1903_v17, 4  ;;  %6302 = vmatmul.mubr.msk.bf16.gmra.mrb[20].mxu1 %vm1248_vm2, %v8203_v1  ;;  %v8446_v44 = vpop.permute.xlu0 %5129 }
 0x11f   : > { %v1936_v0 = vrot.slane %v9642_v41, 4  ;;  %v9644_v45 = vshll.u32 %v7801_v63, 16  ;;  %v3735_v51 = vshll.u32 %v8395_v53, 16  ;;  %v9645_v17 = vcombine.low %v8106_v13, %v8104_v30  ;;  %6305 = vmatprep.mubr.msk.bf16.mxu1 %vm1248_vm2, %v8218_v22  ;;  %9648 = vst [vmem:[#allocation41_spill] sm:$0xff] %v8446_v44 }
 0x120   : > { %v1939_v49 = vrot.slane %v9643_v38, 3  ;;  %v8425_v34 = vsel %vm1898_vm4, %v1929_v16, %v1933_v5  ;;  %v4068_v41 = vrot.slane %v8215_v54, 1  ;;  %v8440_v63 = vor.u32 %v1908_v26, %v1907_v25 }
 0x121   : > { %v1940_v40 = vrot.slane %v9644_v45, 4  ;;  %v1937_v48 = vor.u32 %v1936_v0, %v1935_v24  ;;  %v4067_v36 = vrot.slane %v9645_v17, 1  ;;  %v9646_v38 = vshrl.u32 %v7824_v12, 16 }
 0x122   : > { %v9647_v1 = vshll.u32 %v7824_v12, 16  ;;  %v8448_v24 = vor.u32 %v3723_v10, %v3721_v29  ;;  %v9649_v54 = vshrl.u32 %v7851_v27, 16  ;;  %v9650_v12 = vshll.u32 %v7851_v27, 16 }
 0x123   : > { %v1941_v16 = vor.u32 %v1940_v40, %v1939_v49  ;;  %v1943_v45 = vrot.slane %v9646_v38, 3  ;;  %v8451_v30 = vsel %vm1898_vm4, %v1933_v5, %v1937_v48  ;;  %v8454_v13 = vsel %vm4066_vm10, %v4067_v36, %v4068_v41  ;;  %6476 = vmatmul.mubr.msk.bf16.gmra.mrb[4].mxu0 %vm1248_vm2, %v8329_v62 }
 0x124   : > { %v1944_v9 = vrot.slane %v9647_v1, 4  ;;  %v1947_v22 = vrot.slane %v9649_v54, 3  ;;  %v1948_v0 = vrot.slane %v9650_v12, 4  ;;  %v4070_v49 = vrot.slane %v8231_v7, 1  ;;  %6479 = vmatprep.mubr.msk.bf16.mxu0 %vm1248_vm2, %v8332_v19 }
 0x125   : > { %v8459_v25 = vsel %vm1898_vm4, %v1937_v48, %v1941_v16  ;;  %v3729_v29 = vrot.slane %v3727_v15, 1  ;;  %v4072_v10 = vrot.slane %v8241_v46, 1  ;;  %v9651_v5 = vshrl.u32 %v7872_v47, 16 }
 0x126   : > { %v1945_v26 = vor.u32 %v1944_v9, %v1943_v45  ;;  %v9652_v17 = vshll.u32 %v7872_v47, 16  ;;  %v1949_v9 = vor.u32 %v1948_v0, %v1947_v22  ;;  %v8475_v27 = vsel %vm4066_vm10, %v4068_v41, %v4070_v49  ;;  %v8487_v45 = vpop.permute.xlu0 %5139  ;;  %6306 = vmatmul.mubr.msk.bf16.gmra.mrb[24].mxu1 %vm1248_vm2, %v8235_v33 }
 0x127   : > { %v1951_v40 = vrot.slane %v9651_v5, 3  ;;  %v9653_v7 = vshrl.u32 %v7885_v2, 16  ;;  %v8482_v46 = vsel %vm4066_vm10, %v4070_v49, %v4072_v10  ;;  %v9654_v38 = vshll.u32 %v7885_v2, 16  ;;  %9655 = vst [vmem:[#allocation42_spill] sm:$0xff] %v8487_v45  ;;  %6309 = vmatprep.mubr.msk.bf16.mxu1 %vm1248_vm2, %v8244_v57  ;;  %v9669_v45 = vld [vmem:[#allocation7_spill] sm:$0xff] }
 0x128   : > { %v1952_v36 = vrot.slane %v9652_v17, 4  ;;  %v8472_v48 = vsel %vm1898_vm4, %v1941_v16, %v1945_v26  ;;  %v4074_v16 = vrot.slane %v8251_v43, 1  ;;  %v8490_v41 = vsel %vm1898_vm4, %v1945_v26, %v1949_v9 }
 0x129   : > { %v1955_v15 = vrot.slane %v9653_v7, 3  ;;  %v1956_v62 = vrot.slane %v9654_v38, 4  ;;  %v4076_v1 = vrot.slane %v8265_v37, 1  ;;  %v9656_v54 = vshrl.u32 %v7915_v3, 16 }
 0x12a   : > { %v1953_v47 = vor.u32 %v1952_v36, %v1951_v40  ;;  %v9657_v19 = vshll.u32 %v7915_v3, 16  ;;  %v8503_v0 = vsel %vm4066_vm10, %v4072_v10, %v4074_v16  ;;  %v9658_v26 = vshrl.u32 %v7937_v58, 16 }
 0x12b   : > { %v1959_v22 = vrot.slane %v9656_v54, 3  ;;  %v1957_v43 = vor.u32 %v1956_v62, %v1955_v15  ;;  %v8510_v37 = vsel %vm4066_vm10, %v4074_v16, %v4076_v1  ;;  %v9659_v5 = vshll.u32 %v7937_v58, 16  ;;  %v8523_v15 = vpop.permute.xlu0 %5149  ;;  %6480 = vmatmul.mubr.msk.bf16.gmra.mrb[8].mxu0 %vm1248_vm2, %v8361_v52 }
 0x12c   : > { %v1960_v12 = vrot.slane %v9657_v19, 4  ;;  %v8500_v2 = vsel %vm1898_vm4, %v1949_v9, %v1953_v47  ;;  %v1963_v49 = vrot.slane %v9658_v26, 3  ;;  %v4078_v40 = vrot.slane %v8280_v55, 1  ;;  %9662 = vst [vmem:[#allocation43_spill] sm:$0xff] %v8523_v15  ;;  %6483 = vmatprep.mubr.msk.bf16.mxu0 %vm1248_vm2, %v8373_v18 }
 0x12d   : > { %v1964_v33 = vrot.slane %v9659_v5, 4  ;;  %v8516_v17 = vsel %vm1898_vm4, %v1953_v47, %v1957_v43  ;;  %v4080_v10 = vrot.slane %v8294_v20, 1  ;;  %v9660_v36 = vshrl.u32 %v7964_v14, 16 }
 0x12e   : > { %v1961_v3 = vor.u32 %v1960_v12, %v1959_v22  ;;  %v9661_v7 = vshll.u32 %v7964_v14, 16  ;;  %v8529_v62 = vsel %vm4066_vm10, %v4076_v1, %v4078_v40  ;;  %v9663_v55 = vshrl.u32 %v7995_v28, 16  ;;  %v8545_v12 = vld [vmem:[#allocation2 + $0x78] sm:$0xff]   ;;  %6310 = vmatmul.mubr.msk.bf16.gmra.mrb[28].mxu1 %vm1248_vm2, %v8276_v11 }
 0x12f   : > { %v1967_v9 = vrot.slane %v9660_v36, 3  ;;  %v1965_v58 = vor.u32 %v1964_v33, %v1963_v49  ;;  %v8534_v20 = vsel %vm4066_vm10, %v4078_v40, %v4080_v10  ;;  %v9664_v54 = vshll.u32 %v7995_v28, 16  ;;  %v8553_v28 = vld [vmem:[#allocation2 + $0x80] sm:$0xff]   ;;  %6313 = vmatprep.mubr.msk.bf16.mxu1 %vm1248_vm2, %v8283_v50  ;;  %v8592_v36 = vld [vmem:[#allocation2 + $0x90] sm:$0xff]  }
 0x130   : > { %v1968_v57 = vrot.slane %v9661_v7, 4  ;;  %v8526_v38 = vsel %vm1898_vm4, %v1957_v43, %v1961_v3  ;;  %v1971_v47 = vrot.slane %v9663_v55, 3  ;;  %v4082_v22 = vrot.slane %v8296_v8, 1  ;;  %v9667_v55 = vld [vmem:[#allocation5_spill] sm:$0xff] }
 0x131   : > { %v1972_v14 = vrot.slane %v9664_v54, 4  ;;  %v1906_v19 = vor.u32 %v8421_v60, %v8391_v59  ;;  %v8543_v1 = vrot.slane %v3735_v51, 1  ;;  %v8548_v43 = vsel %vm1898_vm4, %v1961_v3, %v1965_v58  ;;  %v599_v51 = vpop.permute.xlu0 %598 }
 0x132   : > { %v1969_v16 = vor.u32 %v1968_v57, %v1967_v9  ;;  %v4084_v26 = vrot.slane %v8308_v31, 1  ;;  %v8561_v59 = vsel %vm4066_vm10, %v4080_v10, %v4082_v22  ;;  %v4086_v60 = vrot.slane %v8375_v4, 1 }
 0x133   : > { %v8558_v52 = vor.u32 %v1972_v14, %v1971_v47  ;;  %v8566_v49 = vsel %vm3122_vm5, %v8448_v24, %v3729_v29  ;;  %v9665_v31 = vshrl.u32 %v8375_v4, 16  ;;  %v4088_v5 = vrot.slane %v8395_v53, 1  ;;  %v9666_v24 = vld [vmem:[#allocation4_spill] sm:$0xff]  ;;  %6484 = vmatmul.mubr.msk.bf16.gmra.mrb[12].mxu0 %vm1248_vm2, %v8386_v6  ;;  %v9670_v6 = vld [vmem:[#allocation10_spill] sm:$0xff] }
 0x134   : > { %v8556_v8 = vsel %vm1898_vm4, %v1965_v58, %v1969_v16  ;;  %v8573_v3 = vsel %vm4066_vm10, %v4082_v22, %v4084_v26  ;;  %v8583_v40 = vsel %vm4066_vm10, %v4084_v26, %v4086_v60  ;;  %v2413_v10 = vshrl.u32 %v9666_v24, 16  ;;  %v9668_v26 = vld [vmem:[#allocation6_spill] sm:$0xff]  ;;  %6487 = vmatprep.mubr.msk.bf16.mxu0 %vm1248_vm2, %v8389_v42 }
 0x135   : > { %v8570_v18 = vor.u32 %v9665_v31, %v3729_v29  ;;  %v8580_v33 = vsel %vm1898_vm4, %v1969_v16, %v8558_v52  ;;  %v1910_v4 = vsel %vm1898_vm4, %v1906_v19, %v8440_v63  ;;  %v8590_v29 = vld [vmem:[#allocation2 + $0x88] sm:$0xff]   ;;  %v8595_v11 = vsel %vm4066_vm10, %v4086_v60, %v4088_v5  ;;  %v8613_v31 = vld [vmem:[#allocation2 + $0x98] sm:$0xff]  }
 0x136   : > { %v2416_v9 = vshll.u32 %v9666_v24, 16  ;;  %v4090_v7 = vrot.slane %v8545_v12, 1  ;;  %v2415_v57 = vrot.slane %v2413_v10, 3  ;;  %v4092_v58 = vrot.slane %v8553_v28, 1  ;;  %v8615_v24 = vld [vmem:[#allocation2 + $0xa0] sm:$0xff]   ;;  %6314 = vmatmul.mubr.msk.bf16.gmra.mrb[32].mxu1 %vm1248_vm2, %v8311_v32 }
 0x137   : > { %v2422_v47 = vshrl.u32 %v9667_v55, 16  ;;  %v3743_v50 = vshll.u32 %v8545_v12, 16  ;;  %v2425_v14 = vshll.u32 %v9667_v55, 16  ;;  %v2431_v60 = vshrl.u32 %v9668_v26, 16  ;;  %6319 = vmatprep.mubr.msk.bf16.mxu1 %vm1248_vm2, %v1910_v4 }
 0x138   : > { %v2418_v16 = vrot.slane %v2416_v9, 4  ;;  %v8603_v54 = vsel %vm4066_vm10, %v4088_v5, %v4090_v7  ;;  %v8607_v22 = vsel %vm4066_vm10, %v4090_v7, %v4092_v58  ;;  %v2434_v51 = vshll.u32 %v9668_v26, 16 }
 0x139   : > { %v2424_v19 = vrot.slane %v2422_v47, 3  ;;  %v2427_v5 = vrot.slane %v2425_v14, 4  ;;  %v4094_v9 = vrot.slane %v8590_v29, 1  ;;  %v4096_v55 = vrot.slane %v8592_v36, 1 }
 0x13a   : > { %v2419_v10 = vor.u32 %v2418_v16, %v2415_v57  ;;  %v2433_v7 = vrot.slane %v2431_v60, 3  ;;  %v2436_v47 = vrot.slane %v2434_v51, 4  ;;  %v2440_v26 = vshrl.u32 %v9669_v45, 16  ;;  %v9672_v51 = vld [vmem:[#allocation9_spill] sm:$0xff] }
 0x13b   : > { %v2443_v15 = vshll.u32 %v9669_v45, 16  ;;  %v2428_v56 = vor.u32 %v2427_v5, %v2424_v19  ;;  %v8628_v57 = vsel %vm4066_vm10, %v4092_v58, %v4094_v9  ;;  %v8631_v16 = vsel %vm4066_vm10, %v4094_v9, %v4096_v55  ;;  %6488 = vmatmul.mubr.msk.bf16.gmra.mrb[16].mxu0 %vm1248_vm2, %v8566_v49 }
 0x13c   : > { %v8625_v44 = vsel %vm1898_vm4, %v9670_v6, %v2419_v10  ;;  %9671 = vst [vmem:[#allocation4_spill] sm:$0xff] %v8631_v16  ;;  %v2437_v42 = vor.u32 %v2436_v47, %v2433_v7  ;;  %v2442_v14 = vrot.slane %v2440_v26, 3  ;;  %v2449_v39 = vshrl.u32 %v9672_v51, 16  ;;  %v9673_v47 = vld [vmem:[#allocation11_spill] sm:$0xff]  ;;  %v9677_v16 = vld [vmem:[#allocation13_spill] sm:$0xff] }
 0x13d   : > { %v2445_v60 = vrot.slane %v2443_v15, 4  ;;  %v8638_v45 = vsel %vm1898_vm4, %v2419_v10, %v2428_v56  ;;  %v2452_v19 = vshll.u32 %v9672_v51, 16  ;;  %v4098_v58 = vrot.slane %v8613_v31, 1 }
 0x13e   : > { %v9543_v5 = vrot.slane %v8615_v24, 1  ;;  %v8644_v9 = vsel %vm1898_vm4, %v2428_v56, %v2437_v42  ;;  %v2451_v7 = vrot.slane %v2449_v39, 3  ;;  %v2458_v15 = vshrl.u32 %v9673_v47, 16 }
 0x13f   : > { %v2446_v32 = vor.u32 %v2445_v60, %v2442_v14  ;;  %v2454_v26 = vrot.slane %v2452_v19, 4  ;;  %v8648_v6 = vsel %vm4066_vm10, %v4096_v55, %v4098_v58  ;;  %v2461_v10 = vshll.u32 %v9673_v47, 16 }
 0x140   : > { %9674 = vst [vmem:[#allocation5_spill] sm:$0xff] %v8648_v6  ;;  %v8653_v4 = vsel %vm4066_vm10, %v4098_v58, %v9543_v5  ;;  %v2460_v56 = vrot.slane %v2458_v15, 3  ;;  %v2467_v14 = vshrl.u32 %v9677_v16, 16  ;;  %v2470_v39 = vshll.u32 %v9677_v16, 16 }
 0x141   : > { %9675 = vst [vmem:[#allocation6_spill] sm:$0xff] %v8653_v4  ;;  %v8657_v51 = vsel %vm1898_vm4, %v2437_v42, %v2446_v32  ;;  %v3738_v55 = vsel %vm3122_vm5, %v8570_v18, %v8543_v1  ;;  %v3751_v60 = vshll.u32 %v8553_v28, 16  ;;  %v2455_v19 = vor.u32 %v2454_v26, %v2451_v7  ;;  %v9678_v42 = vld [vmem:[#allocation25_spill] sm:$0xff]  ;;  %v9679_v4 = vld [vmem:[#allocation36_spill] sm:$0xff] }
 0x142   : > { %9676 = vst [vmem:[#allocation7_spill] sm:$0xff] %v8657_v51  ;;  %v2463_v58 = vrot.slane %v2461_v10, 4  ;;  %6491 = vmatprep.mubr.msk.bf16.mxu0 %vm1248_vm2, %v3738_v55  ;;  %v2611_v47 = vsel %vm1303_vm0, %v9678_v42, 0  ;;  %v2469_v15 = vrot.slane %v2467_v14, 3  ;;  %v2472_v5 = vrot.slane %v2470_v39, 4  ;;  %v9680_v10 = vld [vmem:[#allocation14_spill] sm:$0xff] }
 0x143   : > { %v1914_v16 = vsel %vm1898_vm4, %v8440_v63, %v9679_v4  ;;  %v3745_v49 = vrot.slane %v3743_v50, 1  ;;  %v8674_v6 = vsel %vm1898_vm4, %v2446_v32, %v2455_v19  ;;  %v3739_v7 = vshrl.u32 %v8395_v53, 16  ;;  %v9681_v51 = vld [vmem:[#allocation37_spill] sm:$0xff]  ;;  %v6978_v53 = vld [vmem:[%s9469_s3 + $0x10] sm:$0xf] }
 0x144   : > { %v2464_v18 = vor.u32 %v2463_v58, %v2460_v56  ;;  %6320 = vmatmul.mubr.msk.bf16.vlgmr.msra.gmra.mrb[0].mxu1 %vm1248_vm2, %v1914_v16  ;;  %v2473_v26 = vor.u32 %v2472_v5, %v2469_v15  ;;  %v2476_v55 = vshrl.u32 %v9680_v10, 16  ;;  %v3747_v14 = vshrl.u32 %v8545_v12, 16 }
 0x145   : > { %6323 = vmatprep.mubr.msk.bf16.mxu1 %vm1248_vm2, %v9681_v51  ;;  %6356 = vmatpush3.bf16.msra.mxu1 %v2611_v47  ;;  %v3753_v39 = vrot.slane %v3751_v60, 1  ;;  %v2479_v50 = vshll.u32 %v9680_v10, 16  ;;  %v3741_v32 = vor.u32 %v3739_v7, %v8543_v1  ;;  %v3759_v12 = vshll.u32 %v8590_v29, 16 }
 0x146   : > { %v8683_v63 = vsel %vm1898_vm4, %v2455_v19, %v2464_v18  ;;  %6878 = vmatprep.subr.msk.bf16.mxu1 %vm1303_vm0, %v6978_v53  ;;  %v8692_v5 = vsel %vm1898_vm4, %v2464_v18, %v2473_v26  ;;  %v2478_v4 = vrot.slane %v2476_v55, 3  ;;  %v3749_v51 = vor.u32 %v3747_v14, %v3745_v49 }
 0x147   : > { %v2481_v56 = vrot.slane %v2479_v50, 4  ;;  %v3746_v60 = vsel %vm3122_vm5, %v3741_v32, %v3745_v49  ;;  %v3767_v19 = vshll.u32 %v8592_v36, 16  ;;  %v3761_v42 = vrot.slane %v3759_v12, 1  ;;  %v6981_v12 = vld [vmem:[#allocation2 + $0x6c] sm:$0xf] }
 0x148   : > { %6492 = vmatmul.mubr.msk.bf16.gmra.mrb[20].mxu0 %vm1248_vm2, %v3746_v60  ;;  %v3754_v1 = vsel %vm3122_vm5, %v3749_v51, %v3753_v39  ;;  %v3755_v15 = vshrl.u32 %v8553_v28, 16  ;;  %v3763_v16 = vshrl.u32 %v8590_v29, 16  ;;  %v3775_v10 = vshll.u32 %v8613_v31, 16 }
 0x149   : > { %v8699_v58 = vor.u32 %v2481_v56, %v2478_v4  ;;  %6495 = vmatprep.mubr.msk.bf16.mxu0 %vm1248_vm2, %v3754_v1  ;;  %v3769_v49 = vrot.slane %v3767_v19, 1  ;;  %v3779_v29 = vshrl.u32 %v8613_v31, 16  ;;  %v6982_v56 = vld [vmem:[#allocation2 + $0x70] sm:$0xf] }
 0x14a   : > { %v3757_v18 = vor.u32 %v3755_v15, %v3753_v39  ;;  %v3765_v7 = vor.u32 %v3763_v16, %v3761_v42  ;;  %v3777_v28 = vrot.slane %v3775_v10, 1  ;;  %v5744_v60 = vcombine.low %v6981_v12, %v6982_v56  ;;  %v6984_v15 = vld [vmem:[#allocation2 + $0x78] sm:$0xf] }
 0x14b   : > { %v8704_v47 = vsel %vm1898_vm4, %v2473_v26, %v8699_v58 }
 0x14c   : > { %6324 = vmatmul.mubr.msk.bf16.gmra.mrb[4].mxu1 %vm1248_vm2, %v8364_v21  ;;  %v3762_v55 = vsel %vm3122_vm5, %v3757_v18, %v3761_v42  ;;  %v3770_v26 = vsel %vm3122_vm5, %v3765_v7, %v3769_v49  ;;  %v3783_v21 = vshll.u32 %v8615_v24, 16  ;;  %v3781_v50 = vor.u32 %v3779_v29, %v3777_v28  ;;  %v6983_v42 = vld [vmem:[#allocation2 + $0x74] sm:$0xf] }
 0x14d   : > { %6327 = vmatprep.mubr.msk.bf16.mxu1 %vm1248_vm2, %v8378_v61  ;;  %v3771_v61 = vshrl.u32 %v8592_v36, 16  ;;  %v5745_v16 = vcombine.low %v6983_v42, %v6984_v15  ;;  %v9690_v42 = vld [vmem:[#allocation30_spill] sm:$0xff] }
 0x14e   : > { %v3785_v14 = vrot.slane %v3783_v21, 1 }
 0x14f   : > { %v3773_v39 = vor.u32 %v3771_v61, %v3769_v49  ;;  %v2497_v61 = vshll.u32 %v5744_v60, 16 }
 0x150   : > { %6496 = vmatmul.mubr.msk.bf16.gmra.mrb[24].mxu0 %vm1248_vm2, %v3762_v55  ;;  %v3786_v53 = vsel %vm3122_vm5, %v3781_v50, %v3785_v14  ;;  %v6959_v55 = vld [vmem:[#allocation2 + $0x38] sm:$0xff]  }
 0x151   : > { %6499 = vmatprep.mubr.msk.bf16.mxu0 %vm1248_vm2, %v3770_v26  ;;  %v3778_v32 = vsel %vm3122_vm5, %v3773_v39, %v3777_v28  ;;  %v2494_v28 = vshrl.u32 %v5744_v60, 16  ;;  %v9689_v39 = vrot.slane %v8615_v24, 1 }
 0x154   : > { %6328 = vmatmul.mubr.msk.bf16.gmra.mrb[8].mxu1 %vm1248_vm2, %v8407_v35  ;;  %v3787_v35 = vshrl.u32 %v8615_v24, 16 }
 0x155   : > { %6331 = vmatprep.mubr.msk.bf16.mxu1 %vm1248_vm2, %v8425_v34 }
 0x156   : > { %v3789_v34 = vor.u32 %v3787_v35, %v3785_v14  ;;  %v2506_v14 = vshll.u32 %v5745_v16, 16  ;;  %v4541_v35 = vshrl.u32 %v6959_v55, 16 }
 0x158   : > { %6500 = vmatmul.mubr.msk.bf16.gmra.mrb[28].mxu0 %vm1248_vm2, %v3778_v32 }
 0x159   : > { %6503 = vmatprep.mubr.msk.bf16.mxu0 %vm1248_vm2, %v3786_v53  ;;  %v6960_v53 = vld [vmem:[#allocation2 + $0x40] sm:$0xff]  }
 0x15c   : > { %6332 = vmatmul.mubr.msk.bf16.gmra.mrb[12].mxu1 %vm1248_vm2, %v8451_v30  ;;  %v4726_v30 = vsel %vm1303_vm0, %v8400_v23, 0  ;;  %v6954_v23 = vld [vmem:[#allocation2 + $0x94] ss:$0 sps:$4 sm:$0x77]  }
 0x15d   : > { %6335 = vmatprep.mubr.msk.bf16.mxu1 %vm1248_vm2, %v8459_v25  ;;  %v1979_v25 = vshll.u32 %v6954_v23, 16 }
 0x160   : > { %6504 = vmatmul.mubr.msk.bf16.gmra.mrb[32].mxu0 %vm1248_vm2, %v3789_v34  ;;  %v6985_v34 = vld [vmem:[#allocation2 + $0x7c] sm:$0xf] }
 0x161   : > { %6509 = vmatprep.mubr.msk.bf16.mxu0 %vm1248_vm2, %v8454_v13  ;;  %v1976_v13 = vshrl.u32 %v6954_v23, 16 }
 0x164   : > { %6336 = vmatmul.mubr.msk.bf16.gmra.mrb[16].mxu1 %vm1248_vm2, %v8472_v48  ;;  %v1978_v48 = vrot.slane %v1976_v13, 3 }
 0x165   : > { %6339 = vmatprep.mubr.msk.bf16.mxu1 %vm1248_vm2, %v8490_v41 }
 0x168   : > { %6510 = vmatmul.mubr.msk.bf16.vlgmr.msra.gmra.mrb[0].mxu0 %vm1248_vm2, %v8475_v27  ;;  %v1981_v27 = vrot.slane %v1979_v25, 4  ;;  %v2496_v25 = vrot.slane %v2494_v28, 3 }
 0x169   : > { %6546 = vmatpush3.bf16.msra.mxu0 %v4726_v30  ;;  %6513 = vmatprep.mubr.msk.bf16.mxu0 %vm1248_vm2, %v8482_v46  ;;  %v6986_v30 = vld [vmem:[#allocation2 + $0x80] sm:$0xf] }
 0x16a   : > { %v1982_v46 = vor.u32 %v1981_v27, %v1978_v48  ;;  %v5746_v23 = vcombine.low %v6985_v34, %v6986_v30  ;;  %v2499_v48 = vrot.slane %v2497_v61, 4  ;;  %v6987_v27 = vld [vmem:[#allocation2 + $0x84] sm:$0xf] }
 0x16c   : > { %6340 = vmatmul.mubr.msk.bf16.gmra.mrb[20].mxu1 %vm1248_vm2, %v8500_v2  ;;  %v1983_v41 = vsel %vm1898_vm4, %v8558_v52, %v1982_v46  ;;  %v9682_v2 = vld [vmem:[#allocation8_spill] sm:$0xff]  ;;  %v6988_v46 = vld [vmem:[#allocation2 + $0x88] sm:$0xf] }
 0x16d   : > { %6343 = vmatprep.mubr.msk.bf16.mxu1 %vm1248_vm2, %v8516_v17  ;;  %v6956_v17 = vld [vmem:[#allocation2 + $0x20] sm:$0xff]  }
 0x16e   : > { %v4514_v52 = vshrl.u32 %v6956_v17, 16 }
 0x170   : > { %6514 = vmatmul.mubr.msk.bf16.gmra.mrb[4].mxu0 %vm1248_vm2, %v8503_v0  ;;  %v9683_v0 = vld [vmem:[#allocation12_spill] sm:$0xff] }
 0x171   : > { %6517 = vmatprep.mubr.msk.bf16.mxu0 %vm1248_vm2, %v8510_v37  ;;  %v9684_v37 = vld [vmem:[#allocation3_spill] sm:$0xff] }
 0x174   : > { %6344 = vmatmul.mubr.msk.bf16.gmra.mrb[24].mxu1 %vm1248_vm2, %v8526_v38  ;;  %v9685_v38 = vld [vmem:[#allocation4_spill] sm:$0xff] }
 0x175   : > { %6347 = vmatprep.mubr.msk.bf16.mxu1 %vm1248_vm2, %v8548_v43  ;;  %v6980_v43 = vld [vmem:[#allocation2 + $0x68] sm:$0xf] }
 0x178   : > { %6518 = vmatmul.mubr.msk.bf16.gmra.mrb[8].mxu0 %vm1248_vm2, %v8529_v62  ;;  %v9686_v62 = vld [vmem:[#allocation7_spill] sm:$0xff] }
 0x179   : > { %6521 = vmatprep.mubr.msk.bf16.mxu0 %vm1248_vm2, %v8534_v20  ;;  %v6979_v20 = vld [vmem:[#allocation2 + $0x64] sm:$0xf] }
 0x17c   : > { %6348 = vmatmul.mubr.msk.bf16.gmra.mrb[28].mxu1 %vm1248_vm2, %v8556_v8  ;;  %v5743_v8 = vcombine.low %v6979_v20, %v6980_v43  ;;  %v2515_v20 = vshll.u32 %v5746_v23, 16  ;;  %v6961_v43 = vld [vmem:[#allocation2 + $0x48] sm:$0xff]  }
 0x17d   : > { %6351 = vmatprep.mubr.msk.bf16.mxu1 %vm1248_vm2, %v8580_v33 }
 0x17e   : > { %v2485_v36 = vshrl.u32 %v5743_v8, 16 }
 0x180   : > { %6522 = vmatmul.mubr.msk.bf16.gmra.mrb[12].mxu0 %vm1248_vm2, %v8561_v59  ;;  %v4517_v59 = vshll.u32 %v6956_v17, 16  ;;  %v2487_v1 = vrot.slane %v2485_v36, 3 }
 0x181   : > { %6525 = vmatprep.mubr.msk.bf16.mxu0 %vm1248_vm2, %v8573_v3 }
 0x182   : > { %v4519_v31 = vrot.slane %v4517_v59, 2 }
 0x184   : > { %6352 = vmatmul.mubr.msk.bf16.gmra.mrb[32].mxu1 %vm1248_vm2, %v1983_v41  ;;  %v5747_v41 = vcombine.low %v6987_v27, %v6988_v46 }
 0x185   : > { %6357 = vmatprep.mubr.msk.bf16.mxu1 %vm1248_vm2, %v9682_v2 }
 0x186   : > { %v2524_v59 = vshll.u32 %v5747_v41, 16 }
 0x188   : > { %6526 = vmatmul.mubr.msk.bf16.gmra.mrb[16].mxu0 %vm1248_vm2, %v8583_v40  ;;  %v6957_v40 = vld [vmem:[#allocation2 + $0x28] sm:$0xff]  }
 0x189   : > { %6529 = vmatprep.mubr.msk.bf16.mxu0 %vm1248_vm2, %v8595_v11  ;;  %v2488_v11 = vshll.u32 %v5743_v8, 16  ;;  %v4523_v51 = vshrl.u32 %v6957_v40, 16  ;;  %v2500_v8 = vor.u32 %v2499_v48, %v2496_v25 }
 0x18b   : > { %v2490_v19 = vrot.slane %v2488_v11, 4  ;;  %v4525_v26 = vrot.slane %v4523_v51, 1  ;;  %v6989_v51 = vld [vmem:[#allocation2 + $0x8c] sm:$0xf] }
 0x18c   : > { %6358 = vmatmul.mubr.msk.bf16.vlgmr.msra.gmra.mrb[0].mxu1 %vm1248_vm2, %v9683_v0  ;;  %v2508_v0 = vrot.slane %v2506_v14, 4 }
 0x18d   : > { %6361 = vmatprep.mubr.msk.bf16.mxu1 %vm1248_vm2, %v8625_v44  ;;  %6584 = vmatpush3.bf16.msra.mxu1 %v9684_v37  ;;  %v6955_v44 = vld [vmem:[#allocation2 + $0x18] sm:$0xfe]   ;;  %v2491_v29 = vor.u32 %v2490_v19, %v2487_v1  ;;  %v4544_v37 = vshll.u32 %v6959_v55, 16  ;;  %v4562_v1 = vshll.u32 %v6961_v43, 16  ;;  %v6991_v19 = vld [vmem:[#allocation2 + $0x94] sm:$0xf] }
 0x18e   : > { %v4506_v3 = vshrl.u32 %v6955_v44, 16  ;;  %v4509_v33 = vshll.u32 %v6955_v44, 16  ;;  %v4553_v44 = vshll.u32 %v6960_v53, 16  ;;  %v5749_v15 = vcombine.low %v6991_v19, %v9690_v42  ;;  %v6969_v19 = vld [vmem:[#allocation2 + $0x80] sm:$0xff]  }
 0x18f   : > { %v2492_v24 = vsel %vm1898_vm4, %v8699_v58, %v2491_v29 }
 0x190   : > { %6530 = vmatmul.mubr.msk.bf16.gmra.mrb[20].mxu0 %vm1248_vm2, %v8603_v54  ;;  %v9687_v54 = vld [vmem:[#allocation5_spill] sm:$0xff]  ;;  %v4511_v4 = vrot.slane %v4509_v33, 2  ;;  %v4543_v33 = vrot.slane %v4541_v35, 1  ;;  %v4555_v11 = vrot.slane %v4553_v44, 2  ;;  %v2542_v14 = vshll.u32 %v5749_v15, 16 }
 0x191   : > { %6533 = vmatprep.mubr.msk.bf16.mxu0 %vm1248_vm2, %v8607_v22  ;;  %v4516_v22 = vrot.slane %v4514_v52, 1  ;;  %v2521_v52 = vshrl.u32 %v5747_v41, 16 }
 0x192   : > { %v2544_v46 = vrot.slane %v2542_v14, 4 }
 0x193   : > { %v4520_v49 = vor.u32 %v4519_v31, %v4516_v22  ;;  %v2517_v31 = vrot.slane %v2515_v20, 4 }
 0x194   : > { %6362 = vmatmul.mubr.msk.bf16.gmra.mrb[4].mxu1 %vm1248_vm2, %v8638_v45  ;;  %v9688_v45 = vld [vmem:[#allocation6_spill] sm:$0xff] }
 0x195   : > { %6365 = vmatprep.mubr.msk.bf16.mxu1 %vm1248_vm2, %v8644_v9  ;;  %v4508_v9 = vrot.slane %v4506_v3, 1 }
 0x197   : > { %v4512_v10 = vor.u32 %v4511_v4, %v4508_v9  ;;  %v2523_v9 = vrot.slane %v2521_v52, 3  ;;  %v2526_v4 = vrot.slane %v2524_v59, 4 }
 0x198   : > { %6534 = vmatmul.mubr.msk.bf16.gmra.mrb[24].mxu0 %vm1248_vm2, %v8628_v57  ;;  %v6958_v57 = vld [vmem:[#allocation2 + $0x30] sm:$0xff]  }
 0x199   : > { %6537 = vmatprep.mubr.msk.bf16.mxu0 %vm1248_vm2, %v9685_v38  ;;  %v4532_v18 = vshrl.u32 %v6958_v57, 16  ;;  %v4535_v7 = vshll.u32 %v6958_v57, 16  ;;  %v4521_v50 = vsel %vm4504_vm11, %v4512_v10, %v4520_v49  ;;  %v4550_v38 = vshrl.u32 %v6960_v53, 16  ;;  %v6963_v10 = vld [vmem:[#allocation2 + $0x58] sm:$0xff]   ;;  %v6964_v53 = vld [vmem:[#allocation2 + $0x60] sm:$0xff]  }
 0x19a   : > { %v4559_v57 = vshrl.u32 %v6961_v43, 16  ;;  %v2527_v55 = vor.u32 %v2526_v4, %v2523_v9  ;;  %v4577_v34 = vshrl.u32 %v6963_v10, 16  ;;  %v4580_v41 = vshll.u32 %v6963_v10, 16 }
 0x19b   : > { %v4537_v32 = vrot.slane %v4535_v7, 2  ;;  %v4552_v36 = vrot.slane %v4550_v38, 1  ;;  %v4622_v10 = vshrl.u32 %v6969_v19, 16 }
 0x19c   : > { %6366 = vmatmul.mubr.msk.bf16.gmra.mrb[8].mxu1 %vm1248_vm2, %v9686_v62  ;;  %v2512_v62 = vshrl.u32 %v5746_v23, 16  ;;  %v4579_v20 = vrot.slane %v4577_v34, 1  ;;  %v4582_v43 = vrot.slane %v4580_v41, 2  ;;  %v9693_v34 = vld [vmem:[#allocation19_spill] sm:$0xff] }
 0x19d   : > { %6369 = vmatprep.mubr.msk.bf16.mxu1 %vm1248_vm2, %v8674_v6  ;;  %v4526_v6 = vshll.u32 %v6957_v40, 16  ;;  %v4546_v40 = vrot.slane %v4544_v37, 2 }
 0x19e   : > { %v2514_v22 = vrot.slane %v2512_v62, 3 }
 0x19f   : > { %v4528_v21 = vrot.slane %v4526_v6, 2  ;;  %v6990_v6 = vld [vmem:[#allocation2 + $0x90] sm:$0xf]  ;;  %v4547_v60 = vor.u32 %v4546_v40, %v4543_v33 }
 0x1a0   : > { %6538 = vmatmul.mubr.msk.bf16.gmra.mrb[28].mxu0 %vm1248_vm2, %v9687_v54  ;;  %v6962_v54 = vld [vmem:[#allocation2 + $0x50] sm:$0xff]   ;;  %v5748_v12 = vcombine.low %v6989_v51, %v6990_v6  ;;  %v2518_v7 = vor.u32 %v2517_v31, %v2514_v22 }
 0x1a1   : > { %6541 = vmatprep.mubr.msk.bf16.mxu0 %vm1248_vm2, %v9688_v45  ;;  %v4529_v13 = vor.u32 %v4528_v21, %v4525_v26  ;;  %v2501_v45 = vsel %vm1898_vm4, %v2491_v29, %v2500_v8  ;;  %v4561_v26 = vrot.slane %v4559_v57, 1  ;;  %v4564_v29 = vrot.slane %v4562_v1, 2 }
 0x1a2   : > { %v2530_v21 = vshrl.u32 %v5748_v12, 16  ;;  %v2533_v28 = vshll.u32 %v5748_v12, 16  ;;  %v2528_v30 = vsel %vm1898_vm4, %v2518_v7, %v2527_v55  ;;  %v6968_v12 = vld [vmem:[#allocation2 + $0x78] sm:$0xff]  }
 0x1a3   : > { %v4530_v3 = vsel %vm4504_vm11, %v4520_v49, %v4529_v13  ;;  %v4568_v49 = vshrl.u32 %v6962_v54, 16  ;;  %v4565_v48 = vor.u32 %v4564_v29, %v4561_v26 }
 0x1a4   : > { %6370 = vmatmul.mubr.msk.bf16.gmra.mrb[12].mxu1 %vm1248_vm2, %v8683_v63  ;;  %v2503_v63 = vshrl.u32 %v5745_v16, 16  ;;  %v4556_v16 = vor.u32 %v4555_v11, %v4552_v36  ;;  %v2532_v23 = vrot.slane %v2530_v21, 3  ;;  %v4583_v11 = vor.u32 %v4582_v43, %v4579_v20 }
 0x1a5   : > { %6373 = vmatprep.mubr.msk.bf16.mxu1 %vm1248_vm2, %v8692_v5  ;;  %v4534_v5 = vrot.slane %v4532_v18, 1  ;;  %v4571_v18 = vshll.u32 %v6962_v54, 16 }
 0x1a6   : > { %v2505_v2 = vrot.slane %v2503_v63, 3  ;;  %v2539_v63 = vshrl.u32 %v5749_v15, 16  ;;  %v4566_v44 = vsel %vm4504_vm11, %v4556_v16, %v4565_v48 }
 0x1a7   : > { %v4538_v17 = vor.u32 %v4537_v32, %v4534_v5  ;;  %v4570_v5 = vrot.slane %v4568_v49, 1  ;;  %v4573_v32 = vrot.slane %v4571_v18, 2  ;;  %v4616_v49 = vshll.u32 %v6968_v12, 16  ;;  %v9691_v18 = vld [vmem:[#allocation15_spill] sm:$0xff] }
 0x1a8   : > { %6542 = vmatmul.mubr.msk.bf16.gmra.mrb[32].mxu0 %vm1248_vm2, %v9689_v39  ;;  %v8828_v39 = vld [vmem:[#allocation2 + $0x9c] sm:$0x7]  ;;  %v2541_v27 = vrot.slane %v2539_v63, 3  ;;  %v4624_v63 = vrot.slane %v4622_v10, 1 }
 0x1a9   : > { %6547 = vmatprep.mubr.msk.bf16.mxu0 %vm1248_vm2, %v4521_v50  ;;  %v4539_v58 = vsel %vm4504_vm11, %v4529_v13, %v4538_v17  ;;  %v4548_v61 = vsel %vm4504_vm11, %v4538_v17, %v4547_v60  ;;  %v4557_v50 = vsel %vm4504_vm11, %v4547_v60, %v4556_v16  ;;  %v2535_v13 = vrot.slane %v2533_v28, 4 }
 0x1aa   : > { %v5750_v25 = vcombine.low %v8828_v39, %v8828_v39  ;;  %v2545_v62 = vor.u32 %v2544_v46, %v2541_v27  ;;  %v4613_v16 = vshrl.u32 %v6968_v12, 16  ;;  %v4618_v28 = vrot.slane %v4616_v49, 2  ;;  %v6972_v46 = vld [vmem:[#allocation2 + $0x98] sm:$0xff]  }
 0x1ab   : > { %v2536_v37 = vor.u32 %v2535_v13, %v2532_v23 }
 0x1ac   : > { %6374 = vmatmul.mubr.msk.bf16.gmra.mrb[16].mxu1 %vm1248_vm2, %v8704_v47  ;;  %v2509_v47 = vor.u32 %v2508_v0, %v2505_v2  ;;  %v4586_v2 = vshrl.u32 %v6964_v53, 16  ;;  %v4589_v0 = vshll.u32 %v6964_v53, 16  ;;  %v2548_v17 = vshrl.u32 %v5750_v25, 16 }
 0x1ad   : > { %6377 = vmatprep.mubr.msk.bf16.mxu1 %vm1248_vm2, %v2492_v24  ;;  %v4574_v24 = vor.u32 %v4573_v32, %v4570_v5  ;;  %v2551_v38 = vshll.u32 %v5750_v25, 16  ;;  %v2537_v33 = vsel %vm1898_vm4, %v2527_v55, %v2536_v37  ;;  %v2546_v36 = vsel %vm1898_vm4, %v2536_v37, %v2545_v62  ;;  %v9692_v5 = vld [vmem:[#allocation16_spill] sm:$0xff] }
 0x1ae   : > { %v2510_v56 = vsel %vm1898_vm4, %v2500_v8, %v2509_v47  ;;  %v2519_v35 = vsel %vm1898_vm4, %v2509_v47, %v2518_v7  ;;  %v6966_v8 = vld [vmem:[#allocation2 + $0x68] sm:$0xff]   ;;  %v4588_v59 = vrot.slane %v4586_v2, 1  ;;  %v6967_v47 = vld [vmem:[#allocation2 + $0x70] sm:$0xff]   ;;  %v2550_v40 = vrot.slane %v2548_v17, 3 }
 0x1af   : > { %v4575_v52 = vsel %vm4504_vm11, %v4565_v48, %v4574_v24  ;;  %v4595_v54 = vshrl.u32 %v6966_v8, 16  ;;  %v4598_v22 = vshll.u32 %v6966_v8, 16  ;;  %v4604_v57 = vshrl.u32 %v6967_v47, 16  ;;  %v9694_v37 = vld [vmem:[#allocation20_spill] sm:$0xff] }
 0x1b0   : > { %6548 = vmatmul.mubr.msk.bf16.vlgmr.msra.gmra.mrb[0].mxu0 %vm1248_vm2, %v4530_v3  ;;  %v4591_v3 = vrot.slane %v4589_v0, 2  ;;  %v4584_v4 = vsel %vm4504_vm11, %v4574_v24, %v4583_v11  ;;  %v4625_v55 = vshll.u32 %v6969_v19, 16  ;;  %v4615_v21 = vrot.slane %v4613_v16, 1  ;;  %v6973_v0 = vld [vmem:[#allocation2 + $0xa0] sm:$0xff]  }
 0x1b1   : > { %6551 = vmatprep.mubr.msk.bf16.mxu0 %vm1248_vm2, %v4539_v58  ;;  %v2553_v58 = vrot.slane %v2551_v38, 4  ;;  %v4597_v51 = vrot.slane %v4595_v54, 1  ;;  %v4600_v6 = vrot.slane %v4598_v22, 2  ;;  %v4606_v60 = vrot.slane %v4604_v57, 1  ;;  %v9697_v54 = vld [vmem:[#allocation28_spill] sm:$0xff] }
 0x1b2   : > { %v4592_v31 = vor.u32 %v4591_v3, %v4588_v59  ;;  %v4627_v14 = vrot.slane %v4625_v55, 2  ;;  %v4619_v32 = vor.u32 %v4618_v28, %v4615_v21  ;;  %v4649_v38 = vshrl.u32 %v6972_v46, 16 }
 0x1b3   : > { %v2554_v9 = vor.u32 %v2553_v58, %v2550_v40  ;;  %v4601_v15 = vor.u32 %v4600_v6, %v4597_v51  ;;  %v4658_v43 = vshrl.u32 %v6973_v0, 16  ;;  %v4661_v8 = vshll.u32 %v6973_v0, 16  ;;  %v9696_v58 = vld [vmem:[#allocation24_spill] sm:$0xff] }
 0x1b4   : > { %6378 = vmatmul.mubr.msk.bf16.gmra.mrb[20].mxu1 %vm1248_vm2, %v2501_v45  ;;  %v4607_v45 = vshll.u32 %v6967_v47, 16  ;;  %v4651_v59 = vrot.slane %v4649_v38, 1 }
 0x1b5   : > { %6381 = vmatprep.mubr.msk.bf16.mxu1 %vm1248_vm2, %v2510_v56  ;;  %v4593_v56 = vsel %vm4504_vm11, %v4583_v11, %v4592_v31  ;;  %v2555_v42 = vsel %vm1898_vm4, %v2545_v62, %v2554_v9  ;;  %v4602_v26 = vsel %vm4504_vm11, %v4592_v31, %v4601_v15  ;;  %v9695_v62 = vld [vmem:[#allocation23_spill] sm:$0xff]  ;;  %v4663_v40 = vrot.slane %v4661_v8, 2  ;;  %v6974_v11 = vld [vmem:[#allocation2 + $0xa8] ss:$0 sps:$4 sm:$0x11]  }
 0x1b6   : > { %v4609_v1 = vrot.slane %v4607_v45, 2  ;;  %v4667_v57 = vshll.u32 %v6974_v11, 16  ;;  %v6992_v9 = vld [vmem:[#allocation2 + $0x98] sm:$0xf] }
 0x1b8   : > { %6552 = vmatmul.mubr.msk.bf16.gmra.mrb[4].mxu0 %vm1248_vm2, %v4548_v61  ;;  %v4610_v7 = vor.u32 %v4609_v1, %v4606_v60  ;;  %v6970_v61 = vld [vmem:[#allocation2 + $0x88] sm:$0xff]   ;;  %v4669_v51 = vrot.slane %v4667_v57, 2  ;;  %v8887_v1 = vpop.permute.xlu1 %4984 }
 0x1b9   : > { %6555 = vmatprep.mubr.msk.bf16.mxu0 %vm1248_vm2, %v4557_v50  ;;  %v6971_v50 = vld [vmem:[#allocation2 + $0x90] sm:$0xff]   ;;  %v4631_v53 = vshrl.u32 %v6970_v61, 16 }
 0x1ba   : > { %v4611_v29 = vsel %vm4504_vm11, %v4601_v15, %v4610_v7  ;;  %v4640_v23 = vshrl.u32 %v6971_v50, 16  ;;  %v4643_v13 = vshll.u32 %v6971_v50, 16  ;;  %v4620_v25 = vsel %vm4504_vm11, %v4610_v7, %v4619_v32 }
 0x1bb   : > { %v4633_v48 = vrot.slane %v4631_v53, 1 }
 0x1bc   : > { %6382 = vmatmul.mubr.msk.bf16.gmra.mrb[24].mxu1 %vm1248_vm2, %v2519_v35  ;;  %v4634_v35 = vshll.u32 %v6970_v61, 16  ;;  %v4642_v24 = vrot.slane %v4640_v23, 1  ;;  %v4645_v2 = vrot.slane %v4643_v13, 2  ;;  %v8889_v15 = vpop.permute.xlu1 %4994 }
 0x1bd   : > { %6385 = vmatprep.mubr.msk.bf16.mxu1 %vm1248_vm2, %v2528_v30  ;;  %v4628_v30 = vor.u32 %v4627_v14, %v4624_v63 }
 0x1be   : > { %v4636_v27 = vrot.slane %v4634_v35, 2  ;;  %v4646_v20 = vor.u32 %v4645_v2, %v4642_v24  ;;  %v9700_v2 = vld [vmem:[#allocation17_spill] sm:$0xff] }
 0x1bf   : > { %v4629_v41 = vsel %vm4504_vm11, %v4619_v32, %v4628_v30 }
 0x1c0   : > { %6556 = vmatmul.mubr.msk.bf16.gmra.mrb[8].mxu0 %vm1248_vm2, %v4566_v44  ;;  %v4637_v17 = vor.u32 %v4636_v27, %v4633_v48  ;;  %v4652_v44 = vshll.u32 %v6972_v46, 16  ;;  %v9699_v27 = vld [vmem:[#allocation18_spill] sm:$0xff] }
 0x1c1   : > { %6559 = vmatprep.mubr.msk.bf16.mxu0 %vm1248_vm2, %v4575_v52 }
 0x1c2   : > { %v4638_v52 = vsel %vm4504_vm11, %v4628_v30, %v4637_v17  ;;  %v4654_v3 = vrot.slane %v4652_v44, 2  ;;  %v4647_v47 = vsel %vm4504_vm11, %v4637_v17, %v4646_v20 }
 0x1c4   : > { %6386 = vmatmul.mubr.msk.bf16.gmra.mrb[28].mxu1 %vm1248_vm2, %v2537_v33  ;;  %v4660_v33 = vrot.slane %v4658_v43, 1 }
 0x1c5   : > { %6389 = vmatprep.mubr.msk.bf16.mxu1 %vm1248_vm2, %v2546_v36  ;;  %v4655_v36 = vor.u32 %v4654_v3, %v4651_v59 }
 0x1c6   : > { %v4664_v22 = vor.u32 %v4663_v40, %v4660_v33 }
 0x1c7   : > { %v4656_v31 = vsel %vm4504_vm11, %v4646_v20, %v4655_v36 }
 0x1c8   : > { %6560 = vmatmul.mubr.msk.bf16.gmra.mrb[12].mxu0 %vm1248_vm2, %v4584_v4  ;;  %v4665_v45 = vsel %vm4504_vm11, %v4655_v36, %v4664_v22  ;;  %v5787_v4 = vcombine.low %v6992_v9, %v8828_v39  ;;  %v4670_v6 = vsel %vm4504_vm11, %v4664_v22, %v4669_v51  ;;  %v8891_v39 = vpop.permute.xlu1 %5004 }
 0x1c9   : > { %6563 = vmatprep.mubr.msk.bf16.mxu0 %vm1248_vm2, %v4593_v56 }
 0x1cc   : > { %6390 = vmatmul.mubr.msk.bf16.gmra.mrb[32].mxu1 %vm1248_vm2, %v2555_v42  ;;  %v8901_v21 = vpop.permute.xlu1 %5014 }
 0x1cd   : > { %6415 = vmatprep.mubr.msk.bf16.mxu1 %vm1248_vm2, %v9691_v18 }
 0x1d0   : > { %6564 = vmatmul.mubr.msk.bf16.gmra.mrb[16].mxu0 %vm1248_vm2, %v4602_v26  ;;  %v8909_v63 = vpop.permute.xlu1 %5024 }
 0x1d1   : > { %6567 = vmatprep.mubr.msk.bf16.mxu0 %vm1248_vm2, %v4611_v29 }
 0x1d4   : > { %6416 = vmatmul.mubr.msk.bf16.vlgmr.msra.gmra.mrb[20].mxu1 %vm1248_vm2, %v9692_v5  ;;  %v8915_v5 = vpop.permute.xlu1 %5034 }
 0x1d5   : > { %6419 = vmatprep.mubr.msk.bf16.mxu1 %vm1248_vm2, %v9693_v34 }
 0x1d8   : > { %6568 = vmatmul.mubr.msk.bf16.gmra.mrb[20].mxu0 %vm1248_vm2, %v4620_v25  ;;  %v8929_v13 = vpop.permute.xlu1 %5044 }
 0x1d9   : > { %6571 = vmatprep.mubr.msk.bf16.mxu0 %vm1248_vm2, %v4629_v41  ;;  %9698 = vst [vmem:[#allocation10_spill] sm:$0xff] %v8929_v13 }
 0x1dc   : > { %6420 = vmatmul.mubr.msk.bf16.gmra.mrb[24].mxu1 %vm1248_vm2, %v9694_v37  ;;  %v8952_v44 = vpop.permute.xlu1 %5054 }
 0x1dd   : > { %6423 = vmatprep.mubr.msk.bf16.mxu1 %vm1248_vm2, %v9695_v62  ;;  %9701 = vst [vmem:[#allocation9_spill] sm:$0xff] %v8952_v44 }
 0x1e0   : > { %6572 = vmatmul.mubr.msk.bf16.gmra.mrb[24].mxu0 %vm1248_vm2, %v4638_v52  ;;  %v8977_v51 = vpop.permute.xlu1 %5064 }
 0x1e1   : > { %6575 = vmatprep.mubr.msk.bf16.mxu0 %vm1248_vm2, %v4647_v47  ;;  %9704 = vst [vmem:[#allocation11_spill] sm:$0xff] %v8977_v51 }
 0x1e4   : > { %6424 = vmatmul.mubr.msk.bf16.gmra.mrb[28].mxu1 %vm1248_vm2, %v9696_v58  ;;  %v9702_v58 = vld [vmem:[#allocation22_spill] sm:$0xff] }
 0x1e5   : > { %6427 = vmatprep.mubr.msk.bf16.mxu1 %vm1248_vm2, %v9697_v54 }
 0x1e8   : > { %6576 = vmatmul.mubr.msk.bf16.gmra.mrb[28].mxu0 %vm1248_vm2, %v4656_v31  ;;  %v9703_v31 = vld [vmem:[#allocation21_spill] sm:$0xff] }
 0x1e9   : > { %6579 = vmatprep.mubr.msk.bf16.mxu0 %vm1248_vm2, %v4665_v45 }
 0x1ec   : > { %6428 = vmatmul.mubr.msk.bf16.gmra.mrb[32].mxu1 %vm1248_vm2, %v5787_v4 }
 0x1f0   : > { %6580 = vmatmul.mubr.msk.bf16.gmra.mrb[32].mxu0 %vm1248_vm2, %v4670_v6 }
 0x25f   : > { %v6359_v12 = vpop.f32.mrb[0].mxu1 }
 0x260   : > { %v2647_v56 = vpop.f32.mrb[1].mxu1 }
 0x261   : > { %v6360_v60 = vpop.f32.mrb[2].mxu1 }
 0x262   : > { %v2650_v19 = vpop.f32.mrb[3].mxu1 }
 0x267   : > { %v6363_v42 = vpop.f32.mrb[4].mxu1 }
 0x268   : > { %v2663_v16 = vpop.f32.mrb[5].mxu1 }
 0x269   : > { %v6364_v49 = vpop.f32.mrb[6].mxu1 }
 0x26a   : > { %v2666_v18 = vpop.f32.mrb[7].mxu1 }
 0x26f   : > { %v8893_v7 = vpop.f32.mrb[8].mxu1 }
 0x270   : > { %v8895_v10 = vpop.f32.mrb[9].mxu1 }
 0x271   : > { %v8897_v55 = vpop.f32.mrb[10].mxu1 }
 0x272   : > { %v8899_v26 = vpop.f32.mrb[11].mxu1 }
 0x277   : > { %v8903_v28 = vpop.f32.mrb[12].mxu1 }
 0x278   : > { %v8905_v61 = vpop.f32.mrb[13].mxu1 }
 0x279   : > { %v8907_v29 = vpop.f32.mrb[14].mxu1 }
 0x27a   : > { %v8911_v14 = vpop.f32.mrb[15].mxu1 }
 0x27f   : > { %v8913_v50 = vpop.f32.mrb[16].mxu1 }
 0x280   : > { %v8917_v32 = vpop.f32.mrb[17].mxu1 }
 0x281   : > { %v8919_v53 = vpop.f32.mrb[18].mxu1 }
 0x282   : > { %v8922_v35 = vpop.f32.mrb[19].mxu1 }
 0x283   : > { %v6549_v34 = vpop.f32.mrb[0].mxu0 }
 0x284   : > { %v6585_v30 = vadd.f32 %v6549_v34, %v6359_v12  ;;  %v4762_v23 = vpop.f32.mrb[1].mxu0 }
 0x285   : > { %v6586_v25 = vadd.f32 %v4762_v23, %v2647_v56  ;;  %v6550_v48 = vpop.f32.mrb[2].mxu0 }
 0x286   : > { %v8932_v46 = vmul.f32 %v6585_v30, %v9699_v27  ;;  %v6587_v41 = vadd.f32 %v6550_v48, %v6360_v60  ;;  %v4765_v24 = vpop.f32.mrb[3].mxu0 }
 0x287   : > { %v8935_v0 = vmul.f32 %v6586_v25, %v9700_v2  ;;  %v6588_v37 = vadd.f32 %v4765_v24, %v2650_v19  ;;  %v9705_v25 = vld [vmem:[#allocation27_spill] sm:$0xff] }
 0x288   : > { %5463 = vst.msk [vmem:[%s8927_s19 + $0x10] sm:$0xff] %vm5193_vm12, %v8932_v46  ;;  %v8941_v17 = vmul.f32 %v6587_v41, %v8889_v15  ;;  %v5197_v3 = vsel %vm5193_vm12, %v8932_v46, 0.0 }
 0x289   : > { %5461 = vst.msk [vmem:[%s8927_s19] sm:$0xff] %vm5193_vm12, %v8935_v0  ;;  %v8947_v38 = vmul.f32 %v6588_v37, %v8887_v1  ;;  %v5194_v62 = vsel %vm5193_vm12, %v8935_v0, 0.0  ;;  %v9003_v37 = vpop.permute.xlu1 %5074 }
 0x28a   : > { %5464 = vst.msk [vmem:[%s8927_s19 + $0x18] sm:$0xff] %vm5193_vm12, %v8941_v17  ;;  %v5199_v22 = vsel %vm5193_vm12, %v8941_v17, 0.0  ;;  %9706 = vst [vmem:[#allocation13_spill] sm:$0xff] %v9003_v37 }
 0x28b   : > { %v5195_v20 = vsel %vm5193_vm12, %v8947_v38, 0.0  ;;  %5462 = vst.msk [vmem:[%s8927_s19 + $0x8] sm:$0xff] %vm5193_vm12, %v8947_v38  ;;  %v6553_v43 = vpop.f32.mrb[4].mxu0 }
 0x28c   : > { %v5196_v8 = vadd.f32 %v5195_v20, %v5194_v62  ;;  %v6589_v52 = vadd.f32 %v6553_v43, %v6363_v42  ;;  %v4778_v59 = vpop.f32.mrb[5].mxu0  ;;  %v9707_v62 = vld [vmem:[#allocation26_spill] sm:$0xff] }
 0x28d   : > { %v6590_v47 = vadd.f32 %v4778_v59, %v2663_v16  ;;  %v6554_v33 = vpop.f32.mrb[6].mxu0 }
 0x28e   : > { %v5198_v40 = vadd.f32 %v5197_v3, %v5196_v8  ;;  %v8964_v36 = vmul.f32 %v6589_v52, %v9702_v58  ;;  %v6591_v11 = vadd.f32 %v6554_v33, %v6364_v49  ;;  %v4781_v54 = vpop.f32.mrb[7].mxu0 }
 0x28f   : > { %v8969_v57 = vmul.f32 %v6590_v47, %v9703_v31  ;;  %v6592_v45 = vadd.f32 %v4781_v54, %v2666_v18 }
 0x290   : > { %5467 = vst.msk [vmem:[%s8927_s19 + $0x30] sm:$0xff] %vm5193_vm12, %v8964_v36  ;;  %v5200_v9 = vadd.f32 %v5199_v22, %v5198_v40  ;;  %v8975_v4 = vmul.f32 %v6591_v11, %v8901_v21  ;;  %v5205_v18 = vsel %vm5193_vm12, %v8964_v36, 0.0  ;;  %v9034_v11 = vpop.permute.xlu1 %5084 }
 0x291   : > { %v5201_v6 = vsel %vm5193_vm12, %v8969_v57, 0.0  ;;  %5465 = vst.msk [vmem:[%s8927_s19 + $0x20] sm:$0xff] %vm5193_vm12, %v8969_v57  ;;  %v8985_v12 = vmul.f32 %v6592_v45, %v8891_v39  ;;  %9708 = vst [vmem:[#allocation25_spill] sm:$0xff] %v9034_v11 }
 0x292   : > { %v5202_v56 = vadd.f32 %v5201_v6, %v5200_v9  ;;  %5468 = vst.msk [vmem:[%s8927_s19 + $0x38] sm:$0xff] %vm5193_vm12, %v8975_v4  ;;  %v9709_v6 = vld [vmem:[#allocation31_spill] sm:$0xff] }
 0x293   : > { %v5203_v60 = vsel %vm5193_vm12, %v8985_v12, 0.0  ;;  %5466 = vst.msk [vmem:[%s8927_s19 + $0x28] sm:$0xff] %vm5193_vm12, %v8985_v12  ;;  %v6557_v19 = vpop.f32.mrb[8].mxu0 }
 0x294   : > { %v5204_v42 = vadd.f32 %v5203_v60, %v5202_v56  ;;  %v6593_v16 = vadd.f32 %v6557_v19, %v8893_v7  ;;  %v4794_v49 = vpop.f32.mrb[9].mxu0  ;;  %v5207_v7 = vsel %vm5193_vm12, %v8975_v4, 0.0 }
 0x295   : > { %v6594_v34 = vadd.f32 %v4794_v49, %v8895_v10  ;;  %v6558_v30 = vpop.f32.mrb[10].mxu0 }
 0x296   : > { %v5206_v23 = vadd.f32 %v5205_v18, %v5204_v42  ;;  %v9000_v48 = vmul.f32 %v6593_v16, %v9705_v25  ;;  %v6595_v41 = vadd.f32 %v6558_v30, %v8897_v55  ;;  %v4797_v24 = vpop.f32.mrb[11].mxu0  ;;  %v9710_v42 = vld [vmem:[#allocation29_spill] sm:$0xff] }
 0x297   : > { %v9008_v20 = vmul.f32 %v6594_v34, %v9707_v62  ;;  %v6596_v10 = vadd.f32 %v4797_v24, %v8899_v26 }
 0x298   : > { %5471 = vst.msk [vmem:[%s8927_s19 + $0x50] sm:$0xff] %vm5193_vm12, %v9000_v48  ;;  %v5208_v43 = vadd.f32 %v5207_v7, %v5206_v23  ;;  %v9015_v8 = vmul.f32 %v6595_v41, %v8915_v5  ;;  %v5213_v54 = vsel %vm5193_vm12, %v9000_v48, 0.0 }
 0x299   : > { %v5209_v55 = vsel %vm5193_vm12, %v9008_v20, 0.0  ;;  %5469 = vst.msk [vmem:[%s8927_s19 + $0x40] sm:$0xff] %vm5193_vm12, %v9008_v20  ;;  %v9023_v52 = vmul.f32 %v6596_v10, %v8909_v63 }
 0x29a   : > { %v5210_v59 = vadd.f32 %v5209_v55, %v5208_v43  ;;  %5472 = vst.msk [vmem:[%s8927_s19 + $0x58] sm:$0xff] %vm5193_vm12, %v9015_v8 }
 0x29b   : > { %v5211_v26 = vsel %vm5193_vm12, %v9023_v52, 0.0  ;;  %5470 = vst.msk [vmem:[%s8927_s19 + $0x48] sm:$0xff] %vm5193_vm12, %v9023_v52  ;;  %v6561_v3 = vpop.f32.mrb[12].mxu0 }
 0x29c   : > { %v5212_v47 = vadd.f32 %v5211_v26, %v5210_v59  ;;  %v6597_v33 = vadd.f32 %v6561_v3, %v8903_v28  ;;  %v4810_v40 = vpop.f32.mrb[13].mxu0  ;;  %v5215_v28 = vsel %vm5193_vm12, %v9015_v8, 0.0  ;;  %v9713_v3 = vld [vmem:[#allocation33_spill] sm:$0xff] }
 0x29d   : > { %v6598_v22 = vadd.f32 %v4810_v40, %v8905_v61  ;;  %v6562_v45 = vpop.f32.mrb[14].mxu0 }
 0x29e   : > { %v5214_v9 = vadd.f32 %v5213_v54, %v5212_v47  ;;  %v9040_v56 = vmul.f32 %v6597_v33, %v9709_v6  ;;  %v6599_v60 = vadd.f32 %v6562_v45, %v8907_v29  ;;  %v4813_v19 = vpop.f32.mrb[15].mxu0 }
 0x29f   : > { %v9046_v16 = vmul.f32 %v6598_v22, %v9710_v42  ;;  %v6600_v49 = vadd.f32 %v4813_v19, %v8911_v14  ;;  %v9066_v14 = vpop.permute.xlu1 %5094  ;;  %v9714_v22 = vld [vmem:[#allocation32_spill] sm:$0xff] }
 0x2a0   : > { %5475 = vst.msk [vmem:[%s8927_s19 + $0x70] sm:$0xff] %vm5193_vm12, %v9040_v56  ;;  %v5216_v61 = vadd.f32 %v5215_v28, %v5214_v9  ;;  %v9053_v18 = vmul.f32 %v6599_v60, %v8952_v44  ;;  %9712 = vst [vmem:[#allocation14_spill] sm:$0xff] %v9066_v14  ;;  %v5221_v43 = vsel %vm5193_vm12, %v9040_v56, 0.0 }
 0x2a1   : > { %v5217_v34 = vsel %vm5193_vm12, %v9046_v16, 0.0  ;;  %5473 = vst.msk [vmem:[%s8927_s19 + $0x60] sm:$0xff] %vm5193_vm12, %v9046_v16  ;;  %v9061_v29 = vmul.f32 %v6600_v49, %v8929_v13 }
 0x2a2   : > { %9711 = vst [vmem:[#allocation36_spill] sm:$0xff] %v9053_v18  ;;  %v5218_v30 = vadd.f32 %v5217_v34, %v5216_v61  ;;  %5476 = vst.msk [vmem:[%s8927_s19 + $0x78] sm:$0xff] %vm5193_vm12, %v9053_v18 }
 0x2a3   : > { %v5219_v23 = vsel %vm5193_vm12, %v9061_v29, 0.0  ;;  %5474 = vst.msk [vmem:[%s8927_s19 + $0x68] sm:$0xff] %vm5193_vm12, %v9061_v29  ;;  %v6565_v41 = vpop.f32.mrb[16].mxu0  ;;  %v9093_v28 = vpop.permute.xlu1 %5104 }
 0x2a4   : > { %v5220_v24 = vadd.f32 %v5219_v23, %v5218_v30  ;;  %v6601_v7 = vadd.f32 %v6565_v41, %v8913_v50  ;;  %v4826_v10 = vpop.f32.mrb[17].mxu0  ;;  %v5223_v50 = vsel %vm5193_vm12, %v9053_v18, 0.0  ;;  %9715 = vst [vmem:[#allocation37_spill] sm:$0xff] %v9093_v28 }
 0x2a5   : > { %v6602_v55 = vadd.f32 %v4826_v10, %v8917_v32  ;;  %v6566_v59 = vpop.f32.mrb[18].mxu0 }
 0x2a6   : > { %v5222_v26 = vadd.f32 %v5221_v43, %v5220_v24  ;;  %v9078_v47 = vmul.f32 %v6601_v7, %v9713_v3  ;;  %v6603_v33 = vadd.f32 %v6566_v59, %v8919_v53  ;;  %v4829_v40 = vpop.f32.mrb[19].mxu0 }
 0x2a7   : > { %v6417_v54 = vpop.f32.mrb[20].mxu1  ;;  %v9084_v45 = vmul.f32 %v6602_v55, %v9714_v22  ;;  %v6604_v32 = vadd.f32 %v4829_v40, %v8922_v35 }
 0x2a8   : > { %v3017_v9 = vpop.f32.mrb[21].mxu1  ;;  %5479 = vst.msk [vmem:[%s8927_s19 + $0x90] sm:$0xff] %vm5193_vm12, %v9078_v47  ;;  %v5224_v60 = vadd.f32 %v5223_v50, %v5222_v26  ;;  %v9091_v19 = vmul.f32 %v6603_v33, %v9003_v37  ;;  %v5229_v10 = vsel %vm5193_vm12, %v9078_v47, 0.0  ;;  %v9716_v26 = vld [vmem:[#allocation35_spill] sm:$0xff] }
 0x2a9   : > { %v6418_v53 = vpop.f32.mrb[22].mxu1  ;;  %v5225_v49 = vsel %vm5193_vm12, %v9084_v45, 0.0  ;;  %5477 = vst.msk [vmem:[%s8927_s19 + $0x80] sm:$0xff] %vm5193_vm12, %v9084_v45  ;;  %v9101_v61 = vmul.f32 %v6604_v32, %v8977_v51 }
 0x2aa   : > { %v3020_v35 = vpop.f32.mrb[23].mxu1  ;;  %v5226_v34 = vadd.f32 %v5225_v49, %v5224_v60  ;;  %5480 = vst.msk [vmem:[%s8927_s19 + $0x98] sm:$0xff] %vm5193_vm12, %v9091_v19  ;;  %v9116_v60 = vpop.permute.xlu1 %5114  ;;  %v9718_v49 = vld [vmem:[#allocation34_spill] sm:$0xff] }
 0x2ab   : > { %v5227_v30 = vsel %vm5193_vm12, %v9101_v61, 0.0  ;;  %5478 = vst.msk [vmem:[%s8927_s19 + $0x88] sm:$0xff] %vm5193_vm12, %v9101_v61  ;;  %v6569_v23 = vpop.f32.mrb[20].mxu0  ;;  %9717 = vst [vmem:[#allocation8_spill] sm:$0xff] %v9116_v60 }
 0x2ac   : > { %v5228_v41 = vadd.f32 %v5227_v30, %v5226_v34  ;;  %v6605_v24 = vadd.f32 %v6569_v23, %v6417_v54  ;;  %v4842_v7 = vpop.f32.mrb[21].mxu0  ;;  %v5231_v54 = vsel %vm5193_vm12, %v9091_v19, 0.0 }
 0x2ad   : > { %v6606_v43 = vadd.f32 %v4842_v7, %v3017_v9  ;;  %v6570_v55 = vpop.f32.mrb[22].mxu0 }
 0x2ae   : > { %v5230_v59 = vadd.f32 %v5229_v10, %v5228_v41  ;;  %v9114_v33 = vmul.f32 %v6605_v24, %v9716_v26  ;;  %v6607_v40 = vadd.f32 %v6570_v55, %v6418_v53  ;;  %v4845_v50 = vpop.f32.mrb[23].mxu0  ;;  %v9720_v26 = vld [vmem:[#allocation39_spill] sm:$0xff] }
 0x2af   : > { %v6421_v32 = vpop.f32.mrb[24].mxu1  ;;  %v9121_v34 = vmul.f32 %v6606_v43, %v9718_v49  ;;  %v6608_v9 = vadd.f32 %v4845_v50, %v3020_v35 }
 0x2b0   : > { %v3033_v30 = vpop.f32.mrb[25].mxu1  ;;  %5483 = vst.msk [vmem:[%s8927_s19 + $0xb0] sm:$0xff] %vm5193_vm12, %v9114_v33  ;;  %v5232_v23 = vadd.f32 %v5231_v54, %v5230_v59  ;;  %v9127_v53 = vmul.f32 %v6607_v40, %v9066_v14  ;;  %v9145_v54 = vpop.permute.xlu1 %5124 }
 0x2b1   : > { %v6422_v41 = vpop.f32.mrb[26].mxu1  ;;  %v5233_v24 = vsel %vm5193_vm12, %v9121_v34, 0.0  ;;  %5481 = vst.msk [vmem:[%s8927_s19 + $0xa0] sm:$0xff] %vm5193_vm12, %v9121_v34  ;;  %v9135_v7 = vmul.f32 %v6608_v9, %v9034_v11  ;;  %9719 = vst [vmem:[#allocation12_spill] sm:$0xff] %v9145_v54  ;;  %v5237_v9 = vsel %vm5193_vm12, %v9114_v33, 0.0 }
 0x2b2   : > { %v3036_v10 = vpop.f32.mrb[27].mxu1  ;;  %v5234_v35 = vadd.f32 %v5233_v24, %v5232_v23  ;;  %5484 = vst.msk [vmem:[%s8927_s19 + $0xb8] sm:$0xff] %vm5193_vm12, %v9127_v53 }
 0x2b3   : > { %v5235_v43 = vsel %vm5193_vm12, %v9135_v7, 0.0  ;;  %5482 = vst.msk [vmem:[%s8927_s19 + $0xa8] sm:$0xff] %vm5193_vm12, %v9135_v7  ;;  %v6573_v55 = vpop.f32.mrb[24].mxu0 }
 0x2b4   : > { %v5236_v59 = vadd.f32 %v5235_v43, %v5234_v35  ;;  %v6609_v40 = vadd.f32 %v6573_v55, %v6421_v32  ;;  %v4858_v50 = vpop.f32.mrb[25].mxu0  ;;  %v5239_v32 = vsel %vm5193_vm12, %v9127_v53, 0.0  ;;  %v9721_v35 = vld [vmem:[#allocation38_spill] sm:$0xff] }
 0x2b5   : > { %v6610_v23 = vadd.f32 %v4858_v50, %v3033_v30  ;;  %v6574_v24 = vpop.f32.mrb[26].mxu0 }
 0x2b6   : > { %v5238_v14 = vadd.f32 %v5237_v9, %v5236_v59  ;;  %v9150_v11 = vmul.f32 %v6609_v40, %v9720_v26  ;;  %v6611_v49 = vadd.f32 %v6574_v24, %v6422_v41  ;;  %v4861_v37 = vpop.f32.mrb[27].mxu0  ;;  %v9723_v26 = vld [vmem:[#allocation41_spill] sm:$0xff] }
 0x2b7   : > { %v6425_v3 = vpop.f32.mrb[28].mxu1  ;;  %v9155_v43 = vmul.f32 %v6610_v23, %v9721_v35  ;;  %v6612_v55 = vadd.f32 %v4861_v37, %v3036_v10  ;;  %v9174_v10 = vpop.permute.xlu1 %5134 }
 0x2b8   : > { %v3049_v51 = vpop.f32.mrb[29].mxu1  ;;  %5487 = vst.msk [vmem:[%s8927_s19 + $0xd0] sm:$0xff] %vm5193_vm12, %v9150_v11  ;;  %v5240_v30 = vadd.f32 %v5239_v32, %v5238_v14  ;;  %v9161_v59 = vmul.f32 %v6611_v49, %v9116_v60  ;;  %9722 = vst [vmem:[#allocation3_spill] sm:$0xff] %v9174_v10 }
 0x2b9   : > { %v6426_v41 = vpop.f32.mrb[30].mxu1  ;;  %v5241_v40 = vsel %vm5193_vm12, %v9155_v43, 0.0  ;;  %5485 = vst.msk [vmem:[%s8927_s19 + $0xc0] sm:$0xff] %vm5193_vm12, %v9155_v43  ;;  %v9169_v50 = vmul.f32 %v6612_v55, %v9093_v28  ;;  %v5245_v55 = vsel %vm5193_vm12, %v9150_v11, 0.0 }
 0x2ba   : > { %v3052_v9 = vpop.f32.mrb[31].mxu1  ;;  %v5242_v37 = vadd.f32 %v5241_v40, %v5240_v30  ;;  %5488 = vst.msk [vmem:[%s8927_s19 + $0xd8] sm:$0xff] %vm5193_vm12, %v9161_v59  ;;  %v5247_v6 = vsel %vm5193_vm12, %v9161_v59, 0.0 }
 0x2bb   : > { %v5243_v14 = vsel %vm5193_vm12, %v9169_v50, 0.0  ;;  %5486 = vst.msk [vmem:[%s8927_s19 + $0xc8] sm:$0xff] %vm5193_vm12, %v9169_v50  ;;  %v6577_v49 = vpop.f32.mrb[28].mxu0 }
 0x2bc   : > { %v5244_v23 = vadd.f32 %v5243_v14, %v5242_v37  ;;  %v6613_v24 = vadd.f32 %v6577_v49, %v6425_v3  ;;  %v4874_v32 = vpop.f32.mrb[29].mxu0  ;;  %v9724_v37 = vld [vmem:[#allocation40_spill] sm:$0xff] }
 0x2bd   : > { %v6614_v30 = vadd.f32 %v4874_v32, %v3049_v51  ;;  %v6578_v40 = vpop.f32.mrb[30].mxu0 }
 0x2be   : > { %v5246_v60 = vadd.f32 %v5245_v55, %v5244_v23  ;;  %v9184_v28 = vmul.f32 %v6613_v24, %v9723_v26  ;;  %v6615_v35 = vadd.f32 %v6578_v40, %v6426_v41  ;;  %v4877_v22 = vpop.f32.mrb[31].mxu0  ;;  %v9197_v24 = vpop.permute.xlu1 %5144  ;;  %v9725_v26 = vld [vmem:[#allocation43_spill] sm:$0xff] }
 0x2bf   : > { %v6429_v44 = vpop.f32.mrb[32].mxu1  ;;  %v9189_v3 = vmul.f32 %v6614_v30, %v9724_v37  ;;  %v6616_v14 = vadd.f32 %v4877_v22, %v3052_v9 }
 0x2c0   : > { %v3065_v49 = vpop.f32.mrb[33].mxu1  ;;  %5491 = vst.msk [vmem:[%s8927_s19 + $0xf0] sm:$0xff] %vm5193_vm12, %v9184_v28  ;;  %v5248_v51 = vadd.f32 %v5247_v6, %v5246_v60  ;;  %v9195_v23 = vmul.f32 %v6615_v35, %v9174_v10 }
 0x2c1   : > { %v6430_v41 = vpop.f32.mrb[34].mxu1  ;;  %v5249_v32 = vsel %vm5193_vm12, %v9189_v3, 0.0  ;;  %5489 = vst.msk [vmem:[%s8927_s19 + $0xe0] sm:$0xff] %vm5193_vm12, %v9189_v3  ;;  %v9205_v55 = vmul.f32 %v6616_v14, %v9145_v54  ;;  %v5253_v14 = vsel %vm5193_vm12, %v9184_v28, 0.0 }
 0x2c2   : > { %v3068_v22 = vpop.f32.mrb[35].mxu1  ;;  %v5250_v9 = vadd.f32 %v5249_v32, %v5248_v51  ;;  %5492 = vst.msk [vmem:[%s8927_s19 + $0xf8] sm:$0xff] %vm5193_vm12, %v9195_v23  ;;  %v5155_v18 = vpop.permute.xlu1 %5154 }
 0x2c3   : > { %v5251_v6 = vsel %vm5193_vm12, %v9205_v55, 0.0  ;;  %5490 = vst.msk [vmem:[%s8927_s19 + $0xe8] sm:$0xff] %vm5193_vm12, %v9205_v55  ;;  %v6581_v60 = vpop.f32.mrb[32].mxu0 }
 0x2c4   : > { %v5252_v35 = vadd.f32 %v5251_v6, %v5250_v9  ;;  %v6617_v30 = vadd.f32 %v6581_v60, %v6429_v44  ;;  %v4890_v40 = vpop.f32.mrb[33].mxu0  ;;  %v5255_v9 = vsel %vm5193_vm12, %v9195_v23, 0.0  ;;  %v9726_v44 = vld [vmem:[#allocation42_spill] sm:$0xff] }
 0x2c5   : > { %v6618_v10 = vadd.f32 %v4890_v40, %v3065_v49  ;;  %v6582_v51 = vpop.f32.mrb[34].mxu0 }
 0x2c6   : > { %v5254_v32 = vadd.f32 %v5253_v14, %v5252_v35  ;;  %v9218_v54 = vmul.f32 %v6617_v30, %v9725_v26  ;;  %v6619_v37 = vadd.f32 %v6582_v51, %v6430_v41  ;;  %v4893_v13 = vpop.f32.mrb[35].mxu0 }
 0x2c7   : > { %v9223_v6 = vmul.f32 %v6618_v10, %v9726_v44  ;;  %v6620_v60 = vadd.f32 %v4893_v13, %v3068_v22 }
 0x2c8   : > { %5495 = vst.msk [vmem:[%s8927_s19 + $0x110] sm:$0xff] %vm5193_vm12, %v9218_v54  ;;  %v5256_v49 = vadd.f32 %v5255_v9, %v5254_v32  ;;  %v5192_v35 = vmul.f32 %v6619_v37, %v5155_v18  ;;  %v5261_v37 = vsel %vm5193_vm12, %v9218_v54, 0.0 }
 0x2c9   : > { %v5257_v30 = vsel %vm5193_vm12, %v9223_v6, 0.0  ;;  %5493 = vst.msk [vmem:[%s8927_s19 + $0x100] sm:$0xff] %vm5193_vm12, %v9223_v6  ;;  %v9234_v41 = vmul.f32 %v6620_v60, %v9197_v24 }
 0x2ca   : > { %v5258_v40 = vadd.f32 %v5257_v30, %v5256_v49  ;;  %5496 = vst.msk [vmem:[%s8927_s19 + $0x118] sm:$0x3f] %vm5263_vm13, %v5192_v35  ;;  %v5264_v14 = vsel %vm5263_vm13, %v5192_v35, 0.0 }
 0x2cb   : > { %v5259_v13 = vsel %vm5193_vm12, %v9234_v41, 0.0  ;;  %5494 = vst.msk [vmem:[%s8927_s19 + $0x108] sm:$0xff] %vm5193_vm12, %v9234_v41 }
 0x2cc   : > { %v5260_v10 = vadd.f32 %v5259_v13, %v5258_v40 }
 0x2ce   : > { %v5262_v22 = vadd.f32 %v5261_v37, %v5260_v10 }
 0x2d0   : > { %v5265_v51 = vadd.f32 %v5264_v14, %v5262_v22 }
 0x2d2   : > { %v5266_v32 = vrot.slane %v5265_v51, 4 }
 0x2d4   : > { %v5267_v9 = vadd.f32 %v5266_v32, %v5265_v51 }
 0x2d6   : > { %v5268_v60 = vrot.slane %v5267_v9, 2 }
 0x2d8   : > { %v5269_v49 = vadd.f32 %v5268_v60, %v5267_v9 }
 0x2da   : > { %v5270_v30 = vrot.slane %v5269_v49, 1 }
 0x2dc   : > { %v5271_v26 = vadd.f32 %v5270_v30, %v5269_v49 }
 0x2de   : > { %5346 = vst.msk [vmem:[%s319_s21] sm:$0x1] %vm5345_vm14, %v5271_v26  ;;  %v9251_v40 = vmul.f32 0.00390625, %v5271_v26 }
 0x2e0   : > { %v5286_v13 = vsub.f32 %v9061_v29, %v9251_v40  ;;  %v5289_v10 = vsub.f32 %v9084_v45, %v9251_v40  ;;  %v5308_v26 = vsub.f32 %v5192_v35, %v9251_v40  ;;  %v5273_v32 = vsub.f32 %v8935_v0, %v9251_v40 }
 0x2e1   : > { %v5274_v9 = vsub.f32 %v8947_v38, %v9251_v40  ;;  %v5275_v60 = vsub.f32 %v8932_v46, %v9251_v40  ;;  %v5276_v49 = vsub.f32 %v8941_v17, %v9251_v40  ;;  %v5277_v35 = vsub.f32 %v8969_v57, %v9251_v40 }
 0x2e2   : > { %v5344_v14 = vmul.f32 %v5308_v26, %v5155_v18  ;;  %v5309_v30 = vmul.f32 %v5273_v32, %v9700_v2  ;;  %v5278_v0 = vsub.f32 %v8985_v12, %v9251_v40  ;;  %v5279_v18 = vsub.f32 %v8964_v36, %v9251_v40 }
 0x2e3   : > { %v5310_v22 = vmul.f32 %v5274_v9, %v8887_v1  ;;  %v5311_v51 = vmul.f32 %v5275_v60, %v9699_v27  ;;  %v5312_v38 = vmul.f32 %v5276_v49, %v8889_v15  ;;  %v5313_v17 = vmul.f32 %v5277_v35, %v9703_v31 }
 0x2e4   : > { %v5347_v37 = vmul.f32 %v5309_v30, %v5309_v30  ;;  %v5280_v1 = vsub.f32 %v8975_v4, %v9251_v40  ;;  %v5314_v57 = vmul.f32 %v5278_v0, %v8891_v39  ;;  %v5281_v15 = vsub.f32 %v9008_v20, %v9251_v40 }
 0x2e5   : > { %v5348_v46 = vmul.f32 %v5310_v22, %v5310_v22  ;;  %v5349_v2 = vmul.f32 %v5311_v51, %v5311_v51  ;;  %v5350_v26 = vmul.f32 %v5312_v38, %v5312_v38  ;;  %v5315_v22 = vmul.f32 %v5279_v18, %v9702_v58 }
 0x2e6   : > { %v5383_v27 = vsel %vm5193_vm12, %v5347_v37, 0.0  ;;  %v5351_v36 = vmul.f32 %v5313_v17, %v5313_v17  ;;  %v5282_v4 = vsub.f32 %v9023_v52, %v9251_v40  ;;  %v5316_v39 = vmul.f32 %v5280_v1, %v8901_v21 }
 0x2e7   : > { %v5384_v12 = vsel %vm5193_vm12, %v5348_v46, 0.0  ;;  %v5386_v31 = vsel %vm5193_vm12, %v5349_v2, 0.0  ;;  %v5352_v9 = vmul.f32 %v5314_v57, %v5314_v57  ;;  %v5388_v37 = vsel %vm5193_vm12, %v5350_v26, 0.0 }
 0x2e8   : > { %v5385_v32 = vadd.f32 %v5384_v12, %v5383_v27  ;;  %v5283_v60 = vsub.f32 %v9000_v48, %v9251_v40  ;;  %v5317_v20 = vmul.f32 %v5281_v15, %v9707_v62  ;;  %v5353_v30 = vmul.f32 %v5315_v22, %v5315_v22  ;;  %v9727_v15 = vld [vmem:[#allocation36_spill] sm:$0xff] }
 0x2e9   : > { %v5382_v58 = vmul.f32 %v5344_v14, %v5344_v14  ;;  %v5390_v35 = vsel %vm5193_vm12, %v5351_v36, 0.0  ;;  %v5284_v38 = vsub.f32 %v9015_v8, %v9251_v40  ;;  %v5318_v52 = vmul.f32 %v5282_v4, %v8909_v63  ;;  %v9728_v36 = vld [vmem:[#allocation10_spill] sm:$0xff] }
 0x2ea   : > { %v5387_v51 = vadd.f32 %v5386_v31, %v5385_v32  ;;  %v5354_v21 = vmul.f32 %v5316_v39, %v5316_v39  ;;  %v5392_v46 = vsel %vm5193_vm12, %v5352_v9, 0.0  ;;  %v5285_v18 = vsub.f32 %v9046_v16, %v9251_v40  ;;  %v9729_v39 = vld [vmem:[#allocation31_spill] sm:$0xff] }
 0x2eb   : > { %v5319_v17 = vmul.f32 %v5283_v60, %v9705_v25  ;;  %v5355_v62 = vmul.f32 %v5317_v20, %v5317_v20  ;;  %v5394_v14 = vsel %vm5193_vm12, %v5353_v30, 0.0  ;;  %v9339_v2 = vsel %vm5263_vm13, %v5382_v58, 0.0  ;;  %v9730_v60 = vld [vmem:[#allocation9_spill] sm:$0xff] }
 0x2ec   : > { %v5389_v49 = vadd.f32 %v5388_v37, %v5387_v51  ;;  %v5320_v8 = vmul.f32 %v5284_v38, %v8915_v5  ;;  %v5356_v57 = vmul.f32 %v5318_v52, %v5318_v52  ;;  %v5396_v63 = vsel %vm5193_vm12, %v5354_v21, 0.0  ;;  %v9732_v52 = vld [vmem:[#allocation11_spill] sm:$0xff] }
 0x2ed   : > { %v5287_v27 = vsub.f32 %v9040_v56, %v9251_v40  ;;  %v5321_v16 = vmul.f32 %v5285_v18, %v9710_v42  ;;  %v5357_v12 = vmul.f32 %v5319_v17, %v5319_v17  ;;  %v5398_v25 = vsel %vm5193_vm12, %v5355_v62, 0.0  ;;  %v9734_v62 = vld [vmem:[#allocation33_spill] sm:$0xff] }
 0x2ee   : > { %v5391_v0 = vadd.f32 %v5390_v35, %v5389_v49  ;;  %v5288_v22 = vsub.f32 %v9727_v15, %v9251_v40  ;;  %v5322_v5 = vmul.f32 %v5286_v13, %v9728_v36  ;;  %v5358_v31 = vmul.f32 %v5320_v8, %v5320_v8  ;;  %v9731_v35 = vld [vmem:[#allocation32_spill] sm:$0xff]  ;;  %v9740_v36 = vld [vmem:[#allocation25_spill] sm:$0xff] }
 0x2ef   : > { %v5400_v51 = vsel %vm5193_vm12, %v5356_v57, 0.0  ;;  %v5323_v56 = vmul.f32 %v5287_v27, %v9729_v39  ;;  %v5359_v9 = vmul.f32 %v5321_v16, %v5321_v16  ;;  %v5402_v42 = vsel %vm5193_vm12, %v5357_v12, 0.0  ;;  %v9736_v57 = vld [vmem:[#allocation13_spill] sm:$0xff]  ;;  %v9738_v12 = vld [vmem:[#allocation34_spill] sm:$0xff]  ;;  %v9742_v39 = vld [vmem:[#allocation35_spill] sm:$0xff] }
 0x2f0   : > { %v5393_v48 = vadd.f32 %v5392_v46, %v5391_v0  ;;  %v5324_v49 = vmul.f32 %v5288_v22, %v9730_v60  ;;  %v5360_v20 = vmul.f32 %v5322_v5, %v5322_v5  ;;  %v5404_v30 = vsel %vm5193_vm12, %v5358_v31, 0.0  ;;  %v9744_v60 = vld [vmem:[#allocation14_spill] sm:$0xff] }
 0x2f1   : > { %v5325_v29 = vmul.f32 %v5289_v10, %v9731_v35  ;;  %v5361_v13 = vmul.f32 %v5323_v56, %v5323_v56  ;;  %v5406_v0 = vsel %vm5193_vm12, %v5359_v9, 0.0  ;;  %v9733_v21 = vsub.f32 %v9101_v61, %v9251_v40  ;;  %v9746_v35 = vld [vmem:[#allocation38_spill] sm:$0xff] }
 0x2f2   : > { %v5395_v1 = vadd.f32 %v5394_v14, %v5393_v48  ;;  %v5362_v18 = vmul.f32 %v5324_v49, %v5324_v49  ;;  %v5408_v48 = vsel %vm5193_vm12, %v5360_v20, 0.0  ;;  %v9735_v14 = vsub.f32 %v9078_v47, %v9251_v40 }
 0x2f3   : > { %v5326_v46 = vmul.f32 %v9733_v21, %v9732_v52  ;;  %v5363_v45 = vmul.f32 %v5325_v29, %v5325_v29  ;;  %v5410_v10 = vsel %vm5193_vm12, %v5361_v13, 0.0  ;;  %v9741_v5 = vsub.f32 %v9135_v7, %v9251_v40  ;;  %v9748_v52 = vld [vmem:[#allocation37_spill] sm:$0xff] }
 0x2f4   : > { %v5397_v26 = vadd.f32 %v5396_v63, %v5395_v1  ;;  %v5327_v1 = vmul.f32 %v9735_v14, %v9734_v62  ;;  %v9737_v63 = vsub.f32 %v9091_v19, %v9251_v40  ;;  %v5412_v27 = vsel %vm5193_vm12, %v5362_v18, 0.0 }
 0x2f5   : > { %v5364_v61 = vmul.f32 %v5326_v46, %v5326_v46  ;;  %v5414_v15 = vsel %vm5193_vm12, %v5363_v45, 0.0  ;;  %v5330_v31 = vmul.f32 %v9741_v5, %v9740_v36  ;;  %v9743_v56 = vsub.f32 %v9114_v33, %v9251_v40  ;;  %v9758_v5 = vld [vmem:[#allocation41_spill] sm:$0xff] }
 0x2f6   : > { %v5399_v32 = vadd.f32 %v5398_v25, %v5397_v26  ;;  %v5328_v26 = vmul.f32 %v9737_v63, %v9736_v57  ;;  %v9739_v25 = vsub.f32 %v9121_v34, %v9251_v40  ;;  %v5365_v47 = vmul.f32 %v5327_v1, %v5327_v1 }
 0x2f7   : > { %v5331_v9 = vmul.f32 %v9743_v56, %v9742_v39  ;;  %v9745_v49 = vsub.f32 %v9127_v53, %v9251_v40  ;;  %v5368_v7 = vmul.f32 %v5330_v31, %v5330_v31  ;;  %v9747_v29 = vsub.f32 %v9155_v43, %v9251_v40  ;;  %v9760_v39 = vld [vmem:[#allocation3_spill] sm:$0xff] }
 0x2f8   : > { %v5401_v4 = vadd.f32 %v5400_v51, %v5399_v32  ;;  %v5329_v32 = vmul.f32 %v9739_v25, %v9738_v12  ;;  %v5366_v19 = vmul.f32 %v5328_v26, %v5328_v26  ;;  %v5416_v51 = vsel %vm5193_vm12, %v5364_v61, 0.0  ;;  %v9754_v61 = vld [vmem:[#allocation40_spill] sm:$0xff] }
 0x2f9   : > { %v5332_v20 = vmul.f32 %v9745_v49, %v9744_v60  ;;  %v5333_v13 = vmul.f32 %v9747_v29, %v9746_v35  ;;  %v5369_v33 = vmul.f32 %v5331_v9, %v5331_v9  ;;  %v9749_v21 = vsub.f32 %v9169_v50, %v9251_v40  ;;  %v9764_v29 = vld [vmem:[#allocation43_spill] sm:$0xff] }
 0x2fa   : > { %v5403_v37 = vadd.f32 %v5402_v42, %v5401_v4  ;;  %v5367_v34 = vmul.f32 %v5329_v32, %v5329_v32  ;;  %v5418_v42 = vsel %vm5193_vm12, %v5365_v47, 0.0  ;;  %v5424_v18 = vsel %vm5193_vm12, %v5368_v7, 0.0  ;;  %v9756_v32 = vld [vmem:[#allocation12_spill] sm:$0xff] }
 0x2fb   : > { %v5334_v46 = vmul.f32 %v9749_v21, %v9748_v52  ;;  %v5370_v53 = vmul.f32 %v5332_v20, %v5332_v20  ;;  %v9751_v62 = vsub.f32 %v9150_v11, %v9251_v40  ;;  %v5371_v43 = vmul.f32 %v5333_v13, %v5333_v13 }
 0x2fc   : > { %v5405_v58 = vadd.f32 %v5404_v30, %v5403_v37  ;;  %v5420_v30 = vsel %vm5193_vm12, %v5366_v19, 0.0  ;;  %v5426_v1 = vsel %vm5193_vm12, %v5369_v33, 0.0  ;;  %v9757_v47 = vsub.f32 %v9205_v55, %v9251_v40 }
 0x2fd   : > { %v5372_v50 = vmul.f32 %v5334_v46, %v5334_v46  ;;  %v5428_v63 = vsel %vm5193_vm12, %v5370_v53, 0.0  ;;  %v5430_v12 = vsel %vm5193_vm12, %v5371_v43, 0.0  ;;  %v9759_v31 = vsub.f32 %v9184_v28, %v9251_v40 }
 0x2fe   : > { %v5407_v38 = vadd.f32 %v5406_v0, %v5405_v58  ;;  %v5422_v0 = vsel %vm5193_vm12, %v5367_v34, 0.0  ;;  %v9761_v56 = vsub.f32 %v9195_v23, %v9251_v40  ;;  %v9763_v7 = vsub.f32 %v9234_v41, %v9251_v40 }
 0x2ff   : > { %v5339_v19 = vmul.f32 %v9759_v31, %v9758_v5  ;;  %v9765_v13 = vsub.f32 %v9218_v54, %v9251_v40 }
 0x300   : > { %v5409_v17 = vadd.f32 %v5408_v48, %v5407_v38  ;;  %v5340_v9 = vmul.f32 %v9761_v56, %v9760_v39 }
 0x301   : > { %v5377_v28 = vmul.f32 %v5339_v19, %v5339_v19  ;;  %v5343_v33 = vmul.f32 %v9765_v13, %v9764_v29 }
 0x302   : > { %v5411_v8 = vadd.f32 %v5410_v10, %v5409_v17  ;;  %v9750_v17 = vld [vmem:[#allocation39_spill] sm:$0xff]  ;;  %v9752_v10 = vld [vmem:[#allocation8_spill] sm:$0xff]  ;;  %v5378_v23 = vmul.f32 %v5340_v9, %v5340_v9 }
 0x303   : > { %v5335_v14 = vmul.f32 %v9751_v62, %v9750_v17  ;;  %v5381_v41 = vmul.f32 %v5343_v33, %v5343_v33 }
 0x304   : > { %v5413_v16 = vadd.f32 %v5412_v27, %v5411_v8  ;;  %v9753_v8 = vsub.f32 %v9161_v59, %v9251_v40  ;;  %v9755_v27 = vsub.f32 %v9189_v3, %v9251_v40  ;;  %v5444_v52 = vsel %vm5193_vm12, %v5378_v23, 0.0 }
 0x305   : > { %v5373_v11 = vmul.f32 %v5335_v14, %v5335_v14 }
 0x306   : > { %v5415_v22 = vadd.f32 %v5414_v15, %v5413_v16  ;;  %v5336_v57 = vmul.f32 %v9753_v8, %v9752_v10  ;;  %v5337_v16 = vmul.f32 %v9755_v27, %v9754_v61  ;;  %v5338_v15 = vmul.f32 %v9757_v47, %v9756_v32 }
 0x308   : > { %v5417_v4 = vadd.f32 %v5416_v51, %v5415_v22  ;;  %v5374_v59 = vmul.f32 %v5336_v57, %v5336_v57  ;;  %v5432_v22 = vsel %vm5193_vm12, %v5372_v50, 0.0  ;;  %v5375_v3 = vmul.f32 %v5337_v16, %v5337_v16 }
 0x309   : > { %v5434_v51 = vsel %vm5193_vm12, %v5373_v11, 0.0  ;;  %v5376_v55 = vmul.f32 %v5338_v15, %v5338_v15 }
 0x30a   : > { %v5419_v37 = vadd.f32 %v5418_v42, %v5417_v4  ;;  %v5436_v34 = vsel %vm5193_vm12, %v5374_v59, 0.0  ;;  %v5438_v49 = vsel %vm5193_vm12, %v5375_v3, 0.0 }
 0x30c   : > { %v5421_v58 = vadd.f32 %v5420_v30, %v5419_v37  ;;  %v9762_v37 = vsub.f32 %v9223_v6, %v9251_v40  ;;  %v5342_v30 = vmul.f32 %v9763_v7, %v9197_v24 }
 0x30e   : > { %v5423_v38 = vadd.f32 %v5422_v0, %v5421_v58  ;;  %v5341_v60 = vmul.f32 %v9762_v37, %v9726_v44  ;;  %v5440_v58 = vsel %vm5193_vm12, %v5376_v55, 0.0  ;;  %v5442_v44 = vsel %vm5193_vm12, %v5377_v28, 0.0 }
 0x310   : > { %v5425_v48 = vadd.f32 %v5424_v18, %v5423_v38  ;;  %v5379_v6 = vmul.f32 %v5341_v60, %v5341_v60  ;;  %v5380_v38 = vmul.f32 %v5342_v30, %v5342_v30 }
 0x312   : > { %v5427_v45 = vadd.f32 %v5426_v1, %v5425_v48  ;;  %v5446_v24 = vsel %vm5193_vm12, %v5379_v6, 0.0  ;;  %v5448_v53 = vsel %vm5193_vm12, %v5380_v38, 0.0  ;;  %v5450_v48 = vsel %vm5193_vm12, %v5381_v41, 0.0 }
 0x314   : > { %v5429_v26 = vadd.f32 %v5428_v63, %v5427_v45 }
 0x316   : > { %v5431_v25 = vadd.f32 %v5430_v12, %v5429_v26 }
 0x318   : > { %v5433_v36 = vadd.f32 %v5432_v22, %v5431_v25 }
 0x31a   : > { %v5435_v4 = vadd.f32 %v5434_v51, %v5433_v36 }
 0x31c   : > { %v5437_v42 = vadd.f32 %v5436_v34, %v5435_v4 }
 0x31e   : > { %v5439_v20 = vadd.f32 %v5438_v49, %v5437_v42 }
 0x320   : > { %v5441_v35 = vadd.f32 %v5440_v58, %v5439_v20 }
 0x322   : > { %v5443_v0 = vadd.f32 %v5442_v44, %v5441_v35 }
 0x324   : > { %v5445_v21 = vadd.f32 %v5444_v52, %v5443_v0 }
 0x326   : > { %v5447_v46 = vadd.f32 %v5446_v24, %v5445_v21 }
 0x328   : > { %v5449_v18 = vadd.f32 %v5448_v53, %v5447_v46 }
 0x32a   : > { %v5451_v54 = vadd.f32 %v5450_v48, %v5449_v18 }
 0x32c   : > { %v5453_v40 = vadd.f32 %v9339_v2, %v5451_v54 }
 0x32e   : > { %v5454_v17 = vrot.slane %v5453_v40, 4 }
 0x330   : > { %v5455_v62 = vadd.f32 %v5454_v17, %v5453_v40 }
 0x332   : > { %v5456_v14 = vrot.slane %v5455_v62, 2 }
 0x334   : > { %v5457_v43 = vadd.f32 %v5456_v14, %v5455_v62 }
 0x336   : > { %v5458_v1 = vrot.slane %v5457_v43, 1 }
 0x338   : > { %v5459_v45 = vadd.f32 %v5458_v1, %v5457_v43 }
 0x33a   : > { %5460 = vst.msk [vmem:[%s322_s24] sm:$0x1] %vm5345_vm14, %v5459_v45 }
 0x33b PF: > { %s19_s27 = sadd.s32 1, %s6999_s27  }
 0x33c   : > { %p16_p4 = scmp.ge.s32.totalorder %s19_s27, 4  }
 0x33e   :  { %18 = sbr.rel (!%p16_p4) target bundleno = 1 (0x1), region = 106 }

// kernel: up_forward.2
= control target key start
LH: loop header
LB: loop body
LE: loop exit
PB: predicated region body
PF: predicated region fallthrough
CT: control target
= control target key end

     0   :  { %s10927_s24 = smov 0   ;;  %s13213_s0 = inlined_call_operand.vmem [shape: bf16[2,324,8], index: 0, kind: input, shape index: {}]   ;;  %s13214_s1 = inlined_call_operand.vmem [shape: bf16[2,324,8], index: 1, kind: input, shape index: {}]   ;;  %s13215_s2 = inlined_call_operand.vmem [shape: bf16[9,8,8], index: 2, kind: input, shape index: {}]   ;;  %s13216_s3 = inlined_call_operand.vmem [shape: bf16[9,8,8], index: 3, kind: input, shape index: {}]   ;;  %s13217_s4 = inlined_call_operand.vmem [shape: f32[286,1], index: 4, kind: input, shape index: {}]   ;;  %s13218_s5 = inlined_call_operand.vmem [shape: bf16[2,337,8], index: 5, kind: output, shape index: {0}]   ;;  %s13219_s6 = inlined_call_operand.vmem [shape: f32[2,1,8], index: 6, kind: output, shape index: {1}]   ;;  %s13220_s7 = inlined_call_operand.vmem [shape: f32[2,1,8], index: 7, kind: output, shape index: {2}]  }
   0x1 LB: > { %s8363_s25 = sadd.s32 4294967295, %s10884_s24   ;;  %p8367_p0 = scmp.ge.s32.totalorder %s10884_s24, 1  ;;  %s10884_s24 = sphi %s10927_s24, %s18_s24  }
   0x2   : > { %p252_p1 = scmp.lt.s32.totalorder %s10884_s24, 3 }
   0x4   : > { %p253_p2 = pnand %p8367_p0, %p252_p1 }
   0x6   : > { %256 = sbr.rel (%p253_p2) target bundleno = 1003 (0x3eb), region = 40 }
   0xd   : > { %v390_v0 = vld [vmem:[%s13216_s3] sm:$0xf]  ;;  %vm536_vm0 = vcmask 1043456   ;;  %p295_p3 = scmp.lt.s32.totalorder %s8363_s25, 1  ;;  %v8635_v2 = vld [vmem:[%s13216_s3 + $0x10] sm:$0xf] }
   0xe   : > { %10581 = vmatprep.subr.msk.bf16.mxu1 %vm536_vm0, %v390_v0  ;;  %v538_v1 = vsel %vm536_vm0, %v390_v0, 0  ;;  %v389_v3 = vld [vmem:[%s13215_s2] sm:$0xf]  ;;  %10590 = vmatprep.subr.msk.bf16.mxu0 %vm536_vm0, %v8635_v2  ;;  %v4257_v4 = vsel %vm536_vm0, %v8635_v2, 0  ;;  %v8673_v5 = vld [vmem:[%s13215_s2 + $0x14] sm:$0xf] }
   0xf   : > { %9286 = vmatpush3.bf16.msra.mxu1 %v538_v1  ;;  %s13337_s25 = smov (!%p295_p3, %s8363_s25), 1  ;;  %9628 = vmatpush3.bf16.msra.mxu0 %v4257_v4  ;;  %vm481_vm1 = vcmask 64512   ;;  %vm3504_vm2 = vsmask.f32 6400  ;;  %v862_v10 = vsel %vm536_vm0, %v389_v3, 0  ;;  %v4572_v40 = vsel %vm536_vm0, %v8673_v5, 0 }
  0x10   : > { %10582 = vmatprep.subr.msk.bf16.mxu1 %vm536_vm0, %v389_v3  ;;  %s10599_s11 = smul.u32 164, %s13337_s25  ;;  %10591 = vmatprep.subr.msk.bf16.mxu0 %vm536_vm0, %v8673_v5  ;;  %v10977_v15 = vld [vmem:[%s13215_s2 + $0x4] sm:$0xf]  ;;  %v10995_v42 = vld [vmem:[%s13216_s3 + $0x14] sm:$0xf]  ;;  %vm4479_vm3 = vcmask 1045504   ;;  %s312_s29 = scalar_lea.vmem %s13219_s6, %s13337_s25 }
  0x11   : > { %vm1048_vm4 = vsmask.f32 7424  ;;  %vm1853_vm5 = vcmask 1046528   ;;  %vm5984_vm6 = vsmask.f32 5376  ;;  %vm6877_vm7 = vcmask 1044480   ;;  %s315_s9 = scalar_lea.vmem %s13220_s7, %s13337_s25 }
  0x12   : > { %s10961_s14 = scalar_lea.vmem %s13214_s1, %s10599_s11  ;;  %s11049_s21 = scalar_lea.vmem %s13213_s0, %s10599_s11  ;;  %vm8016_vm8 = vcmask 60416   ;;  %vm8244_vm9 = vcmask 59392   ;;  %vm7818_vm10 = vcmask 62464   ;;  %vm7900_vm11 = vcmask 57344  }
  0x13   : > { %v353_v6 = vld [vmem:[%s10961_s14] sm:$0xf]  ;;  %v354_v7 = vld [vmem:[%s10961_s14 + $0x4] sm:$0xf]  ;;  %v10614_v9 = vld [vmem:[%s10961_s14 + $0x8] sm:$0xff]  }
  0x14   : > { %v10965_v8 = vcombine.low %v353_v6, %v354_v7  ;;  %v3372_v11 = vld [vmem:[%s10961_s14 + $0x8] sm:$0xe]  ;;  %v3373_v12 = vld [vmem:[%s10961_s14 + $0xc] sm:$0xf]  ;;  %v10616_v14 = vld [vmem:[%s10961_s14 + $0x10] sm:$0xff]  }
  0x15   : > { %v8636_v13 = vcombine.low %v3372_v11, %v3373_v12  ;;  %v10617_v16 = vld [vmem:[%s10961_s14 + $0x10] sm:$0xff]   ;;  %v4045_v19 = vshrl.u32 %v10616_v14, 16  ;;  %v4048_v20 = vshll.u32 %v10616_v14, 16  ;;  %v10618_v21 = vld [vmem:[%s10961_s14 + $0x18] sm:$0xff]   ;;  %v10620_v29 = vld [vmem:[%s10961_s14 + $0x20] sm:$0xff]  }
  0x16   : > { %9287 = vmatprep.mubr.msk.bf16.mxu1 %vm481_vm1, %v10965_v8  ;;  %v10619_v25 = vld [vmem:[%s10961_s14 + $0x18] sm:$0xff]   ;;  %v4054_v27 = vshrl.u32 %v10618_v21, 16  ;;  %v4057_v28 = vshll.u32 %v10618_v21, 16  ;;  %v4063_v34 = vshrl.u32 %v10620_v29, 16  ;;  %v10621_v35 = vld [vmem:[%s10961_s14 + $0x20] sm:$0xff]   ;;  %v4066_v36 = vshll.u32 %v10620_v29, 16 }
  0x17   : > { %9288 = vmatmul.mubr.msk.bf16.vlgmr.msra.gmra.mrb[0].mxu1 %vm481_vm1, %v10614_v9  ;;  %v4037_v17 = vshrl.u32 %v8636_v13, 16  ;;  %v4040_v18 = vshll.u32 %v8636_v13, 16  ;;  %v4047_v24 = vrot.slane %v4045_v19, 1  ;;  %v4050_v26 = vrot.slane %v4048_v20, 2  ;;  %v10622_v37 = vld [vmem:[%s10961_s14 + $0x28] sm:$0xff]   ;;  %v10624_v46 = vld [vmem:[%s10961_s14 + $0x30] sm:$0xff]  }
  0x18   : > { %9324 = vmatpush3.bf16.msra.mxu1 %v862_v10  ;;  %9291 = vmatprep.mubr.msk.bf16.mxu1 %vm481_vm1, %v10617_v16  ;;  %v4056_v32 = vrot.slane %v4054_v27, 1  ;;  %v4059_v33 = vrot.slane %v4057_v28, 2  ;;  %v4065_v41 = vrot.slane %v4063_v34, 1  ;;  %v4068_v43 = vrot.slane %v4066_v36, 2  ;;  %v10623_v48 = vld [vmem:[%s10961_s14 + $0x28] sm:$0xff]   ;;  %v10626_v53 = vld [vmem:[%s10961_s14 + $0x38] sm:$0xff]  }
  0x19   : > { %10583 = vmatprep.subr.msk.bf16.mxu1 %vm536_vm0, %v10977_v15  ;;  %v4039_v22 = vrot.slane %v4037_v17, 1  ;;  %v4042_v23 = vrot.slane %v4040_v18, 2  ;;  %v4051_v31 = vor.u32 %v4050_v26, %v4047_v24  ;;  %v4072_v44 = vshrl.u32 %v10622_v37, 16  ;;  %v10625_v55 = vld [vmem:[%s10961_s14 + $0x30] sm:$0xff]   ;;  %v10628_v62 = vld [vmem:[%s10961_s14 + $0x40] sm:$0xff]   ;;  %v10630_v1 = vld [vmem:[%s10961_s14 + $0x48] sm:$0xff]  }
  0x1a   : > { %v4060_v39 = vor.u32 %v4059_v33, %v4056_v32  ;;  %v4075_v45 = vshll.u32 %v10622_v37, 16  ;;  %v4069_v49 = vor.u32 %v4068_v43, %v4065_v41  ;;  %v4081_v52 = vshrl.u32 %v10624_v46, 16  ;;  %v10627_v10 = vld [vmem:[%s10961_s14 + $0x38] sm:$0xff]   ;;  %v10632_v13 = vld [vmem:[%s10961_s14 + $0x50] sm:$0xff]   ;;  %v10629_v17 = vld [vmem:[%s10961_s14 + $0x40] sm:$0xff]  }
  0x1b   : > { %v4043_v30 = vor.u32 %v4042_v23, %v4039_v22  ;;  %v4074_v50 = vrot.slane %v4072_v44, 1  ;;  %v4084_v54 = vshll.u32 %v10624_v46, 16  ;;  %v4090_v59 = vshrl.u32 %v10626_v53, 16  ;;  %v10634_v21 = vld [vmem:[%s10961_s14 + $0x58] sm:$0xff]   ;;  %v10636_v24 = vld [vmem:[%s10961_s14 + $0x60] sm:$0xff]   ;;  %v10631_v28 = vld [vmem:[%s10961_s14 + $0x48] sm:$0xff]  }
  0x1c   : > { %v4061_v47 = vsel %vm3504_vm2, %v4051_v31, %v4060_v39  ;;  %v4077_v51 = vrot.slane %v4075_v45, 2  ;;  %v4070_v56 = vsel %vm3504_vm2, %v4060_v39, %v4069_v49  ;;  %v4083_v58 = vrot.slane %v4081_v52, 1  ;;  %v10633_v34 = vld [vmem:[%s10961_s14 + $0x50] sm:$0xff]   ;;  %v10638_v37 = vld [vmem:[%s10961_s14 + $0x68] sm:$0xff]   ;;  %v10635_v46 = vld [vmem:[%s10961_s14 + $0x58] sm:$0xff]  }
  0x1d   : > { %v4052_v38 = vsel %vm3504_vm2, %v4043_v30, %v4051_v31  ;;  %v4086_v60 = vrot.slane %v4084_v54, 2  ;;  %v4093_v61 = vshll.u32 %v10626_v53, 16  ;;  %v4092_v0 = vrot.slane %v4090_v59, 1  ;;  %v10640_v44 = vld [vmem:[%s10961_s14 + $0x70] sm:$0xff]   ;;  %v10642_v53 = vld [vmem:[%s10961_s14 + $0x78] sm:$0xff]  }
  0x1e   : > { %9629 = vmatprep.mubr.msk.bf16.mxu0 %vm481_vm1, %v4052_v38  ;;  %v4078_v57 = vor.u32 %v4077_v51, %v4074_v50  ;;  %v4099_v4 = vshrl.u32 %v10628_v62, 16  ;;  %v4102_v5 = vshll.u32 %v10628_v62, 16  ;;  %v4108_v11 = vshrl.u32 %v10630_v1, 16  ;;  %v10637_v50 = vld [vmem:[%s10961_s14 + $0x60] sm:$0xff]  }
  0x1f   : > { %9292 = vmatmul.mubr.msk.bf16.gmra.mrb[4].mxu1 %vm481_vm1, %v10619_v25  ;;  %9630 = vmatmul.mubr.msk.bf16.vlgmr.msra.gmra.mrb[0].mxu0 %vm481_vm1, %v4061_v47  ;;  %v4087_v2 = vor.u32 %v4086_v60, %v4083_v58  ;;  %v4095_v3 = vrot.slane %v4093_v61, 2  ;;  %v4111_v12 = vshll.u32 %v10630_v1, 16  ;;  %v4117_v18 = vshrl.u32 %v10632_v13, 16  ;;  %v10639_v61 = vld [vmem:[%s10961_s14 + $0x68] sm:$0xff]  }
  0x20   : > { %9295 = vmatprep.mubr.msk.bf16.mxu1 %vm481_vm1, %v10621_v35  ;;  %9666 = vmatpush3.bf16.msra.mxu0 %v4572_v40  ;;  %v4079_v63 = vsel %vm3504_vm2, %v4069_v49, %v4078_v57  ;;  %v4101_v7 = vrot.slane %v4099_v4, 1  ;;  %v4104_v9 = vrot.slane %v4102_v5, 2  ;;  %v4120_v19 = vshll.u32 %v10632_v13, 16  ;;  %v10649_v13 = vld [vmem:[%s10961_s14 + $0x90] sm:$0xff]  }
  0x21   : > { %10592 = vmatprep.subr.msk.bf16.mxu0 %vm536_vm0, %v10995_v42  ;;  %9633 = vmatprep.mubr.msk.bf16.mxu0 %vm481_vm1, %v4070_v56  ;;  %v4088_v6 = vsel %vm3504_vm2, %v4078_v57, %v4087_v2  ;;  %v4096_v14 = vor.u32 %v4095_v3, %v4092_v0  ;;  %v4110_v20 = vrot.slane %v4108_v11, 1  ;;  %v4113_v23 = vrot.slane %v4111_v12, 2  ;;  %v10644_v57 = vld [vmem:[%s10961_s14 + $0x80] sm:$0xff]   ;;  %v10641_v0 = vld [vmem:[%s10961_s14 + $0x70] sm:$0xff]  }
  0x22   : > { %v4105_v16 = vor.u32 %v4104_v9, %v4101_v7  ;;  %v4119_v26 = vrot.slane %v4117_v18, 1  ;;  %v4122_v27 = vrot.slane %v4120_v19, 2  ;;  %v4126_v29 = vshrl.u32 %v10634_v21, 16 }
  0x23   : > { %v4097_v22 = vsel %vm3504_vm2, %v4087_v2, %v4096_v14  ;;  %v4114_v30 = vor.u32 %v4113_v23, %v4110_v20  ;;  %v4129_v31 = vshll.u32 %v10634_v21, 16  ;;  %v4135_v32 = vshrl.u32 %v10636_v24, 16  ;;  %v387_v23 = vld [vmem:[%s10961_s14 + $0x88] sm:$0xf] }
  0x24   : > { %v4106_v25 = vsel %vm3504_vm2, %v4096_v14, %v4105_v16  ;;  %v4123_v33 = vor.u32 %v4122_v27, %v4119_v26  ;;  %v4138_v35 = vshll.u32 %v10636_v24, 16  ;;  %v4128_v36 = vrot.slane %v4126_v29, 1  ;;  %v10643_v14 = vld [vmem:[%s10961_s14 + $0x78] sm:$0xff]   ;;  %v388_v24 = vld [vmem:[%s10961_s14 + $0x8c] sm:$0x7] }
  0x25   : > { %v4115_v38 = vsel %vm3504_vm2, %v4105_v16, %v4114_v30  ;;  %v4131_v39 = vrot.slane %v4129_v31, 2  ;;  %v4137_v40 = vrot.slane %v4135_v32, 1  ;;  %v4144_v47 = vshrl.u32 %v10638_v37, 16  ;;  %v10645_v16 = vld [vmem:[%s10961_s14 + $0x80] sm:$0xff]  }
  0x26   : > { %v4124_v41 = vsel %vm3504_vm2, %v4114_v30, %v4123_v33  ;;  %v4140_v43 = vrot.slane %v4138_v35, 2  ;;  %v4153_v51 = vshrl.u32 %v10640_v44, 16  ;;  %v4156_v52 = vshll.u32 %v10640_v44, 16  ;;  %v318_v32 = vld [vmem:[%s11049_s21 + $0x4] sm:$0xf] }
  0x27   : > { %9296 = vmatmul.mubr.msk.bf16.gmra.mrb[8].mxu1 %vm481_vm1, %v10623_v48  ;;  %9634 = vmatmul.mubr.msk.bf16.gmra.mrb[4].mxu0 %vm481_vm1, %v4079_v63  ;;  %v4132_v45 = vor.u32 %v4131_v39, %v4128_v36  ;;  %v4147_v48 = vshll.u32 %v10638_v37, 16  ;;  %v4162_v62 = vshrl.u32 %v10642_v53, 16  ;;  %v4165_v63 = vshll.u32 %v10642_v53, 16  ;;  %v4472_v39 = vld [vmem:[%s11049_s21 + $0x8] sm:$0xc]  ;;  %v10657_v53 = vld [vmem:[%s11049_s21 + $0x18] sm:$0xff]  }
  0x28   : > { %9299 = vmatprep.mubr.msk.bf16.mxu1 %vm481_vm1, %v10625_v55  ;;  %9637 = vmatprep.mubr.msk.bf16.mxu0 %vm481_vm1, %v4088_v6  ;;  %v4141_v49 = vor.u32 %v4140_v43, %v4137_v40  ;;  %v4146_v55 = vrot.slane %v4144_v47, 1  ;;  %v4155_v59 = vrot.slane %v4153_v51, 1  ;;  %v4158_v60 = vrot.slane %v4156_v52, 2  ;;  %v10654_v43 = vld [vmem:[%s11049_s21 + $0x10] sm:$0xff]  }
  0x29   : > { %v4133_v54 = vsel %vm3504_vm2, %v4123_v33, %v4132_v45  ;;  %v4149_v56 = vrot.slane %v4147_v48, 2  ;;  %v4171_v2 = vshrl.u32 %v10644_v57, 16  ;;  %v4174_v3 = vshll.u32 %v10644_v57, 16  ;;  %v11076_v33 = vld [vmem:[%s10961_s14 + $0x98] ss:$0 sps:$4 sm:$0x11]  }
  0x2a   : > { %v4142_v58 = vsel %vm3504_vm2, %v4132_v45, %v4141_v49  ;;  %v4159_v4 = vor.u32 %v4158_v60, %v4155_v59  ;;  %v4164_v5 = vrot.slane %v4162_v62, 1  ;;  %v4167_v6 = vrot.slane %v4165_v63, 2  ;;  %v11120_v59 = vld [vmem:[%s13216_s3 + $0x4] sm:$0xf] }
  0x2b   : > { %v4150_v1 = vor.u32 %v4149_v56, %v4146_v55  ;;  %v4173_v9 = vrot.slane %v4171_v2, 1  ;;  %v4176_v12 = vrot.slane %v4174_v3, 2  ;;  %v4189_v21 = vshrl.u32 %v10649_v13, 16  ;;  %v10659_v55 = vld [vmem:[%s11049_s21 + $0x20] sm:$0xff]   ;;  %v11112_v56 = vld [vmem:[%s11049_s21 + $0x18] sm:$0xff]  }
  0x2c   : > { %v8388_v35 = vcombine.low %v387_v23, %v388_v24  ;;  %v4481_v48 = vrot.slane %v10654_v43, 2  ;;  %v1230_v51 = vsel %vm536_vm0, %v10977_v15, 0  ;;  %v4483_v15 = vrot.slane %v10657_v53, 2  ;;  %v10673_v23 = vld [vmem:[%s11049_s21 + $0x58] sm:$0xff]  }
  0x2d   : > { %v4151_v7 = vsel %vm3504_vm2, %v4141_v49, %v4150_v1  ;;  %v4160_v11 = vsel %vm3504_vm2, %v4150_v1, %v4159_v4  ;;  %v4177_v20 = vor.u32 %v4176_v12, %v4173_v9  ;;  %v4191_v30 = vrot.slane %v4189_v21, 1  ;;  %v11137_v1 = vld [vmem:[%s13215_s2 + $0x18] sm:$0xf]  ;;  %v10667_v9 = vld [vmem:[%s11049_s21 + $0x40] sm:$0xff]  }
  0x2e   : > { %v4485_v57 = vrot.slane %v10659_v55, 2  ;;  %v4484_v60 = vsel %vm4479_vm3, %v4481_v48, %v4483_v15  ;;  %v4884_v62 = vsel %vm536_vm0, %v10995_v42, 0  ;;  %v11142_v42 = vld [vmem:[%s11049_s21 + $0x28] sm:$0xff]   ;;  %v4493_v12 = vrot.slane %v10667_v9, 2 }
  0x2f   : > { %9300 = vmatmul.mubr.msk.bf16.gmra.mrb[12].mxu1 %vm481_vm1, %v10627_v10  ;;  %9638 = vmatmul.mubr.msk.bf16.gmra.mrb[8].mxu0 %vm481_vm1, %v4097_v22  ;;  %v10646_v10 = vld [vmem:[%s10961_s14 + $0x88] sm:$0xff]   ;;  %v4192_v22 = vshll.u32 %v10649_v13, 16  ;;  %v11163_v13 = vld [vmem:[%s11049_s21 + $0x40] sm:$0xff]   ;;  %vm8060_vm12 = vsmask.f32 256 }
  0x30   : > { %9303 = vmatprep.mubr.msk.bf16.mxu1 %vm481_vm1, %v10629_v17  ;;  %9641 = vmatprep.mubr.msk.bf16.mxu0 %vm481_vm1, %v4106_v25  ;;  %v4168_v17 = vor.u32 %v4167_v6, %v4164_v5  ;;  %v4180_v18 = vshrl.u32 %v10646_v10, 16  ;;  %v4183_v19 = vshll.u32 %v10646_v10, 16  ;;  %v4486_v63 = vsel %vm4479_vm3, %v4483_v15, %v4485_v57  ;;  %v10665_v6 = vld [vmem:[%s11049_s21 + $0x38] sm:$0xff]   ;;  %v11230_v15 = vld [vmem:[%s11049_s21 + $0x80] sm:$0xff]   ;;  %v4473_v9 = vld [vmem:[%s10961_s14 + $0x8] sm:$0xc] }
  0x31   : > { %v4194_v31 = vrot.slane %v4192_v22, 2  ;;  %v4491_v10 = vrot.slane %v10665_v6, 2  ;;  %v11179_v22 = vld [vmem:[%s11049_s21 + $0x50] sm:$0xff]   ;;  %vm8061_vm13 = vmand %vm7900_vm11, %vm8060_vm12 }
  0x32   : > { %v4169_v25 = vsel %vm3504_vm2, %v4159_v4, %v4168_v17  ;;  %v4182_v26 = vrot.slane %v4180_v18, 1  ;;  %v4185_v27 = vrot.slane %v4183_v19, 2  ;;  %v4178_v29 = vsel %vm3504_vm2, %v4168_v17, %v4177_v20  ;;  %v11145_v4 = vld [vmem:[%s11049_s21 + $0x30] sm:$0xff]  }
  0x33   : > { %v4195_v36 = vor.u32 %v4194_v31, %v4191_v30  ;;  %v4494_v17 = vsel %vm4479_vm3, %v4491_v10, %v4493_v12  ;;  %v10671_v18 = vld [vmem:[%s11049_s21 + $0x50] sm:$0xff]   ;;  %v11195_v30 = vld [vmem:[%s11049_s21 + $0x60] sm:$0xff]  }
  0x34   : > { %v4497_v21 = vrot.slane %v10671_v18, 2  ;;  %v10770_v18 = vld [vmem:[%s10961_s14 + $0xc] sm:$0xf] }
  0x37   : > { %9304 = vmatmul.mubr.msk.bf16.gmra.mrb[16].mxu1 %vm481_vm1, %v10631_v28  ;;  %9642 = vmatmul.mubr.msk.bf16.gmra.mrb[12].mxu0 %vm481_vm1, %v4115_v38  ;;  %v317_v28 = vld [vmem:[%s11049_s21] sm:$0xf]  ;;  %v3336_v38 = vld [vmem:[%s11049_s21 + $0xc] sm:$0xf] }
  0x38   : > { %9307 = vmatprep.mubr.msk.bf16.mxu1 %vm481_vm1, %v10633_v34  ;;  %9645 = vmatprep.mubr.msk.bf16.mxu0 %vm481_vm1, %v4124_v41  ;;  %v4186_v34 = vor.u32 %v4185_v27, %v4182_v26  ;;  %v11080_v37 = vcombine.low %v317_v28, %v318_v32  ;;  %v4198_v41 = vshll.u32 %v11076_v33, 16  ;;  %v8674_v45 = vcombine.low %v4472_v39, %v3336_v38  ;;  %v10675_v26 = vld [vmem:[%s11049_s21 + $0x60] sm:$0xff]   ;;  %v11192_v28 = vld [vmem:[%s11049_s21 + $0x58] sm:$0xff]   ;;  %v10677_v32 = vld [vmem:[%s11049_s21 + $0x68] sm:$0xff]  }
  0x39   : > { %v4499_v27 = vrot.slane %v10673_v23, 2  ;;  %v11208_v38 = vld [vmem:[%s11049_s21 + $0x68] sm:$0xff]  }
  0x3a   : > { %v4187_v40 = vsel %vm3504_vm2, %v4177_v20, %v4186_v34  ;;  %v4196_v44 = vsel %vm3504_vm2, %v4186_v34, %v4195_v36  ;;  %v4200_v47 = vrot.slane %v4198_v41, 2  ;;  %v4480_v49 = vrot.slane %v8674_v45, 2  ;;  %v11176_v20 = vld [vmem:[%s11049_s21 + $0x48] sm:$0xff]  }
  0x3b   : > { %v4500_v31 = vsel %vm4479_vm3, %v4497_v21, %v4499_v27  ;;  %v1051_v41 = vshll.u32 %v11080_v37, 16 }
  0x3c   : > { %v4201_v52 = vsel %vm3504_vm2, %v4195_v36, %v4200_v47  ;;  %v4503_v36 = vrot.slane %v10677_v32, 2  ;;  %v1631_v32 = vsel %vm536_vm0, %v11120_v59, 0 }
  0x3d   : > { %v1053_v53 = vrot.slane %v1051_v41, 1 }
  0x3f   : > { %9308 = vmatmul.mubr.msk.bf16.gmra.mrb[20].mxu1 %vm481_vm1, %v10635_v46  ;;  %9646 = vmatmul.mubr.msk.bf16.gmra.mrb[16].mxu0 %vm481_vm1, %v4133_v54  ;;  %v11093_v46 = vld [vmem:[%s11049_s21 + $0x8] sm:$0xff]   ;;  %v4482_v54 = vsel %vm4479_vm3, %v4480_v49, %v4481_v48  ;;  %v10683_v48 = vld [vmem:[%s11049_s21 + $0x80] sm:$0xff]   ;;  %v1049_v49 = vshrl.u32 %v11080_v37, 16 }
  0x40   : > { %9311 = vmatprep.mubr.msk.bf16.mxu1 %vm481_vm1, %v10637_v50  ;;  %9649 = vmatprep.mubr.msk.bf16.mxu0 %vm481_vm1, %v4142_v58  ;;  %v11097_v50 = vld [vmem:[%s11049_s21 + $0x10] sm:$0xff]   ;;  %v11115_v58 = vld [vmem:[%s11049_s21 + $0x20] sm:$0xff]   ;;  %v1055_v45 = vshll.u32 %v11093_v46, 16  ;;  %v4509_v55 = vrot.slane %v10683_v48, 2 }
  0x47   : > { %9312 = vmatmul.mubr.msk.bf16.gmra.mrb[24].mxu1 %vm481_vm1, %v10639_v61  ;;  %9650 = vmatmul.mubr.msk.bf16.gmra.mrb[20].mxu0 %vm481_vm1, %v4151_v7  ;;  %v10661_v61 = vld [vmem:[%s11049_s21 + $0x28] sm:$0xff]  }
  0x48   : > { %9315 = vmatprep.mubr.msk.bf16.mxu1 %vm481_vm1, %v10641_v0  ;;  %9653 = vmatprep.mubr.msk.bf16.mxu0 %vm481_vm1, %v4160_v11  ;;  %v10663_v0 = vld [vmem:[%s11049_s21 + $0x30] sm:$0xff]   ;;  %v4487_v2 = vrot.slane %v10661_v61, 2  ;;  %v11160_v11 = vld [vmem:[%s11049_s21 + $0x38] sm:$0xff]   ;;  %v11235_v61 = vld [vmem:[%s11049_s21 + $0x88] sm:$0xf] }
  0x49   : > { %v4489_v3 = vrot.slane %v10663_v0, 2  ;;  %v1097_v48 = vshll.u32 %v11160_v11, 16 }
  0x4a   : > { %v4488_v5 = vsel %vm4479_vm3, %v4485_v57, %v4487_v2  ;;  %v10685_v57 = vld [vmem:[%s11049_s21 + $0x88] sm:$0xff]  }
  0x4b   : > { %v4490_v7 = vsel %vm4479_vm3, %v4487_v2, %v4489_v3  ;;  %v352_v2 = vld [vmem:[%s11049_s21 + $0x8c] sm:$0x7] }
  0x4f   : > { %9316 = vmatmul.mubr.msk.bf16.gmra.mrb[28].mxu1 %vm481_vm1, %v10643_v14  ;;  %9654 = vmatmul.mubr.msk.bf16.gmra.mrb[24].mxu0 %vm481_vm1, %v4169_v25  ;;  %v4492_v14 = vsel %vm4479_vm3, %v4489_v3, %v4491_v10  ;;  %v4511_v3 = vrot.slane %v10685_v57, 2 }
  0x50   : > { %9319 = vmatprep.mubr.msk.bf16.mxu1 %vm481_vm1, %v10645_v16  ;;  %9657 = vmatprep.mubr.msk.bf16.mxu0 %vm481_vm1, %v4178_v29  ;;  %v10669_v16 = vld [vmem:[%s11049_s21 + $0x48] sm:$0xff]   ;;  %v4501_v29 = vrot.slane %v10675_v26, 2 }
  0x51   : > { %v4495_v19 = vrot.slane %v10669_v16, 2 }
  0x52   : > { %v4502_v34 = vsel %vm4479_vm3, %v4499_v27, %v4501_v29  ;;  %v4504_v43 = vsel %vm4479_vm3, %v4501_v29, %v4503_v36  ;;  %v10771_v27 = vld [vmem:[%s10961_s14 + $0x10] sm:$0xff]  }
  0x53   : > { %v4496_v24 = vsel %vm4479_vm3, %v4493_v12, %v4495_v19  ;;  %v4498_v25 = vsel %vm4479_vm3, %v4495_v19, %v4497_v21  ;;  %v10689_v12 = vld [vmem:[%s11049_s21 + $0x98] ss:$0 sps:$4 sm:$0x11]   ;;  %v8694_v19 = vcombine.low %v4473_v9, %v10770_v18 }
  0x54   : > { %v4515_v29 = vrot.slane %v10689_v12, 2 }
  0x57   : > { %9320 = vmatmul.mubr.msk.bf16.gmra.mrb[32].mxu1 %vm481_vm1, %v8388_v35  ;;  %9658 = vmatmul.mubr.msk.bf16.gmra.mrb[28].mxu0 %vm481_vm1, %v4187_v40  ;;  %v10679_v35 = vld [vmem:[%s11049_s21 + $0x70] sm:$0xff]  }
  0x58   : > { %9325 = vmatprep.mubr.msk.bf16.mxu1 %vm481_vm1, %v11080_v37  ;;  %9661 = vmatprep.mubr.msk.bf16.mxu0 %vm481_vm1, %v4196_v44  ;;  %v4505_v39 = vrot.slane %v10679_v35, 2  ;;  %v11211_v40 = vld [vmem:[%s11049_s21 + $0x70] sm:$0xff]   ;;  %v10681_v44 = vld [vmem:[%s11049_s21 + $0x78] sm:$0xff]   ;;  %v1062_v37 = vshll.u32 %v11097_v50, 16 }
  0x5a   : > { %v4506_v47 = vsel %vm4479_vm3, %v4503_v36, %v4505_v39  ;;  %v1064_v16 = vrot.slane %v1062_v37, 1  ;;  %v1080_v36 = vshrl.u32 %v11115_v58, 16 }
  0x5f   : > { %9326 = vmatmul.mubr.msk.bf16.vlgmr.msra.gmra.mrb[0].mxu1 %vm481_vm1, %v11093_v46  ;;  %9662 = vmatmul.mubr.msk.bf16.gmra.mrb[32].mxu0 %vm481_vm1, %v4201_v52  ;;  %v11227_v52 = vld [vmem:[%s11049_s21 + $0x78] sm:$0xff]  }
  0x60   : > { %9329 = vmatprep.mubr.msk.bf16.mxu1 %vm481_vm1, %v11097_v50  ;;  %9362 = vmatpush3.bf16.msra.mxu1 %v1230_v51  ;;  %v4507_v51 = vrot.slane %v10681_v44, 2  ;;  %v1090_v44 = vshll.u32 %v11145_v4, 16 }
  0x61   : > { %9667 = vmatprep.mubr.msk.bf16.mxu0 %vm481_vm1, %v4482_v54  ;;  %10584 = vmatprep.subr.msk.bf16.mxu1 %vm536_vm0, %v11120_v59  ;;  %v1057_v54 = vrot.slane %v1055_v45, 1  ;;  %v11274_v45 = vld [vmem:[%s13215_s2 + $0x8] sm:$0xf] }
  0x62   : > { %v4510_v0 = vsel %vm4479_vm3, %v4507_v51, %v4509_v55  ;;  %v1092_v37 = vrot.slane %v1090_v44, 1 }
  0x67   : > { %9330 = vmatmul.mubr.msk.bf16.gmra.mrb[4].mxu1 %vm481_vm1, %v11112_v56  ;;  %9668 = vmatmul.mubr.msk.bf16.vlgmr.msra.gmra.mrb[0].mxu0 %vm481_vm1, %v4484_v60  ;;  %v1059_v60 = vshrl.u32 %v11093_v46, 16  ;;  %v1054_v46 = vor.u32 %v1053_v53, %v1049_v49 }
  0x68   : > { %9333 = vmatprep.mubr.msk.bf16.mxu1 %vm481_vm1, %v11115_v58  ;;  %9704 = vmatpush3.bf16.msra.mxu0 %v4884_v62  ;;  %v10688_v62 = vld [vmem:[%s11049_s21 + $0x90] sm:$0xff]  }
  0x69   : > { %9671 = vmatprep.mubr.msk.bf16.mxu0 %vm481_vm1, %v4486_v63  ;;  %10593 = vmatprep.subr.msk.bf16.mxu0 %vm536_vm0, %v11137_v1  ;;  %v4508_v63 = vsel %vm4479_vm3, %v4505_v39, %v4507_v51  ;;  %v4513_v6 = vrot.slane %v10688_v62, 2  ;;  %v1058_v10 = vsel %vm1048_vm4, %v1054_v46, %v1057_v54  ;;  %v1061_v23 = vor.u32 %v1059_v60, %v1057_v54  ;;  %v10772_v51 = vld [vmem:[%s10961_s14 + $0x18] sm:$0xff]  }
  0x6a   : > { %v1083_v39 = vshll.u32 %v11142_v42, 16  ;;  %v4795_v53 = vrot.slane %v10772_v51, 2  ;;  %v5360_v54 = vsel %vm536_vm0, %v11137_v1, 0  ;;  %v1087_v62 = vshrl.u32 %v11142_v42, 16  ;;  %v11298_v1 = vld [vmem:[%s13216_s3 + $0x18] sm:$0xf] }
  0x6b   : > { %v4514_v21 = vsel %vm4479_vm3, %v4511_v3, %v4513_v6  ;;  %v1065_v35 = vsel %vm1048_vm4, %v1061_v23, %v1064_v16  ;;  %v1129_v51 = vshrl.u32 %v11192_v28, 16 }
  0x6f   : > { %9334 = vmatmul.mubr.msk.bf16.gmra.mrb[8].mxu1 %vm481_vm1, %v11142_v42  ;;  %9672 = vmatmul.mubr.msk.bf16.gmra.mrb[4].mxu0 %vm481_vm1, %v4488_v5  ;;  %v8424_v5 = vcombine.low %v11235_v61, %v352_v2  ;;  %v1099_v2 = vrot.slane %v1097_v48, 1  ;;  %v10779_v48 = vld [vmem:[%s10961_s14 + $0x50] sm:$0xff]  }
  0x70   : > { %9337 = vmatprep.mubr.msk.bf16.mxu1 %vm481_vm1, %v11145_v4  ;;  %9675 = vmatprep.mubr.msk.bf16.mxu0 %vm481_vm1, %v4490_v7  ;;  %v1069_v7 = vshll.u32 %v11112_v56, 16 }
  0x77   : > { %9338 = vmatmul.mubr.msk.bf16.gmra.mrb[12].mxu1 %vm481_vm1, %v11160_v11  ;;  %9676 = vmatmul.mubr.msk.bf16.gmra.mrb[8].mxu0 %vm481_vm1, %v4492_v14  ;;  %v1066_v14 = vshrl.u32 %v11097_v50, 16  ;;  %v4793_v50 = vrot.slane %v10771_v27, 2  ;;  %v1118_v27 = vshll.u32 %v11179_v22, 16 }
  0x78   : > { %9341 = vmatprep.mubr.msk.bf16.mxu1 %vm481_vm1, %v11163_v13  ;;  %9679 = vmatprep.mubr.msk.bf16.mxu0 %vm481_vm1, %v4494_v17  ;;  %v4512_v17 = vsel %vm4479_vm3, %v4509_v55, %v4511_v3  ;;  %v10773_v55 = vld [vmem:[%s10961_s14 + $0x20] sm:$0xff]  }
  0x79   : > { %v1068_v26 = vor.u32 %v1066_v14, %v1064_v16  ;;  %v4797_v57 = vrot.slane %v10773_v55, 2  ;;  %v4796_v46 = vsel %vm4479_vm3, %v4793_v50, %v4795_v53  ;;  %v1101_v14 = vshrl.u32 %v11160_v11, 16 }
  0x7a   : > { %v1108_v16 = vshrl.u32 %v11163_v13, 16  ;;  %v1139_v55 = vshll.u32 %v11208_v38, 16 }
  0x7b   : > { %v4798_v3 = vsel %vm4479_vm3, %v4795_v53, %v4797_v57  ;;  %v1103_v11 = vor.u32 %v1101_v14, %v1099_v2 }
  0x7f   : > { %9342 = vmatmul.mubr.msk.bf16.gmra.mrb[16].mxu1 %vm481_vm1, %v11176_v20  ;;  %9680 = vmatmul.mubr.msk.bf16.gmra.mrb[12].mxu0 %vm481_vm1, %v4496_v24  ;;  %v1071_v24 = vrot.slane %v1069_v7, 1  ;;  %v10775_v7 = vld [vmem:[%s10961_s14 + $0x30] sm:$0xff]  }
  0x80   : > { %9345 = vmatprep.mubr.msk.bf16.mxu1 %vm481_vm1, %v11179_v22  ;;  %9683 = vmatprep.mubr.msk.bf16.mxu0 %vm481_vm1, %v4498_v25  ;;  %v1076_v25 = vshll.u32 %v11115_v58, 16  ;;  %v4801_v9 = vrot.slane %v10775_v7, 2  ;;  %v1153_v7 = vshll.u32 %v11227_v52, 16 }
  0x81   : > { %v1072_v41 = vsel %vm1048_vm4, %v1068_v26, %v1071_v24 }
  0x87   : > { %9346 = vmatmul.mubr.msk.bf16.gmra.mrb[20].mxu1 %vm481_vm1, %v11192_v28  ;;  %9684 = vmatmul.mubr.msk.bf16.gmra.mrb[16].mxu0 %vm481_vm1, %v4500_v31  ;;  %v4792_v31 = vrot.slane %v8694_v19, 2 }
  0x88   : > { %9349 = vmatprep.mubr.msk.bf16.mxu1 %vm481_vm1, %v11195_v30  ;;  %9687 = vmatprep.mubr.msk.bf16.mxu0 %vm481_vm1, %v4502_v34  ;;  %v1073_v34 = vshrl.u32 %v11112_v56, 16  ;;  %v4516_v56 = vsel %vm4479_vm3, %v4513_v6, %v4515_v29  ;;  %v10777_v29 = vld [vmem:[%s10961_s14 + $0x40] sm:$0xff]  }
  0x89   : > { %v4794_v58 = vsel %vm4479_vm3, %v4792_v31, %v4793_v50  ;;  %v4805_v31 = vrot.slane %v10777_v29, 2 }
  0x8a   : > { %v1075_v59 = vor.u32 %v1073_v34, %v1071_v24 }
  0x8f   : > { %9350 = vmatmul.mubr.msk.bf16.gmra.mrb[24].mxu1 %vm481_vm1, %v11208_v38  ;;  %9688 = vmatmul.mubr.msk.bf16.gmra.mrb[20].mxu0 %vm481_vm1, %v4504_v43  ;;  %v1078_v43 = vrot.slane %v1076_v25, 1  ;;  %v10776_v25 = vld [vmem:[%s10961_s14 + $0x38] sm:$0xff]  }
  0x90   : > { %9353 = vmatprep.mubr.msk.bf16.mxu1 %vm481_vm1, %v11211_v40  ;;  %9691 = vmatprep.mubr.msk.bf16.mxu0 %vm481_vm1, %v4506_v47  ;;  %v1085_v47 = vrot.slane %v1083_v39, 1  ;;  %v4803_v26 = vrot.slane %v10776_v25, 2  ;;  %v1164_v25 = vshrl.u32 %v11230_v15, 16 }
  0x91   : > { %v1082_v49 = vor.u32 %v1080_v36, %v1078_v43  ;;  %v1079_v60 = vsel %vm1048_vm4, %v1075_v59, %v1078_v43  ;;  %v1125_v36 = vshll.u32 %v11192_v28, 16  ;;  %v1132_v59 = vshll.u32 %v11195_v30, 16 }
  0x92   : > { %v1089_v42 = vor.u32 %v1087_v62, %v1085_v47  ;;  %v4804_v39 = vsel %vm4479_vm3, %v4801_v9, %v4803_v26  ;;  %v4806_v43 = vsel %vm4479_vm3, %v4803_v26, %v4805_v31  ;;  %v1141_v28 = vrot.slane %v1139_v55, 1 }
  0x94   : > { %v1093_v12 = vsel %vm1048_vm4, %v1089_v42, %v1092_v37 }
  0x97   : > { %9354 = vmatmul.mubr.msk.bf16.gmra.mrb[28].mxu1 %vm481_vm1, %v11227_v52  ;;  %9692 = vmatmul.mubr.msk.bf16.gmra.mrb[24].mxu0 %vm481_vm1, %v4508_v63  ;;  %v1086_v63 = vsel %vm1048_vm4, %v1082_v49, %v1085_v47  ;;  %v4809_v49 = vrot.slane %v10779_v48, 2 }
  0x98   : > { %9357 = vmatprep.mubr.msk.bf16.mxu1 %vm481_vm1, %v11230_v15  ;;  %9695 = vmatprep.mubr.msk.bf16.mxu0 %vm481_vm1, %v4510_v0  ;;  %v1094_v0 = vshrl.u32 %v11145_v4, 16  ;;  %v10774_v4 = vld [vmem:[%s10961_s14 + $0x28] sm:$0xff]  }
  0x99   : > { %v4799_v6 = vrot.slane %v10774_v4, 2 }
  0x9b   : > { %v4800_v19 = vsel %vm4479_vm3, %v4797_v57, %v4799_v6  ;;  %v4802_v23 = vsel %vm4479_vm3, %v4799_v6, %v4801_v9  ;;  %v1150_v6 = vshrl.u32 %v11211_v40, 16  ;;  %v1041_v9 = vld [vmem:[%s11049_s21 + $0x8c] sm:$0xf] }
  0x9f   : > { %9358 = vmatmul.mubr.msk.bf16.gmra.mrb[32].mxu1 %vm481_vm1, %v8424_v5  ;;  %9696 = vmatmul.mubr.msk.bf16.gmra.mrb[28].mxu0 %vm481_vm1, %v4512_v17  ;;  %v1096_v5 = vor.u32 %v1094_v0, %v1092_v37  ;;  %v1111_v17 = vshll.u32 %v11176_v20, 16 }
  0xa0   : > { %9363 = vmatprep.mubr.msk.bf16.mxu1 %vm481_vm1, %v1058_v10  ;;  %9699 = vmatprep.mubr.msk.bf16.mxu0 %vm481_vm1, %v4514_v21  ;;  %v1104_v10 = vshll.u32 %v11163_v13, 16 }
  0xa1   : > { %v1100_v18 = vsel %vm1048_vm4, %v1096_v5, %v1099_v2  ;;  %v1113_v13 = vrot.slane %v1111_v17, 1  ;;  %v1146_v2 = vshll.u32 %v11211_v40, 16  ;;  %v1143_v5 = vshrl.u32 %v11208_v38, 16  ;;  %v10782_v40 = vld [vmem:[%s10961_s14 + $0x68] sm:$0xff]  }
  0xa2   : > { %v1106_v21 = vrot.slane %v1104_v10, 1  ;;  %v11362_v38 = vcombine.low %v11235_v61, %v1041_v9 }
  0xa4   : > { %v1110_v24 = vor.u32 %v1108_v16, %v1106_v21  ;;  %v1107_v50 = vsel %vm1048_vm4, %v1103_v11, %v1106_v21  ;;  %v1145_v16 = vor.u32 %v1143_v5, %v1141_v28  ;;  %v1160_v21 = vshll.u32 %v11230_v15, 16  ;;  %v10783_v11 = vld [vmem:[%s10961_s14 + $0x70] sm:$0xff]   ;;  %v10784_v15 = vld [vmem:[%s10961_s14 + $0x78] sm:$0xff]  }
  0xa5   : > { %v1168_v26 = vshll.u32 %v11362_v38, 16 }
  0xa6   : > { %v1114_v34 = vsel %vm1048_vm4, %v1110_v24, %v1113_v13  ;;  %v4817_v24 = vrot.slane %v10783_v11, 2 }
  0xa7   : > { %9364 = vmatmul.mubr.msk.bf16.vlgmr.msra.gmra.mrb[0].mxu1 %vm481_vm1, %v1065_v35  ;;  %9700 = vmatmul.mubr.msk.bf16.gmra.mrb[32].mxu0 %vm481_vm1, %v4516_v56  ;;  %v1122_v35 = vshrl.u32 %v11179_v22, 16 }
  0xa8   : > { %9367 = vmatprep.mubr.msk.bf16.mxu1 %vm481_vm1, %v1072_v41  ;;  %9400 = vmatpush3.bf16.msra.mxu1 %v1631_v32  ;;  %v1115_v32 = vshrl.u32 %v11176_v20, 16  ;;  %v1120_v41 = vrot.slane %v1118_v27, 1  ;;  %v10778_v20 = vld [vmem:[%s10961_s14 + $0x48] sm:$0xff]  }
  0xa9   : > { %10585 = vmatprep.subr.msk.bf16.mxu1 %vm536_vm0, %v11274_v45  ;;  %9705 = vmatprep.mubr.msk.bf16.mxu0 %vm481_vm1, %v4794_v58  ;;  %v1127_v58 = vrot.slane %v1125_v36, 1  ;;  %v4807_v22 = vrot.slane %v10778_v20, 2 }
  0xaa   : > { %v1117_v44 = vor.u32 %v1115_v32, %v1113_v13  ;;  %v1124_v56 = vor.u32 %v1122_v35, %v1120_v41  ;;  %v1157_v13 = vshrl.u32 %v11227_v52, 16  ;;  %v1452_v52 = vshll.u32 %v10965_v8, 16 }
  0xab   : > { %v4808_v57 = vsel %vm4479_vm3, %v4805_v31, %v4807_v22  ;;  %v4810_v62 = vsel %vm4479_vm3, %v4807_v22, %v4809_v49  ;;  %v1131_v37 = vor.u32 %v1129_v51, %v1127_v58  ;;  %v4819_v35 = vrot.slane %v10784_v15, 2 }
  0xac   : > { %v1121_v47 = vsel %vm1048_vm4, %v1117_v44, %v1120_v41  ;;  %v1128_v53 = vsel %vm1048_vm4, %v1124_v56, %v1127_v58  ;;  %v1454_v44 = vrot.slane %v1452_v52, 1  ;;  %v11387_v58 = vld [vmem:[%s10961_s14 + $0x8] sm:$0xff]   ;;  %v11461_v52 = vld [vmem:[%s10961_s14 + $0x30] sm:$0xff]  }
  0xad   : > { %v1456_v20 = vshll.u32 %v11387_v58, 16  ;;  %v4820_v22 = vsel %vm4479_vm3, %v4817_v24, %v4819_v35 }
  0xaf   : > { %9368 = vmatmul.mubr.msk.bf16.gmra.mrb[4].mxu1 %vm481_vm1, %v1079_v60  ;;  %9706 = vmatmul.mubr.msk.bf16.vlgmr.msra.gmra.mrb[0].mxu0 %vm481_vm1, %v4796_v46  ;;  %v1134_v60 = vrot.slane %v1132_v59, 1  ;;  %v1172_v59 = vshrl.u32 %v11362_v38, 16  ;;  %v1458_v48 = vrot.slane %v1456_v20, 1 }
  0xb0   : > { %9371 = vmatprep.mubr.msk.bf16.mxu1 %vm481_vm1, %v1086_v63  ;;  %9742 = vmatpush3.bf16.msra.mxu0 %v5360_v54  ;;  %v1136_v54 = vshrl.u32 %v11195_v30, 16  ;;  %v10780_v30 = vld [vmem:[%s10961_s14 + $0x58] sm:$0xff]  }
  0xb1   : > { %9709 = vmatprep.mubr.msk.bf16.mxu0 %vm481_vm1, %v4798_v3  ;;  %10594 = vmatprep.subr.msk.bf16.mxu0 %vm536_vm0, %v11298_v1  ;;  %v4811_v0 = vrot.slane %v10780_v30, 2  ;;  %v1135_v46 = vsel %vm1048_vm4, %v1131_v37, %v1134_v60  ;;  %v10781_v3 = vld [vmem:[%s10961_s14 + $0x60] sm:$0xff]  }
  0xb2   : > { %v1138_v63 = vor.u32 %v1136_v54, %v1134_v60  ;;  %v4813_v42 = vrot.slane %v10781_v3, 2  ;;  %v11399_v54 = vld [vmem:[%s10961_s14 + $0x10] sm:$0xff]  }
  0xb3   : > { %v4812_v10 = vsel %vm4479_vm3, %v4809_v49, %v4811_v0  ;;  %v10787_v49 = vld [vmem:[%s10961_s14 + $0x88] sm:$0xff]   ;;  %v1463_v55 = vshll.u32 %v11399_v54, 16  ;;  %v1467_v30 = vshrl.u32 %v11399_v54, 16 }
  0xb4   : > { %v1142_v4 = vsel %vm1048_vm4, %v1138_v63, %v1141_v28  ;;  %v4814_v14 = vsel %vm4479_vm3, %v4811_v0, %v4813_v42  ;;  %v4823_v51 = vrot.slane %v10787_v49, 2  ;;  %v5099_v63 = vld [vmem:[%s11049_s21 + $0x10] sm:$0xc]  ;;  %v5100_v28 = vld [vmem:[%s11049_s21 + $0x14] sm:$0xf]  ;;  %v11409_v0 = vld [vmem:[%s10961_s14 + $0x18] sm:$0xff]  }
  0xb5   : > { %v1465_v3 = vrot.slane %v1463_v55, 1 }
  0xb7   : > { %9372 = vmatmul.mubr.msk.bf16.gmra.mrb[8].mxu1 %vm481_vm1, %v1093_v12  ;;  %9710 = vmatmul.mubr.msk.bf16.gmra.mrb[4].mxu0 %vm481_vm1, %v4800_v19  ;;  %v1148_v12 = vrot.slane %v1146_v2, 1  ;;  %v4815_v19 = vrot.slane %v10782_v40, 2  ;;  %v1470_v2 = vshll.u32 %v11409_v0, 16  ;;  %v1474_v40 = vshrl.u32 %v11409_v0, 16 }
  0xb8   : > { %9375 = vmatprep.mubr.msk.bf16.mxu1 %vm481_vm1, %v1100_v18  ;;  %9713 = vmatprep.mubr.msk.bf16.mxu0 %vm481_vm1, %v4802_v23  ;;  %v1155_v18 = vrot.slane %v1153_v7, 1  ;;  %v1469_v7 = vor.u32 %v1467_v30, %v1465_v3 }
  0xb9   : > { %v1152_v17 = vor.u32 %v1150_v6, %v1148_v12  ;;  %v1149_v23 = vsel %vm1048_vm4, %v1145_v16, %v1148_v12  ;;  %v4816_v27 = vsel %vm4479_vm3, %v4813_v42, %v4815_v19  ;;  %v4818_v29 = vsel %vm4479_vm3, %v4815_v19, %v4817_v24  ;;  %v11419_v6 = vld [vmem:[%s11049_s21 + $0x18] sm:$0xff]   ;;  %v11425_v12 = vld [vmem:[%s10961_s14 + $0x20] sm:$0xff]   ;;  %v11443_v24 = vld [vmem:[%s13216_s3 + $0x8] sm:$0xf] }
  0xba   : > { %v1159_v31 = vor.u32 %v1157_v13, %v1155_v18  ;;  %v1472_v9 = vrot.slane %v1470_v2, 1 }
  0xbb   : > { %v1156_v61 = vsel %vm1048_vm4, %v1152_v17, %v1155_v18  ;;  %v5269_v18 = vrot.slane %v11419_v6, 2 }
  0xbc   : > { %v1473_v19 = vsel %vm1048_vm4, %v1469_v7, %v1472_v9  ;;  %v11516_v7 = vld [vmem:[%s11049_s21 + $0x48] sm:$0xff]  }
  0xbf   : > { %9376 = vmatmul.mubr.msk.bf16.gmra.mrb[12].mxu1 %vm481_vm1, %v1107_v50  ;;  %9714 = vmatmul.mubr.msk.bf16.gmra.mrb[8].mxu0 %vm481_vm1, %v4804_v39  ;;  %v1162_v50 = vrot.slane %v1160_v21, 1  ;;  %v10785_v39 = vld [vmem:[%s10961_s14 + $0x80] sm:$0xff]   ;;  %v1944_v21 = vsel %vm536_vm0, %v11274_v45, 0 }
  0xc0   : > { %9379 = vmatprep.mubr.msk.bf16.mxu1 %vm481_vm1, %v1114_v34  ;;  %9717 = vmatprep.mubr.msk.bf16.mxu0 %vm481_vm1, %v4806_v43  ;;  %v1170_v34 = vrot.slane %v1168_v26, 1  ;;  %v4821_v41 = vrot.slane %v10785_v39, 2  ;;  %v1450_v43 = vshrl.u32 %v10965_v8, 16  ;;  %v1476_v26 = vor.u32 %v1474_v40, %v1472_v9 }
  0xc1   : > { %v1166_v32 = vor.u32 %v1164_v25, %v1162_v50  ;;  %v1163_v36 = vsel %vm1048_vm4, %v1159_v31, %v1162_v50  ;;  %v1495_v39 = vshrl.u32 %v11461_v52, 16  ;;  %v5281_v40 = vrot.slane %v11516_v7, 2 }
  0xc2   : > { %v1455_v8 = vor.u32 %v1454_v44, %v1450_v43 }
  0xc3   : > { %v1171_v56 = vsel %vm1048_vm4, %v1166_v32, %v1170_v34  ;;  %v1491_v32 = vshll.u32 %v11461_v52, 16 }
  0xc4   : > { %v1459_v37 = vsel %vm1048_vm4, %v1455_v8, %v1458_v48  ;;  %v11483_v8 = vld [vmem:[%s11049_s21 + $0x38] sm:$0xff]  }
  0xc5   : > { %v1493_v20 = vrot.slane %v1491_v32, 1 }
  0xc7   : > { %9380 = vmatmul.mubr.msk.bf16.gmra.mrb[16].mxu1 %vm481_vm1, %v1121_v47  ;;  %9718 = vmatmul.mubr.msk.bf16.gmra.mrb[12].mxu0 %vm481_vm1, %v4808_v57  ;;  %v4822_v47 = vsel %vm4479_vm3, %v4819_v35, %v4821_v41  ;;  %v10789_v57 = vld [vmem:[%s10961_s14 + $0x90] sm:$0xff]  }
  0xc8   : > { %9383 = vmatprep.mubr.msk.bf16.mxu1 %vm481_vm1, %v1128_v53  ;;  %9721 = vmatprep.mubr.msk.bf16.mxu0 %vm481_vm1, %v4810_v62  ;;  %v1174_v53 = vor.u32 %v1172_v59, %v1170_v34  ;;  %v4825_v60 = vrot.slane %v10789_v57, 2  ;;  %v1460_v62 = vshrl.u32 %v11387_v58, 16 }
  0xca   : > { %v4826_v42 = vsel %vm4479_vm3, %v4823_v51, %v4825_v60  ;;  %v1462_v5 = vor.u32 %v1460_v62, %v1458_v48  ;;  %v1497_v48 = vor.u32 %v1495_v39, %v1493_v20 }
  0xcc   : > { %v1466_v16 = vsel %vm1048_vm4, %v1462_v5, %v1465_v3 }
  0xcf   : > { %9384 = vmatmul.mubr.msk.bf16.gmra.mrb[20].mxu1 %vm481_vm1, %v1135_v46  ;;  %9722 = vmatmul.mubr.msk.bf16.gmra.mrb[16].mxu0 %vm481_vm1, %v4812_v10  ;;  %v4824_v46 = vsel %vm4479_vm3, %v4821_v41, %v4823_v51  ;;  %v4827_v10 = vrot.slane %v11076_v33, 2  ;;  %v1481_v33 = vshrl.u32 %v11425_v12, 16  ;;  %v11470_v41 = vld [vmem:[%s10961_s14 + $0x38] sm:$0xff]  }
  0xd0   : > { %9387 = vmatprep.mubr.msk.bf16.mxu1 %vm481_vm1, %v1142_v4  ;;  %9725 = vmatprep.mubr.msk.bf16.mxu0 %vm481_vm1, %v4814_v14  ;;  %v11416_v4 = vcombine.low %v5099_v63, %v5100_v28  ;;  %v1477_v14 = vshll.u32 %v11425_v12, 16  ;;  %v1498_v43 = vshll.u32 %v11470_v41, 16  ;;  %v11488_v51 = vld [vmem:[%s13215_s2 + $0x1c] sm:$0xf]  ;;  %v1502_v62 = vshrl.u32 %v11470_v41, 16  ;;  %v11505_v28 = vld [vmem:[%s10961_s14 + $0x48] sm:$0xff]  }
  0xd1   : > { %v4828_v13 = vsel %vm4479_vm3, %v4825_v60, %v4827_v10  ;;  %v5277_v60 = vrot.slane %v11483_v8, 2  ;;  %v1512_v30 = vshll.u32 %v11505_v28, 16 }
  0xd2   : > { %v5268_v17 = vrot.slane %v11416_v4, 2  ;;  %v1479_v25 = vrot.slane %v1477_v14, 1  ;;  %v1500_v49 = vrot.slane %v1498_v43, 1 }
  0xd3   : > { %v1514_v10 = vrot.slane %v1512_v30, 1  ;;  %v11574_v30 = vld [vmem:[%s10961_s14 + $0x70] sm:$0xff]  }
  0xd4   : > { %v5270_v45 = vsel %vm4479_vm3, %v5268_v17, %v5269_v18  ;;  %v1483_v50 = vor.u32 %v1481_v33, %v1479_v25  ;;  %v1480_v34 = vsel %vm1048_vm4, %v1476_v26, %v1479_v25  ;;  %v1504_v5 = vor.u32 %v1502_v62, %v1500_v49 }
  0xd7   : > { %9388 = vmatmul.mubr.msk.bf16.gmra.mrb[24].mxu1 %vm481_vm1, %v1149_v23  ;;  %9726 = vmatmul.mubr.msk.bf16.gmra.mrb[20].mxu0 %vm481_vm1, %v4816_v27  ;;  %v11437_v23 = vld [vmem:[%s10961_s14 + $0x28] sm:$0xff]  }
  0xd8   : > { %9391 = vmatprep.mubr.msk.bf16.mxu1 %vm481_vm1, %v1156_v61  ;;  %9729 = vmatprep.mubr.msk.bf16.mxu0 %vm481_vm1, %v4818_v29  ;;  %v1484_v11 = vshll.u32 %v11437_v23, 16  ;;  %v11448_v61 = vld [vmem:[%s11049_s21 + $0x20] sm:$0xff]   ;;  %v11453_v27 = vld [vmem:[%s11049_s21 + $0x28] sm:$0xff]   ;;  %v1488_v35 = vshrl.u32 %v11437_v23, 16 }
  0xd9   : > { %v5271_v31 = vrot.slane %v11448_v61, 2  ;;  %v5273_v15 = vrot.slane %v11453_v27, 2 }
  0xda   : > { %v1486_v29 = vrot.slane %v1484_v11, 1  ;;  %v11531_v11 = vld [vmem:[%s10961_s14 + $0x58] sm:$0xff]  }
  0xdb   : > { %v5272_v44 = vsel %vm4479_vm3, %v5269_v18, %v5271_v31  ;;  %v5274_v59 = vsel %vm4479_vm3, %v5271_v31, %v5273_v15  ;;  %v11542_v31 = vld [vmem:[%s11049_s21 + $0x58] sm:$0xff]  }
  0xdc   : > { %v5285_v43 = vrot.slane %v11542_v31, 2 }
  0xdf   : > { %9392 = vmatmul.mubr.msk.bf16.gmra.mrb[28].mxu1 %vm481_vm1, %v1163_v36  ;;  %9730 = vmatmul.mubr.msk.bf16.gmra.mrb[24].mxu0 %vm481_vm1, %v4820_v22  ;;  %v1487_v36 = vsel %vm1048_vm4, %v1483_v50, %v1486_v29  ;;  %v5762_v22 = vsel %vm536_vm0, %v11298_v1, 0 }
  0xe0   : > { %9395 = vmatprep.mubr.msk.bf16.mxu1 %vm481_vm1, %v1171_v56  ;;  %9733 = vmatprep.mubr.msk.bf16.mxu0 %vm481_vm1, %v4822_v47  ;;  %v11476_v56 = vld [vmem:[%s11049_s21 + $0x30] sm:$0xff]   ;;  %v1490_v47 = vor.u32 %v1488_v35, %v1486_v29  ;;  %v11548_v35 = vld [vmem:[%s10961_s14 + $0x60] sm:$0xff]  }
  0xe1   : > { %v5275_v1 = vrot.slane %v11476_v56, 2 }
  0xe2   : > { %v1494_v57 = vsel %vm1048_vm4, %v1490_v47, %v1493_v20 }
  0xe3   : > { %v5276_v2 = vsel %vm4479_vm3, %v5273_v15, %v5275_v1 }
  0xe7   : > { %9396 = vmatmul.mubr.msk.bf16.gmra.mrb[32].mxu1 %vm481_vm1, %v1174_v53  ;;  %9734 = vmatmul.mubr.msk.bf16.gmra.mrb[28].mxu0 %vm481_vm1, %v4824_v46  ;;  %v11494_v53 = vld [vmem:[%s10961_s14 + $0x40] sm:$0xff]  }
  0xe8   : > { %9401 = vmatprep.mubr.msk.bf16.mxu1 %vm481_vm1, %v1459_v37  ;;  %9737 = vmatprep.mubr.msk.bf16.mxu0 %vm481_vm1, %v4826_v42  ;;  %v1505_v55 = vshll.u32 %v11494_v53, 16  ;;  %v1501_v37 = vsel %vm1048_vm4, %v1497_v48, %v1500_v49  ;;  %v1509_v63 = vshrl.u32 %v11494_v53, 16  ;;  %v11511_v46 = vld [vmem:[%s11049_s21 + $0x40] sm:$0xff]   ;;  %v5278_v42 = vsel %vm4479_vm3, %v5275_v1, %v5277_v60 }
  0xe9   : > { %v5279_v14 = vrot.slane %v11511_v46, 2  ;;  %v11563_v49 = vld [vmem:[%s11049_s21 + $0x60] sm:$0xff]  }
  0xea   : > { %v1507_v3 = vrot.slane %v1505_v55, 1 }
  0xeb   : > { %v5280_v25 = vsel %vm4479_vm3, %v5277_v60, %v5279_v14  ;;  %v5282_v50 = vsel %vm4479_vm3, %v5279_v14, %v5281_v40  ;;  %v11568_v60 = vld [vmem:[%s11049_s21 + $0x68] sm:$0xff]   ;;  %v11583_v14 = vld [vmem:[%s10961_s14 + $0x78] sm:$0xff]  }
  0xec   : > { %v1511_v9 = vor.u32 %v1509_v63, %v1507_v3  ;;  %v1508_v18 = vsel %vm1048_vm4, %v1504_v5, %v1507_v3  ;;  %v5287_v63 = vrot.slane %v11563_v49, 2 }
  0xef   : > { %9402 = vmatmul.mubr.msk.bf16.vlgmr.msra.gmra.mrb[0].mxu1 %vm481_vm1, %v1466_v16  ;;  %9738 = vmatmul.mubr.msk.bf16.gmra.mrb[32].mxu0 %vm481_vm1, %v4828_v13  ;;  %v11522_v16 = vld [vmem:[%s10961_s14 + $0x50] sm:$0xff]   ;;  %v1526_v13 = vshll.u32 %v11531_v11, 16 }
  0xf0   : > { %9405 = vmatprep.mubr.msk.bf16.mxu1 %vm481_vm1, %v1473_v19  ;;  %9438 = vmatpush3.bf16.msra.mxu1 %v1944_v21  ;;  %v1519_v17 = vshll.u32 %v11522_v16, 16  ;;  %v1516_v19 = vshrl.u32 %v11505_v28, 16  ;;  %v1515_v21 = vsel %vm1048_vm4, %v1511_v9, %v1514_v10  ;;  %v1523_v33 = vshrl.u32 %v11522_v16, 16 }
  0xf1   : > { %10586 = vmatprep.subr.msk.bf16.mxu1 %vm536_vm0, %v11443_v24  ;;  %9743 = vmatprep.mubr.msk.bf16.mxu0 %vm481_vm1, %v5270_v45  ;;  %v11537_v45 = vld [vmem:[%s11049_s21 + $0x50] sm:$0xff]  }
  0xf2   : > { %v1521_v26 = vrot.slane %v1519_v17, 1  ;;  %v1518_v29 = vor.u32 %v1516_v19, %v1514_v10  ;;  %v5283_v15 = vrot.slane %v11537_v45, 2  ;;  %v1551_v10 = vshrl.u32 %v11574_v30, 16  ;;  %v11590_v19 = vld [vmem:[%s11049_s21 + $0x70] sm:$0xff]  }
  0xf3   : > { %v1554_v17 = vshll.u32 %v11583_v14, 16 }
  0xf4   : > { %v1525_v32 = vor.u32 %v1523_v33, %v1521_v26  ;;  %v1522_v39 = vsel %vm1048_vm4, %v1518_v29, %v1521_v26  ;;  %v5284_v48 = vsel %vm4479_vm3, %v5281_v40, %v5283_v15  ;;  %v5286_v55 = vsel %vm4479_vm3, %v5283_v15, %v5285_v43  ;;  %v10803_v26 = vld [vmem:[%s10961_s14 + $0x88] sm:$0xf]  ;;  %v11604_v15 = vld [vmem:[%s10961_s14 + $0x80] sm:$0xff]  }
  0xf5   : > { %v5288_v40 = vsel %vm4479_vm3, %v5285_v43, %v5287_v63 }
  0xf7   : > { %9406 = vmatmul.mubr.msk.bf16.gmra.mrb[4].mxu1 %vm481_vm1, %v1480_v34  ;;  %9744 = vmatmul.mubr.msk.bf16.vlgmr.msra.gmra.mrb[0].mxu0 %vm481_vm1, %v5272_v44  ;;  %v1528_v34 = vrot.slane %v1526_v13, 1  ;;  %v1530_v44 = vshrl.u32 %v11531_v11, 16 }
  0xf8   : > { %9409 = vmatprep.mubr.msk.bf16.mxu1 %vm481_vm1, %v1487_v36  ;;  %9780 = vmatpush3.bf16.msra.mxu0 %v5762_v22  ;;  %v1533_v36 = vshll.u32 %v11548_v35, 16  ;;  %v1537_v22 = vshrl.u32 %v11548_v35, 16 }
  0xf9   : > { %9747 = vmatprep.mubr.msk.bf16.mxu0 %vm481_vm1, %v5274_v59  ;;  %10595 = vmatprep.subr.msk.bf16.mxu0 %vm536_vm0, %v11488_v51  ;;  %v1529_v20 = vsel %vm1048_vm4, %v1525_v32, %v1528_v34  ;;  %v11557_v59 = vld [vmem:[%s10961_s14 + $0x68] sm:$0xff]   ;;  %v1556_v32 = vrot.slane %v1554_v17, 1  ;;  %v10805_v17 = vld [vmem:[%s11049_s21 + $0x4] sm:$0xf] }
  0xfa   : > { %v1540_v47 = vshll.u32 %v11557_v59, 16  ;;  %v1535_v1 = vrot.slane %v1533_v36, 1  ;;  %v1544_v5 = vshrl.u32 %v11557_v59, 16  ;;  %v1561_v36 = vshll.u32 %v11604_v15, 16 }
  0xfc   : > { %v1539_v62 = vor.u32 %v1537_v22, %v1535_v1  ;;  %v1565_v22 = vshrl.u32 %v11604_v15, 16 }
  0xff   : > { %9410 = vmatmul.mubr.msk.bf16.gmra.mrb[8].mxu1 %vm481_vm1, %v1494_v57  ;;  %9748 = vmatmul.mubr.msk.bf16.gmra.mrb[4].mxu0 %vm481_vm1, %v5276_v2  ;;  %v1532_v57 = vor.u32 %v1530_v44, %v1528_v34  ;;  %v1547_v2 = vshll.u32 %v11574_v30, 16  ;;  %v5291_v34 = vrot.slane %v11590_v19, 2  ;;  %v1558_v44 = vshrl.u32 %v11583_v14, 16 }
 0x100   : > { %9413 = vmatprep.mubr.msk.bf16.mxu1 %vm481_vm1, %v1501_v37  ;;  %9751 = vmatprep.mubr.msk.bf16.mxu0 %vm481_vm1, %v5278_v42  ;;  %v1542_v37 = vrot.slane %v1540_v47, 1  ;;  %v5289_v42 = vrot.slane %v11568_v60, 2 }
 0x101   : > { %v1536_v3 = vsel %vm1048_vm4, %v1532_v57, %v1535_v1  ;;  %v11616_v1 = vld [vmem:[%s11049_s21 + $0x80] sm:$0xff]  }
 0x102   : > { %v1543_v9 = vsel %vm1048_vm4, %v1539_v62, %v1542_v37  ;;  %v5290_v33 = vsel %vm4479_vm3, %v5287_v63, %v5289_v42  ;;  %v1546_v13 = vor.u32 %v1544_v5, %v1542_v37  ;;  %v1560_v62 = vor.u32 %v1558_v44, %v1556_v32  ;;  %v11621_v37 = vld [vmem:[%s11049_s21 + $0x88] sm:$0xff]  }
 0x107   : > { %9414 = vmatmul.mubr.msk.bf16.gmra.mrb[12].mxu1 %vm481_vm1, %v1508_v18  ;;  %9752 = vmatmul.mubr.msk.bf16.gmra.mrb[8].mxu0 %vm481_vm1, %v5280_v25  ;;  %v1042_v18 = vld [vmem:[%s10961_s14 + $0x8c] sm:$0xf]  ;;  %v11595_v25 = vld [vmem:[%s11049_s21 + $0x78] sm:$0xff]  }
 0x108   : > { %9417 = vmatprep.mubr.msk.bf16.mxu1 %vm481_vm1, %v1515_v21  ;;  %9755 = vmatprep.mubr.msk.bf16.mxu0 %vm481_vm1, %v5282_v50  ;;  %v1549_v21 = vrot.slane %v1547_v2, 1  ;;  %v11598_v50 = vcombine.low %v10803_v26, %v1042_v18  ;;  %v5293_v43 = vrot.slane %v11595_v25, 2  ;;  %v11640_v26 = vld [vmem:[%s11049_s21 + $0x98] sm:$0xff]  }
 0x10a   : > { %v1553_v29 = vor.u32 %v1551_v10, %v1549_v21  ;;  %v1569_v47 = vshll.u32 %v11598_v50, 16  ;;  %v5294_v57 = vsel %vm4479_vm3, %v5291_v34, %v5293_v43 }
 0x10c   : > { %v1571_v2 = vrot.slane %v1569_v47, 1 }
 0x10f   : > { %9418 = vmatmul.mubr.msk.bf16.gmra.mrb[16].mxu1 %vm481_vm1, %v1522_v39  ;;  %9756 = vmatmul.mubr.msk.bf16.gmra.mrb[12].mxu0 %vm481_vm1, %v5284_v48  ;;  %v1550_v39 = vsel %vm1048_vm4, %v1546_v13, %v1549_v21  ;;  %v5292_v48 = vsel %vm4479_vm3, %v5289_v42, %v5291_v34  ;;  %v5295_v42 = vrot.slane %v11616_v1, 2  ;;  %v11634_v21 = vld [vmem:[%s11049_s21 + $0x90] sm:$0xff]  }
 0x110   : > { %9421 = vmatprep.mubr.msk.bf16.mxu1 %vm481_vm1, %v1529_v20  ;;  %9759 = vmatprep.mubr.msk.bf16.mxu0 %vm481_vm1, %v5286_v55  ;;  %v1557_v20 = vsel %vm1048_vm4, %v1553_v29, %v1556_v32  ;;  %v1563_v55 = vrot.slane %v1561_v36, 1  ;;  %v10806_v32 = vld [vmem:[%s11049_s21 + $0x8] sm:$0xff]   ;;  %v5299_v36 = vrot.slane %v11634_v21, 2 }
 0x111   : > { %v1855_v34 = vrot.slane %v10806_v32, 1 }
 0x112   : > { %v1567_v63 = vor.u32 %v1565_v22, %v1563_v55  ;;  %v1564_v5 = vsel %vm1048_vm4, %v1560_v62, %v1563_v55  ;;  %v5137_v22 = vld [vmem:[%s10961_s14 + $0x14] sm:$0xf] }
 0x114   : > { %v1572_v10 = vsel %vm1048_vm4, %v1567_v63, %v1571_v2 }
 0x117   : > { %9422 = vmatmul.mubr.msk.bf16.gmra.mrb[20].mxu1 %vm481_vm1, %v1536_v3  ;;  %9760 = vmatmul.mubr.msk.bf16.gmra.mrb[16].mxu0 %vm481_vm1, %v5288_v40  ;;  %v1846_v3 = vld [vmem:[%s11049_s21] sm:$0xe]  ;;  %v5296_v40 = vsel %vm4479_vm3, %v5293_v43, %v5295_v42  ;;  %v5301_v43 = vrot.slane %v11640_v26, 2 }
 0x118   : > { %9425 = vmatprep.mubr.msk.bf16.mxu1 %vm481_vm1, %v1543_v9  ;;  %9763 = vmatprep.mubr.msk.bf16.mxu0 %vm481_vm1, %v5290_v33  ;;  %v5297_v9 = vrot.slane %v11621_v37, 2  ;;  %v8484_v18 = vcombine.low %v1846_v3, %v10805_v17  ;;  %v1573_v33 = vshrl.u32 %v11598_v50, 16  ;;  %v10808_v3 = vld [vmem:[%s11049_s21 + $0x18] sm:$0xff]  }
 0x119   : > { %v5302_v55 = vsel %vm4479_vm3, %v5299_v36, %v5301_v43 }
 0x11a   : > { %v5298_v13 = vsel %vm4479_vm3, %v5295_v42, %v5297_v9  ;;  %v1854_v29 = vrot.slane %v8484_v18, 1  ;;  %v5300_v47 = vsel %vm4479_vm3, %v5297_v9, %v5299_v36  ;;  %v1859_v42 = vrot.slane %v10808_v3, 1  ;;  %v10811_v3 = vld [vmem:[%s11049_s21 + $0x30] sm:$0xff]  }
 0x11c   : > { %v1856_v44 = vsel %vm1853_vm5, %v1854_v29, %v1855_v34  ;;  %v11678_v29 = vld [vmem:[%s10961_s14 + $0x20] sm:$0xff]  }
 0x11f   : > { %9426 = vmatmul.mubr.msk.bf16.gmra.mrb[24].mxu1 %vm481_vm1, %v1550_v39  ;;  %9764 = vmatmul.mubr.msk.bf16.gmra.mrb[20].mxu0 %vm481_vm1, %v5292_v48  ;;  %v1575_v39 = vor.u32 %v1573_v33, %v1571_v2  ;;  %v10710_v48 = vld [vmem:[%s11049_s21 + $0xa0] ss:$0 sps:$4 sm:$0x11]   ;;  %v11659_v2 = vld [vmem:[%s10961_s14 + $0x18] sm:$0xff]   ;;  %v11673_v33 = vld [vmem:[%s13215_s2 + $0xc] sm:$0xf] }
 0x120   : > { %9429 = vmatprep.mubr.msk.bf16.mxu1 %vm481_vm1, %v1557_v20  ;;  %9767 = vmatprep.mubr.msk.bf16.mxu0 %vm481_vm1, %v5294_v57  ;;  %v5136_v20 = vld [vmem:[%s10961_s14 + $0x10] sm:$0xc]  ;;  %v5671_v17 = vrot.slane %v11659_v2, 2 }
 0x121   : > { %v10807_v57 = vld [vmem:[%s11049_s21 + $0x10] sm:$0xff]   ;;  %v11656_v63 = vcombine.low %v5136_v20, %v5137_v22 }
 0x122   : > { %v1857_v62 = vrot.slane %v10807_v57, 1  ;;  %v6210_v57 = vsel %vm536_vm0, %v11488_v51, 0 }
 0x124   : > { %v1858_v9 = vsel %vm1853_vm5, %v1855_v34, %v1857_v62  ;;  %v1860_v18 = vsel %vm1853_vm5, %v1857_v62, %v1859_v42  ;;  %v10809_v34 = vld [vmem:[%s11049_s21 + $0x20] sm:$0xff]  }
 0x125   : > { %v1861_v36 = vrot.slane %v10809_v34, 1  ;;  %v11725_v34 = vld [vmem:[%s10961_s14 + $0x40] sm:$0xff]  }
 0x127   : > { %9430 = vmatmul.mubr.msk.bf16.gmra.mrb[28].mxu1 %vm481_vm1, %v1564_v5  ;;  %9768 = vmatmul.mubr.msk.bf16.gmra.mrb[24].mxu0 %vm481_vm1, %v5296_v40  ;;  %v5303_v5 = vrot.slane %v10710_v48, 2  ;;  %v2254_v40 = vsel %vm536_vm0, %v11443_v24, 0  ;;  %v11684_v24 = vld [vmem:[%s10961_s14 + $0x28] sm:$0xff]   ;;  %v1862_v20 = vsel %vm1853_vm5, %v1859_v42, %v1861_v36  ;;  %v1865_v42 = vrot.slane %v10811_v3, 1 }
 0x128   : > { %9433 = vmatprep.mubr.msk.bf16.mxu1 %vm481_vm1, %v1572_v10  ;;  %9771 = vmatprep.mubr.msk.bf16.mxu0 %vm481_vm1, %v5298_v13  ;;  %v5670_v10 = vrot.slane %v11656_v63, 2  ;;  %v5675_v22 = vrot.slane %v11684_v24, 2 }
 0x129   : > { %v5304_v13 = vsel %vm4479_vm3, %v5301_v43, %v5303_v5  ;;  %v5673_v43 = vrot.slane %v11678_v29, 2  ;;  %v11706_v5 = vld [vmem:[%s10961_s14 + $0x38] sm:$0xff]  }
 0x12a   : > { %v5672_v32 = vsel %vm4479_vm3, %v5670_v10, %v5671_v17 }
 0x12b   : > { %v5674_v48 = vsel %vm4479_vm3, %v5671_v17, %v5673_v43  ;;  %v5676_v62 = vsel %vm4479_vm3, %v5673_v43, %v5675_v22  ;;  %v11712_v17 = vld [vmem:[%s13216_s3 + $0x1c] sm:$0xf]  ;;  %v11731_v43 = vld [vmem:[%s10961_s14 + $0x48] sm:$0xff]  }
 0x12f   : > { %9434 = vmatmul.mubr.msk.bf16.gmra.mrb[32].mxu1 %vm481_vm1, %v1575_v39  ;;  %9772 = vmatmul.mubr.msk.bf16.gmra.mrb[28].mxu0 %vm481_vm1, %v5300_v47  ;;  %v10810_v39 = vld [vmem:[%s11049_s21 + $0x28] sm:$0xff]  }
 0x130   : > { %9439 = vmatprep.mubr.msk.bf16.mxu1 %vm481_vm1, %v1856_v44  ;;  %9775 = vmatprep.mubr.msk.bf16.mxu0 %vm481_vm1, %v5302_v55  ;;  %v1863_v44 = vrot.slane %v10810_v39, 1  ;;  %v11698_v55 = vld [vmem:[%s10961_s14 + $0x30] sm:$0xff]   ;;  %v10813_v39 = vld [vmem:[%s11049_s21 + $0x40] sm:$0xff]  }
 0x131   : > { %v5677_v51 = vrot.slane %v11698_v55, 2 }
 0x132   : > { %v1864_v47 = vsel %vm1853_vm5, %v1861_v36, %v1863_v44 }
 0x137   : > { %9440 = vmatmul.mubr.msk.bf16.vlgmr.msra.gmra.mrb[0].mxu1 %vm481_vm1, %v1858_v9  ;;  %9776 = vmatmul.mubr.msk.bf16.gmra.mrb[32].mxu0 %vm481_vm1, %v5304_v13  ;;  %v10812_v9 = vld [vmem:[%s11049_s21 + $0x38] sm:$0xff]  }
 0x138   : > { %9443 = vmatprep.mubr.msk.bf16.mxu1 %vm481_vm1, %v1860_v18  ;;  %9476 = vmatpush3.bf16.msra.mxu1 %v2254_v40  ;;  %v1867_v10 = vrot.slane %v10812_v9, 1  ;;  %v1866_v18 = vsel %vm1853_vm5, %v1863_v44, %v1865_v42  ;;  %v5679_v40 = vrot.slane %v11706_v5, 2  ;;  %v1869_v44 = vrot.slane %v10813_v39, 1 }
 0x139   : > { %10587 = vmatprep.subr.msk.bf16.mxu1 %vm536_vm0, %v11673_v33  ;;  %9781 = vmatprep.mubr.msk.bf16.mxu0 %vm481_vm1, %v5672_v32  ;;  %v5678_v32 = vsel %vm4479_vm3, %v5675_v22, %v5677_v51  ;;  %v5681_v22 = vrot.slane %v11725_v34, 2 }
 0x13a   : > { %v1868_v13 = vsel %vm1853_vm5, %v1865_v42, %v1867_v10  ;;  %v5680_v36 = vsel %vm4479_vm3, %v5677_v51, %v5679_v40  ;;  %v11743_v42 = vld [vmem:[%s10961_s14 + $0x50] sm:$0xff]  }
 0x13b   : > { %v5682_v3 = vsel %vm4479_vm3, %v5679_v40, %v5681_v22  ;;  %v10815_v51 = vld [vmem:[%s11049_s21 + $0x50] sm:$0xff]   ;;  %v5685_v40 = vrot.slane %v11743_v42, 2 }
 0x13f   : > { %9444 = vmatmul.mubr.msk.bf16.gmra.mrb[4].mxu1 %vm481_vm1, %v1862_v20  ;;  %9782 = vmatmul.mubr.msk.bf16.vlgmr.msra.gmra.mrb[0].mxu0 %vm481_vm1, %v5674_v48  ;;  %v10814_v20 = vld [vmem:[%s11049_s21 + $0x48] sm:$0xff]   ;;  %v1870_v48 = vsel %vm1853_vm5, %v1867_v10, %v1869_v44  ;;  %v10816_v10 = vld [vmem:[%s11049_s21 + $0x58] sm:$0xff]  }
 0x140   : > { %9447 = vmatprep.mubr.msk.bf16.mxu1 %vm481_vm1, %v1864_v47  ;;  %9818 = vmatpush3.bf16.msra.mxu0 %v6210_v57  ;;  %v1871_v47 = vrot.slane %v10814_v20, 1  ;;  %v5683_v57 = vrot.slane %v11731_v43, 2 }
 0x141   : > { %9785 = vmatprep.mubr.msk.bf16.mxu0 %vm481_vm1, %v5676_v62  ;;  %10596 = vmatprep.subr.msk.bf16.mxu0 %vm536_vm0, %v11712_v17 }
 0x142   : > { %v1872_v62 = vsel %vm1853_vm5, %v1869_v44, %v1871_v47  ;;  %v5684_v9 = vsel %vm4479_vm3, %v5681_v22, %v5683_v57  ;;  %v5686_v20 = vsel %vm4479_vm3, %v5683_v57, %v5685_v40  ;;  %v11761_v22 = vld [vmem:[%s10961_s14 + $0x60] sm:$0xff]  }
 0x143   : > { %13261 = vst [vmem:[#allocation3_spill] sm:$0xff] %v11761_v22  ;;  %v5689_v57 = vrot.slane %v11761_v22, 2 }
 0x147   : > { %9448 = vmatmul.mubr.msk.bf16.gmra.mrb[8].mxu1 %vm481_vm1, %v1866_v18  ;;  %9786 = vmatmul.mubr.msk.bf16.gmra.mrb[4].mxu0 %vm481_vm1, %v5678_v32  ;;  %v1873_v18 = vrot.slane %v10815_v51, 1  ;;  %v1875_v32 = vrot.slane %v10816_v10, 1 }
 0x148   : > { %9451 = vmatprep.mubr.msk.bf16.mxu1 %vm481_vm1, %v1868_v13  ;;  %9789 = vmatprep.mubr.msk.bf16.mxu0 %vm481_vm1, %v5680_v36  ;;  %v11749_v13 = vld [vmem:[%s10961_s14 + $0x58] sm:$0xff]  }
 0x149   : > { %13260 = vst [vmem:[#allocation2_spill] sm:$0xff] %v11749_v13  ;;  %v1874_v36 = vsel %vm1853_vm5, %v1871_v47, %v1873_v18  ;;  %v5687_v39 = vrot.slane %v11749_v13, 2  ;;  %v1876_v44 = vsel %vm1853_vm5, %v1873_v18, %v1875_v32  ;;  %v10818_v47 = vld [vmem:[%s11049_s21 + $0x68] sm:$0xff]   ;;  %v11820_v13 = vld [vmem:[%s10961_s14 + $0x98] sm:$0xff]  }
 0x14a   : > { %v1879_v51 = vrot.slane %v10818_v47, 1  ;;  %v11785_v47 = vld [vmem:[%s10961_s14 + $0x78] sm:$0xff]   ;;  %13268 = vst [vmem:[#allocation10_spill] sm:$0xff] %v11820_v13 }
 0x14b   : > { %13264 = vst [vmem:[#allocation6_spill] sm:$0xff] %v11785_v47 }
 0x14f   : > { %9452 = vmatmul.mubr.msk.bf16.gmra.mrb[12].mxu1 %vm481_vm1, %v1870_v48  ;;  %9790 = vmatmul.mubr.msk.bf16.gmra.mrb[8].mxu0 %vm481_vm1, %v5682_v3  ;;  %v5688_v48 = vsel %vm4479_vm3, %v5685_v40, %v5687_v39 }
 0x150   : > { %9455 = vmatprep.mubr.msk.bf16.mxu1 %vm481_vm1, %v1872_v62  ;;  %9793 = vmatprep.mubr.msk.bf16.mxu0 %vm481_vm1, %v5684_v9  ;;  %v10817_v62 = vld [vmem:[%s11049_s21 + $0x60] sm:$0xff]   ;;  %v11767_v9 = vld [vmem:[%s10961_s14 + $0x68] sm:$0xff]  }
 0x151   : > { %v1877_v3 = vrot.slane %v10817_v62, 1  ;;  %13262 = vst [vmem:[#allocation4_spill] sm:$0xff] %v11767_v9  ;;  %v5691_v10 = vrot.slane %v11767_v9, 2 }
 0x153   : > { %v1878_v18 = vsel %vm1853_vm5, %v1875_v32, %v1877_v3  ;;  %v1880_v40 = vsel %vm1853_vm5, %v1877_v3, %v1879_v51  ;;  %v5692_v62 = vsel %vm4479_vm3, %v5689_v57, %v5691_v10  ;;  %v10820_v32 = vld [vmem:[%s11049_s21 + $0x78] sm:$0xff]  }
 0x154   : > { %v1883_v9 = vrot.slane %v10820_v32, 1 }
 0x157   : > { %9456 = vmatmul.mubr.msk.bf16.gmra.mrb[16].mxu1 %vm481_vm1, %v1874_v36  ;;  %9794 = vmatmul.mubr.msk.bf16.gmra.mrb[12].mxu0 %vm481_vm1, %v5686_v20  ;;  %v5690_v36 = vsel %vm4479_vm3, %v5687_v39, %v5689_v57  ;;  %v10819_v20 = vld [vmem:[%s11049_s21 + $0x70] sm:$0xff]   ;;  %v5695_v57 = vrot.slane %v11785_v47, 2  ;;  %v1887_v47 = vrot.slane %v11362_v38, 1 }
 0x158   : > { %9459 = vmatprep.mubr.msk.bf16.mxu1 %vm481_vm1, %v1876_v44  ;;  %9797 = vmatprep.mubr.msk.bf16.mxu0 %vm481_vm1, %v5688_v48  ;;  %v11779_v44 = vld [vmem:[%s10961_s14 + $0x70] sm:$0xff]   ;;  %v1881_v48 = vrot.slane %v10819_v20, 1  ;;  %v11797_v20 = vld [vmem:[%s10961_s14 + $0x80] sm:$0xff]  }
 0x159   : > { %13263 = vst [vmem:[#allocation5_spill] sm:$0xff] %v11779_v44  ;;  %v5693_v39 = vrot.slane %v11779_v44, 2  ;;  %13265 = vst [vmem:[#allocation7_spill] sm:$0xff] %v11797_v20  ;;  %v11817_v38 = vld [vmem:[%s10961_s14 + $0x90] sm:$0xff]  }
 0x15a   : > { %v1882_v3 = vsel %vm1853_vm5, %v1879_v51, %v1881_v48  ;;  %v11803_v51 = vld [vmem:[%s10961_s14 + $0x88] sm:$0xff]   ;;  %13267 = vst [vmem:[#allocation9_spill] sm:$0xff] %v11817_v38 }
 0x15b   : > { %v5696_v32 = vsel %vm4479_vm3, %v5693_v39, %v5695_v57  ;;  %13266 = vst [vmem:[#allocation8_spill] sm:$0xff] %v11803_v51 }
 0x15f   : > { %9460 = vmatmul.mubr.msk.bf16.gmra.mrb[20].mxu1 %vm481_vm1, %v1878_v18  ;;  %9798 = vmatmul.mubr.msk.bf16.gmra.mrb[16].mxu0 %vm481_vm1, %v5690_v36  ;;  %v1884_v18 = vsel %vm1853_vm5, %v1881_v48, %v1883_v9  ;;  %v10821_v36 = vld [vmem:[%s11049_s21 + $0x80] sm:$0xff]  }
 0x160   : > { %9463 = vmatprep.mubr.msk.bf16.mxu1 %vm481_vm1, %v1880_v40  ;;  %9801 = vmatprep.mubr.msk.bf16.mxu0 %vm481_vm1, %v5692_v62  ;;  %v5694_v40 = vsel %vm4479_vm3, %v5691_v10, %v5693_v39  ;;  %v1885_v62 = vrot.slane %v10821_v36, 1  ;;  %v1847_v48 = vld [vmem:[%s10961_s14] sm:$0xe]  ;;  %v5697_v10 = vrot.slane %v11797_v20, 2  ;;  %v5699_v39 = vrot.slane %v11803_v51, 2 }
 0x161   : > { %v2169_v20 = vrot.slane %v11409_v0, 1 }
 0x162   : > { %v1888_v22 = vsel %vm1853_vm5, %v1885_v62, %v1887_v47  ;;  %v5698_v36 = vsel %vm4479_vm3, %v5695_v57, %v5697_v10  ;;  %v5701_v57 = vrot.slane %v11817_v38, 2 }
 0x167   : > { %9464 = vmatmul.mubr.msk.bf16.gmra.mrb[24].mxu1 %vm481_vm1, %v1882_v3  ;;  %9802 = vmatmul.mubr.msk.bf16.gmra.mrb[20].mxu0 %vm481_vm1, %v5694_v40  ;;  %v1886_v3 = vsel %vm1853_vm5, %v1883_v9, %v1885_v62  ;;  %v5700_v40 = vsel %vm4479_vm3, %v5697_v10, %v5699_v39  ;;  %v5703_v62 = vrot.slane %v11820_v13, 2  ;;  %v5994_v10 = vshrl.u32 %v11419_v6, 16 }
 0x168   : > { %9467 = vmatprep.mubr.msk.bf16.mxu1 %vm481_vm1, %v1884_v18  ;;  %9805 = vmatprep.mubr.msk.bf16.mxu0 %vm481_vm1, %v5696_v32  ;;  %v10822_v18 = vld [vmem:[%s10961_s14 + $0x4] sm:$0xf]  ;;  %v2165_v32 = vrot.slane %v11387_v58, 1  ;;  %v5702_v58 = vsel %vm4479_vm3, %v5699_v39, %v5701_v57  ;;  %v6003_v39 = vshrl.u32 %v11448_v61, 16 }
 0x169   : > { %v8504_v44 = vcombine.low %v1847_v48, %v10822_v18  ;;  %v5986_v48 = vshrl.u32 %v11416_v4, 16  ;;  %v5997_v18 = vshll.u32 %v11419_v6, 16 }
 0x16b   : > { %v2164_v9 = vrot.slane %v8504_v44, 1  ;;  %v5704_v44 = vsel %vm4479_vm3, %v5701_v57, %v5703_v62  ;;  %v5988_v13 = vrot.slane %v5986_v48, 2  ;;  %v5999_v51 = vrot.slane %v5997_v18, 3 }
 0x16c   : > { %v6012_v48 = vshrl.u32 %v11453_v27, 16 }
 0x16f   : > { %9468 = vmatmul.mubr.msk.bf16.gmra.mrb[28].mxu1 %vm481_vm1, %v1886_v3  ;;  %9806 = vmatmul.mubr.msk.bf16.gmra.mrb[24].mxu0 %vm481_vm1, %v5698_v36  ;;  %v5989_v3 = vshll.u32 %v11416_v4, 16  ;;  %v10729_v36 = vld [vmem:[%s10961_s14 + $0xa0] ss:$0 sps:$4 sm:$0x11]   ;;  %v5996_v4 = vrot.slane %v5994_v10, 2  ;;  %v2723_v10 = vsel %vm536_vm0, %v11673_v33, 0 }
 0x170   : > { %9471 = vmatprep.mubr.msk.bf16.mxu1 %vm481_vm1, %v1888_v22  ;;  %9809 = vmatprep.mubr.msk.bf16.mxu0 %vm481_vm1, %v5700_v40  ;;  %v2166_v22 = vsel %vm1853_vm5, %v2164_v9, %v2165_v32  ;;  %v2167_v40 = vrot.slane %v11399_v54, 1  ;;  %v5705_v6 = vrot.slane %v10729_v36, 2  ;;  %v6006_v9 = vshll.u32 %v11448_v61, 16 }
 0x171   : > { %v5991_v38 = vrot.slane %v5989_v3, 3  ;;  %v6000_v57 = vor.u32 %v5999_v51, %v5996_v4  ;;  %v6015_v3 = vshll.u32 %v11453_v27, 16  ;;  %v6005_v61 = vrot.slane %v6003_v39, 2 }
 0x172   : > { %v2170_v0 = vsel %vm1853_vm5, %v2167_v40, %v2169_v20  ;;  %v5706_v18 = vsel %vm4479_vm3, %v5703_v62, %v5705_v6  ;;  %v2171_v27 = vrot.slane %v11425_v12, 1  ;;  %v6030_v12 = vshrl.u32 %v11483_v8, 16 }
 0x173   : > { %v5992_v54 = vor.u32 %v5991_v38, %v5988_v13  ;;  %v6008_v13 = vrot.slane %v6006_v9, 3  ;;  %v6014_v38 = vrot.slane %v6012_v48, 2  ;;  %v6017_v33 = vrot.slane %v6015_v3, 3 }
 0x174   : > { %v2172_v36 = vsel %vm1853_vm5, %v2169_v20, %v2171_v27  ;;  %v6033_v4 = vshll.u32 %v11483_v8, 16  ;;  %v2175_v20 = vrot.slane %v11461_v52, 1  ;;  %v2177_v8 = vrot.slane %v11470_v41, 1 }
 0x175   : > { %v6001_v51 = vsel %vm5984_vm6, %v5992_v54, %v6000_v57  ;;  %v6009_v62 = vor.u32 %v6008_v13, %v6005_v61  ;;  %v6032_v54 = vrot.slane %v6030_v12, 2  ;;  %v6039_v3 = vshrl.u32 %v11511_v46, 16 }
 0x176   : > { %v6035_v48 = vrot.slane %v6033_v4, 3  ;;  %v6048_v41 = vshrl.u32 %v11516_v7, 16  ;;  %v2178_v61 = vsel %vm1853_vm5, %v2175_v20, %v2177_v8  ;;  %v6066_v12 = vshrl.u32 %v11542_v31, 16 }
 0x177   : > { %9472 = vmatmul.mubr.msk.bf16.gmra.mrb[32].mxu1 %vm481_vm1, %v1887_v47  ;;  %9810 = vmatmul.mubr.msk.bf16.gmra.mrb[28].mxu0 %vm481_vm1, %v5702_v58  ;;  %v2168_v47 = vsel %vm1853_vm5, %v2165_v32, %v2167_v40  ;;  %v11854_v32 = vld [vmem:[%s13216_s3 + $0xc] sm:$0xf]  ;;  %v6021_v58 = vshrl.u32 %v11476_v56, 16  ;;  %v6018_v40 = vor.u32 %v6017_v33, %v6014_v38  ;;  %v6010_v6 = vsel %vm5984_vm6, %v6000_v57, %v6009_v62  ;;  %v11883_v57 = vld [vmem:[%s13215_s2 + $0x20] sm:$0xf] }
 0x178   : > { %9477 = vmatprep.mubr.msk.bf16.mxu1 %vm481_vm1, %v2166_v22  ;;  %9813 = vmatprep.mubr.msk.bf16.mxu0 %vm481_vm1, %v5704_v44  ;;  %v2173_v22 = vrot.slane %v11437_v23, 1  ;;  %v6024_v44 = vshll.u32 %v11476_v56, 16  ;;  %v2179_v38 = vrot.slane %v11494_v53, 1  ;;  %v6050_v33 = vrot.slane %v6048_v41, 2 }
 0x179   : > { %v6023_v39 = vrot.slane %v6021_v58, 2  ;;  %v6019_v56 = vsel %vm5984_vm6, %v6009_v62, %v6018_v40  ;;  %v6057_v58 = vshrl.u32 %v11537_v45, 16  ;;  %v6069_v53 = vshll.u32 %v11542_v31, 16 }
 0x17a   : > { %v2174_v23 = vsel %vm1853_vm5, %v2171_v27, %v2173_v22  ;;  %v6026_v9 = vrot.slane %v6024_v44, 3  ;;  %v2176_v52 = vsel %vm1853_vm5, %v2173_v22, %v2175_v20  ;;  %v6060_v44 = vshll.u32 %v11537_v45, 16 }
 0x17b   : > { %v2183_v45 = vrot.slane %v11522_v16, 1  ;;  %v6075_v20 = vshrl.u32 %v11563_v49, 16  ;;  %v6087_v16 = vshll.u32 %v11568_v60, 16 }
 0x17f   : > { %9478 = vmatmul.mubr.msk.bf16.vlgmr.msra.gmra.mrb[0].mxu1 %vm481_vm1, %v2168_v47  ;;  %9814 = vmatmul.mubr.msk.bf16.gmra.mrb[32].mxu0 %vm481_vm1, %v5706_v18  ;;  %v6655_v47 = vsel %vm536_vm0, %v11712_v17, 0  ;;  %v6027_v17 = vor.u32 %v6026_v9, %v6023_v39  ;;  %v6051_v18 = vshll.u32 %v11516_v7, 16  ;;  %v2181_v7 = vrot.slane %v11505_v28, 1 }
 0x180   : > { %9481 = vmatprep.mubr.msk.bf16.mxu1 %vm481_vm1, %v2170_v0  ;;  %9514 = vmatpush3.bf16.msra.mxu1 %v2723_v10  ;;  %v6042_v0 = vshll.u32 %v11511_v46, 16  ;;  %v6036_v10 = vor.u32 %v6035_v48, %v6032_v54  ;;  %v6068_v39 = vrot.slane %v6066_v12, 2  ;;  %v6071_v9 = vrot.slane %v6069_v53, 3 }
 0x181   : > { %10588 = vmatprep.subr.msk.bf16.mxu1 %vm536_vm0, %v11854_v32  ;;  %9819 = vmatprep.mubr.msk.bf16.mxu0 %vm481_vm1, %v6001_v51  ;;  %v6028_v13 = vsel %vm5984_vm6, %v6018_v40, %v6027_v17  ;;  %v6041_v51 = vrot.slane %v6039_v3, 2  ;;  %v6053_v22 = vrot.slane %v6051_v18, 3  ;;  %v2182_v4 = vsel %vm1853_vm5, %v2179_v38, %v2181_v7 }
 0x182   : > { %v6044_v27 = vrot.slane %v6042_v0, 3  ;;  %v6037_v46 = vsel %vm5984_vm6, %v6027_v17, %v6036_v10  ;;  %v6078_v54 = vshll.u32 %v11563_v49, 16  ;;  %v2184_v48 = vsel %vm1853_vm5, %v2181_v7, %v2183_v45 }
 0x183   : > { %v6054_v40 = vor.u32 %v6053_v22, %v6050_v33  ;;  %v6084_v17 = vshrl.u32 %v11568_v60, 16  ;;  %v6077_v0 = vrot.slane %v6075_v20, 2  ;;  %v2187_v49 = vrot.slane %v11548_v35, 1 }
 0x184   : > { %v6045_v62 = vor.u32 %v6044_v27, %v6041_v51  ;;  %v6089_v18 = vrot.slane %v6087_v16, 3  ;;  %v6096_v51 = vshll.u32 %v11590_v19, 16  ;;  %v6105_v35 = vshll.u32 %v11595_v25, 16  ;;  %v10731_v16 = vld [vmem:[%s11049_s21 + $0x10] sm:$0xff]  }
 0x185   : > { %v6086_v41 = vrot.slane %v6084_v17, 2  ;;  %v6114_v12 = vshll.u32 %v11616_v1, 16 }
 0x186   : > { %v6046_v28 = vsel %vm5984_vm6, %v6036_v10, %v6045_v62  ;;  %v6098_v7 = vrot.slane %v6096_v51, 3  ;;  %v10733_v51 = vld [vmem:[%s11049_s21 + $0x18] sm:$0xff]  }
 0x187   : > { %9482 = vmatmul.mubr.msk.bf16.gmra.mrb[4].mxu1 %vm481_vm1, %v2172_v36  ;;  %9820 = vmatmul.mubr.msk.bf16.vlgmr.msra.gmra.mrb[0].mxu0 %vm481_vm1, %v6010_v6  ;;  %v2180_v36 = vsel %vm1853_vm5, %v2177_v8, %v2179_v38  ;;  %v6062_v6 = vrot.slane %v6060_v44, 3  ;;  %v6072_v8 = vor.u32 %v6071_v9, %v6068_v39  ;;  %v6102_v38 = vshrl.u32 %v11595_v25, 16 }
 0x188   : > { %9485 = vmatprep.mubr.msk.bf16.mxu1 %vm481_vm1, %v2174_v23  ;;  %9856 = vmatpush3.bf16.msra.mxu0 %v6655_v47  ;;  %v6059_v23 = vrot.slane %v6057_v58, 2  ;;  %v6055_v47 = vsel %vm5984_vm6, %v6045_v62, %v6054_v40  ;;  %v6107_v44 = vrot.slane %v6105_v35, 3  ;;  %v6442_v35 = vshll.u32 %v11659_v2, 16 }
 0x189   : > { %9823 = vmatprep.mubr.msk.bf16.mxu0 %vm481_vm1, %v6019_v56  ;;  %10597 = vmatprep.subr.msk.bf16.mxu0 %vm536_vm0, %v11883_v57  ;;  %v2185_v56 = vrot.slane %v11531_v11, 1  ;;  %v6104_v58 = vrot.slane %v6102_v38, 2  ;;  %v6439_v38 = vshrl.u32 %v11659_v2, 16 }
 0x18a   : > { %v6063_v31 = vor.u32 %v6062_v6, %v6059_v23  ;;  %v6444_v2 = vrot.slane %v6442_v35, 3  ;;  %v6493_v35 = vshrl.u32 %v11731_v43, 16 }
 0x18b   : > { %v2186_v3 = vsel %vm1853_vm5, %v2183_v45, %v2185_v56  ;;  %v2188_v27 = vsel %vm1853_vm5, %v2185_v56, %v2187_v49  ;;  %v6129_v56 = vshrl.u32 %v11634_v21, 16 }
 0x18c   : > { %v6064_v11 = vsel %vm5984_vm6, %v6054_v40, %v6063_v31  ;;  %v6073_v10 = vsel %vm5984_vm6, %v6063_v31, %v6072_v8  ;;  %v6111_v40 = vshrl.u32 %v11616_v1, 16  ;;  %v2195_v1 = vrot.slane %v11604_v15, 1 }
 0x18d   : > { %v6132_v31 = vshll.u32 %v11634_v21, 16 }
 0x18e   : > { %v6113_v6 = vrot.slane %v6111_v40, 2 }
 0x18f   : > { %9486 = vmatmul.mubr.msk.bf16.gmra.mrb[8].mxu1 %vm481_vm1, %v2176_v52  ;;  %9824 = vmatmul.mubr.msk.bf16.gmra.mrb[4].mxu0 %vm481_vm1, %v6028_v13  ;;  %v6080_v52 = vrot.slane %v6078_v54, 3  ;;  %v6093_v13 = vshrl.u32 %v11590_v19, 16  ;;  %v2191_v19 = vrot.slane %v11574_v30, 1  ;;  %v6123_v30 = vshll.u32 %v11621_v37, 16 }
 0x190   : > { %9489 = vmatprep.mubr.msk.bf16.mxu1 %vm481_vm1, %v2178_v61  ;;  %9827 = vmatprep.mubr.msk.bf16.mxu0 %vm481_vm1, %v6037_v46  ;;  %v2189_v61 = vrot.slane %v11557_v59, 1  ;;  %v6090_v46 = vor.u32 %v6089_v18, %v6086_v41  ;;  %v6138_v54 = vshrl.u32 %v11640_v26, 16  ;;  %v2634_v41 = vrot.slane %v10731_v16, 1 }
 0x191   : > { %v6081_v60 = vor.u32 %v6080_v52, %v6077_v0  ;;  %v6095_v22 = vrot.slane %v6093_v13, 2  ;;  %v6125_v9 = vrot.slane %v6123_v30, 3  ;;  %v6475_v16 = vshrl.u32 %v11706_v5, 16 }
 0x192   : > { %v2190_v33 = vsel %vm1853_vm5, %v2187_v49, %v2189_v61  ;;  %v2192_v53 = vsel %vm1853_vm5, %v2189_v61, %v2191_v19  ;;  %v6140_v0 = vrot.slane %v6138_v54, 2 }
 0x193   : > { %v6082_v59 = vsel %vm5984_vm6, %v6072_v8, %v6081_v60  ;;  %v6091_v62 = vsel %vm5984_vm6, %v6081_v60, %v6090_v46  ;;  %v6099_v25 = vor.u32 %v6098_v7, %v6095_v22 }
 0x197   : > { %9490 = vmatmul.mubr.msk.bf16.gmra.mrb[12].mxu1 %vm481_vm1, %v2180_v36  ;;  %9828 = vmatmul.mubr.msk.bf16.gmra.mrb[8].mxu0 %vm481_vm1, %v6046_v28  ;;  %v2193_v36 = vrot.slane %v11583_v14, 1  ;;  %v6120_v28 = vshrl.u32 %v11621_v37, 16  ;;  %v6100_v14 = vsel %vm5984_vm6, %v6090_v46, %v6099_v25  ;;  %v2197_v37 = vrot.slane %v11598_v50, 1  ;;  %v10730_v50 = vld [vmem:[%s11049_s21 + $0x8] sm:$0xfe]  }
 0x198   : > { %9493 = vmatprep.mubr.msk.bf16.mxu1 %vm481_vm1, %v2182_v4  ;;  %9831 = vmatprep.mubr.msk.bf16.mxu0 %vm481_vm1, %v6055_v47  ;;  %v6108_v4 = vor.u32 %v6107_v44, %v6104_v58  ;;  %v6116_v47 = vrot.slane %v6114_v12, 3  ;;  %v2633_v49 = vrot.slane %v10730_v50, 1  ;;  %v6434_v46 = vshll.u32 %v11656_v63, 16  ;;  %v10737_v50 = vld [vmem:[%s11049_s21 + $0x38] sm:$0xff]  }
 0x199   : > { %v2194_v23 = vsel %vm1853_vm5, %v2191_v19, %v2193_v36  ;;  %v6122_v39 = vrot.slane %v6120_v28, 2  ;;  %v2196_v15 = vsel %vm1853_vm5, %v2193_v36, %v2195_v1  ;;  %v2198_v17 = vsel %vm1853_vm5, %v2195_v1, %v2197_v37  ;;  %v10736_v1 = vld [vmem:[%s11049_s21 + $0x30] sm:$0xff]  }
 0x19a   : > { %v6109_v45 = vsel %vm5984_vm6, %v6099_v25, %v6108_v4  ;;  %v6117_v20 = vor.u32 %v6116_v47, %v6113_v6  ;;  %v2636_v58 = vrot.slane %v10733_v51, 1  ;;  %v6436_v44 = vrot.slane %v6434_v46, 3 }
 0x19b   : > { %v6126_v8 = vor.u32 %v6125_v9, %v6122_v39  ;;  %v6441_v36 = vrot.slane %v6439_v38, 2  ;;  %v6460_v6 = vshll.u32 %v11684_v24, 16  ;;  %v12004_v39 = vld [vmem:[%s13215_s2 + $0x10] sm:$0xf]  ;;  %v6487_v51 = vshll.u32 %v11725_v34, 16  ;;  %v10739_v38 = vld [vmem:[%s11049_s21 + $0x48] sm:$0xff]  }
 0x19c   : > { %v6118_v21 = vsel %vm5984_vm6, %v6108_v4, %v6117_v20  ;;  %v2637_v12 = vsel %vm1853_vm5, %v2634_v41, %v2636_v58  ;;  %v6451_v4 = vshll.u32 %v11678_v29, 16 }
 0x19d   : > { %v6445_v30 = vor.u32 %v6444_v2, %v6441_v36  ;;  %v6502_v2 = vshrl.u32 %v11743_v42, 16 }
 0x19f   : > { %9494 = vmatmul.mubr.msk.bf16.gmra.mrb[16].mxu1 %vm481_vm1, %v2184_v48  ;;  %9832 = vmatmul.mubr.msk.bf16.gmra.mrb[12].mxu0 %vm481_vm1, %v6064_v11  ;;  %v6141_v48 = vshll.u32 %v11640_v26, 16  ;;  %v6134_v11 = vrot.slane %v6132_v31, 3  ;;  %v6127_v26 = vsel %vm5984_vm6, %v6117_v20, %v6126_v8  ;;  %v6462_v31 = vrot.slane %v6460_v6, 3 }
 0x1a0   : > { %9497 = vmatprep.mubr.msk.bf16.mxu1 %vm481_vm1, %v2186_v3  ;;  %9835 = vmatprep.mubr.msk.bf16.mxu0 %vm481_vm1, %v6073_v10  ;;  %v6131_v3 = vrot.slane %v6129_v56, 2  ;;  %v11970_v10 = vld [vmem:[%s11049_s21 + $0xa0] ss:$0 sps:$4 sm:$0x33]   ;;  %v2642_v20 = vrot.slane %v10736_v1, 1 }
 0x1a1   : > { %v6143_v52 = vrot.slane %v6141_v48, 3  ;;  %v6147_v60 = vshrl.u32 %v11970_v10, 16  ;;  %v6150_v13 = vshll.u32 %v11970_v10, 16  ;;  %v6466_v48 = vshrl.u32 %v11698_v55, 16 }
 0x1a2   : > { %v6135_v18 = vor.u32 %v6134_v11, %v6131_v3  ;;  %v6478_v3 = vshll.u32 %v11706_v5, 16 }
 0x1a3   : > { %v6144_v61 = vor.u32 %v6143_v52, %v6140_v0  ;;  %v6152_v19 = vrot.slane %v6150_v13, 3  ;;  %v6970_v52 = vsel %vm536_vm0, %v11883_v57, 0  ;;  %v6484_v13 = vshrl.u32 %v11725_v34, 16 }
 0x1a4   : > { %v6136_v22 = vsel %vm5984_vm6, %v6126_v8, %v6135_v18  ;;  %v6480_v5 = vrot.slane %v6478_v3, 3 }
 0x1a5   : > { %v6145_v7 = vsel %vm5984_vm6, %v6135_v18, %v6144_v61  ;;  %v6477_v18 = vrot.slane %v6475_v16, 2  ;;  %v6486_v34 = vrot.slane %v6484_v13, 2  ;;  %v10744_v16 = vld [vmem:[%s11049_s21 + $0x70] sm:$0xff]  }
 0x1a7   : > { %9498 = vmatmul.mubr.msk.bf16.gmra.mrb[20].mxu1 %vm481_vm1, %v2188_v27  ;;  %9836 = vmatmul.mubr.msk.bf16.gmra.mrb[16].mxu0 %vm481_vm1, %v6082_v59  ;;  %v6431_v27 = vshrl.u32 %v11656_v63, 16  ;;  %v10734_v59 = vld [vmem:[%s11049_s21 + $0x20] sm:$0xff]   ;;  %v6481_v46 = vor.u32 %v6480_v5, %v6477_v18  ;;  %v13272_v18 = vld [vmem:[#allocation5_spill] sm:$0xff] }
 0x1a8   : > { %9501 = vmatprep.mubr.msk.bf16.mxu1 %vm481_vm1, %v2190_v33  ;;  %9839 = vmatprep.mubr.msk.bf16.mxu0 %vm481_vm1, %v6091_v62  ;;  %v2635_v33 = vsel %vm1853_vm5, %v2633_v49, %v2634_v41  ;;  %v6149_v62 = vrot.slane %v6147_v60, 2  ;;  %v2638_v25 = vrot.slane %v10734_v59, 1  ;;  %v2644_v41 = vrot.slane %v10737_v50, 1  ;;  %v12031_v60 = vld [vmem:[%s13216_s3 + $0x20] sm:$0xf] }
 0x1a9   : > { %v6433_v63 = vrot.slane %v6431_v27, 2  ;;  %v6538_v5 = vshrl.u32 %v13272_v18, 16 }
 0x1aa   : > { %v6153_v40 = vor.u32 %v6152_v19, %v6149_v62  ;;  %v2639_v47 = vsel %vm1853_vm5, %v2636_v58, %v2638_v25  ;;  %v2645_v27 = vsel %vm1853_vm5, %v2642_v20, %v2644_v41  ;;  %v6489_v62 = vrot.slane %v6487_v51, 3  ;;  %v10745_v51 = vld [vmem:[%s11049_s21 + $0x78] sm:$0xff]  }
 0x1ab   : > { %v6437_v28 = vor.u32 %v6436_v44, %v6433_v63  ;;  %v2648_v58 = vrot.slane %v10739_v38, 1 }
 0x1ac   : > { %v6490_v36 = vor.u32 %v6489_v62, %v6486_v34 }
 0x1ae   : > { %v6491_v6 = vsel %vm5984_vm6, %v6481_v46, %v6490_v36 }
 0x1af   : > { %9502 = vmatmul.mubr.msk.bf16.gmra.mrb[24].mxu1 %vm481_vm1, %v2192_v53  ;;  %9840 = vmatmul.mubr.msk.bf16.gmra.mrb[20].mxu0 %vm481_vm1, %v6100_v14  ;;  %v6448_v53 = vshrl.u32 %v11678_v29, 16  ;;  %v6457_v14 = vshrl.u32 %v11684_v24, 16  ;;  %v6154_v29 = vsel %vm5984_vm6, %v6144_v61, %v6153_v40  ;;  %v6446_v24 = vsel %vm5984_vm6, %v6437_v28, %v6445_v30 }
 0x1b0   : > { %9505 = vmatprep.mubr.msk.bf16.mxu1 %vm481_vm1, %v2194_v23  ;;  %9843 = vmatprep.mubr.msk.bf16.mxu0 %vm481_vm1, %v6109_v45  ;;  %v10735_v23 = vld [vmem:[%s11049_s21 + $0x28] sm:$0xff]   ;;  %v3120_v45 = vsel %vm536_vm0, %v11854_v32, 0 }
 0x1b1   : > { %v6450_v9 = vrot.slane %v6448_v53, 2  ;;  %v2640_v56 = vrot.slane %v10735_v23, 1  ;;  %v6459_v32 = vrot.slane %v6457_v14, 2  ;;  %v10741_v53 = vld [vmem:[%s11049_s21 + $0x58] sm:$0xff]   ;;  %v10742_v14 = vld [vmem:[%s11049_s21 + $0x60] sm:$0xff]  }
 0x1b2   : > { %v2652_v1 = vrot.slane %v10741_v53, 1 }
 0x1b3   : > { %v2641_v8 = vsel %vm1853_vm5, %v2638_v25, %v2640_v56  ;;  %v2643_v11 = vsel %vm1853_vm5, %v2640_v56, %v2642_v20  ;;  %v6505_v25 = vshll.u32 %v11743_v42, 16  ;;  %v13270_v56 = vld [vmem:[#allocation3_spill] sm:$0xff] }
 0x1b7   : > { %9506 = vmatmul.mubr.msk.bf16.gmra.mrb[28].mxu1 %vm481_vm1, %v2196_v15  ;;  %9844 = vmatmul.mubr.msk.bf16.gmra.mrb[24].mxu0 %vm481_vm1, %v6118_v21  ;;  %v6469_v15 = vshll.u32 %v11698_v55, 16  ;;  %v10738_v21 = vld [vmem:[%s11049_s21 + $0x40] sm:$0xff]  }
 0x1b8   : > { %9509 = vmatprep.mubr.msk.bf16.mxu1 %vm481_vm1, %v2198_v17  ;;  %9847 = vmatprep.mubr.msk.bf16.mxu0 %vm481_vm1, %v6127_v26  ;;  %v6463_v17 = vor.u32 %v6462_v31, %v6459_v32  ;;  %v6468_v26 = vrot.slane %v6466_v48, 2  ;;  %v2646_v61 = vrot.slane %v10738_v21, 1  ;;  %v6520_v32 = vshrl.u32 %v13270_v56, 16  ;;  %v10743_v48 = vld [vmem:[%s11049_s21 + $0x68] sm:$0xff]  }
 0x1b9   : > { %v6471_v55 = vrot.slane %v6469_v15, 3  ;;  %v6523_v31 = vshll.u32 %v13270_v56, 16  ;;  %v13271_v15 = vld [vmem:[#allocation4_spill] sm:$0xff] }
 0x1ba   : > { %v2647_v59 = vsel %vm1853_vm5, %v2644_v41, %v2646_v61  ;;  %v2649_v40 = vsel %vm1853_vm5, %v2646_v61, %v2648_v58  ;;  %v6541_v61 = vshll.u32 %v13272_v18, 16 }
 0x1bb   : > { %v6472_v57 = vor.u32 %v6471_v55, %v6468_v26  ;;  %v6525_v21 = vrot.slane %v6523_v31, 3  ;;  %v7500_v31 = vld [vmem:[%s13217_s4 + $0x18] sm:$0xff] }
 0x1bc   : > { %v6543_v34 = vrot.slane %v6541_v61, 3 }
 0x1bd   : > { %v6482_v19 = vsel %vm5984_vm6, %v6472_v57, %v6481_v46 }
 0x1bf   : > { %9510 = vmatmul.mubr.msk.bf16.gmra.mrb[32].mxu1 %vm481_vm1, %v2197_v37  ;;  %9848 = vmatmul.mubr.msk.bf16.gmra.mrb[28].mxu0 %vm481_vm1, %v6136_v22  ;;  %v6453_v37 = vrot.slane %v6451_v4, 3  ;;  %v10740_v22 = vld [vmem:[%s11049_s21 + $0x50] sm:$0xff]   ;;  %v13269_v4 = vld [vmem:[#allocation2_spill] sm:$0xff] }
 0x1c0   : > { %9515 = vmatprep.mubr.msk.bf16.mxu1 %vm481_vm1, %v2635_v33  ;;  %9851 = vmatprep.mubr.msk.bf16.mxu0 %vm481_vm1, %v6145_v7  ;;  %v6496_v33 = vshll.u32 %v11731_v43, 16  ;;  %v6473_v7 = vsel %vm5984_vm6, %v6463_v17, %v6472_v57  ;;  %v6495_v43 = vrot.slane %v6493_v35, 2  ;;  %v2650_v44 = vrot.slane %v10740_v22, 1 }
 0x1c1   : > { %v6454_v54 = vor.u32 %v6453_v37, %v6450_v9  ;;  %v6511_v28 = vshrl.u32 %v13269_v4, 16  ;;  %v2654_v37 = vrot.slane %v10742_v14, 1  ;;  %v10886_v35 = vmov 0  }
 0x1c2   : > { %v6498_v63 = vrot.slane %v6496_v33, 3  ;;  %v2651_v23 = vsel %vm1853_vm5, %v2648_v58, %v2650_v44  ;;  %v2653_v20 = vsel %vm1853_vm5, %v2650_v44, %v2652_v1  ;;  %10610 = vset.pattern.permute.xlu0 %v10886_v35  ;;  %10611 = vset.pattern.permute.xlu1 %v10886_v35  ;;  %v7497_v44 = vld [vmem:[%s13217_s4] sm:$0xff] }
 0x1c3   : > { %v6455_v0 = vsel %vm5984_vm6, %v6445_v30, %v6454_v54  ;;  %v6464_v49 = vsel %vm5984_vm6, %v6454_v54, %v6463_v17  ;;  %v6514_v30 = vshll.u32 %v13269_v4, 16  ;;  %v6532_v17 = vshll.u32 %v13271_v15, 16  ;;  %7535 = vperm.xlu0 %10610, %v7497_v44  }
 0x1c4   : > { %v2655_v50 = vsel %vm1853_vm5, %v2652_v1, %v2654_v37 }
 0x1c5   : > { %v6516_v9 = vrot.slane %v6514_v30, 3  ;;  %v6534_v55 = vrot.slane %v6532_v17, 3  ;;  %v13275_v30 = vld [vmem:[#allocation8_spill] sm:$0xff] }
 0x1c6   : > { %v6568_v14 = vshll.u32 %v13275_v30, 16 }
 0x1c7   : > { %9516 = vmatmul.mubr.msk.bf16.vlgmr.msra.gmra.mrb[0].mxu1 %vm481_vm1, %v2637_v12  ;;  %9852 = vmatmul.mubr.msk.bf16.gmra.mrb[32].mxu0 %vm481_vm1, %v6154_v29  ;;  %v6499_v12 = vor.u32 %v6498_v63, %v6495_v43  ;;  %v6513_v29 = vrot.slane %v6511_v28, 2  ;;  %v10747_v28 = vld [vmem:[%s11049_s21 + $0x88] sm:$0xff]  }
 0x1c8   : > { %9519 = vmatprep.mubr.msk.bf16.mxu1 %vm481_vm1, %v2639_v47  ;;  %9552 = vmatpush3.bf16.msra.mxu1 %v3120_v45  ;;  %v6504_v47 = vrot.slane %v6502_v2, 2  ;;  %v6507_v45 = vrot.slane %v6505_v25, 3  ;;  %v13274_v25 = vld [vmem:[#allocation7_spill] sm:$0xff]  ;;  %v6570_v56 = vrot.slane %v6568_v14, 3 }
 0x1c9   : > { %10589 = vmatprep.subr.msk.bf16.mxu1 %vm536_vm0, %v12004_v39  ;;  %9857 = vmatprep.mubr.msk.bf16.mxu0 %vm481_vm1, %v6446_v24  ;;  %v6500_v42 = vsel %vm5984_vm6, %v6490_v36, %v6499_v12  ;;  %v6517_v54 = vor.u32 %v6516_v9, %v6513_v29  ;;  %v7499_v36 = vld [vmem:[%s13217_s4 + $0x10] sm:$0xff] }
 0x1ca   : > { %v6508_v24 = vor.u32 %v6507_v45, %v6504_v47  ;;  %7545 = vperm.xlu1 %10611, %v7499_v36   ;;  %v10748_v45 = vld [vmem:[%s11049_s21 + $0x90] sm:$0xff]  }
 0x1cc   : > { %v6509_v3 = vsel %vm5984_vm6, %v6499_v12, %v6508_v24  ;;  %v6559_v12 = vshll.u32 %v13274_v25, 16 }
 0x1ce   : > { %v6561_v29 = vrot.slane %v6559_v12, 3  ;;  %7550 = vperm.xlu1 %10611, %v7500_v31   ;;  %v10823_v12 = vld [vmem:[%s11049_s21 + $0x14] sm:$0xf] }
 0x1cf   : > { %9520 = vmatmul.mubr.msk.bf16.gmra.mrb[4].mxu1 %vm481_vm1, %v2641_v8  ;;  %9858 = vmatmul.mubr.msk.bf16.vlgmr.msra.gmra.mrb[0].mxu0 %vm481_vm1, %v6455_v0  ;;  %v6529_v8 = vshrl.u32 %v13271_v15, 16  ;;  %v6518_v0 = vsel %vm5984_vm6, %v6508_v24, %v6517_v54 }
 0x1d0   : > { %9523 = vmatprep.mubr.msk.bf16.mxu1 %vm481_vm1, %v2643_v11  ;;  %9894 = vmatpush3.bf16.msra.mxu0 %v6970_v52  ;;  %v6522_v11 = vrot.slane %v6520_v32, 2  ;;  %v2656_v52 = vrot.slane %v10743_v48, 1  ;;  %v2666_v32 = vrot.slane %v10748_v45, 1  ;;  %v13276_v48 = vld [vmem:[#allocation9_spill] sm:$0xff] }
 0x1d1   : > { %9861 = vmatprep.mubr.msk.bf16.mxu0 %vm481_vm1, %v6464_v49  ;;  %10598 = vmatprep.subr.msk.bf16.mxu0 %vm536_vm0, %v12031_v60  ;;  %v6531_v26 = vrot.slane %v6529_v8, 2  ;;  %v2658_v49 = vrot.slane %v10744_v16, 1  ;;  %v6574_v15 = vshrl.u32 %v13276_v48, 16  ;;  %v6577_v8 = vshll.u32 %v13276_v48, 16  ;;  %v13277_v16 = vld [vmem:[#allocation10_spill] sm:$0xff] }
 0x1d2   : > { %v6526_v41 = vor.u32 %v6525_v21, %v6522_v11  ;;  %v2657_v57 = vsel %vm1853_vm5, %v2654_v37, %v2656_v52  ;;  %v2664_v37 = vrot.slane %v10747_v28, 1  ;;  %v6586_v11 = vshll.u32 %v13277_v16, 16  ;;  %v7502_v21 = vld [vmem:[%s13217_s4 + $0x28] sm:$0xff]  ;;  %v7508_v28 = vld [vmem:[%s13217_s4 + $0x58] sm:$0xff]  ;;  %v10825_v48 = vld [vmem:[%s11049_s21 + $0x20] sm:$0xff]  }
 0x1d3   : > { %v6535_v13 = vor.u32 %v6534_v55, %v6531_v26  ;;  %v2659_v33 = vsel %vm1853_vm5, %v2656_v52, %v2658_v49  ;;  %v10749_v52 = vld [vmem:[%s10961_s14 + $0x8] sm:$0xfe]   ;;  %v10750_v26 = vld [vmem:[%s10961_s14 + $0x10] sm:$0xff]   ;;  %v6579_v18 = vrot.slane %v6577_v8, 3  ;;  %7560 = vperm.xlu1 %10611, %v7502_v21   ;;  %v10758_v21 = vld [vmem:[%s10961_s14 + $0x40] sm:$0xff]  }
 0x1d4   : > { %v6527_v22 = vsel %vm5984_vm6, %v6517_v54, %v6526_v41  ;;  %v7503_v55 = vld [vmem:[%s13217_s4 + $0x30] sm:$0xff] }
 0x1d5   : > { %v6536_v62 = vsel %vm5984_vm6, %v6526_v41, %v6535_v13  ;;  %v6576_v41 = vrot.slane %v6574_v15, 2  ;;  %v6881_v15 = vrot.slane %v10825_v48, 3 }
 0x1d7   : > { %9524 = vmatmul.mubr.msk.bf16.gmra.mrb[8].mxu1 %vm481_vm1, %v2645_v27  ;;  %9862 = vmatmul.mubr.msk.bf16.gmra.mrb[4].mxu0 %vm481_vm1, %v6473_v7  ;;  %v13273_v27 = vld [vmem:[#allocation6_spill] sm:$0xff]  ;;  %v6540_v7 = vrot.slane %v6538_v5, 2 }
 0x1d8   : > { %9527 = vmatprep.mubr.msk.bf16.mxu1 %vm481_vm1, %v2647_v59  ;;  %9865 = vmatprep.mubr.msk.bf16.mxu0 %vm481_vm1, %v6482_v19  ;;  %v6547_v46 = vshrl.u32 %v13273_v27, 16  ;;  %v6550_v38 = vshll.u32 %v13273_v27, 16  ;;  %v10746_v59 = vld [vmem:[%s11049_s21 + $0x80] sm:$0xff]   ;;  %v2660_v19 = vrot.slane %v10745_v51, 1  ;;  %v3030_v51 = vrot.slane %v10749_v52, 1 }
 0x1d9   : > { %v2662_v63 = vrot.slane %v10746_v59, 1  ;;  %v6544_v2 = vor.u32 %v6543_v34, %v6540_v7  ;;  %v12141_v5 = vld [vmem:[%s10961_s14 + $0xa0] ss:$0 sps:$4 sm:$0x33]   ;;  %v3031_v27 = vrot.slane %v10750_v26, 1  ;;  %v10752_v34 = vld [vmem:[%s10961_s14 + $0x18] sm:$0xff]  }
 0x1da   : > { %v6549_v58 = vrot.slane %v6547_v46, 2  ;;  %v6552_v43 = vrot.slane %v6550_v38, 3  ;;  %v2661_v53 = vsel %vm1853_vm5, %v2658_v49, %v2660_v19  ;;  %v7504_v46 = vld [vmem:[%s13217_s4 + $0x38] sm:$0xff]  ;;  %v7505_v38 = vld [vmem:[%s13217_s4 + $0x40] sm:$0xff]  ;;  %v6592_v59 = vshrl.u32 %v12141_v5, 16 }
 0x1db   : > { %v2663_v47 = vsel %vm1853_vm5, %v2660_v19, %v2662_v63  ;;  %v2665_v17 = vsel %vm1853_vm5, %v2662_v63, %v2664_v37  ;;  %7570 = vperm.xlu1 %10611, %v7504_v46   ;;  %v3032_v19 = vsel %vm1853_vm5, %v3030_v51, %v3031_v27  ;;  %v7507_v63 = vld [vmem:[%s13217_s4 + $0x50] sm:$0xff]  ;;  %v7282_v26 = vsel %vm536_vm0, %v12031_v60, 0  ;;  %v10828_v51 = vld [vmem:[%s11049_s21 + $0x38] sm:$0xff]   ;;  %v10759_v46 = vld [vmem:[%s10961_s14 + $0x48] sm:$0xff]  }
 0x1dc   : > { %v6553_v4 = vor.u32 %v6552_v43, %v6549_v58  ;;  %v6870_v58 = vld [vmem:[%s11049_s21 + $0x10] sm:$0x8]  ;;  %v10754_v43 = vld [vmem:[%s10961_s14 + $0x20] sm:$0xff]   ;;  %v6594_v36 = vrot.slane %v6592_v59, 2  ;;  %v7518_v59 = vld [vmem:[%s13217_s4 + $0xa8] sm:$0xff] }
 0x1dd   : > { %v10827_v60 = vld [vmem:[%s11049_s21 + $0x30] sm:$0xff]  }
 0x1de   : > { %v6554_v9 = vsel %vm5984_vm6, %v6544_v2, %v6553_v4 }
 0x1df   : > { %9528 = vmatmul.mubr.msk.bf16.gmra.mrb[12].mxu1 %vm481_vm1, %v2649_v40  ;;  %9866 = vmatmul.mubr.msk.bf16.gmra.mrb[8].mxu0 %vm481_vm1, %v6491_v6  ;;  %v6556_v40 = vshrl.u32 %v13274_v25, 16  ;;  %v7498_v6 = vld [vmem:[%s13217_s4 + $0x8] sm:$0xff] }
 0x1e0   : > { %9531 = vmatprep.mubr.msk.bf16.mxu1 %vm481_vm1, %v2651_v23  ;;  %9869 = vmatprep.mubr.msk.bf16.mxu0 %vm481_vm1, %v6500_v42  ;;  %v6565_v23 = vshrl.u32 %v13275_v30, 16  ;;  %v6545_v42 = vsel %vm5984_vm6, %v6535_v13, %v6544_v2  ;;  %v6588_v13 = vrot.slane %v6586_v11, 3  ;;  %v7509_v30 = vld [vmem:[%s13217_s4 + $0x60] sm:$0xff] }
 0x1e1   : > { %v6558_v1 = vrot.slane %v6556_v40, 2  ;;  %7540 = vperm.xlu0 %10610, %v7498_v6   ;;  %v3033_v40 = vrot.slane %v10752_v34, 1 }
 0x1e2   : > { %v6567_v24 = vrot.slane %v6565_v23, 2 }
 0x1e3   : > { %v6562_v54 = vor.u32 %v6561_v29, %v6558_v1  ;;  %v3034_v14 = vsel %vm1853_vm5, %v3031_v27, %v3033_v40  ;;  %v7510_v1 = vld [vmem:[%s13217_s4 + $0x68] sm:$0xff]  ;;  %v6887_v27 = vrot.slane %v10828_v51, 3  ;;  %v10835_v51 = vld [vmem:[%s11049_s21 + $0x70] sm:$0xff]  }
 0x1e5   : > { %v6563_v49 = vsel %vm5984_vm6, %v6553_v4, %v6562_v54  ;;  %v3035_v4 = vrot.slane %v10754_v43, 1  ;;  %v7521_v43 = vld [vmem:[%s13217_s4 + $0xc0] sm:$0xff] }
 0x1e7   : > { %9532 = vmatmul.mubr.msk.bf16.gmra.mrb[16].mxu1 %vm481_vm1, %v2653_v20  ;;  %9870 = vmatmul.mubr.msk.bf16.gmra.mrb[12].mxu0 %vm481_vm1, %v6509_v3  ;;  %v7501_v20 = vld [vmem:[%s13217_s4 + $0x20] sm:$0xff]  ;;  %v6583_v3 = vshrl.u32 %v13277_v16, 16  ;;  %v3036_v29 = vsel %vm1853_vm5, %v3033_v40, %v3035_v4  ;;  %v10757_v16 = vld [vmem:[%s10961_s14 + $0x38] sm:$0xff]  }
 0x1e8   : > { %9535 = vmatprep.mubr.msk.bf16.mxu1 %vm481_vm1, %v2655_v50  ;;  %9873 = vmatprep.mubr.msk.bf16.mxu0 %vm481_vm1, %v6518_v0  ;;  %v6571_v50 = vor.u32 %v6570_v56, %v6567_v24  ;;  %v2667_v0 = vsel %vm1853_vm5, %v2664_v37, %v2666_v32  ;;  %v10756_v37 = vld [vmem:[%s10961_s14 + $0x30] sm:$0xff]   ;;  %v10761_v40 = vld [vmem:[%s10961_s14 + $0x58] sm:$0xff]  }
 0x1e9   : > { %7555 = vperm.xlu0 %10610, %v7501_v20   ;;  %v7511_v24 = vld [vmem:[%s13217_s4 + $0x70] sm:$0xff]  ;;  %v7512_v20 = vld [vmem:[%s13217_s4 + $0x78] sm:$0xff] }
 0x1ea   : > { %v6572_v61 = vsel %vm5984_vm6, %v6562_v54, %v6571_v50  ;;  %v7513_v54 = vld [vmem:[%s13217_s4 + $0x80] sm:$0xff] }
 0x1ed   : > { %7565 = vperm.xlu0 %10610, %v7503_v55  }
 0x1ef   : > { %9536 = vmatmul.mubr.msk.bf16.gmra.mrb[20].mxu1 %vm481_vm1, %v2657_v57  ;;  %9874 = vmatmul.mubr.msk.bf16.gmra.mrb[16].mxu0 %vm481_vm1, %v6527_v22  ;;  %v6585_v57 = vrot.slane %v6583_v3, 2  ;;  %v6595_v22 = vshll.u32 %v12141_v5, 16  ;;  %v7514_v3 = vld [vmem:[%s13217_s4 + $0x88] sm:$0xff] }
 0x1f0   : > { %9539 = vmatprep.mubr.msk.bf16.mxu1 %vm481_vm1, %v2659_v33  ;;  %9877 = vmatprep.mubr.msk.bf16.mxu0 %vm481_vm1, %v6536_v62  ;;  %v6580_v33 = vor.u32 %v6579_v18, %v6576_v41  ;;  %v7506_v62 = vld [vmem:[%s13217_s4 + $0x48] sm:$0xff]  ;;  %v3043_v41 = vrot.slane %v10758_v21, 1  ;;  %v7516_v18 = vld [vmem:[%s13217_s4 + $0x98] sm:$0xff] }
 0x1f1   : > { %v6589_v7 = vor.u32 %v6588_v13, %v6585_v57  ;;  %7575 = vperm.xlu0 %10610, %v7505_v38   ;;  %v6597_v2 = vrot.slane %v6595_v22, 3  ;;  %7580 = vperm.xlu1 %10611, %v7506_v62   ;;  %v6885_v57 = vrot.slane %v10827_v60, 3  ;;  %v7519_v22 = vld [vmem:[%s13217_s4 + $0xb0] sm:$0xff]  ;;  %v3045_v62 = vrot.slane %v10759_v46, 1 }
 0x1f2   : > { %v6581_v44 = vsel %vm5984_vm6, %v6571_v50, %v6580_v33 }
 0x1f3   : > { %v6590_v25 = vsel %vm5984_vm6, %v6580_v33, %v6589_v7  ;;  %v6598_v23 = vor.u32 %v6597_v2, %v6594_v36  ;;  %v10760_v33 = vld [vmem:[%s10961_s14 + $0x50] sm:$0xff]   ;;  %v6888_v34 = vsel %vm6877_vm7, %v6885_v57, %v6887_v27  ;;  %v3046_v36 = vsel %vm1853_vm5, %v3043_v41, %v3045_v62  ;;  %v10830_v2 = vld [vmem:[%s11049_s21 + $0x48] sm:$0xff]  }
 0x1f5   : > { %7585 = vperm.xlu0 %10610, %v7507_v63   ;;  %7590 = vperm.xlu1 %10611, %v7508_v28   ;;  %v6599_v56 = vsel %vm5984_vm6, %v6589_v7, %v6598_v23  ;;  %v10829_v63 = vld [vmem:[%s11049_s21 + $0x40] sm:$0xff]   ;;  %v7523_v28 = vld [vmem:[%s13217_s4 + $0xd0] sm:$0xff] }
 0x1f7   : > { %9540 = vmatmul.mubr.msk.bf16.gmra.mrb[24].mxu1 %vm481_vm1, %v2661_v53  ;;  %9878 = vmatmul.mubr.msk.bf16.gmra.mrb[20].mxu0 %vm481_vm1, %v6545_v42  ;;  %v8830_v53 = vcombine.low %v6870_v58, %v10823_v12  ;;  %v10755_v42 = vld [vmem:[%s10961_s14 + $0x28] sm:$0xff]   ;;  %v7520_v58 = vld [vmem:[%s13217_s4 + $0xb8] sm:$0xff] }
 0x1f8   : > { %9543 = vmatprep.mubr.msk.bf16.mxu1 %vm481_vm1, %v2663_v47  ;;  %9881 = vmatprep.mubr.msk.bf16.mxu0 %vm481_vm1, %v6554_v9  ;;  %v10824_v47 = vld [vmem:[%s11049_s21 + $0x18] sm:$0xff]   ;;  %v3726_v9 = vsel %vm536_vm0, %v12004_v39, 0  ;;  %v3037_v31 = vrot.slane %v10755_v42, 1  ;;  %v3039_v39 = vrot.slane %v10756_v37, 1  ;;  %v10831_v42 = vld [vmem:[%s11049_s21 + $0x50] sm:$0xff]  }
 0x1f9   : > { %v6878_v6 = vrot.slane %v8830_v53, 3  ;;  %v6879_v45 = vrot.slane %v10824_v47, 3  ;;  %7595 = vperm.xlu0 %10610, %v7509_v30   ;;  %7600 = vperm.xlu1 %10611, %v7510_v1   ;;  %v10762_v53 = vld [vmem:[%s10961_s14 + $0x60] sm:$0xff]   ;;  %v7524_v47 = vld [vmem:[%s13217_s4 + $0xd8] sm:$0xff]  ;;  %v6893_v1 = vrot.slane %v10831_v42, 3 }
 0x1fa   : > { %v3038_v8 = vsel %vm1853_vm5, %v3035_v4, %v3037_v31  ;;  %v3040_v11 = vsel %vm1853_vm5, %v3037_v31, %v3039_v39  ;;  %v7522_v4 = vld [vmem:[%s13217_s4 + $0xc8] sm:$0xff] }
 0x1fb   : > { %v6882_v52 = vsel %vm6877_vm7, %v6879_v45, %v6881_v15  ;;  %v7526_v31 = vld [vmem:[%s13217_s4 + $0xe8] sm:$0xff] }
 0x1fd   : > { %7605 = vperm.xlu0 %10610, %v7511_v24   ;;  %7610 = vperm.xlu1 %10611, %v7512_v20   ;;  %v10763_v24 = vld [vmem:[%s10961_s14 + $0x68] sm:$0xff]  }
 0x1fe   : > { %v3053_v48 = vrot.slane %v10763_v24, 1 }
 0x1ff   : > { %9544 = vmatmul.mubr.msk.bf16.gmra.mrb[28].mxu1 %vm481_vm1, %v2665_v17  ;;  %9882 = vmatmul.mubr.msk.bf16.gmra.mrb[24].mxu0 %vm481_vm1, %v6563_v49  ;;  %v10826_v17 = vld [vmem:[%s11049_s21 + $0x28] sm:$0xff]   ;;  %v3041_v49 = vrot.slane %v10757_v16, 1 }
 0x200   : > { %9547 = vmatprep.mubr.msk.bf16.mxu1 %vm481_vm1, %v2667_v0  ;;  %9885 = vmatprep.mubr.msk.bf16.mxu0 %vm481_vm1, %v6572_v61  ;;  %v6883_v50 = vrot.slane %v10826_v17, 3  ;;  %v7515_v0 = vld [vmem:[%s13217_s4 + $0x90] sm:$0xff]  ;;  %v7517_v61 = vld [vmem:[%s13217_s4 + $0xa0] sm:$0xff] }
 0x201   : > { %7615 = vperm.xlu0 %10610, %v7513_v54   ;;  %7620 = vperm.xlu1 %10611, %v7514_v3   ;;  %v3042_v13 = vsel %vm1853_vm5, %v3039_v39, %v3041_v49  ;;  %v3044_v38 = vsel %vm1853_vm5, %v3041_v49, %v3043_v41  ;;  %v7527_v39 = vld [vmem:[%s13217_s4 + $0xf0] sm:$0xff]  ;;  %v7529_v17 = vld [vmem:[%s13217_s4 + $0x100] sm:$0xff] }
 0x202   : > { %v6884_v55 = vsel %vm6877_vm7, %v6881_v15, %v6883_v50  ;;  %v6886_v7 = vsel %vm6877_vm7, %v6883_v50, %v6885_v57  ;;  %v10833_v50 = vld [vmem:[%s11049_s21 + $0x60] sm:$0xff]   ;;  %v7531_v49 = vld [vmem:[%s13217_s4 + $0x110] sm:$0xff]  ;;  %v7532_v57 = vld [vmem:[%s13217_s4 + $0x118] sm:$0x3f] }
 0x203   : > { %v6897_v16 = vrot.slane %v10833_v50, 3 }
 0x205   : > { %7625 = vperm.xlu0 %10610, %v7515_v0   ;;  %7630 = vperm.xlu1 %10611, %v7516_v18   ;;  %v10765_v0 = vld [vmem:[%s10961_s14 + $0x78] sm:$0xff]  }
 0x207   : > { %9548 = vmatmul.mubr.msk.bf16.gmra.mrb[32].mxu1 %vm481_vm1, %v2666_v32  ;;  %9886 = vmatmul.mubr.msk.bf16.gmra.mrb[28].mxu0 %vm481_vm1, %v6581_v44  ;;  %v6880_v32 = vsel %vm6877_vm7, %v6878_v6, %v6879_v45  ;;  %v6889_v44 = vrot.slane %v10829_v63, 3  ;;  %v3051_v6 = vrot.slane %v10762_v53, 1  ;;  %v7525_v45 = vld [vmem:[%s13217_s4 + $0xe0] sm:$0xff] }
 0x208   : > { %9553 = vmatprep.mubr.msk.bf16.mxu1 %vm481_vm1, %v3032_v19  ;;  %9889 = vmatprep.mubr.msk.bf16.mxu0 %vm481_vm1, %v6590_v25  ;;  %v3047_v19 = vrot.slane %v10760_v33, 1  ;;  %v6891_v25 = vrot.slane %v10830_v2, 3  ;;  %v10838_v2 = vld [vmem:[%s11049_s21 + $0x10] sm:$0xff]  }
 0x209   : > { %7635 = vperm.xlu0 %10610, %v7517_v61   ;;  %7640 = vperm.xlu1 %10611, %v7518_v59   ;;  %v6890_v30 = vsel %vm6877_vm7, %v6887_v27, %v6889_v44  ;;  %v3054_v3 = vsel %vm1853_vm5, %v3051_v6, %v3053_v48  ;;  %v3057_v61 = vrot.slane %v10765_v0, 1  ;;  %v6901_v27 = vrot.slane %v10835_v51, 3  ;;  %v10767_v59 = vld [vmem:[%s10961_s14 + $0x88] sm:$0xff]  }
 0x20a   : > { %v3048_v12 = vsel %vm1853_vm5, %v3045_v62, %v3047_v19  ;;  %v6892_v23 = vsel %vm6877_vm7, %v6889_v44, %v6891_v25  ;;  %v6894_v20 = vsel %vm6877_vm7, %v6891_v25, %v6893_v1  ;;  %v3514_v25 = vshrl.u32 %v10838_v2, 16 }
 0x20b   : > { %v6913_v51 = vrot.slane %v11970_v10, 3 }
 0x20d   : > { %7645 = vperm.xlu0 %10610, %v7519_v22   ;;  %7650 = vperm.xlu1 %10611, %v7520_v58   ;;  %v10768_v22 = vld [vmem:[%s10961_s14 + $0x90] sm:$0xff]  }
 0x20e   : > { %v3063_v63 = vrot.slane %v10768_v22, 1 }
 0x20f   : > { %9554 = vmatmul.mubr.msk.bf16.vlgmr.msra.gmra.mrb[0].mxu1 %vm481_vm1, %v3034_v14  ;;  %9890 = vmatmul.mubr.msk.bf16.gmra.mrb[32].mxu0 %vm481_vm1, %v6599_v56  ;;  %v3049_v14 = vrot.slane %v10761_v40, 1  ;;  %v3517_v40 = vshll.u32 %v10838_v2, 16  ;;  %v10850_v2 = vld [vmem:[%s11049_s21 + $0x40] sm:$0xff]  }
 0x210   : > { %9557 = vmatprep.mubr.msk.bf16.mxu1 %vm481_vm1, %v3036_v29  ;;  %9590 = vmatpush3.bf16.msra.mxu1 %v3726_v9  ;;  %v10832_v9 = vld [vmem:[%s11049_s21 + $0x58] sm:$0xff]  }
 0x211   : > { %9895 = vmatprep.mubr.msk.bf16.mxu0 %vm481_vm1, %v6880_v32  ;;  %7655 = vperm.xlu0 %10610, %v7521_v43   ;;  %v3050_v29 = vsel %vm1853_vm5, %v3047_v19, %v3049_v14  ;;  %v6895_v37 = vrot.slane %v10832_v9, 3  ;;  %v3052_v56 = vsel %vm1853_vm5, %v3049_v14, %v3051_v6  ;;  %v10764_v32 = vld [vmem:[%s10961_s14 + $0x70] sm:$0xff]   ;;  %v3061_v43 = vrot.slane %v10767_v59, 1 }
 0x212   : > { %7660 = vperm.xlu1 %10611, %v7522_v4   ;;  %v3055_v15 = vrot.slane %v10764_v32, 1  ;;  %v10842_v32 = vld [vmem:[%s11049_s21 + $0x20] sm:$0xff]  }
 0x213   : > { %v6896_v54 = vsel %vm6877_vm7, %v6893_v1, %v6895_v37  ;;  %v6898_v41 = vsel %vm6877_vm7, %v6895_v37, %v6897_v16  ;;  %v10841_v1 = vld [vmem:[%s11049_s21 + $0x18] sm:$0xff]  }
 0x214   : > { %v3058_v46 = vsel %vm1853_vm5, %v3055_v15, %v3057_v61  ;;  %v3526_v9 = vshll.u32 %v10841_v1, 16 }
 0x215   : > { %7665 = vperm.xlu0 %10610, %v7523_v28   ;;  %v10840_v28 = vld [vmem:[%s11049_s21 + $0x88] sm:$0xff]  }
 0x216   : > { %7670 = vperm.xlu1 %10611, %v7524_v47   ;;  %v3516_v47 = vrot.slane %v3514_v25, 1  ;;  %v3568_v25 = vshrl.u32 %v10850_v2, 16 }
 0x217   : > { %9558 = vmatmul.mubr.msk.bf16.gmra.mrb[4].mxu1 %vm481_vm1, %v3038_v8  ;;  %9896 = vmatmul.mubr.msk.bf16.vlgmr.msra.gmra.mrb[0].mxu0 %vm481_vm1, %v6882_v52  ;;  %v7528_v8 = vld [vmem:[%s13217_s4 + $0xf8] sm:$0xff]  ;;  %v3056_v52 = vsel %vm1853_vm5, %v3053_v48, %v3055_v15  ;;  %v3528_v15 = vrot.slane %v3526_v9, 2  ;;  %v10853_v9 = vld [vmem:[%s11049_s21 + $0x48] sm:$0xff]  }
 0x218   : > { %9561 = vmatprep.mubr.msk.bf16.mxu1 %vm481_vm1, %v3040_v11  ;;  %9932 = vmatpush3.bf16.msra.mxu0 %v7282_v26  ;;  %v10834_v11 = vld [vmem:[%s11049_s21 + $0x68] sm:$0xff]   ;;  %v10766_v26 = vld [vmem:[%s10961_s14 + $0x80] sm:$0xff]  }
 0x219   : > { %9899 = vmatprep.mubr.msk.bf16.mxu0 %vm481_vm1, %v6884_v55  ;;  %7675 = vperm.xlu0 %10610, %v7525_v45   ;;  %v6899_v21 = vrot.slane %v10834_v11, 3  ;;  %v7530_v55 = vld [vmem:[%s13217_s4 + $0x108] sm:$0xff]  ;;  %v3059_v60 = vrot.slane %v10766_v26, 1  ;;  %v3519_v45 = vrot.slane %v3517_v40, 2  ;;  %v10845_v26 = vld [vmem:[%s10961_s14 + $0x14] sm:$0xf] }
 0x21a   : > { %7680 = vperm.xlu1 %10611, %v7526_v31   ;;  %v3532_v31 = vshrl.u32 %v10842_v32, 16  ;;  %v3571_v40 = vshll.u32 %v10850_v2, 16 }
 0x21b   : > { %v6900_v18 = vsel %vm6877_vm7, %v6897_v16, %v6899_v21  ;;  %v3060_v62 = vsel %vm1853_vm5, %v3057_v61, %v3059_v60  ;;  %v6902_v19 = vsel %vm6877_vm7, %v6899_v21, %v6901_v27  ;;  %v3062_v4 = vsel %vm1853_vm5, %v3059_v60, %v3061_v43  ;;  %v6871_v16 = vld [vmem:[%s10961_s14 + $0x10] sm:$0x8] }
 0x21c   : > { %v10847_v60 = vld [vmem:[%s11049_s21 + $0x30] sm:$0xff]  }
 0x21d   : > { %7685 = vperm.xlu0 %10610, %v7527_v39   ;;  %v3535_v39 = vshll.u32 %v10842_v32, 16  ;;  %v10854_v32 = vld [vmem:[%s11049_s21 + $0x50] sm:$0xff]  }
 0x21e   : > { %7690 = vperm.xlu1 %10611, %v7528_v8   ;;  %v10844_v8 = vld [vmem:[%s11049_s21 + $0x98] sm:$0xff]  }
 0x21f   : > { %9562 = vmatmul.mubr.msk.bf16.gmra.mrb[8].mxu1 %vm481_vm1, %v3042_v13  ;;  %9900 = vmatmul.mubr.msk.bf16.gmra.mrb[4].mxu0 %vm481_vm1, %v6886_v7  ;;  %v3335_v13 = vld [vmem:[%s11049_s21 + $0x8] sm:$0xe]  ;;  %v10837_v7 = vld [vmem:[%s11049_s21 + $0xc] sm:$0xf]  ;;  %v3537_v11 = vrot.slane %v3535_v39, 2  ;;  %v3589_v39 = vshll.u32 %v10854_v32, 16 }
 0x220   : > { %9565 = vmatprep.mubr.msk.bf16.mxu1 %vm481_vm1, %v3044_v38  ;;  %9903 = vmatprep.mubr.msk.bf16.mxu0 %vm481_vm1, %v6888_v34  ;;  %v10836_v38 = vld [vmem:[%s11049_s21 + $0x78] sm:$0xff]   ;;  %v8598_v34 = vcombine.low %v3335_v13, %v10837_v7  ;;  %v3553_v13 = vshll.u32 %v10847_v60, 16 }
 0x221   : > { %7695 = vperm.xlu0 %10610, %v7529_v17   ;;  %v6903_v33 = vrot.slane %v10836_v38, 3  ;;  %v6911_v17 = vrot.slane %v10844_v8, 3  ;;  %v10848_v38 = vld [vmem:[%s10961_s14 + $0x18] sm:$0xff]  }
 0x222   : > { %7700 = vperm.xlu1 %10611, %v7530_v55   ;;  %v3506_v44 = vshrl.u32 %v8598_v34, 16  ;;  %v8850_v55 = vcombine.low %v6871_v16, %v10845_v26  ;;  %v10857_v26 = vld [vmem:[%s11049_s21 + $0x58] sm:$0xff]  }
 0x223   : > { %v6904_v58 = vsel %vm6877_vm7, %v6901_v27, %v6903_v33 }
 0x224   : > { %v3508_v14 = vrot.slane %v3506_v44, 1 }
 0x225   : > { %7705 = vperm.xlu0 %10610, %v7531_v49   ;;  %v10846_v49 = vld [vmem:[%s11049_s21 + $0x28] sm:$0xff]  }
 0x226   : > { %7710 = vperm.xlu1 %10611, %v7532_v57   ;;  %v3550_v57 = vshrl.u32 %v10847_v60, 16 }
 0x227   : > { %9566 = vmatmul.mubr.msk.bf16.gmra.mrb[12].mxu1 %vm481_vm1, %v3046_v36  ;;  %9904 = vmatmul.mubr.msk.bf16.gmra.mrb[8].mxu0 %vm481_vm1, %v6890_v30  ;;  %v3509_v36 = vshll.u32 %v8598_v34, 16  ;;  %v6907_v30 = vrot.slane %v10840_v28, 3  ;;  %v10852_v28 = vld [vmem:[%s10961_s14 + $0x28] sm:$0xff]  }
 0x228   : > { %9569 = vmatprep.mubr.msk.bf16.mxu1 %vm481_vm1, %v3048_v12  ;;  %9907 = vmatprep.mubr.msk.bf16.mxu0 %vm481_vm1, %v6892_v23  ;;  %v10839_v12 = vld [vmem:[%s11049_s21 + $0x80] sm:$0xff]   ;;  %v3064_v23 = vsel %vm1853_vm5, %v3061_v43, %v3063_v63  ;;  %v3552_v34 = vrot.slane %v3550_v57, 1  ;;  %v10849_v43 = vld [vmem:[%s11049_s21 + $0x38] sm:$0xff]  }
 0x229   : > { %v6905_v53 = vrot.slane %v10839_v12, 3  ;;  %v3511_v6 = vrot.slane %v3509_v36, 2  ;;  %v3562_v44 = vshll.u32 %v10849_v43, 16  ;;  %v10851_v12 = vld [vmem:[%s10961_s14 + $0x20] sm:$0xff]  }
 0x22a   : > { %v10859_v57 = vld [vmem:[%s10961_s14 + $0x40] sm:$0xff]  }
 0x22b   : > { %v6906_v42 = vsel %vm6877_vm7, %v6903_v33, %v6905_v53  ;;  %v6908_v37 = vsel %vm6877_vm7, %v6905_v53, %v6907_v30  ;;  %v3512_v24 = vor.u32 %v3511_v6, %v3508_v14  ;;  %v7191_v33 = vrot.slane %v10848_v38, 3 }
 0x22c   : > { %v7193_v53 = vrot.slane %v10851_v12, 3  ;;  %v3564_v14 = vrot.slane %v3562_v44, 2  ;;  %v10862_v44 = vld [vmem:[%s11049_s21 + $0x70] sm:$0xff]  }
 0x22d   : > { %v3625_v2 = vshll.u32 %v10862_v44, 16 }
 0x22f   : > { %9570 = vmatmul.mubr.msk.bf16.gmra.mrb[16].mxu1 %vm481_vm1, %v3050_v29  ;;  %9908 = vmatmul.mubr.msk.bf16.gmra.mrb[12].mxu0 %vm481_vm1, %v6894_v20  ;;  %v3523_v29 = vshrl.u32 %v10841_v1, 16  ;;  %v10843_v20 = vld [vmem:[%s11049_s21 + $0x90] sm:$0xff]  }
 0x230   : > { %9573 = vmatprep.mubr.msk.bf16.mxu1 %vm481_vm1, %v3052_v56  ;;  %9911 = vmatprep.mubr.msk.bf16.mxu0 %vm481_vm1, %v6896_v54  ;;  %v3520_v56 = vor.u32 %v3519_v45, %v3516_v47  ;;  %v6909_v54 = vrot.slane %v10843_v20, 3  ;;  %v3570_v47 = vrot.slane %v3568_v25, 1  ;;  %v3573_v45 = vrot.slane %v3571_v40, 2  ;;  %v10855_v20 = vld [vmem:[%s10961_s14 + $0x30] sm:$0xff]  }
 0x231   : > { %v3525_v48 = vrot.slane %v3523_v29, 1  ;;  %v10863_v25 = vld [vmem:[%s10961_s14 + $0x50] sm:$0xff]  }
 0x232   : > { %v3521_v50 = vsel %vm3504_vm2, %v3512_v24, %v3520_v56  ;;  %v6910_v21 = vsel %vm6877_vm7, %v6907_v30, %v6909_v54  ;;  %v7195_v30 = vrot.slane %v10852_v28, 3  ;;  %v3580_v24 = vshll.u32 %v10853_v9, 16 }
 0x233   : > { %v3529_v0 = vor.u32 %v3528_v15, %v3525_v48  ;;  %v10856_v15 = vld [vmem:[%s10961_s14 + $0x38] sm:$0xff]   ;;  %v7205_v40 = vrot.slane %v10863_v25, 3 }
 0x234   : > { %v7196_v1 = vsel %vm6877_vm7, %v7193_v53, %v7195_v30  ;;  %v7199_v8 = vrot.slane %v10856_v15, 3 }
 0x235   : > { %v3530_v27 = vsel %vm3504_vm2, %v3520_v56, %v3529_v0  ;;  %v3574_v56 = vor.u32 %v3573_v45, %v3570_v47 }
 0x237   : > { %9574 = vmatmul.mubr.msk.bf16.gmra.mrb[20].mxu1 %vm481_vm1, %v3054_v3  ;;  %9912 = vmatmul.mubr.msk.bf16.gmra.mrb[16].mxu0 %vm481_vm1, %v6898_v41  ;;  %v3534_v3 = vrot.slane %v3532_v31, 1  ;;  %v3541_v41 = vshrl.u32 %v10846_v49, 16  ;;  %v3586_v31 = vshrl.u32 %v10854_v32, 16 }
 0x238   : > { %9577 = vmatprep.mubr.msk.bf16.mxu1 %vm481_vm1, %v3056_v52  ;;  %9915 = vmatprep.mubr.msk.bf16.mxu0 %vm481_vm1, %v6900_v18  ;;  %v6912_v52 = vsel %vm6877_vm7, %v6909_v54, %v6911_v17  ;;  %v3544_v18 = vshll.u32 %v10846_v49, 16  ;;  %v7197_v54 = vrot.slane %v10855_v20, 3  ;;  %v3598_v49 = vshll.u32 %v10857_v26, 16 }
 0x239   : > { %v3538_v61 = vor.u32 %v3537_v11, %v3534_v3  ;;  %v3543_v59 = vrot.slane %v3541_v41, 1  ;;  %v3588_v3 = vrot.slane %v3586_v31, 1  ;;  %v3591_v11 = vrot.slane %v3589_v39, 2  ;;  %v10867_v31 = vld [vmem:[%s10961_s14 + $0x60] sm:$0xff]  }
 0x23a   : > { %v3546_v22 = vrot.slane %v3544_v18, 2  ;;  %v10858_v18 = vld [vmem:[%s11049_s21 + $0x60] sm:$0xff]   ;;  %v7209_v39 = vrot.slane %v10867_v31, 3 }
 0x23b   : > { %v3539_v7 = vsel %vm3504_vm2, %v3529_v0, %v3538_v61  ;;  %v7200_v0 = vsel %vm6877_vm7, %v7197_v54, %v7199_v8  ;;  %v3592_v41 = vor.u32 %v3591_v11, %v3588_v3  ;;  %v3607_v60 = vshll.u32 %v10858_v18, 16 }
 0x23f   : > { %9578 = vmatmul.mubr.msk.bf16.gmra.mrb[24].mxu1 %vm481_vm1, %v3058_v46  ;;  %9916 = vmatmul.mubr.msk.bf16.gmra.mrb[20].mxu0 %vm481_vm1, %v6902_v19  ;;  %v7190_v46 = vrot.slane %v8850_v55, 3  ;;  %v6914_v19 = vsel %vm6877_vm7, %v6911_v17, %v6913_v51  ;;  %v3595_v55 = vshrl.u32 %v10857_v26, 16 }
 0x240   : > { %9581 = vmatprep.mubr.msk.bf16.mxu1 %vm481_vm1, %v3060_v62  ;;  %9919 = vmatprep.mubr.msk.bf16.mxu0 %vm481_vm1, %v6904_v58  ;;  %v3555_v62 = vrot.slane %v3553_v13, 2  ;;  %v3547_v58 = vor.u32 %v3546_v22, %v3543_v59  ;;  %v7201_v13 = vrot.slane %v10859_v57, 3 }
 0x241   : > { %v7192_v10 = vsel %vm6877_vm7, %v7190_v46, %v7191_v33  ;;  %v3597_v38 = vrot.slane %v3595_v55, 1 }
 0x242   : > { %v3556_v36 = vor.u32 %v3555_v62, %v3552_v34  ;;  %v7202_v34 = vsel %vm6877_vm7, %v7199_v8, %v7201_v13 }
 0x244   : > { %v3557_v6 = vsel %vm3504_vm2, %v3547_v58, %v3556_v36 }
 0x247   : > { %9582 = vmatmul.mubr.msk.bf16.gmra.mrb[28].mxu1 %vm481_vm1, %v3062_v4  ;;  %9920 = vmatmul.mubr.msk.bf16.gmra.mrb[24].mxu0 %vm481_vm1, %v6906_v42  ;;  %v3548_v4 = vsel %vm3504_vm2, %v3538_v61, %v3547_v58  ;;  %v7194_v42 = vsel %vm6877_vm7, %v7191_v33, %v7193_v53  ;;  %v3604_v61 = vshrl.u32 %v10858_v18, 16  ;;  %v3600_v33 = vrot.slane %v3598_v49, 2  ;;  %v10864_v53 = vld [vmem:[%s10961_s14 + $0x58] sm:$0xff]   ;;  %v10870_v49 = vld [vmem:[%s11049_s21 + $0x90] sm:$0xff]  }
 0x248   : > { %9585 = vmatprep.mubr.msk.bf16.mxu1 %vm481_vm1, %v3064_v23  ;;  %9923 = vmatprep.mubr.msk.bf16.mxu0 %vm481_vm1, %v6908_v37  ;;  %v3577_v37 = vshrl.u32 %v10853_v9, 16  ;;  %v3661_v18 = vshll.u32 %v10870_v49, 16 }
 0x249   : > { %v3606_v22 = vrot.slane %v3604_v61, 1  ;;  %v10871_v61 = vld [vmem:[%s10961_s14 + $0x70] sm:$0xff]  }
 0x24a   : > { %v3579_v17 = vrot.slane %v3577_v37, 1 }
 0x24f   : > { %9586 = vmatmul.mubr.msk.bf16.gmra.mrb[32].mxu1 %vm481_vm1, %v3063_v63  ;;  %9924 = vmatmul.mubr.msk.bf16.gmra.mrb[28].mxu0 %vm481_vm1, %v6910_v21  ;;  %v3559_v63 = vshrl.u32 %v10849_v43, 16  ;;  %v7198_v21 = vsel %vm6877_vm7, %v7195_v30, %v7197_v54  ;;  %v10868_v54 = vld [vmem:[%s10961_s14 + $0x68] sm:$0xff]  }
 0x250   : > { %9591 = vmatprep.mubr.msk.bf16.mxu1 %vm481_vm1, %v3521_v50  ;;  %9927 = vmatprep.mubr.msk.bf16.mxu0 %vm481_vm1, %v6912_v52  ;;  %v3582_v50 = vrot.slane %v3580_v24, 2  ;;  %v10866_v24 = vld [vmem:[%s11049_s21 + $0x80] sm:$0xff]  }
 0x251   : > { %v3561_v23 = vrot.slane %v3559_v63, 1  ;;  %v3643_v32 = vshll.u32 %v10866_v24, 16 }
 0x252   : > { %v3583_v52 = vor.u32 %v3582_v50, %v3579_v17 }
 0x253   : > { %v3565_v29 = vor.u32 %v3564_v14, %v3561_v23 }
 0x254   : > { %v3584_v51 = vsel %vm3504_vm2, %v3574_v56, %v3583_v52  ;;  %v3593_v59 = vsel %vm3504_vm2, %v3583_v52, %v3592_v41 }
 0x255   : > { %v3566_v48 = vsel %vm3504_vm2, %v3556_v36, %v3565_v29  ;;  %v3575_v16 = vsel %vm3504_vm2, %v3565_v29, %v3574_v56  ;;  %v3622_v36 = vshrl.u32 %v10862_v44, 16  ;;  %v3640_v56 = vshrl.u32 %v10866_v24, 16  ;;  %v10875_v44 = vld [vmem:[%s11049_s21 + $0x98] ss:$0 sps:$4 sm:$0x11]  }
 0x257   : > { %9592 = vmatmul.mubr.msk.bf16.vlgmr.msra.gmra.mrb[0].mxu1 %vm481_vm1, %v3530_v27  ;;  %9928 = vmatmul.mubr.msk.bf16.gmra.mrb[32].mxu0 %vm481_vm1, %v6914_v19  ;;  %v10860_v27 = vld [vmem:[%s10961_s14 + $0x48] sm:$0xff]   ;;  %v3601_v19 = vor.u32 %v3600_v33, %v3597_v38  ;;  %v3624_v14 = vrot.slane %v3622_v36, 1  ;;  %v3642_v50 = vrot.slane %v3640_v56, 1  ;;  %v3667_v36 = vshll.u32 %v10875_v44, 16 }
 0x258   : > { %9595 = vmatprep.mubr.msk.bf16.mxu1 %vm481_vm1, %v3539_v7  ;;  %9933 = vmatprep.mubr.msk.bf16.mxu0 %vm481_vm1, %v7192_v10  ;;  %v7203_v46 = vrot.slane %v10860_v27, 3  ;;  %v3609_v7 = vrot.slane %v3607_v60, 2  ;;  %v10861_v10 = vld [vmem:[%s11049_s21 + $0x68] sm:$0xff]   ;;  %v7213_v60 = vrot.slane %v10871_v61, 3 }
 0x259   : > { %v3613_v58 = vshrl.u32 %v10861_v10, 16  ;;  %v3616_v43 = vshll.u32 %v10861_v10, 16  ;;  %v3602_v12 = vsel %vm3504_vm2, %v3592_v41, %v3601_v19  ;;  %v3658_v41 = vshrl.u32 %v10870_v49, 16 }
 0x25a   : > { %v7204_v62 = vsel %vm6877_vm7, %v7201_v13, %v7203_v46  ;;  %v3610_v63 = vor.u32 %v3609_v7, %v3606_v22  ;;  %v7206_v47 = vsel %vm6877_vm7, %v7203_v46, %v7205_v40  ;;  %v10872_v13 = vld [vmem:[%s10961_s14 + $0x78] sm:$0xff]  }
 0x25b   : > { %v3615_v28 = vrot.slane %v3613_v58, 1  ;;  %v3618_v30 = vrot.slane %v3616_v43, 2  ;;  %v3660_v33 = vrot.slane %v3658_v41, 1  ;;  %v10874_v43 = vld [vmem:[%s10961_s14 + $0x88] sm:$0xff]  }
 0x25c   : > { %v3611_v23 = vsel %vm3504_vm2, %v3601_v19, %v3610_v63  ;;  %v10873_v19 = vld [vmem:[%s10961_s14 + $0x80] sm:$0xff]  }
 0x25d   : > { %v7217_v10 = vrot.slane %v10873_v19, 3 }
 0x25f   : > { %9596 = vmatmul.mubr.msk.bf16.gmra.mrb[4].mxu1 %vm481_vm1, %v3548_v4  ;;  %9934 = vmatmul.mubr.msk.bf16.vlgmr.msra.gmra.mrb[0].mxu0 %vm481_vm1, %v7194_v42  ;;  %v7207_v4 = vrot.slane %v10864_v53, 3  ;;  %v3619_v42 = vor.u32 %v3618_v30, %v3615_v28  ;;  %v10876_v53 = vld [vmem:[%s10961_s14 + $0x90] sm:$0xff]   ;;  %v10877_v30 = vld [vmem:[%s10961_s14 + $0x98] sm:$0xff]  }
 0x260   : > { %9599 = vmatprep.mubr.msk.bf16.mxu1 %vm481_vm1, %v3557_v6  ;;  %9937 = vmatprep.mubr.msk.bf16.mxu0 %vm481_vm1, %v7196_v1  ;;  %v3627_v6 = vrot.slane %v3625_v2, 2  ;;  %v10865_v1 = vld [vmem:[%s11049_s21 + $0x78] sm:$0xff]  }
 0x261   : > { %v7208_v45 = vsel %vm6877_vm7, %v7205_v40, %v7207_v4  ;;  %v3631_v29 = vshrl.u32 %v10865_v1, 16  ;;  %v3634_v9 = vshll.u32 %v10865_v1, 16  ;;  %v3620_v20 = vsel %vm3504_vm2, %v3610_v63, %v3619_v42 }
 0x262   : > { %v3628_v37 = vor.u32 %v3627_v6, %v3624_v14  ;;  %v7210_v3 = vsel %vm6877_vm7, %v7207_v4, %v7209_v39  ;;  %v7219_v63 = vrot.slane %v10874_v43, 3  ;;  %v7221_v4 = vrot.slane %v10876_v53, 3 }
 0x263   : > { %v3633_v15 = vrot.slane %v3631_v29, 1  ;;  %v3636_v8 = vrot.slane %v3634_v9, 2 }
 0x264   : > { %v3629_v17 = vsel %vm3504_vm2, %v3619_v42, %v3628_v37  ;;  %v7220_v40 = vsel %vm6877_vm7, %v7217_v10, %v7219_v63  ;;  %v7222_v14 = vsel %vm6877_vm7, %v7219_v63, %v7221_v4  ;;  %v12600_v42 = vpop.permute.xlu1 %7545 }
 0x267   : > { %9600 = vmatmul.mubr.msk.bf16.gmra.mrb[8].mxu1 %vm481_vm1, %v3566_v48  ;;  %9938 = vmatmul.mubr.msk.bf16.gmra.mrb[4].mxu0 %vm481_vm1, %v7198_v21  ;;  %v7211_v48 = vrot.slane %v10868_v54, 3  ;;  %v3637_v21 = vor.u32 %v3636_v8, %v3633_v15 }
 0x268   : > { %9603 = vmatprep.mubr.msk.bf16.mxu1 %vm481_vm1, %v3575_v16  ;;  %9941 = vmatprep.mubr.msk.bf16.mxu0 %vm481_vm1, %v7200_v0  ;;  %v3645_v16 = vrot.slane %v3643_v32, 2  ;;  %v10869_v0 = vld [vmem:[%s11049_s21 + $0x88] sm:$0xff]   ;;  %s10600_s21 = smul.u32 172, %s13337_s25  ;;  %v12604_v29 = vpop.permute.xlu1 %7550 }
 0x269   : > { %v7212_v11 = vsel %vm6877_vm7, %v7209_v39, %v7211_v48  ;;  %v3649_v52 = vshrl.u32 %v10869_v0, 16  ;;  %v3652_v26 = vshll.u32 %v10869_v0, 16  ;;  %v3638_v57 = vsel %vm3504_vm2, %v3628_v37, %v3637_v21 }
 0x26a   : > { %v3646_v55 = vor.u32 %v3645_v16, %v3642_v50  ;;  %v7214_v22 = vsel %vm6877_vm7, %v7211_v48, %v7213_v60  ;;  %s12470_s26 = scalar_lea.vmem %s13218_s5, %s10600_s21 }
 0x26b   : > { %v3651_v27 = vrot.slane %v3649_v52, 1  ;;  %v3654_v46 = vrot.slane %v3652_v26, 2  ;;  %8023 = vst.msk [vmem:[%s12470_s26 + $0x18] sm:$0xf] %vm8016_vm8, %v10886_v35  ;;  %8017 = vst.msk [vmem:[%s12470_s26] sm:$0xf] %vm8016_vm8, %v10886_v35 }
 0x26c   : > { %v3647_v38 = vsel %vm3504_vm2, %v3637_v21, %v3646_v55  ;;  %8018 = vst.msk [vmem:[%s12470_s26 + $0x4] sm:$0xf] %vm8016_vm8, %v10886_v35  ;;  %8019 = vst.msk [vmem:[%s12470_s26 + $0x8] sm:$0xf] %vm8016_vm8, %v10886_v35  ;;  %v12608_v37 = vpop.permute.xlu1 %7560 }
 0x26d   : > { %8020 = vst.msk [vmem:[%s12470_s26 + $0xc] sm:$0xf] %vm8016_vm8, %v10886_v35  ;;  %8021 = vst.msk [vmem:[%s12470_s26 + $0x10] sm:$0xf] %vm8016_vm8, %v10886_v35 }
 0x26e   : > { %8022 = vst.msk [vmem:[%s12470_s26 + $0x14] sm:$0xf] %vm8016_vm8, %v10886_v35  ;;  %8024 = vst.msk [vmem:[%s12470_s26 + $0x1c] sm:$0xf] %vm8016_vm8, %v10886_v35 }
 0x26f   : > { %9604 = vmatmul.mubr.msk.bf16.gmra.mrb[12].mxu1 %vm481_vm1, %v3584_v51  ;;  %9942 = vmatmul.mubr.msk.bf16.gmra.mrb[8].mxu0 %vm481_vm1, %v7202_v34  ;;  %v7215_v51 = vrot.slane %v10872_v13, 3  ;;  %v3655_v34 = vor.u32 %v3654_v46, %v3651_v27  ;;  %8025 = vst.msk [vmem:[%s12470_s26 + $0x20] sm:$0xf] %vm8016_vm8, %v10886_v35  ;;  %8026 = vst.msk [vmem:[%s12470_s26 + $0x24] sm:$0xf] %vm8016_vm8, %v10886_v35 }
 0x270   : > { %9607 = vmatprep.mubr.msk.bf16.mxu1 %vm481_vm1, %v3593_v59  ;;  %9945 = vmatprep.mubr.msk.bf16.mxu0 %vm481_vm1, %v7204_v62  ;;  %v3663_v59 = vrot.slane %v3661_v18, 2  ;;  %8027 = vst.msk [vmem:[%s12470_s26 + $0x28] sm:$0xf] %vm8016_vm8, %v10886_v35  ;;  %8028 = vst.msk [vmem:[%s12470_s26 + $0x2c] sm:$0xf] %vm8016_vm8, %v10886_v35  ;;  %v12612_v56 = vpop.permute.xlu1 %7570 }
 0x271   : > { %v7216_v7 = vsel %vm6877_vm7, %v7213_v60, %v7215_v51  ;;  %v3656_v58 = vsel %vm3504_vm2, %v3646_v55, %v3655_v34  ;;  %v7218_v25 = vsel %vm6877_vm7, %v7215_v51, %v7217_v10  ;;  %8029 = vst.msk [vmem:[%s12470_s26 + $0x30] sm:$0xf] %vm8016_vm8, %v10886_v35  ;;  %8030 = vst.msk [vmem:[%s12470_s26 + $0x34] sm:$0xf] %vm8016_vm8, %v10886_v35 }
 0x272   : > { %v3664_v62 = vor.u32 %v3663_v59, %v3660_v33  ;;  %8031 = vst.msk [vmem:[%s12470_s26 + $0x38] sm:$0xf] %vm8016_vm8, %v10886_v35  ;;  %8032 = vst.msk [vmem:[%s12470_s26 + $0x3c] sm:$0xf] %vm8016_vm8, %v10886_v35 }
 0x273   : > { %8033 = vst.msk [vmem:[%s12470_s26 + $0x40] sm:$0xf] %vm8016_vm8, %v10886_v35  ;;  %8034 = vst.msk [vmem:[%s12470_s26 + $0x44] sm:$0xf] %vm8016_vm8, %v10886_v35 }
 0x274   : > { %v3665_v2 = vsel %vm3504_vm2, %v3655_v34, %v3664_v62  ;;  %8035 = vst.msk [vmem:[%s12470_s26 + $0x48] sm:$0xf] %vm8016_vm8, %v10886_v35  ;;  %8036 = vst.msk [vmem:[%s12470_s26 + $0x4c] sm:$0xf] %vm8016_vm8, %v10886_v35  ;;  %v12616_v31 = vpop.permute.xlu1 %7580 }
 0x275   : > { %8037 = vst.msk [vmem:[%s12470_s26 + $0x50] sm:$0xf] %vm8016_vm8, %v10886_v35  ;;  %8038 = vst.msk [vmem:[%s12470_s26 + $0x54] sm:$0xf] %vm8016_vm8, %v10886_v35 }
 0x276   : > { %8039 = vst.msk [vmem:[%s12470_s26 + $0x58] sm:$0xf] %vm8016_vm8, %v10886_v35  ;;  %8040 = vst.msk [vmem:[%s12470_s26 + $0x5c] sm:$0xf] %vm8016_vm8, %v10886_v35 }
 0x277   : > { %9608 = vmatmul.mubr.msk.bf16.gmra.mrb[16].mxu1 %vm481_vm1, %v3602_v12  ;;  %9946 = vmatmul.mubr.msk.bf16.gmra.mrb[12].mxu0 %vm481_vm1, %v7206_v47  ;;  %v3669_v12 = vrot.slane %v3667_v36, 2  ;;  %v7225_v47 = vrot.slane %v12141_v5, 3  ;;  %8041 = vst.msk [vmem:[%s12470_s26 + $0x60] sm:$0xf] %vm8016_vm8, %v10886_v35  ;;  %8042 = vst.msk [vmem:[%s12470_s26 + $0x64] sm:$0xf] %vm8016_vm8, %v10886_v35  ;;  %v12598_v5 = vpop.permute.xlu0 %7535 }
 0x278   : > { %9611 = vmatprep.mubr.msk.bf16.mxu1 %vm481_vm1, %v3611_v23  ;;  %9949 = vmatprep.mubr.msk.bf16.mxu0 %vm481_vm1, %v7208_v45  ;;  %v7223_v23 = vrot.slane %v10877_v30, 3  ;;  %8043 = vst.msk [vmem:[%s12470_s26 + $0x68] sm:$0xf] %vm8016_vm8, %v10886_v35  ;;  %8044 = vst.msk [vmem:[%s12470_s26 + $0x6c] sm:$0xf] %vm8016_vm8, %v10886_v35  ;;  %v12620_v15 = vpop.permute.xlu1 %7590 }
 0x279   : > { %v3670_v28 = vsel %vm3504_vm2, %v3664_v62, %v3669_v12  ;;  %8045 = vst.msk [vmem:[%s12470_s26 + $0x70] sm:$0xf] %vm8016_vm8, %v10886_v35  ;;  %8046 = vst.msk [vmem:[%s12470_s26 + $0x74] sm:$0xf] %vm8016_vm8, %v10886_v35 }
 0x27a   : > { %v7224_v6 = vsel %vm6877_vm7, %v7221_v4, %v7223_v23  ;;  %v7226_v45 = vsel %vm6877_vm7, %v7223_v23, %v7225_v47  ;;  %8047 = vst.msk [vmem:[%s12470_s26 + $0x78] sm:$0xf] %vm8016_vm8, %v10886_v35  ;;  %8048 = vst.msk [vmem:[%s12470_s26 + $0x7c] sm:$0xf] %vm8016_vm8, %v10886_v35 }
 0x27b   : > { %8049 = vst.msk [vmem:[%s12470_s26 + $0x80] sm:$0xf] %vm8016_vm8, %v10886_v35  ;;  %8050 = vst.msk [vmem:[%s12470_s26 + $0x84] sm:$0xf] %vm8016_vm8, %v10886_v35  ;;  %v12602_v1 = vpop.permute.xlu0 %7540 }
 0x27c   : > { %8051 = vst.msk [vmem:[%s12470_s26 + $0x88] sm:$0xf] %vm8016_vm8, %v10886_v35  ;;  %8052 = vst.msk [vmem:[%s12470_s26 + $0x8c] sm:$0xf] %vm8016_vm8, %v10886_v35  ;;  %v12624_v21 = vpop.permute.xlu1 %7600 }
 0x27d   : > { %8053 = vst.msk [vmem:[%s12470_s26 + $0x90] sm:$0xf] %vm8016_vm8, %v10886_v35  ;;  %8054 = vst.msk [vmem:[%s12470_s26 + $0x94] sm:$0xf] %vm8016_vm8, %v10886_v35 }
 0x27e   : > { %8055 = vst.msk [vmem:[%s12470_s26 + $0x98] sm:$0xf] %vm8016_vm8, %v10886_v35  ;;  %8056 = vst.msk [vmem:[%s12470_s26 + $0x9c] sm:$0xf] %vm8016_vm8, %v10886_v35 }
 0x27f   : > { %9612 = vmatmul.mubr.msk.bf16.gmra.mrb[20].mxu1 %vm481_vm1, %v3620_v20  ;;  %9950 = vmatmul.mubr.msk.bf16.gmra.mrb[16].mxu0 %vm481_vm1, %v7210_v3  ;;  %8057 = vst.msk [vmem:[%s12470_s26 + $0xa0] sm:$0xf] %vm8016_vm8, %v10886_v35  ;;  %8058 = vst.msk [vmem:[%s12470_s26 + $0xa4] sm:$0xf] %vm8016_vm8, %v10886_v35  ;;  %v12606_v9 = vpop.permute.xlu0 %7555 }
 0x280   : > { %9615 = vmatprep.mubr.msk.bf16.mxu1 %vm481_vm1, %v3629_v17  ;;  %9953 = vmatprep.mubr.msk.bf16.mxu0 %vm481_vm1, %v7212_v11  ;;  %13279 = vst [vmem:[#allocation3_spill] sm:$0xff] %v12620_v15  ;;  %13281 = vst [vmem:[#allocation5_spill] sm:$0xff] %v12624_v21  ;;  %v12644_v59 = vpop.permute.xlu1 %7610 }
 0x281   : > { %13283 = vst [vmem:[#allocation7_spill] sm:$0xff] %v12644_v59 }
 0x283   : > { %v12610_v24 = vpop.permute.xlu0 %7565 }
 0x287   : > { %9616 = vmatmul.mubr.msk.bf16.gmra.mrb[24].mxu1 %vm481_vm1, %v3638_v57  ;;  %9954 = vmatmul.mubr.msk.bf16.gmra.mrb[20].mxu0 %vm481_vm1, %v7214_v22  ;;  %v12614_v32 = vpop.permute.xlu0 %7575 }
 0x288   : > { %9619 = vmatprep.mubr.msk.bf16.mxu1 %vm481_vm1, %v3647_v38  ;;  %9957 = vmatprep.mubr.msk.bf16.mxu0 %vm481_vm1, %v7216_v7 }
 0x28b   : > { %v12618_v48 = vpop.permute.xlu0 %7585 }
 0x28c   : > { %13278 = vst [vmem:[#allocation2_spill] sm:$0xff] %v12618_v48 }
 0x28f   : > { %9620 = vmatmul.mubr.msk.bf16.gmra.mrb[28].mxu1 %vm481_vm1, %v3656_v58  ;;  %9958 = vmatmul.mubr.msk.bf16.gmra.mrb[24].mxu0 %vm481_vm1, %v7218_v25  ;;  %v12622_v50 = vpop.permute.xlu0 %7595 }
 0x290   : > { %9623 = vmatprep.mubr.msk.bf16.mxu1 %vm481_vm1, %v3665_v2  ;;  %9961 = vmatprep.mubr.msk.bf16.mxu0 %vm481_vm1, %v7220_v40  ;;  %13280 = vst [vmem:[#allocation4_spill] sm:$0xff] %v12622_v50 }
 0x293   : > { %v12632_v57 = vpop.permute.xlu0 %7605 }
 0x294   : > { %13282 = vst [vmem:[#allocation6_spill] sm:$0xff] %v12632_v57 }
 0x297   : > { %9624 = vmatmul.mubr.msk.bf16.gmra.mrb[32].mxu1 %vm481_vm1, %v3670_v28  ;;  %9962 = vmatmul.mubr.msk.bf16.gmra.mrb[28].mxu0 %vm481_vm1, %v7222_v14  ;;  %v12664_v40 = vpop.permute.xlu0 %7615 }
 0x298   : > { %9965 = vmatprep.mubr.msk.bf16.mxu0 %vm481_vm1, %v7224_v6  ;;  %13284 = vst [vmem:[#allocation8_spill] sm:$0xff] %v12664_v40  ;;  %v12674_v6 = vpop.permute.xlu1 %7620 }
 0x299   : > { %13285 = vst [vmem:[#allocation9_spill] sm:$0xff] %v12674_v6 }
 0x29f   : > { %9966 = vmatmul.mubr.msk.bf16.gmra.mrb[32].mxu0 %vm481_vm1, %v7226_v45 }
 0x32a   : > { %v9593_v35 = vpop.f32.mrb[0].mxu1 }
 0x32b   : > { %v3762_v39 = vpop.f32.mrb[1].mxu1 }
 0x32c   : > { %v9594_v20 = vpop.f32.mrb[2].mxu1 }
 0x32d   : > { %v3765_v54 = vpop.f32.mrb[3].mxu1 }
 0x332   : > { %v9597_v8 = vpop.f32.mrb[4].mxu1  ;;  %v9935_v3 = vpop.f32.mrb[0].mxu0 }
 0x333   : > { %v3778_v17 = vpop.f32.mrb[5].mxu1  ;;  %v9969_v0 = vadd.f32 %v9935_v3, %v9593_v35  ;;  %v7318_v52 = vpop.f32.mrb[1].mxu0 }
 0x334   : > { %v9598_v16 = vpop.f32.mrb[6].mxu1  ;;  %v9970_v26 = vadd.f32 %v7318_v52, %v3762_v39  ;;  %v9936_v55 = vpop.f32.mrb[2].mxu0 }
 0x335   : > { %v3781_v11 = vpop.f32.mrb[7].mxu1  ;;  %v12627_v49 = vmul.f32 %v9969_v0, %v12600_v42  ;;  %v9971_v41 = vadd.f32 %v9936_v55, %v9594_v20  ;;  %v7321_v18 = vpop.f32.mrb[3].mxu0 }
 0x336   : > { %v12630_v61 = vmul.f32 %v9970_v26, %v12598_v5  ;;  %v9972_v60 = vadd.f32 %v7321_v18, %v3765_v54 }
 0x337   : > { %v8909_v13 = vpack.c.bf16 %v12627_v49, %v12627_v49  ;;  %v12637_v51 = vmul.f32 %v9971_v41, %v12604_v29  ;;  %v7752_v36 = vsel %vm481_vm1, %v12627_v49, 0.0  ;;  %v12698_v41 = vpop.permute.xlu0 %7625 }
 0x338   : > { %v8907_v46 = vpack.c.bf16 %v12630_v61, %v12630_v61  ;;  %v12642_v38 = vmul.f32 %v9972_v60, %v12602_v1  ;;  %v7749_v34 = vsel %vm481_vm1, %v12630_v61, 0.0  ;;  %13286 = vst [vmem:[#allocation10_spill] sm:$0xff] %v12698_v41 }
 0x339   : > { %8211 = vst.msk [vmem:[%s12470_s26 + $0x18] sm:$0xf] %vm8016_vm8, %v8909_v13  ;;  %v8910_v22 = vpack.c.bf16 %v12637_v51, %v12637_v51  ;;  %v7754_v30 = vsel %vm481_vm1, %v12637_v51, 0.0 }
 0x33a   : > { %v9601_v27 = vpop.f32.mrb[8].mxu1  ;;  %8209 = vst.msk [vmem:[%s12470_s26 + $0x10] sm:$0xf] %vm8016_vm8, %v8907_v46  ;;  %v7750_v62 = vsel %vm481_vm1, %v12642_v38, 0.0  ;;  %v8908_v19 = vpack.c.bf16 %v12642_v38, %v12642_v38  ;;  %v9939_v10 = vpop.f32.mrb[4].mxu0 }
 0x33b   : > { %v3794_v33 = vpop.f32.mrb[9].mxu1  ;;  %8212 = vst.msk [vmem:[%s12470_s26 + $0x1c] sm:$0xf] %vm8016_vm8, %v8910_v22  ;;  %v7751_v43 = vadd.f32 %v7750_v62, %v7749_v34  ;;  %v9973_v63 = vadd.f32 %v9939_v10, %v9597_v8  ;;  %v7334_v44 = vpop.f32.mrb[5].mxu0 }
 0x33c   : > { %v9602_v7 = vpop.f32.mrb[10].mxu1  ;;  %8210 = vst.msk [vmem:[%s12470_s26 + $0x14] sm:$0xf] %vm8016_vm8, %v8908_v19  ;;  %v9974_v2 = vadd.f32 %v7334_v44, %v3778_v17  ;;  %v9940_v25 = vpop.f32.mrb[6].mxu0 }
 0x33d   : > { %v3797_v58 = vpop.f32.mrb[11].mxu1  ;;  %v7753_v12 = vadd.f32 %v7752_v36, %v7751_v43  ;;  %v12667_v53 = vmul.f32 %v9973_v63, %v12610_v24  ;;  %v9975_v4 = vadd.f32 %v9940_v25, %v9598_v16  ;;  %v7337_v28 = vpop.f32.mrb[7].mxu0 }
 0x33e   : > { %v12672_v23 = vmul.f32 %v9974_v2, %v12606_v9  ;;  %v9976_v14 = vadd.f32 %v7337_v28, %v3781_v11  ;;  %v12706_v62 = vpop.permute.xlu1 %7630 }
 0x33f   : > { %v8913_v47 = vpack.c.bf16 %v12667_v53, %v12667_v53  ;;  %v7755_v45 = vadd.f32 %v7754_v30, %v7753_v12  ;;  %v12679_v35 = vmul.f32 %v9975_v4, %v12612_v56  ;;  %v7760_v46 = vsel %vm481_vm1, %v12667_v53, 0.0  ;;  %13287 = vst [vmem:[#allocation11_spill] sm:$0xff] %v12706_v62 }
 0x340   : > { %v7756_v20 = vsel %vm481_vm1, %v12672_v23, 0.0  ;;  %v8911_v54 = vpack.c.bf16 %v12672_v23, %v12672_v23  ;;  %v12686_v8 = vmul.f32 %v9976_v14, %v12608_v37 }
 0x341   : > { %8215 = vst.msk [vmem:[%s12470_s26 + $0x28] sm:$0xf] %vm8016_vm8, %v8913_v47  ;;  %v7757_v16 = vadd.f32 %v7756_v20, %v7755_v45  ;;  %v8914_v3 = vpack.c.bf16 %v12679_v35, %v12679_v35 }
 0x342   : > { %v9605_v39 = vpop.f32.mrb[12].mxu1  ;;  %8213 = vst.msk [vmem:[%s12470_s26 + $0x20] sm:$0xf] %vm8016_vm8, %v8911_v54  ;;  %v7758_v0 = vsel %vm481_vm1, %v12686_v8, 0.0  ;;  %v8912_v52 = vpack.c.bf16 %v12686_v8, %v12686_v8  ;;  %v9943_v26 = vpop.f32.mrb[8].mxu0 }
 0x343   : > { %v3810_v17 = vpop.f32.mrb[13].mxu1  ;;  %8216 = vst.msk [vmem:[%s12470_s26 + $0x2c] sm:$0xf] %vm8016_vm8, %v8914_v3  ;;  %v7759_v18 = vadd.f32 %v7758_v0, %v7757_v16  ;;  %v9977_v60 = vadd.f32 %v9943_v26, %v9601_v27  ;;  %v7350_v13 = vpop.f32.mrb[9].mxu0  ;;  %v7762_v27 = vsel %vm481_vm1, %v12679_v35, 0.0 }
 0x344   : > { %v9606_v11 = vpop.f32.mrb[14].mxu1  ;;  %8214 = vst.msk [vmem:[%s12470_s26 + $0x24] sm:$0xf] %vm8016_vm8, %v8912_v52  ;;  %v9978_v22 = vadd.f32 %v7350_v13, %v3794_v33  ;;  %v9944_v34 = vpop.f32.mrb[10].mxu0 }
 0x345   : > { %v3813_v55 = vpop.f32.mrb[15].mxu1  ;;  %v7761_v19 = vadd.f32 %v7760_v46, %v7759_v18  ;;  %v12709_v10 = vmul.f32 %v9977_v60, %v12618_v48  ;;  %v9979_v43 = vadd.f32 %v9944_v34, %v9602_v7  ;;  %v7353_v63 = vpop.f32.mrb[11].mxu0 }
 0x346   : > { %v12714_v44 = vmul.f32 %v9978_v22, %v12614_v32  ;;  %v9980_v36 = vadd.f32 %v7353_v63, %v3797_v58  ;;  %v12728_v58 = vpop.permute.xlu0 %7635  ;;  %v12740_v0 = vpop.permute.xlu1 %7640 }
 0x347   : > { %v8917_v33 = vpack.c.bf16 %v12709_v10, %v12709_v10  ;;  %v7763_v2 = vadd.f32 %v7762_v27, %v7761_v19  ;;  %v12719_v25 = vmul.f32 %v9979_v43, %v12620_v15  ;;  %13288 = vst [vmem:[#allocation12_spill] sm:$0xff] %v12728_v58  ;;  %13289 = vst [vmem:[#allocation13_spill] sm:$0xff] %v12740_v0  ;;  %v7768_v60 = vsel %vm481_vm1, %v12709_v10, 0.0 }
 0x348   : > { %v7764_v7 = vsel %vm481_vm1, %v12714_v44, 0.0  ;;  %v8915_v4 = vpack.c.bf16 %v12714_v44, %v12714_v44  ;;  %v12726_v28 = vmul.f32 %v9980_v36, %v12616_v31 }
 0x349   : > { %8219 = vst.msk [vmem:[%s12470_s26 + $0x38] sm:$0xf] %vm8016_vm8, %v8917_v33  ;;  %v7765_v14 = vadd.f32 %v7764_v7, %v7763_v2  ;;  %v8918_v47 = vpack.c.bf16 %v12719_v25, %v12719_v25  ;;  %v7770_v63 = vsel %vm481_vm1, %v12719_v25, 0.0 }
 0x34a   : > { %v9609_v12 = vpop.f32.mrb[16].mxu1  ;;  %8217 = vst.msk [vmem:[%s12470_s26 + $0x30] sm:$0xf] %vm8016_vm8, %v8915_v4  ;;  %v7766_v20 = vsel %vm481_vm1, %v12726_v28, 0.0  ;;  %v8916_v54 = vpack.c.bf16 %v12726_v28, %v12726_v28  ;;  %v9947_v16 = vpop.f32.mrb[12].mxu0 }
 0x34b   : > { %v3826_v30 = vpop.f32.mrb[17].mxu1  ;;  %8220 = vst.msk [vmem:[%s12470_s26 + $0x3c] sm:$0xf] %vm8016_vm8, %v8918_v47  ;;  %v7767_v52 = vadd.f32 %v7766_v20, %v7765_v14  ;;  %v9981_v26 = vadd.f32 %v9947_v16, %v9605_v39  ;;  %v7366_v18 = vpop.f32.mrb[13].mxu0 }
 0x34c   : > { %v9610_v45 = vpop.f32.mrb[18].mxu1  ;;  %8218 = vst.msk [vmem:[%s12470_s26 + $0x34] sm:$0xf] %vm8016_vm8, %v8916_v54  ;;  %v9982_v13 = vadd.f32 %v7366_v18, %v3810_v17  ;;  %v9948_v46 = vpop.f32.mrb[14].mxu0 }
 0x34d   : > { %v3829_v3 = vpop.f32.mrb[19].mxu1  ;;  %v7769_v22 = vadd.f32 %v7768_v60, %v7767_v52  ;;  %v12749_v34 = vmul.f32 %v9981_v26, %v12632_v57  ;;  %v9983_v19 = vadd.f32 %v9948_v46, %v9606_v11  ;;  %v7369_v43 = vpop.f32.mrb[15].mxu0 }
 0x34e   : > { %v12754_v39 = vmul.f32 %v9982_v13, %v12622_v50  ;;  %v9984_v27 = vadd.f32 %v7369_v43, %v3813_v55  ;;  %v12756_v36 = vpop.permute.xlu0 %7645  ;;  %v12770_v47 = vpop.permute.xlu1 %7650 }
 0x34f   : > { %13290 = vst [vmem:[#allocation14_spill] sm:$0xff] %v12749_v34  ;;  %13291 = vst [vmem:[#allocation15_spill] sm:$0xff] %v12756_v36  ;;  %v8921_v17 = vpack.c.bf16 %v12749_v34, %v12749_v34  ;;  %v7771_v33 = vadd.f32 %v7770_v63, %v7769_v22  ;;  %v12761_v2 = vmul.f32 %v9983_v19, %v12644_v59  ;;  %v7776_v19 = vsel %vm481_vm1, %v12749_v34, 0.0 }
 0x350   : > { %v7772_v7 = vsel %vm481_vm1, %v12754_v39, 0.0  ;;  %v8919_v4 = vpack.c.bf16 %v12754_v39, %v12754_v39  ;;  %v12768_v14 = vmul.f32 %v9984_v27, %v12624_v21  ;;  %13293 = vst [vmem:[#allocation17_spill] sm:$0xff] %v12770_v47 }
 0x351   : > { %13292 = vst [vmem:[#allocation16_spill] sm:$0xff] %v12761_v2  ;;  %8223 = vst.msk [vmem:[%s12470_s26 + $0x48] sm:$0xf] %vm8016_vm8, %v8921_v17  ;;  %v7773_v20 = vadd.f32 %v7772_v7, %v7771_v33  ;;  %v8922_v54 = vpack.c.bf16 %v12761_v2, %v12761_v2 }
 0x352   : > { %v9613_v11 = vpop.f32.mrb[20].mxu1  ;;  %8221 = vst.msk [vmem:[%s12470_s26 + $0x40] sm:$0xf] %vm8016_vm8, %v8919_v4  ;;  %v7774_v52 = vsel %vm481_vm1, %v12768_v14, 0.0  ;;  %v8920_v26 = vpack.c.bf16 %v12768_v14, %v12768_v14  ;;  %v9951_v18 = vpop.f32.mrb[16].mxu0 }
 0x353   : > { %v3842_v55 = vpop.f32.mrb[21].mxu1  ;;  %8224 = vst.msk [vmem:[%s12470_s26 + $0x4c] sm:$0xf] %vm8016_vm8, %v8922_v54  ;;  %v7775_v13 = vadd.f32 %v7774_v52, %v7773_v20  ;;  %v9985_v46 = vadd.f32 %v9951_v18, %v9609_v12  ;;  %v7382_v22 = vpop.f32.mrb[17].mxu0  ;;  %v7778_v12 = vsel %vm481_vm1, %v12761_v2, 0.0 }
 0x354   : > { %v9614_v16 = vpop.f32.mrb[22].mxu1  ;;  %8222 = vst.msk [vmem:[%s12470_s26 + $0x44] sm:$0xf] %vm8016_vm8, %v8920_v26  ;;  %v9986_v43 = vadd.f32 %v7382_v22, %v3826_v30  ;;  %v9952_v63 = vpop.f32.mrb[18].mxu0 }
 0x355   : > { %v3845_v60 = vpop.f32.mrb[23].mxu1  ;;  %v12788_v27 = vpop.permute.xlu0 %7655  ;;  %v7777_v17 = vadd.f32 %v7776_v19, %v7775_v13  ;;  %v12791_v33 = vmul.f32 %v9985_v46, %v12698_v41  ;;  %v9987_v7 = vadd.f32 %v9952_v63, %v9610_v45 }
 0x356   : > { %13294 = vst [vmem:[#allocation18_spill] sm:$0xff] %v12788_v27  ;;  %v7385_v4 = vpop.f32.mrb[19].mxu0  ;;  %v12796_v20 = vmul.f32 %v9986_v43, %v12664_v40  ;;  %v12798_v52 = vpop.permute.xlu1 %7660 }
 0x357   : > { %v9988_v54 = vadd.f32 %v7385_v4, %v3829_v3  ;;  %13295 = vst [vmem:[#allocation19_spill] sm:$0xff] %v12798_v52  ;;  %v8925_v30 = vpack.c.bf16 %v12791_v33, %v12791_v33  ;;  %v7779_v26 = vadd.f32 %v7778_v12, %v7777_v17  ;;  %v12803_v18 = vmul.f32 %v9987_v7, %v12706_v62 }
 0x358   : > { %v7780_v13 = vsel %vm481_vm1, %v12796_v20, 0.0  ;;  %v8923_v46 = vpack.c.bf16 %v12796_v20, %v12796_v20  ;;  %v7784_v62 = vsel %vm481_vm1, %v12791_v33, 0.0 }
 0x359   : > { %v12810_v22 = vmul.f32 %v9988_v54, %v12674_v6  ;;  %8227 = vst.msk [vmem:[%s12470_s26 + $0x58] sm:$0xf] %vm8016_vm8, %v8925_v30  ;;  %v7781_v19 = vadd.f32 %v7780_v13, %v7779_v26  ;;  %v8926_v43 = vpack.c.bf16 %v12803_v18, %v12803_v18  ;;  %v12822_v54 = vpop.permute.xlu0 %7665 }
 0x35a   : > { %v9617_v45 = vpop.f32.mrb[24].mxu1  ;;  %8225 = vst.msk [vmem:[%s12470_s26 + $0x50] sm:$0xf] %vm8016_vm8, %v8923_v46  ;;  %v9955_v4 = vpop.f32.mrb[20].mxu0  ;;  %13296 = vst [vmem:[#allocation20_spill] sm:$0xff] %v12822_v54 }
 0x35b   : > { %v3858_v3 = vpop.f32.mrb[25].mxu1  ;;  %v7782_v17 = vsel %vm481_vm1, %v12810_v22, 0.0  ;;  %v8924_v7 = vpack.c.bf16 %v12810_v22, %v12810_v22  ;;  %8228 = vst.msk [vmem:[%s12470_s26 + $0x5c] sm:$0xf] %vm8016_vm8, %v8926_v43  ;;  %v9989_v26 = vadd.f32 %v9955_v4, %v9613_v11  ;;  %v7398_v13 = vpop.f32.mrb[21].mxu0  ;;  %v7786_v11 = vsel %vm481_vm1, %v12803_v18, 0.0 }
 0x35c   : > { %v9618_v63 = vpop.f32.mrb[26].mxu1  ;;  %v7783_v30 = vadd.f32 %v7782_v17, %v7781_v19  ;;  %v9990_v46 = vadd.f32 %v7398_v13, %v3842_v55  ;;  %v9956_v41 = vpop.f32.mrb[22].mxu0 }
 0x35d   : > { %v3861_v12 = vpop.f32.mrb[27].mxu1  ;;  %8226 = vst.msk [vmem:[%s12470_s26 + $0x54] sm:$0xf] %vm8016_vm8, %v8924_v7  ;;  %v12830_v6 = vpop.permute.xlu1 %7670  ;;  %v12833_v59 = vmul.f32 %v9989_v26, %v12756_v36  ;;  %v9991_v57 = vadd.f32 %v9956_v41, %v9614_v16 }
 0x35e   : > { %13297 = vst [vmem:[#allocation21_spill] sm:$0xff] %v12830_v6  ;;  %v7785_v40 = vadd.f32 %v7784_v62, %v7783_v30  ;;  %v7401_v21 = vpop.f32.mrb[23].mxu0  ;;  %v12838_v19 = vmul.f32 %v9990_v46, %v12728_v58 }
 0x35f   : > { %v9992_v43 = vadd.f32 %v7401_v21, %v3845_v60  ;;  %v8929_v55 = vpack.c.bf16 %v12833_v59, %v12833_v59  ;;  %v12843_v62 = vmul.f32 %v9991_v57, %v12770_v47  ;;  %v12852_v21 = vpop.permute.xlu0 %7675  ;;  %v7792_v47 = vsel %vm481_vm1, %v12833_v59, 0.0 }
 0x360   : > { %v7787_v17 = vadd.f32 %v7786_v11, %v7785_v40  ;;  %v7788_v41 = vsel %vm481_vm1, %v12838_v19, 0.0  ;;  %v8927_v16 = vpack.c.bf16 %v12838_v19, %v12838_v19 }
 0x361   : > { %v12850_v4 = vmul.f32 %v9992_v43, %v12740_v0  ;;  %8231 = vst.msk [vmem:[%s12470_s26 + $0x68] sm:$0xf] %vm8016_vm8, %v8929_v55  ;;  %v8930_v57 = vpack.c.bf16 %v12843_v62, %v12843_v62  ;;  %v12864_v43 = vpop.permute.xlu1 %7680 }
 0x362   : > { %v9621_v7 = vpop.f32.mrb[28].mxu1  ;;  %v7789_v40 = vadd.f32 %v7788_v41, %v7787_v17  ;;  %8229 = vst.msk [vmem:[%s12470_s26 + $0x60] sm:$0xf] %vm8016_vm8, %v8927_v16  ;;  %v9959_v46 = vpop.f32.mrb[24].mxu0 }
 0x363   : > { %v3874_v30 = vpop.f32.mrb[29].mxu1  ;;  %v7790_v26 = vsel %vm481_vm1, %v12850_v4, 0.0  ;;  %v8928_v13 = vpack.c.bf16 %v12850_v4, %v12850_v4  ;;  %8232 = vst.msk [vmem:[%s12470_s26 + $0x6c] sm:$0xf] %vm8016_vm8, %v8930_v57  ;;  %v9993_v17 = vadd.f32 %v9959_v46, %v9617_v45  ;;  %v7414_v41 = vpop.f32.mrb[25].mxu0  ;;  %v7794_v57 = vsel %vm481_vm1, %v12843_v62, 0.0 }
 0x364   : > { %v9622_v60 = vpop.f32.mrb[30].mxu1  ;;  %v7791_v55 = vadd.f32 %v7790_v26, %v7789_v40  ;;  %v9994_v16 = vadd.f32 %v7414_v41, %v3858_v3  ;;  %v9960_v36 = vpop.f32.mrb[26].mxu0 }
 0x365   : > { %v3877_v11 = vpop.f32.mrb[31].mxu1  ;;  %8230 = vst.msk [vmem:[%s12470_s26 + $0x64] sm:$0xf] %vm8016_vm8, %v8928_v13  ;;  %v12873_v58 = vmul.f32 %v9993_v17, %v12822_v54  ;;  %v9995_v2 = vadd.f32 %v9960_v36, %v9618_v63  ;;  %v7417_v50 = vpop.f32.mrb[27].mxu0 }
 0x366   : > { %v7793_v0 = vadd.f32 %v7792_v47, %v7791_v55  ;;  %v12878_v45 = vmul.f32 %v9994_v16, %v12788_v27  ;;  %v9996_v40 = vadd.f32 %v7417_v50, %v3861_v12  ;;  %v12885_v46 = vpop.permute.xlu0 %7685  ;;  %v12894_v12 = vpop.permute.xlu1 %7690 }
 0x367   : > { %v8933_v26 = vpack.c.bf16 %v12873_v58, %v12873_v58  ;;  %v12883_v47 = vmul.f32 %v9995_v2, %v12830_v6  ;;  %13298 = vst [vmem:[#allocation22_spill] sm:$0xff] %v12894_v12 }
 0x368   : > { %v7795_v3 = vadd.f32 %v7794_v57, %v7793_v0  ;;  %v7796_v36 = vsel %vm481_vm1, %v12878_v45, 0.0  ;;  %v8931_v63 = vpack.c.bf16 %v12878_v45, %v12878_v45  ;;  %v12892_v55 = vmul.f32 %v9996_v40, %v12798_v52 }
 0x369   : > { %8235 = vst.msk [vmem:[%s12470_s26 + $0x78] sm:$0xf] %vm8016_vm8, %v8933_v26  ;;  %v8934_v2 = vpack.c.bf16 %v12883_v47, %v12883_v47 }
 0x36a   : > { %v9625_v13 = vpop.f32.mrb[32].mxu1  ;;  %v7797_v0 = vadd.f32 %v7796_v36, %v7795_v3  ;;  %8233 = vst.msk [vmem:[%s12470_s26 + $0x70] sm:$0xf] %vm8016_vm8, %v8931_v63  ;;  %v7798_v41 = vsel %vm481_vm1, %v12892_v55, 0.0  ;;  %v8932_v16 = vpack.c.bf16 %v12892_v55, %v12892_v55  ;;  %v9963_v57 = vpop.f32.mrb[28].mxu0  ;;  %v7800_v3 = vsel %vm481_vm1, %v12873_v58, 0.0 }
 0x36b   : > { %v3890_v50 = vpop.f32.mrb[33].mxu1  ;;  %8236 = vst.msk [vmem:[%s12470_s26 + $0x7c] sm:$0xf] %vm8016_vm8, %v8934_v2  ;;  %v9997_v54 = vadd.f32 %v9963_v57, %v9621_v7  ;;  %v7430_v26 = vpop.f32.mrb[29].mxu0  ;;  %v7802_v7 = vsel %vm481_vm1, %v12883_v47, 0.0 }
 0x36c   : > { %v9626_v17 = vpop.f32.mrb[34].mxu1  ;;  %v7799_v6 = vadd.f32 %v7798_v41, %v7797_v0  ;;  %8234 = vst.msk [vmem:[%s12470_s26 + $0x74] sm:$0xf] %vm8016_vm8, %v8932_v16  ;;  %v9998_v36 = vadd.f32 %v7430_v26, %v3874_v30  ;;  %v9964_v63 = vpop.f32.mrb[30].mxu0 }
 0x36d   : > { %v3893_v40 = vpop.f32.mrb[35].mxu1  ;;  %v12913_v27 = vmul.f32 %v9997_v54, %v12885_v46  ;;  %v9999_v34 = vadd.f32 %v9964_v63, %v9622_v60  ;;  %v7433_v15 = vpop.f32.mrb[31].mxu0 }
 0x36e   : > { %v7801_v52 = vadd.f32 %v7800_v3, %v7799_v6  ;;  %v12915_v48 = vpop.permute.xlu0 %7695  ;;  %v12920_v0 = vmul.f32 %v9998_v36, %v12852_v21  ;;  %v10000_v2 = vadd.f32 %v7433_v15, %v3877_v11  ;;  %v12927_v60 = vpop.permute.xlu1 %7700 }
 0x36f   : > { %v8937_v30 = vpack.c.bf16 %v12913_v27, %v12913_v27  ;;  %v12925_v54 = vmul.f32 %v9999_v34, %v12894_v12 }
 0x370   : > { %v7803_v6 = vadd.f32 %v7802_v7, %v7801_v52  ;;  %v7804_v41 = vsel %vm481_vm1, %v12920_v0, 0.0  ;;  %v8935_v16 = vpack.c.bf16 %v12920_v0, %v12920_v0  ;;  %v12934_v57 = vmul.f32 %v10000_v2, %v12864_v43 }
 0x371   : > { %8239 = vst.msk [vmem:[%s12470_s26 + $0x88] sm:$0xf] %vm8016_vm8, %v8937_v30  ;;  %v8938_v52 = vpack.c.bf16 %v12925_v54, %v12925_v54  ;;  %v7808_v2 = vsel %vm481_vm1, %v12913_v27, 0.0 }
 0x372   : > { %v7805_v15 = vadd.f32 %v7804_v41, %v7803_v6  ;;  %8237 = vst.msk [vmem:[%s12470_s26 + $0x80] sm:$0xf] %vm8016_vm8, %v8935_v16  ;;  %v7806_v34 = vsel %vm481_vm1, %v12934_v57, 0.0  ;;  %v8936_v11 = vpack.c.bf16 %v12934_v57, %v12934_v57  ;;  %v9967_v26 = vpop.f32.mrb[32].mxu0  ;;  %v12948_v7 = vpop.permute.xlu0 %7705 }
 0x373   : > { %8240 = vst.msk [vmem:[%s12470_s26 + $0x8c] sm:$0xf] %vm8016_vm8, %v8938_v52  ;;  %v10001_v36 = vadd.f32 %v9967_v26, %v9625_v13  ;;  %v7446_v63 = vpop.f32.mrb[33].mxu0  ;;  %v7810_v13 = vsel %vm481_vm1, %v12925_v54, 0.0 }
 0x374   : > { %v7807_v3 = vadd.f32 %v7806_v34, %v7805_v15  ;;  %8238 = vst.msk [vmem:[%s12470_s26 + $0x84] sm:$0xf] %vm8016_vm8, %v8936_v11  ;;  %v10002_v30 = vadd.f32 %v7446_v63, %v3890_v50  ;;  %v9968_v6 = vpop.f32.mrb[34].mxu0  ;;  %v12957_v15 = vpop.permute.xlu1 %7710 }
 0x375   : > { %v12955_v16 = vmul.f32 %v10001_v36, %v12948_v7  ;;  %v10003_v12 = vadd.f32 %v9968_v6, %v9626_v17  ;;  %v7449_v52 = vpop.f32.mrb[35].mxu0 }
 0x376   : > { %v7809_v41 = vadd.f32 %v7808_v2, %v7807_v3  ;;  %v12962_v34 = vmul.f32 %v10002_v30, %v12915_v48  ;;  %v10004_v11 = vadd.f32 %v7449_v52, %v3893_v40 }
 0x377   : > { %v8941_v50 = vpack.c.bf16 %v12955_v16, %v12955_v16  ;;  %v7748_v3 = vmul.f32 %v10003_v12, %v12957_v15 }
 0x378   : > { %v7811_v26 = vadd.f32 %v7810_v13, %v7809_v41  ;;  %v7812_v17 = vsel %vm481_vm1, %v12962_v34, 0.0  ;;  %v8939_v36 = vpack.c.bf16 %v12962_v34, %v12962_v34  ;;  %v12972_v63 = vmul.f32 %v10004_v11, %v12927_v60  ;;  %v8062_v13 = vld [vmem:[%s12470_s26 + $0xa8] sm:$0x1] }
 0x379   : > { %8243 = vst.msk [vmem:[%s12470_s26 + $0x98] sm:$0xf] %vm8016_vm8, %v8941_v50  ;;  %v8942_v2 = vpack.c.bf16 %v7748_v3, %v7748_v3  ;;  %v7816_v41 = vsel %vm481_vm1, %v12955_v16, 0.0  ;;  %v7819_v11 = vsel %vm7818_vm10, %v7748_v3, 0.0 }
 0x37a   : > { %v7813_v40 = vadd.f32 %v7812_v17, %v7811_v26  ;;  %8241 = vst.msk [vmem:[%s12470_s26 + $0x90] sm:$0xf] %vm8016_vm8, %v8939_v36  ;;  %v7814_v12 = vsel %vm481_vm1, %v12972_v63, 0.0  ;;  %v8940_v30 = vpack.c.bf16 %v12972_v63, %v12972_v63  ;;  %v8063_v26 = vsel %vm8061_vm13, 0, %v8062_v13 }
 0x37b   : > { %8245 = vst.msk [vmem:[%s12470_s26 + $0x9c] sm:$0x7] %vm8244_vm9, %v8942_v2  ;;  %8064 = vst [vmem:[%s12470_s26 + $0xa8] sm:$0x1] %v8063_v26 }
 0x37c   : > { %v7815_v6 = vadd.f32 %v7814_v12, %v7813_v40  ;;  %8242 = vst.msk [vmem:[%s12470_s26 + $0x94] sm:$0xf] %vm8016_vm8, %v8940_v30 }
 0x37e   : > { %v7817_v52 = vadd.f32 %v7816_v41, %v7815_v6 }
 0x380   : > { %v7820_v50 = vadd.f32 %v7819_v11, %v7817_v52 }
 0x382   : > { %v7821_v17 = vrot.slane %v7820_v50, 4 }
 0x384   : > { %v7822_v36 = vadd.f32 %v7821_v17, %v7820_v50 }
 0x386   : > { %v7823_v40 = vrot.slane %v7822_v36, 2 }
 0x388   : > { %v7824_v2 = vadd.f32 %v7823_v40, %v7822_v36 }
 0x38a   : > { %v7825_v12 = vrot.slane %v7824_v2, 1 }
 0x38c   : > { %v7826_v30 = vadd.f32 %v7825_v12, %v7824_v2 }
 0x38e   : > { %7901 = vst.msk [vmem:[%s312_s29] sm:$0x1] %vm7900_vm11, %v7826_v30  ;;  %v12996_v6 = vmul.f32 0.00390625, %v7826_v30 }
 0x390   : > { %v7841_v41 = vsub.f32 %v12768_v14, %v12996_v6  ;;  %v7844_v52 = vsub.f32 %v12796_v20, %v12996_v6  ;;  %v7845_v13 = vsub.f32 %v12810_v22, %v12996_v6  ;;  %v7862_v26 = vsub.f32 %v12955_v16, %v12996_v6 }
 0x391   : > { %v7863_v17 = vsub.f32 %v7748_v3, %v12996_v6  ;;  %v7828_v36 = vsub.f32 %v12630_v61, %v12996_v6  ;;  %v7829_v40 = vsub.f32 %v12642_v38, %v12996_v6  ;;  %v7830_v2 = vsub.f32 %v12627_v49, %v12996_v6 }
 0x392   : > { %v13046_v50 = vmul.f32 %v7862_v26, %v12948_v7  ;;  %v7831_v30 = vsub.f32 %v12637_v51, %v12996_v6  ;;  %v7832_v61 = vsub.f32 %v12672_v23, %v12996_v6  ;;  %v7833_v49 = vsub.f32 %v12686_v8, %v12996_v6 }
 0x393   : > { %v7899_v12 = vmul.f32 %v7863_v17, %v12957_v15  ;;  %v7864_v16 = vmul.f32 %v7828_v36, %v12598_v5  ;;  %v7865_v3 = vmul.f32 %v7829_v40, %v12602_v1  ;;  %v7866_v38 = vmul.f32 %v7830_v2, %v12600_v42 }
 0x394   : > { %v7867_v7 = vmul.f32 %v7831_v30, %v12604_v29  ;;  %v7834_v15 = vsub.f32 %v12667_v53, %v12996_v6  ;;  %v7868_v51 = vmul.f32 %v7832_v61, %v12606_v9  ;;  %v7835_v1 = vsub.f32 %v12679_v35, %v12996_v6 }
 0x395   : > { %v7902_v26 = vmul.f32 %v7864_v16, %v7864_v16  ;;  %v7903_v11 = vmul.f32 %v7865_v3, %v7865_v3  ;;  %v7904_v5 = vmul.f32 %v7866_v38, %v7866_v38  ;;  %v7869_v23 = vmul.f32 %v7833_v49, %v12608_v37 }
 0x396   : > { %v7905_v17 = vmul.f32 %v7867_v7, %v7867_v7  ;;  %v7836_v29 = vsub.f32 %v12714_v44, %v12996_v6  ;;  %v7870_v40 = vmul.f32 %v7834_v15, %v12610_v24  ;;  %v7906_v53 = vmul.f32 %v7868_v51, %v7868_v51  ;;  %v13299_v51 = vld [vmem:[#allocation2_spill] sm:$0xff] }
 0x397   : > { %v7938_v42 = vsel %vm481_vm1, %v7902_v26, 0.0  ;;  %v7939_v8 = vsel %vm481_vm1, %v7903_v11, 0.0  ;;  %v7941_v9 = vsel %vm481_vm1, %v7904_v5, 0.0  ;;  %v7837_v35 = vsub.f32 %v12726_v28, %v12996_v6 }
 0x398   : > { %v7940_v36 = vadd.f32 %v7939_v8, %v7938_v42  ;;  %v7871_v37 = vmul.f32 %v7835_v1, %v12612_v56  ;;  %v7907_v30 = vmul.f32 %v7869_v23, %v7869_v23  ;;  %v7943_v16 = vsel %vm481_vm1, %v7905_v17, 0.0  ;;  %v13300_v17 = vld [vmem:[#allocation3_spill] sm:$0xff] }
 0x399   : > { %v7838_v11 = vsub.f32 %v12709_v10, %v12996_v6  ;;  %v7872_v44 = vmul.f32 %v7836_v29, %v12614_v32  ;;  %v7908_v61 = vmul.f32 %v7870_v40, %v7870_v40  ;;  %v7937_v24 = vmul.f32 %v7899_v12, %v7899_v12 }
 0x39a   : > { %v7942_v2 = vadd.f32 %v7941_v9, %v7940_v36  ;;  %v7945_v38 = vsel %vm481_vm1, %v7906_v53, 0.0  ;;  %v7839_v7 = vsub.f32 %v12719_v25, %v12996_v6  ;;  %v7873_v28 = vmul.f32 %v7837_v35, %v12616_v31  ;;  %v13301_v36 = vld [vmem:[#allocation14_spill] sm:$0xff]  ;;  %v13303_v35 = vld [vmem:[#allocation16_spill] sm:$0xff] }
 0x39b   : > { %v7909_v56 = vmul.f32 %v7871_v37, %v7871_v37  ;;  %v7947_v26 = vsel %vm481_vm1, %v7907_v30, 0.0  ;;  %v7840_v15 = vsub.f32 %v12754_v39, %v12996_v6  ;;  %v7874_v5 = vmul.f32 %v7838_v11, %v13299_v51  ;;  %v13302_v39 = vld [vmem:[#allocation4_spill] sm:$0xff]  ;;  %v13304_v30 = vld [vmem:[#allocation5_spill] sm:$0xff] }
 0x39c   : > { %v7944_v3 = vadd.f32 %v7943_v16, %v7942_v2  ;;  %v7910_v32 = vmul.f32 %v7872_v44, %v7872_v44  ;;  %v7949_v12 = vsel %vm481_vm1, %v7908_v61, 0.0  ;;  %v13088_v1 = vsel %vm7818_vm10, %v7937_v24, 0.0  ;;  %v13305_v61 = vld [vmem:[#allocation6_spill] sm:$0xff]  ;;  %v13307_v51 = vld [vmem:[#allocation8_spill] sm:$0xff] }
 0x39d   : > { %v7875_v25 = vmul.f32 %v7839_v7, %v13300_v17  ;;  %v7911_v42 = vmul.f32 %v7873_v28, %v7873_v28  ;;  %v7951_v31 = vsel %vm481_vm1, %v7909_v56, 0.0  ;;  %v7842_v29 = vsub.f32 %v13301_v36, %v12996_v6  ;;  %v13306_v28 = vld [vmem:[#allocation7_spill] sm:$0xff] }
 0x39e   : > { %v7946_v49 = vadd.f32 %v7945_v38, %v7944_v3  ;;  %v7876_v40 = vmul.f32 %v7840_v15, %v13302_v39  ;;  %v7912_v53 = vmul.f32 %v7874_v5, %v7874_v5  ;;  %v7953_v9 = vsel %vm481_vm1, %v7910_v32, 0.0  ;;  %v13311_v39 = vld [vmem:[#allocation11_spill] sm:$0xff] }
 0x39f   : > { %v7843_v37 = vsub.f32 %v13303_v35, %v12996_v6  ;;  %v7877_v16 = vmul.f32 %v7841_v41, %v13304_v30  ;;  %v7913_v11 = vmul.f32 %v7875_v25, %v7875_v25  ;;  %v7955_v3 = vsel %vm481_vm1, %v7911_v42, 0.0 }
 0x3a0   : > { %v7948_v10 = vadd.f32 %v7947_v26, %v7946_v49  ;;  %v7878_v24 = vmul.f32 %v7842_v29, %v13305_v61  ;;  %v7914_v38 = vmul.f32 %v7876_v40, %v7876_v40  ;;  %v7957_v49 = vsel %vm481_vm1, %v7912_v53, 0.0 }
 0x3a1   : > { %v7879_v56 = vmul.f32 %v7843_v37, %v13306_v28  ;;  %v7915_v26 = vmul.f32 %v7877_v16, %v7877_v16  ;;  %v7959_v15 = vsel %vm481_vm1, %v7913_v11, 0.0  ;;  %v7880_v14 = vmul.f32 %v7844_v52, %v13307_v51  ;;  %v13315_v11 = vld [vmem:[#allocation13_spill] sm:$0xff] }
 0x3a2   : > { %v7950_v23 = vadd.f32 %v7949_v12, %v7948_v10  ;;  %v7916_v41 = vmul.f32 %v7878_v24, %v7878_v24  ;;  %v7961_v5 = vsel %vm481_vm1, %v7914_v38, 0.0  ;;  %v13308_v12 = vld [vmem:[#allocation9_spill] sm:$0xff]  ;;  %v13312_v40 = vsub.f32 %v12803_v18, %v12996_v6  ;;  %v13317_v38 = vld [vmem:[#allocation15_spill] sm:$0xff] }
 0x3a3   : > { %v7917_v17 = vmul.f32 %v7879_v56, %v7879_v56  ;;  %v7963_v25 = vsel %vm481_vm1, %v7915_v26, 0.0  ;;  %v7918_v20 = vmul.f32 %v7880_v14, %v7880_v14  ;;  %v13314_v35 = vsub.f32 %v12838_v19, %v12996_v6  ;;  %v13319_v26 = vld [vmem:[#allocation17_spill] sm:$0xff] }
 0x3a4   : > { %v7952_v8 = vadd.f32 %v7951_v31, %v7950_v23  ;;  %v7881_v23 = vmul.f32 %v7845_v13, %v13308_v12  ;;  %v13309_v31 = vld [vmem:[#allocation10_spill] sm:$0xff]  ;;  %v7965_v52 = vsel %vm481_vm1, %v7916_v41, 0.0  ;;  %v7883_v53 = vmul.f32 %v13312_v40, %v13311_v39  ;;  %v13327_v40 = vld [vmem:[#allocation21_spill] sm:$0xff] }
 0x3a5   : > { %v7967_v13 = vsel %vm481_vm1, %v7917_v17, 0.0  ;;  %v7969_v30 = vsel %vm481_vm1, %v7918_v20, 0.0  ;;  %v13321_v41 = vld [vmem:[#allocation18_spill] sm:$0xff]  ;;  %v13323_v17 = vld [vmem:[#allocation19_spill] sm:$0xff]  ;;  %v13326_v20 = vsub.f32 %v12873_v58, %v12996_v6 }
 0x3a6   : > { %v7954_v2 = vadd.f32 %v7953_v9, %v7952_v8  ;;  %v13310_v8 = vsub.f32 %v12791_v33, %v12996_v6  ;;  %v7919_v22 = vmul.f32 %v7881_v23, %v7881_v23  ;;  %v7921_v18 = vmul.f32 %v7883_v53, %v7883_v53 }
 0x3a7   : > { %v13328_v53 = vsub.f32 %v12883_v47, %v12996_v6 }
 0x3a8   : > { %v7956_v44 = vadd.f32 %v7955_v3, %v7954_v2  ;;  %v7882_v36 = vmul.f32 %v13310_v8, %v13309_v31  ;;  %v13313_v2 = vld [vmem:[#allocation12_spill] sm:$0xff]  ;;  %v13316_v3 = vsub.f32 %v12850_v4, %v12996_v6  ;;  %v7971_v61 = vsel %vm481_vm1, %v7919_v22, 0.0 }
 0x3a9   : > { %v7884_v37 = vmul.f32 %v13314_v35, %v13313_v2  ;;  %v7975_v51 = vsel %vm481_vm1, %v7921_v18, 0.0  ;;  %v7891_v22 = vmul.f32 %v13328_v53, %v13327_v40  ;;  %v13329_v2 = vsub.f32 %v12920_v0, %v12996_v6 }
 0x3aa   : > { %v7958_v7 = vadd.f32 %v7957_v49, %v7956_v44  ;;  %v7920_v33 = vmul.f32 %v7882_v36, %v7882_v36  ;;  %v7885_v44 = vmul.f32 %v13316_v3, %v13315_v11  ;;  %v13318_v49 = vsub.f32 %v12833_v59, %v12996_v6  ;;  %v13325_v36 = vld [vmem:[#allocation20_spill] sm:$0xff] }
 0x3ab   : > { %v7922_v19 = vmul.f32 %v7884_v37, %v7884_v37  ;;  %v7892_v35 = vmul.f32 %v13329_v2, %v12852_v21  ;;  %v7929_v47 = vmul.f32 %v7891_v22, %v7891_v22 }
 0x3ac   : > { %v7960_v10 = vadd.f32 %v7959_v15, %v7958_v7  ;;  %v7886_v7 = vmul.f32 %v13318_v49, %v13317_v38  ;;  %v7973_v28 = vsel %vm481_vm1, %v7920_v33, 0.0  ;;  %v13320_v15 = vsub.f32 %v12843_v62, %v12996_v6 }
 0x3ad   : > { %v7923_v4 = vmul.f32 %v7885_v44, %v7885_v44  ;;  %v7977_v12 = vsel %vm481_vm1, %v7922_v19, 0.0  ;;  %v13331_v44 = vsub.f32 %v12913_v27, %v12996_v6  ;;  %v7930_v0 = vmul.f32 %v7892_v35, %v7892_v35 }
 0x3ae   : > { %v7962_v32 = vadd.f32 %v7961_v5, %v7960_v10  ;;  %v7887_v10 = vmul.f32 %v13320_v15, %v13319_v26  ;;  %v13322_v5 = vsub.f32 %v12878_v45, %v12996_v6  ;;  %v7924_v59 = vmul.f32 %v7886_v7, %v7886_v7 }
 0x3af   : > { %v7979_v31 = vsel %vm481_vm1, %v7923_v4, 0.0  ;;  %v7894_v18 = vmul.f32 %v13331_v44, %v12885_v46  ;;  %v13333_v38 = vsub.f32 %v12925_v54, %v12996_v6  ;;  %v13334_v19 = vsub.f32 %v12962_v34, %v12996_v6 }
 0x3b0   : > { %v7964_v42 = vadd.f32 %v7963_v25, %v7962_v32  ;;  %v7888_v32 = vmul.f32 %v13322_v5, %v13321_v41  ;;  %v13324_v25 = vsub.f32 %v12892_v55, %v12996_v6  ;;  %v7925_v62 = vmul.f32 %v7887_v10, %v7887_v10 }
 0x3b1   : > { %v7932_v27 = vmul.f32 %v7894_v18, %v7894_v18  ;;  %v7993_v46 = vsel %vm481_vm1, %v7930_v0, 0.0  ;;  %v13335_v26 = vsub.f32 %v12972_v63, %v12996_v6 }
 0x3b2   : > { %v7966_v29 = vadd.f32 %v7965_v52, %v7964_v42  ;;  %v7889_v42 = vmul.f32 %v13324_v25, %v13323_v17  ;;  %v7890_v52 = vmul.f32 %v13326_v20, %v13325_v36  ;;  %v7926_v45 = vmul.f32 %v7888_v32, %v7888_v32 }
 0x3b3   : > { %v7897_v15 = vmul.f32 %v13335_v26, %v12927_v60  ;;  %v7936_v32 = vmul.f32 %v13046_v50, %v13046_v50 }
 0x3b4   : > { %v7968_v9 = vadd.f32 %v7967_v13, %v7966_v29  ;;  %v7981_v29 = vsel %vm481_vm1, %v7924_v59, 0.0  ;;  %v7927_v55 = vmul.f32 %v7889_v42, %v7889_v42  ;;  %v7983_v13 = vsel %vm481_vm1, %v7925_v62, 0.0 }
 0x3b5   : > { %v7928_v58 = vmul.f32 %v7890_v52, %v7890_v52  ;;  %v7985_v37 = vsel %vm481_vm1, %v7926_v45, 0.0  ;;  %v7935_v5 = vmul.f32 %v7897_v15, %v7897_v15 }
 0x3b6   : > { %v7970_v16 = vadd.f32 %v7969_v30, %v7968_v9  ;;  %v13330_v30 = vsub.f32 %v12934_v57, %v12996_v6  ;;  %v7987_v11 = vsel %vm481_vm1, %v7927_v55, 0.0 }
 0x3b7   : > { %v7989_v21 = vsel %vm481_vm1, %v7928_v58, 0.0  ;;  %v8003_v60 = vsel %vm481_vm1, %v7935_v5, 0.0 }
 0x3b8   : > { %v7972_v24 = vadd.f32 %v7971_v61, %v7970_v16  ;;  %v7893_v16 = vmul.f32 %v13330_v30, %v12864_v43  ;;  %v7991_v43 = vsel %vm481_vm1, %v7929_v47, 0.0 }
 0x3ba   : > { %v7974_v56 = vadd.f32 %v7973_v28, %v7972_v24  ;;  %v13332_v24 = vld [vmem:[#allocation22_spill] sm:$0xff]  ;;  %v7931_v57 = vmul.f32 %v7893_v16, %v7893_v16  ;;  %v7896_v28 = vmul.f32 %v13334_v19, %v12915_v48 }
 0x3bb   : > { %v7895_v49 = vmul.f32 %v13333_v38, %v13332_v24 }
 0x3bc   : > { %v7976_v14 = vadd.f32 %v7975_v51, %v7974_v56  ;;  %v7995_v10 = vsel %vm481_vm1, %v7931_v57, 0.0  ;;  %v7934_v51 = vmul.f32 %v7896_v28, %v7896_v28 }
 0x3bd   : > { %v7933_v54 = vmul.f32 %v7895_v49, %v7895_v49 }
 0x3be   : > { %v7978_v23 = vadd.f32 %v7977_v12, %v7976_v14  ;;  %v7997_v14 = vsel %vm481_vm1, %v7932_v27, 0.0  ;;  %v8001_v59 = vsel %vm481_vm1, %v7934_v51, 0.0  ;;  %v8005_v12 = vsel %vm481_vm1, %v7936_v32, 0.0 }
 0x3bf   : > { %v7999_v48 = vsel %vm481_vm1, %v7933_v54, 0.0 }
 0x3c0   : > { %v7980_v8 = vadd.f32 %v7979_v31, %v7978_v23 }
 0x3c2   : > { %v7982_v39 = vadd.f32 %v7981_v29, %v7980_v8 }
 0x3c4   : > { %v7984_v9 = vadd.f32 %v7983_v13, %v7982_v39 }
 0x3c6   : > { %v7986_v33 = vadd.f32 %v7985_v37, %v7984_v9 }
 0x3c8   : > { %v7988_v3 = vadd.f32 %v7987_v11, %v7986_v33 }
 0x3ca   : > { %v7990_v61 = vadd.f32 %v7989_v21, %v7988_v3 }
 0x3cc   : > { %v7992_v7 = vadd.f32 %v7991_v43, %v7990_v61 }
 0x3ce   : > { %v7994_v56 = vadd.f32 %v7993_v46, %v7992_v7 }
 0x3d0   : > { %v7996_v4 = vadd.f32 %v7995_v10, %v7994_v56 }
 0x3d2   : > { %v7998_v41 = vadd.f32 %v7997_v14, %v7996_v4 }
 0x3d4   : > { %v8000_v34 = vadd.f32 %v7999_v48, %v7998_v41 }
 0x3d6   : > { %v8002_v63 = vadd.f32 %v8001_v59, %v8000_v34 }
 0x3d8   : > { %v8004_v6 = vadd.f32 %v8003_v60, %v8002_v63 }
 0x3da   : > { %v8006_v23 = vadd.f32 %v8005_v12, %v8004_v6 }
 0x3dc   : > { %v8008_v17 = vadd.f32 %v13088_v1, %v8006_v23 }
 0x3de   : > { %v8009_v25 = vrot.slane %v8008_v17, 4 }
 0x3e0   : > { %v8010_v42 = vadd.f32 %v8009_v25, %v8008_v17 }
 0x3e2   : > { %v8011_v62 = vrot.slane %v8010_v42, 2 }
 0x3e4   : > { %v8012_v31 = vadd.f32 %v8011_v62, %v8010_v42 }
 0x3e6   : > { %v8013_v8 = vrot.slane %v8012_v31, 1 }
 0x3e8   : > { %v8014_v50 = vadd.f32 %v8013_v8, %v8012_v31 }
 0x3ea   : > { %8015 = vst.msk [vmem:[%s315_s9] sm:$0x1] %vm7900_vm11, %v8014_v50 }
 0x3eb PF: > { %s18_s24 = sadd.s32 1, %s10884_s24  }
 0x3ec   : > { %p15_p4 = scmp.ge.s32.totalorder %s18_s24, 4  }
 0x3ee   :  { %17 = sbr.rel (!%p15_p4) target bundleno = 1 (0x1), region = 113 }

</bundles_post_ra>
